<compile_context>
chip_gen: v5e
topology: v5e:2x2
jax: 0.10.0
libtpu: 0.0.40
codegen_flags: <defaults>
</compile_context>

<pallas_src>
import math

import jax
import jax.numpy as jnp
from jax.experimental import pallas as pl
from jax.experimental.pallas import tpu as pltpu


def _round_up(x, m):
    return ((x + m - 1) // m) * m


def _pad_to(x, shape):
    return jnp.pad(x, [(0, s - d) for d, s in zip(x.shape, shape)])


def _sigmoid(x):
    # 0.5*(tanh(0.5x)+1) == sigmoid(x); tanh runs on the EUP slot.
    return 0.5 * (jnp.tanh(0.5 * x) + 1.0)


def make_decoder_kernel(num_layers, d_pad):
    f32 = jnp.float32
    bf16 = jnp.bfloat16

    def kernel(*refs):
        it = iter(refs)
        emb_ref = next(it)     # (1, Bt, Ee)  bf16, per-timestep block
        enc_ref = next(it)     # (Bt, Np, Ep) bf16, resident per batch chunk
        att1_ref = next(it)    # (Bt, Np, Ap) bf16, resident (hoisted enc proj)
        ebias_ref = next(it)   # (Bt, Np) f32: b_full_att on valid n, -1e30 on pad
        h0_ref = next(it)      # (Bt, Dp) f32 (precomputed init_hidden_state)
        c0_ref = next(it)      # (Bt, Dp) f32
        Wda_ref = next(it)     # (Dp, Ap) bf16
        bda_ref = next(it)     # (1, Ap)  f32
        wfa_ref = next(it)     # (1, Ap)  f32
        layers = [(next(it), next(it), next(it), next(it))]   # Wie, Wia, Whh, b
        for _ in range(1, num_layers):
            layers.append((next(it), next(it), next(it)))     # Wih, Whh, b
        h_out_ref = next(it)   # (1, Bt, Dp) out: top-layer h (fc done in wrapper)
        alpha_ref = next(it)   # (1, Bt, Np) out
        h_sc = next(it)        # (L, Bt, Dp) f32 scratch, persists across steps
        c_sc = next(it)        # (L, Bt, Dp) f32 scratch

        t = pl.program_id(1)
        Dp = d_pad

        @pl.when(t == 0)
        def _init():           # init_hidden_state (precomputed in the wrapper)
            for l in range(num_layers):
                h_sc[l] = h0_ref[...]
                c_sc[l] = c0_ref[...]

        # ---- read previous state once; hoist all state-only MXU work ahead of
        #      the VPU-heavy attention combine so MXU and VALU slots overlap ----
        h_prev = [h_sc[l] for l in range(num_layers)]
        c_prev = [c_sc[l] for l in range(num_layers)]
        h_top = h_prev[num_layers - 1]

        att2 = jnp.dot(h_top.astype(bf16), Wda_ref[...],
                       preferred_element_type=f32) + bda_ref[...]        # (Bt, Ap)

        Wie, Wia, Whh0, bg0 = layers[0]
        gates_state = []
        for l in range(num_layers):
            if l == 0:
                Whh, bg = Whh0, bg0
            else:
                _, Whh, bg = layers[l]
            gates_state.append(
                jnp.dot(h_prev[l].astype(bf16), Whh[...],
                        preferred_element_type=f32) + bg[...])           # (Bt, 4Dp)

        emb_t = emb_ref[0]                                               # (Bt, Ee) bf16
        g_emb = jnp.dot(emb_t, Wie[...], preferred_element_type=f32)     # (Bt, 4Dp)

        # ---- Bahdanau attention (encoder-side projection precomputed) ----
        # NOTE: at very large N / E_enc, chunk this combine over N; at these
        # shapes the full (Bt, Np, Ap) temporary is small.
        comb = jnp.maximum(att1_ref[...] + att2[:, None, :], 0.0)        # (Bt, Np, Ap) f32
        e = jnp.sum(comb * wfa_ref[...][None, :, :], axis=-1) + ebias_ref[...]
        e = e - jnp.max(e, axis=-1, keepdims=True)
        p = jnp.exp(e)
        alpha = p * pl.reciprocal(jnp.sum(p, axis=-1, keepdims=True), approx=True)
        # weighted encoder sum on the MXU (batched matvec) instead of VPU reduce
        awe = jnp.einsum('bqn,bne->bqe', alpha[:, None, :].astype(bf16),
                         enc_ref[...], preferred_element_type=f32)[:, 0, :]  # (Bt, Ep)

        # ---- LSTM stack, one timestep ----
        x = None
        for l in range(num_layers):
            if l == 0:
                gates = (g_emb
                         + jnp.dot(awe.astype(bf16), Wia[...],
                                   preferred_element_type=f32)
                         + gates_state[0])
            else:
                Wih = layers[l][0]
                gates = jnp.dot(x.astype(bf16), Wih[...],
                                preferred_element_type=f32) + gates_state[l]
            i_g = _sigmoid(gates[:, 0 * Dp:1 * Dp])
            f_g = _sigmoid(gates[:, 1 * Dp:2 * Dp])
            g_g = jnp.tanh(gates[:, 2 * Dp:3 * Dp])
            o_g = _sigmoid(gates[:, 3 * Dp:4 * Dp])
            c_new = f_g * c_prev[l] + i_g * g_g
            h_new = o_g * jnp.tanh(c_new)
            h_sc[l] = h_new
            c_sc[l] = c_new
            # TODO(synk): nn.LSTM inter-layer dropout and self.dropout are identity (eval).
            x = h_new

        h_out_ref[0] = x.astype(h_out_ref.dtype)
        alpha_ref[0] = alpha.astype(alpha_ref.dtype)

    return kernel


def decoder_forward(params, encoder_out, captions, caption_lengths=None):
    """Matches DecoderRNN.forward: returns (predictions, alphas)."""
    # TODO(synk): per-sample caption_lengths masking / pack_padded behaviour is
    # not applied; all samples are decoded for the full T-1 steps.
    del caption_lengths
    f32, bf16 = jnp.float32, jnp.bfloat16

    B, N, E_enc = encoder_out.shape
    T = captions.shape[1]
    dec_len = T - 1
    E_emb = params['embedding'].shape[1]
    D = params['W_init_h'].shape[0]
    A = params['W_enc_att'].shape[0]
    V = params['W_fc'].shape[0]
    L = params['num_layers']

    Bp = _round_up(B, 8)
    Np = _round_up(N, 128)
    Ep = _round_up(E_enc, 128)
    Ee = _round_up(E_emb, 128)
    Dp = _round_up(D, 128)
    Ap = _round_up(A, 128)

    # Batch tiling: leading "parallel" grid axis; on v7x the two TensorCores
    # each take half the batch (and only half of enc/att1 sits per-core).
    b_tile = Bp // 2 if (Bp % 16 == 0) else Bp
    n_bchunks = Bp // b_tile

    enc = encoder_out.astype(f32)

    # ---- time-invariant preamble hoisted out of the sequential decode ----
    att1 = jnp.einsum('bne,ae->bna', enc, params['W_enc_att']) + params['b_enc_att'][0]
    mean_enc = enc.mean(axis=1)
    h0 = mean_enc @ params['W_init_h'].T + params['b_init_h']
    c0 = mean_enc @ params['W_init_c'].T + params['b_init_c']
    emb = params['embedding'][captions[:, :dec_len]]           # (B, dec_len, E_emb)
    emb_tm = jnp.transpose(emb, (1, 0, 2))                     # (dec_len, B, E_emb)

    # ---- pad to lane/sublane friendly shapes (bf16 for the big residents) ----
    emb_p = _pad_to(emb_tm, (dec_len, Bp, Ee)).astype(bf16)
    enc_p = _pad_to(enc, (Bp, Np, Ep)).astype(bf16)
    att1_p = _pad_to(att1, (Bp, Np, Ap)).astype(bf16)
    ebias = jnp.full((Bp, Np), -1e30, f32).at[:, :N].set(params['b_full_att'][0, 0])
    h0_p = _pad_to(h0, (Bp, Dp)).astype(f32)
    c0_p = _pad_to(c0, (Bp, Dp)).astype(f32)

    def pack_lin(W, in_dim, in_pad):
        # (4D, in_dim) -> (in_pad, 4*Dp): transposed per-gate blocks, zero-padded.
        out = jnp.zeros((in_pad, 4 * Dp), f32)
        for g in range(4):
            out = out.at[:in_dim, g * Dp:g * Dp + D].set(W[g * D:(g + 1) * D, :].T)
        return out.astype(bf16)

    def pack_bias(b):
        out = jnp.zeros((1, 4 * Dp), f32)
        for g in range(4):
            out = out.at[:, g * Dp:g * Dp + D].set(b[:, g * D:(g + 1) * D])
        return out

    inputs, in_specs = [], []
    blk_bytes = [0]

    def add(arr, block_shape=None, index_map=None):
        if block_shape is None:
            # Time-invariant resident block (constant index -> fetched once).
            block_shape = arr.shape
            nd = arr.ndim
            index_map = lambda b, t, _n=nd: (0,) * _n
        inputs.append(arr)
        in_specs.append(pl.BlockSpec(block_shape, index_map))
        blk_bytes[0] += int(math.prod(block_shape)) * arr.dtype.itemsize

    add(emb_p, (1, b_tile, Ee), lambda b, t: (t, b, 0))         # per-step block
    add(enc_p, (b_tile, Np, Ep), lambda b, t: (b, 0, 0))
    add(att1_p, (b_tile, Np, Ap), lambda b, t: (b, 0, 0))
    add(ebias, (b_tile, Np), lambda b, t: (b, 0))
    add(h0_p, (b_tile, Dp), lambda b, t: (b, 0))
    add(c0_p, (b_tile, Dp), lambda b, t: (b, 0))
    add(_pad_to(params['W_dec_att'].T, (Dp, Ap)).astype(bf16))
    add(_pad_to(params['b_dec_att'], (1, Ap)).astype(f32))
    add(_pad_to(params['w_full_att'], (1, Ap)).astype(f32))

    W0 = params['W_ih'][0]
    add(pack_lin(W0[:, :E_emb], E_emb, Ee))     # embedding block of layer-0 W_ih
    add(pack_lin(W0[:, E_emb:], E_enc, Ep))     # attention (awe) block of layer-0 W_ih
    add(pack_lin(params['W_hh'][0], D, Dp))
    add(pack_bias(params['b_ih'][0] + params['b_hh'][0]))
    for l in range(1, L):
        add(pack_lin(params['W_ih'][l], D, Dp))
        add(pack_lin(params['W_hh'][l], D, Dp))
        add(pack_bias(params['b_ih'][l] + params['b_hh'][l]))

    out_shapes = (
        jax.ShapeDtypeStruct((dec_len, Bp, Dp), f32),   # top-layer h per step
        jax.ShapeDtypeStruct((dec_len, Bp, Np), f32),   # attention weights
    )
    out_specs = [
        pl.BlockSpec((1, b_tile, Dp), lambda b, t: (t, b, 0)),
        pl.BlockSpec((1, b_tile, Np), lambda b, t: (t, b, 0)),
    ]

    # ---- explicit VMEM budget: 2x (double-buffer) for in/out blocks + scratch ----
    out_blk_bytes = (b_tile * Dp + b_tile * Np) * 4
    scratch_bytes = 2 * L * b_tile * Dp * 4
    needed = 2 * (blk_bytes[0] + out_blk_bytes) + scratch_bytes
    try:
        vmem_cap = int(pltpu.get_tpu_info().vmem_capacity_bytes)
    except Exception:
        vmem_cap = 64 * 1024 * 1024
    vmem_limit = int(min(vmem_cap - 8 * 2**20,
                         max(32 * 2**20, needed + 8 * 2**20)))

    h_tm, alphas_tm = pl.pallas_call(
        make_decoder_kernel(L, Dp),
        out_shape=out_shapes,
        grid_spec=pltpu.PrefetchScalarGridSpec(
            num_scalar_prefetch=0,
            grid=(n_bchunks, dec_len),          # time innermost (recurrent carry)
            in_specs=in_specs,
            out_specs=out_specs,
            scratch_shapes=[
                pltpu.VMEM((L, b_tile, Dp), f32),   # h state (persists across steps)
                pltpu.VMEM((L, b_tile, Dp), f32),   # c state
            ],
        ),
        compiler_params=pltpu.CompilerParams(
            dimension_semantics=("parallel", "arbitrary"),
            vmem_limit_bytes=vmem_limit),
    )(*inputs)

    # fc hoisted out of the recurrent kernel: one full-utilization matmul.
    h_flat = h_tm[:, :B, :D].reshape(dec_len * B, D)
    preds = (h_flat @ params['W_fc'].T + params['b_fc']).reshape(dec_len, B, V)
    predictions = jnp.transpose(preds, (1, 0, 2))                 # (B, dec_len, V)
    alphas = jnp.transpose(alphas_tm[:, :B, :N], (1, 0, 2))       # (B, dec_len, N)
    return predictions, alphas


def init_params(key, vocab_size, embed_size, decoder_dim, encoder_dim,
                attention_dim, num_layers):
    scale = 0.1
    keys = iter(jax.random.split(key, 16 + 4 * num_layers))

    def nrm(shape):
        return jax.random.normal(next(keys), shape, dtype=jnp.float32) * scale

    p = {
        'num_layers': num_layers,
        'embedding':  nrm((vocab_size, embed_size)),
        'W_enc_att':  nrm((attention_dim, encoder_dim)),
        'b_enc_att':  nrm((1, attention_dim)),
        'W_dec_att':  nrm((attention_dim, decoder_dim)),
        'b_dec_att':  nrm((1, attention_dim)),
        'w_full_att': nrm((1, attention_dim)),
        'b_full_att': nrm((1, 1)),
        'W_fc':       nrm((vocab_size, decoder_dim)),
        'b_fc':       nrm((1, vocab_size)),
        'W_init_h':   nrm((decoder_dim, encoder_dim)),
        'b_init_h':   nrm((1, decoder_dim)),
        'W_init_c':   nrm((decoder_dim, encoder_dim)),
        'b_init_c':   nrm((1, decoder_dim)),
        'W_ih': [], 'W_hh': [], 'b_ih': [], 'b_hh': [],
    }
    for l in range(num_layers):
        in_size = (embed_size + encoder_dim) if l == 0 else decoder_dim
        p['W_ih'].append(nrm((4 * decoder_dim, in_size)))
        p['W_hh'].append(nrm((4 * decoder_dim, decoder_dim)))
        p['b_ih'].append(nrm((1, 4 * decoder_dim)))
        p['b_hh'].append(nrm((1, 4 * decoder_dim)))
    return p


def reference_forward(params, encoder_out, captions):
    """Pure-JAX f32 reference mirroring the PyTorch forward, for verification."""
    decode_len = captions.shape[1] - 1
    L = params['num_layers']
    D = params['W_init_h'].shape[0]
    emb = params['embedding'][captions]
    mean_enc = encoder_out.mean(axis=1)
    h = [mean_enc @ params['W_init_h'].T + params['b_init_h']] * L
    c = [mean_enc @ params['W_init_c'].T + params['b_init_c']] * L
    h, c = list(h), list(c)
    preds_all, alpha_all = [], []
    for t in range(decode_len):
        att1 = jnp.einsum('bne,ae->bna', encoder_out, params['W_enc_att']) \
            + params['b_enc_att'][0]
        att2 = h[-1] @ params['W_dec_att'].T + params['b_dec_att']
        comb = jnp.maximum(att1 + att2[:, None, :], 0.0)
        e = jnp.einsum('bna,oa->bno', comb, params['w_full_att'])[..., 0] \
            + params['b_full_att'][0, 0]
        alpha = jax.nn.softmax(e, axis=1)
        awe = (encoder_out * alpha[:, :, None]).sum(axis=1)
        x = jnp.concatenate([emb[:, t, :], awe], axis=1)
        for l in range(L):
            gates = (x @ params['W_ih'][l].T + params['b_ih'][l]
                     + h[l] @ params['W_hh'][l].T + params['b_hh'][l])
            i_g = jax.nn.sigmoid(gates[:, :D])
            f_g = jax.nn.sigmoid(gates[:, D:2 * D])
            g_g = jnp.tanh(gates[:, 2 * D:3 * D])
            o_g = jax.nn.sigmoid(gates[:, 3 * D:4 * D])
            c[l] = f_g * c[l] + i_g * g_g
            h[l] = o_g * jnp.tanh(c[l])
            x = h[l]
        preds_all.append(x @ params['W_fc'].T + params['b_fc'])
        alpha_all.append(alpha)
    return jnp.stack(preds_all, axis=1), jnp.stack(alpha_all, axis=1)


if __name__ == "__main__":
    # Small synthetic shapes consistent with the module's forward.
    # B=10 -> Bp=16 -> two batch chunks, exercising the parallel batch grid axis.
    B, N = 10, 16                        # batch, encoder (spatial) positions
    encoder_dim, decoder_dim, attention_dim = 32, 32, 32
    embed_size, vocab_size, num_layers = 16, 40, 2
    T = 8                                # caption length => decode_len = 7

    key = jax.random.PRNGKey(0)
    kp, ke, kc = jax.random.split(key, 3)
    params = init_params(kp, vocab_size, embed_size, decoder_dim,
                         encoder_dim, attention_dim, num_layers)
    encoder_out = jax.random.normal(ke, (B, N, encoder_dim), dtype=jnp.float32)
    captions = jax.random.randint(kc, (B, T), 0, vocab_size, dtype=jnp.int32)
    caption_lengths = jnp.full((B,), T, dtype=jnp.int32)

    preds, alphas = decoder_forward(params, encoder_out, captions, caption_lengths)
    jax.block_until_ready((preds, alphas))

    ref_p, ref_a = reference_forward(params, encoder_out, captions)
    assert preds.shape == (B, T - 1, vocab_size)
    assert alphas.shape == (B, T - 1, N)
    # bf16 weights/activations on the MXU (f32 accumulation + f32 state) =>
    # loosened tolerances vs the pure-f32 reference.
    assert jnp.allclose(preds, ref_p, atol=5e-2, rtol=5e-2), \
        float(jnp.max(jnp.abs(preds - ref_p)))
    assert jnp.allclose(alphas, ref_a, atol=1e-2, rtol=1e-2), \
        float(jnp.max(jnp.abs(alphas - ref_a)))
    print("KERNEL_OK")
</pallas_src>

<mosaic_0001>
module attributes {stable_mosaic.version = 11 : i64} {
  func.func @kernel(%arg0: i32, %arg1: i32, %arg2: memref<1x8x128xbf16, #tpu.memory_space<vmem>>, %arg3: memref<8x128x128xbf16, #tpu.memory_space<vmem>>, %arg4: memref<8x128x128xbf16, #tpu.memory_space<vmem>>, %arg5: memref<8x128xf32, #tpu.memory_space<vmem>>, %arg6: memref<8x128xf32, #tpu.memory_space<vmem>>, %arg7: memref<8x128xf32, #tpu.memory_space<vmem>>, %arg8: memref<128x128xbf16, #tpu.memory_space<vmem>>, %arg9: memref<1x128xf32, #tpu.memory_space<vmem>>, %arg10: memref<1x128xf32, #tpu.memory_space<vmem>>, %arg11: memref<128x512xbf16, #tpu.memory_space<vmem>>, %arg12: memref<128x512xbf16, #tpu.memory_space<vmem>>, %arg13: memref<128x512xbf16, #tpu.memory_space<vmem>>, %arg14: memref<1x512xf32, #tpu.memory_space<vmem>>, %arg15: memref<128x512xbf16, #tpu.memory_space<vmem>>, %arg16: memref<128x512xbf16, #tpu.memory_space<vmem>>, %arg17: memref<1x512xf32, #tpu.memory_space<vmem>>, %arg18: memref<1x8x128xf32, #tpu.memory_space<vmem>>, %arg19: memref<1x8x128xf32, #tpu.memory_space<vmem>>, %arg20: memref<2x8x128xf32, #tpu.memory_space<vmem>>, %arg21: memref<2x8x128xf32, #tpu.memory_space<vmem>>) attributes {dimension_semantics = [#tpu.dimension_semantics<parallel>, #tpu.dimension_semantics<arbitrary>], iteration_bounds = array<i64: 2, 7>, scalar_prefetch = 0 : i64, scratch_operands = 2 : i64, tpu.core_type = #tpu.core_type<tc>, window_params = [{transform_indices = @transform_0, window_bounds = array<i64: 1, 8, 128>}, {transform_indices = @transform_1, window_bounds = array<i64: 8, 128, 128>}, {transform_indices = @transform_2, window_bounds = array<i64: 8, 128, 128>}, {transform_indices = @transform_3, window_bounds = array<i64: 8, 128>}, {transform_indices = @transform_4, window_bounds = array<i64: 8, 128>}, {transform_indices = @transform_5, window_bounds = array<i64: 8, 128>}, {pipeline_mode = #tpu.pipeline_mode<synchronous>, transform_indices = @transform_6, window_bounds = array<i64: 128, 128>}, {pipeline_mode = #tpu.pipeline_mode<synchronous>, transform_indices = @transform_7, window_bounds = array<i64: 1, 128>}, {pipeline_mode = #tpu.pipeline_mode<synchronous>, transform_indices = @transform_8, window_bounds = array<i64: 1, 128>}, {pipeline_mode = #tpu.pipeline_mode<synchronous>, transform_indices = @transform_9, window_bounds = array<i64: 128, 512>}, {pipeline_mode = #tpu.pipeline_mode<synchronous>, transform_indices = @transform_10, window_bounds = array<i64: 128, 512>}, {pipeline_mode = #tpu.pipeline_mode<synchronous>, transform_indices = @transform_11, window_bounds = array<i64: 128, 512>}, {pipeline_mode = #tpu.pipeline_mode<synchronous>, transform_indices = @transform_12, window_bounds = array<i64: 1, 512>}, {pipeline_mode = #tpu.pipeline_mode<synchronous>, transform_indices = @transform_13, window_bounds = array<i64: 128, 512>}, {pipeline_mode = #tpu.pipeline_mode<synchronous>, transform_indices = @transform_14, window_bounds = array<i64: 128, 512>}, {pipeline_mode = #tpu.pipeline_mode<synchronous>, transform_indices = @transform_15, window_bounds = array<i64: 1, 512>}, {transform_indices = @transform_16, window_bounds = array<i64: 1, 8, 128>}, {transform_indices = @transform_17, window_bounds = array<i64: 1, 8, 128>}]} {
    %c0_i32 = arith.constant 0 : i32
    %0 = arith.cmpi eq, %arg1, %c0_i32 : i32
    %1 = arith.extui %0 : i1 to i32
    %c0_i32_0 = arith.constant 0 : i32
    %2 = arith.cmpi ne, %1, %c0_i32_0 : i32
    scf.if %2 {
      %c0_88 = arith.constant 0 : index
      %c0_89 = arith.constant 0 : index
      %151 = vector.load %arg6[%c0_88, %c0_89] : memref<8x128xf32, #tpu.memory_space<vmem>>, vector<8x128xf32>
      %c0_90 = arith.constant 0 : index
      %c0_91 = arith.constant 0 : index
      %c0_92 = arith.constant 0 : index
      %152 = vector.load %arg20[%c0_90, %c0_91, %c0_92] : memref<2x8x128xf32, #tpu.memory_space<vmem>>, vector<1x8x128xf32>
      %153 = vector.shape_cast %152 : vector<1x8x128xf32> to vector<8x128xf32>
      %154 = vector.shape_cast %151 : vector<8x128xf32> to vector<1x8x128xf32>
      tpu.vector_store %arg20[%c0_90, %c0_91, %c0_92], %154 {strides = array<i32>} : memref<2x8x128xf32, #tpu.memory_space<vmem>>, vector<1x8x128xf32>,
      %c0_93 = arith.constant 0 : index
      %c0_94 = arith.constant 0 : index
      %155 = vector.load %arg7[%c0_93, %c0_94] : memref<8x128xf32, #tpu.memory_space<vmem>>, vector<8x128xf32>
      %c0_95 = arith.constant 0 : index
      %c0_96 = arith.constant 0 : index
      %c0_97 = arith.constant 0 : index
      %156 = vector.load %arg21[%c0_95, %c0_96, %c0_97] : memref<2x8x128xf32, #tpu.memory_space<vmem>>, vector<1x8x128xf32>
      %157 = vector.shape_cast %156 : vector<1x8x128xf32> to vector<8x128xf32>
      %158 = vector.shape_cast %155 : vector<8x128xf32> to vector<1x8x128xf32>
      tpu.vector_store %arg21[%c0_95, %c0_96, %c0_97], %158 {strides = array<i32>} : memref<2x8x128xf32, #tpu.memory_space<vmem>>, vector<1x8x128xf32>,
      %c0_98 = arith.constant 0 : index
      %c0_99 = arith.constant 0 : index
      %159 = vector.load %arg6[%c0_98, %c0_99] : memref<8x128xf32, #tpu.memory_space<vmem>>, vector<8x128xf32>
      %c1_100 = arith.constant 1 : index
      %c0_101 = arith.constant 0 : index
      %c0_102 = arith.constant 0 : index
      %160 = vector.load %arg20[%c1_100, %c0_101, %c0_102] : memref<2x8x128xf32, #tpu.memory_space<vmem>>, vector<1x8x128xf32>
      %161 = vector.shape_cast %160 : vector<1x8x128xf32> to vector<8x128xf32>
      %162 = vector.shape_cast %159 : vector<8x128xf32> to vector<1x8x128xf32>
      tpu.vector_store %arg20[%c1_100, %c0_101, %c0_102], %162 {strides = array<i32>} : memref<2x8x128xf32, #tpu.memory_space<vmem>>, vector<1x8x128xf32>,
      %c0_103 = arith.constant 0 : index
      %c0_104 = arith.constant 0 : index
      %163 = vector.load %arg7[%c0_103, %c0_104] : memref<8x128xf32, #tpu.memory_space<vmem>>, vector<8x128xf32>
      %c1_105 = arith.constant 1 : index
      %c0_106 = arith.constant 0 : index
      %c0_107 = arith.constant 0 : index
      %164 = vector.load %arg21[%c1_105, %c0_106, %c0_107] : memref<2x8x128xf32, #tpu.memory_space<vmem>>, vector<1x8x128xf32>
      %165 = vector.shape_cast %164 : vector<1x8x128xf32> to vector<8x128xf32>
      %166 = vector.shape_cast %163 : vector<8x128xf32> to vector<1x8x128xf32>
      tpu.vector_store %arg21[%c1_105, %c0_106, %c0_107], %166 {strides = array<i32>} : memref<2x8x128xf32, #tpu.memory_space<vmem>>, vector<1x8x128xf32>,
    } else {
    }
    %c0 = arith.constant 0 : index
    %c0_1 = arith.constant 0 : index
    %c0_2 = arith.constant 0 : index
    %3 = vector.load %arg20[%c0, %c0_1, %c0_2] : memref<2x8x128xf32, #tpu.memory_space<vmem>>, vector<1x8x128xf32>
    %4 = vector.shape_cast %3 : vector<1x8x128xf32> to vector<8x128xf32>
    %c1 = arith.constant 1 : index
    %c0_3 = arith.constant 0 : index
    %c0_4 = arith.constant 0 : index
    %5 = vector.load %arg20[%c1, %c0_3, %c0_4] : memref<2x8x128xf32, #tpu.memory_space<vmem>>, vector<1x8x128xf32>
    %6 = vector.shape_cast %5 : vector<1x8x128xf32> to vector<8x128xf32>
    %c0_5 = arith.constant 0 : index
    %c0_6 = arith.constant 0 : index
    %c0_7 = arith.constant 0 : index
    %7 = vector.load %arg21[%c0_5, %c0_6, %c0_7] : memref<2x8x128xf32, #tpu.memory_space<vmem>>, vector<1x8x128xf32>
    %8 = vector.shape_cast %7 : vector<1x8x128xf32> to vector<8x128xf32>
    %c1_8 = arith.constant 1 : index
    %c0_9 = arith.constant 0 : index
    %c0_10 = arith.constant 0 : index
    %9 = vector.load %arg21[%c1_8, %c0_9, %c0_10] : memref<2x8x128xf32, #tpu.memory_space<vmem>>, vector<1x8x128xf32>
    %10 = vector.shape_cast %9 : vector<1x8x128xf32> to vector<8x128xf32>
    %11 = arith.truncf %6 : vector<8x128xf32> to vector<8x128xbf16>
    %c0_11 = arith.constant 0 : index
    %c0_12 = arith.constant 0 : index
    %12 = vector.load %arg8[%c0_11, %c0_12] : memref<128x128xbf16, #tpu.memory_space<vmem>>, vector<128x128xbf16>
    %cst = arith.constant dense<0.000000e+00> : vector<8x128xf32>
    %13 = tpu.matmul %11, %12, %cst {dimension_numbers = #tpu.dot_dimension_numbers<[1], [0], [0], [1], [0, 0, 1, 1], [], []>} : vector<8x128xbf16>, vector<128x128xbf16>, vector<8x128xf32> -> vector<8x128xf32>
    %c0_13 = arith.constant 0 : index
    %c0_14 = arith.constant 0 : index
    %14 = vector.load %arg9[%c0_13, %c0_14] : memref<1x128xf32, #tpu.memory_space<vmem>>, vector<1x128xf32>
    %15 = vector.broadcast %14 : vector<1x128xf32> to vector<8x128xf32>
    %16 = arith.addf %13, %15 : vector<8x128xf32>
    %17 = arith.truncf %4 : vector<8x128xf32> to vector<8x128xbf16>
    %c0_15 = arith.constant 0 : index
    %c0_16 = arith.constant 0 : index
    %18 = vector.load %arg13[%c0_15, %c0_16] : memref<128x512xbf16, #tpu.memory_space<vmem>>, vector<128x512xbf16>
    %cst_17 = arith.constant dense<0.000000e+00> : vector<8x512xf32>
    %19 = tpu.matmul %17, %18, %cst_17 {dimension_numbers = #tpu.dot_dimension_numbers<[1], [0], [0], [1], [0, 0, 1, 1], [], []>} : vector<8x128xbf16>, vector<128x512xbf16>, vector<8x512xf32> -> vector<8x512xf32>
    %c0_18 = arith.constant 0 : index
    %c0_19 = arith.constant 0 : index
    %20 = vector.load %arg14[%c0_18, %c0_19] : memref<1x512xf32, #tpu.memory_space<vmem>>, vector<1x512xf32>
    %21 = vector.broadcast %20 : vector<1x512xf32> to vector<8x512xf32>
    %22 = arith.addf %19, %21 : vector<8x512xf32>
    %23 = arith.truncf %6 : vector<8x128xf32> to vector<8x128xbf16>
    %c0_20 = arith.constant 0 : index
    %c0_21 = arith.constant 0 : index
    %24 = vector.load %arg16[%c0_20, %c0_21] : memref<128x512xbf16, #tpu.memory_space<vmem>>, vector<128x512xbf16>
    %cst_22 = arith.constant dense<0.000000e+00> : vector<8x512xf32>
    %25 = tpu.matmul %23, %24, %cst_22 {dimension_numbers = #tpu.dot_dimension_numbers<[1], [0], [0], [1], [0, 0, 1, 1], [], []>} : vector<8x128xbf16>, vector<128x512xbf16>, vector<8x512xf32> -> vector<8x512xf32>
    %c0_23 = arith.constant 0 : index
    %c0_24 = arith.constant 0 : index
    %26 = vector.load %arg17[%c0_23, %c0_24] : memref<1x512xf32, #tpu.memory_space<vmem>>, vector<1x512xf32>
    %27 = vector.broadcast %26 : vector<1x512xf32> to vector<8x512xf32>
    %28 = arith.addf %25, %27 : vector<8x512xf32>
    %c0_25 = arith.constant 0 : index
    %c0_26 = arith.constant 0 : index
    %c0_27 = arith.constant 0 : index
    %29 = vector.load %arg2[%c0_25, %c0_26, %c0_27] : memref<1x8x128xbf16, #tpu.memory_space<vmem>>, vector<1x8x128xbf16>
    %30 = vector.shape_cast %29 : vector<1x8x128xbf16> to vector<8x128xbf16>
    %c0_28 = arith.constant 0 : index
    %c0_29 = arith.constant 0 : index
    %31 = vector.load %arg11[%c0_28, %c0_29] : memref<128x512xbf16, #tpu.memory_space<vmem>>, vector<128x512xbf16>
    %cst_30 = arith.constant dense<0.000000e+00> : vector<8x512xf32>
    %32 = tpu.matmul %30, %31, %cst_30 {dimension_numbers = #tpu.dot_dimension_numbers<[1], [0], [0], [1], [0, 0, 1, 1], [], []>} : vector<8x128xbf16>, vector<128x512xbf16>, vector<8x512xf32> -> vector<8x512xf32>
    %c0_31 = arith.constant 0 : index
    %c0_32 = arith.constant 0 : index
    %c0_33 = arith.constant 0 : index
    %33 = vector.load %arg4[%c0_31, %c0_32, %c0_33] : memref<8x128x128xbf16, #tpu.memory_space<vmem>>, vector<8x128x128xbf16>
    %34 = vector.shape_cast %16 : vector<8x128xf32> to vector<8x1x128xf32>
    %35 = arith.extf %33 : vector<8x128x128xbf16> to vector<8x128x128xf32>
    %36 = vector.broadcast %34 : vector<8x1x128xf32> to vector<8x128x128xf32>
    %37 = arith.addf %35, %36 : vector<8x128x128xf32>
    %cst_34 = arith.constant 0.000000e+00 : f32
    %38 = vector.broadcast %cst_34 : f32 to vector<8x128x128xf32>
    %39 = arith.maximumf %37, %38 : vector<8x128x128xf32>
    %c0_35 = arith.constant 0 : index
    %c0_36 = arith.constant 0 : index
    %40 = vector.load %arg10[%c0_35, %c0_36] : memref<1x128xf32, #tpu.memory_space<vmem>>, vector<1x128xf32>
    %41 = vector.shape_cast %40 : vector<1x128xf32> to vector<1x1x128xf32>
    %42 = vector.broadcast %41 : vector<1x1x128xf32> to vector<8x128x128xf32>
    %43 = arith.mulf %39, %42 : vector<8x128x128xf32>
    %cst_37 = arith.constant dense<0.000000e+00> : vector<8x128xf32>
    %44 = vector.multi_reduction <add>, %43, %cst_37 [2] : vector<8x128x128xf32> to vector<8x128xf32>
    %c0_38 = arith.constant 0 : index
    %c0_39 = arith.constant 0 : index
    %45 = vector.load %arg5[%c0_38, %c0_39] : memref<8x128xf32, #tpu.memory_space<vmem>>, vector<8x128xf32>
    %46 = arith.addf %44, %45 : vector<8x128xf32>
    %cst_40 = arith.constant dense<0xFF800000> : vector<8xf32>
    %47 = vector.multi_reduction <maximumf>, %46, %cst_40 [1] : vector<8x128xf32> to vector<8xf32>
    %48 = vector.shape_cast %47 : vector<8xf32> to vector<8x1xf32>
    %49 = vector.broadcast %48 : vector<8x1xf32> to vector<8x128xf32>
    %50 = arith.subf %46, %49 : vector<8x128xf32>
    %51 = math.exp %50 : vector<8x128xf32>
    %cst_41 = arith.constant dense<0.000000e+00> : vector<8xf32>
    %52 = vector.multi_reduction <add>, %51, %cst_41 [1] : vector<8x128xf32> to vector<8xf32>
    %53 = vector.shape_cast %52 : vector<8xf32> to vector<8x1xf32>
    %54 = tpu.reciprocal %53 {approx = true} : vector<8x1xf32> -> vector<8x1xf32>
    %55 = vector.broadcast %54 : vector<8x1xf32> to vector<8x128xf32>
    %56 = arith.mulf %51, %55 : vector<8x128xf32>
    %57 = vector.shape_cast %56 : vector<8x128xf32> to vector<8x1x128xf32>
    %58 = arith.truncf %57 : vector<8x1x128xf32> to vector<8x1x128xbf16>
    %c0_42 = arith.constant 0 : index
    %c0_43 = arith.constant 0 : index
    %c0_44 = arith.constant 0 : index
    %59 = vector.load %arg3[%c0_42, %c0_43, %c0_44] : memref<8x128x128xbf16, #tpu.memory_space<vmem>>, vector<8x128x128xbf16>
    "tpu.trace_start"() <{level = 10 : i32, message = "bqn,bne->bqe"}> : () -> ()
    %cst_45 = arith.constant dense<0.000000e+00> : vector<8x1x128xf32>
    %60 = tpu.matmul %58, %59, %cst_45 {dimension_numbers = #tpu.dot_dimension_numbers<[2], [1], [1], [2], [0, 0, 0, 1, 1, 2], [0], [0]>} : vector<8x1x128xbf16>, vector<8x128x128xbf16>, vector<8x1x128xf32> -> vector<8x1x128xf32>
    "tpu.trace_stop"() : () -> ()
    %61 = vector.shape_cast %60 : vector<8x1x128xf32> to vector<8x128xf32>
    %62 = arith.truncf %61 : vector<8x128xf32> to vector<8x128xbf16>
    %c0_46 = arith.constant 0 : index
    %c0_47 = arith.constant 0 : index
    %63 = vector.load %arg12[%c0_46, %c0_47] : memref<128x512xbf16, #tpu.memory_space<vmem>>, vector<128x512xbf16>
    %cst_48 = arith.constant dense<0.000000e+00> : vector<8x512xf32>
    %64 = tpu.matmul %62, %63, %cst_48 {dimension_numbers = #tpu.dot_dimension_numbers<[1], [0], [0], [1], [0, 0, 1, 1], [], []>} : vector<8x128xbf16>, vector<128x512xbf16>, vector<8x512xf32> -> vector<8x512xf32>
    %65 = arith.addf %32, %64 : vector<8x512xf32>
    %66 = arith.addf %65, %22 : vector<8x512xf32>
    %67 = vector.extract_strided_slice %66 {offsets = [0, 0], sizes = [8, 128], strides = [1, 1]} : vector<8x512xf32> to vector<8x128xf32>
    %cst_49 = arith.constant 5.000000e-01 : f32
    %68 = vector.broadcast %cst_49 : f32 to vector<8x128xf32>
    %69 = arith.mulf %68, %67 : vector<8x128xf32>
    %70 = math.tanh %69 : vector<8x128xf32>
    %cst_50 = arith.constant 1.000000e+00 : f32
    %71 = vector.broadcast %cst_50 : f32 to vector<8x128xf32>
    %72 = arith.addf %70, %71 : vector<8x128xf32>
    %cst_51 = arith.constant 5.000000e-01 : f32
    %73 = vector.broadcast %cst_51 : f32 to vector<8x128xf32>
    %74 = arith.mulf %73, %72 : vector<8x128xf32>
    %75 = vector.extract_strided_slice %66 {offsets = [0, 128], sizes = [8, 128], strides = [1, 1]} : vector<8x512xf32> to vector<8x128xf32>
    %cst_52 = arith.constant 5.000000e-01 : f32
    %76 = vector.broadcast %cst_52 : f32 to vector<8x128xf32>
    %77 = arith.mulf %76, %75 : vector<8x128xf32>
    %78 = math.tanh %77 : vector<8x128xf32>
    %cst_53 = arith.constant 1.000000e+00 : f32
    %79 = vector.broadcast %cst_53 : f32 to vector<8x128xf32>
    %80 = arith.addf %78, %79 : vector<8x128xf32>
    %cst_54 = arith.constant 5.000000e-01 : f32
    %81 = vector.broadcast %cst_54 : f32 to vector<8x128xf32>
    %82 = arith.mulf %81, %80 : vector<8x128xf32>
    %83 = vector.extract_strided_slice %66 {offsets = [0, 256], sizes = [8, 128], strides = [1, 1]} : vector<8x512xf32> to vector<8x128xf32>
    %84 = math.tanh %83 : vector<8x128xf32>
    %85 = vector.extract_strided_slice %66 {offsets = [0, 384], sizes = [8, 128], strides = [1, 1]} : vector<8x512xf32> to vector<8x128xf32>
    %cst_55 = arith.constant 5.000000e-01 : f32
    %86 = vector.broadcast %cst_55 : f32 to vector<8x128xf32>
    %87 = arith.mulf %86, %85 : vector<8x128xf32>
    %88 = math.tanh %87 : vector<8x128xf32>
    %cst_56 = arith.constant 1.000000e+00 : f32
    %89 = vector.broadcast %cst_56 : f32 to vector<8x128xf32>
    %90 = arith.addf %88, %89 : vector<8x128xf32>
    %cst_57 = arith.constant 5.000000e-01 : f32
    %91 = vector.broadcast %cst_57 : f32 to vector<8x128xf32>
    %92 = arith.mulf %91, %90 : vector<8x128xf32>
    %93 = arith.mulf %82, %8 : vector<8x128xf32>
    %94 = arith.mulf %74, %84 : vector<8x128xf32>
    %95 = arith.addf %93, %94 : vector<8x128xf32>
    %96 = math.tanh %95 : vector<8x128xf32>
    %97 = arith.mulf %92, %96 : vector<8x128xf32>
    %c0_58 = arith.constant 0 : index
    %c0_59 = arith.constant 0 : index
    %c0_60 = arith.constant 0 : index
    %98 = vector.load %arg20[%c0_58, %c0_59, %c0_60] : memref<2x8x128xf32, #tpu.memory_space<vmem>>, vector<1x8x128xf32>
    %99 = vector.shape_cast %98 : vector<1x8x128xf32> to vector<8x128xf32>
    %100 = vector.shape_cast %97 : vector<8x128xf32> to vector<1x8x128xf32>
    tpu.vector_store %arg20[%c0_58, %c0_59, %c0_60], %100 {strides = array<i32>} : memref<2x8x128xf32, #tpu.memory_space<vmem>>, vector<1x8x128xf32>,
    %c0_61 = arith.constant 0 : index
    %c0_62 = arith.constant 0 : index
    %c0_63 = arith.constant 0 : index
    %101 = vector.load %arg21[%c0_61, %c0_62, %c0_63] : memref<2x8x128xf32, #tpu.memory_space<vmem>>, vector<1x8x128xf32>
    %102 = vector.shape_cast %101 : vector<1x8x128xf32> to vector<8x128xf32>
    %103 = vector.shape_cast %95 : vector<8x128xf32> to vector<1x8x128xf32>
    tpu.vector_store %arg21[%c0_61, %c0_62, %c0_63], %103 {strides = array<i32>} : memref<2x8x128xf32, #tpu.memory_space<vmem>>, vector<1x8x128xf32>,
    %104 = arith.truncf %97 : vector<8x128xf32> to vector<8x128xbf16>
    %c0_64 = arith.constant 0 : index
    %c0_65 = arith.constant 0 : index
    %105 = vector.load %arg15[%c0_64, %c0_65] : memref<128x512xbf16, #tpu.memory_space<vmem>>, vector<128x512xbf16>
    %cst_66 = arith.constant dense<0.000000e+00> : vector<8x512xf32>
    %106 = tpu.matmul %104, %105, %cst_66 {dimension_numbers = #tpu.dot_dimension_numbers<[1], [0], [0], [1], [0, 0, 1, 1], [], []>} : vector<8x128xbf16>, vector<128x512xbf16>, vector<8x512xf32> -> vector<8x512xf32>
    %107 = arith.addf %106, %28 : vector<8x512xf32>
    %108 = vector.extract_strided_slice %107 {offsets = [0, 0], sizes = [8, 128], strides = [1, 1]} : vector<8x512xf32> to vector<8x128xf32>
    %cst_67 = arith.constant 5.000000e-01 : f32
    %109 = vector.broadcast %cst_67 : f32 to vector<8x128xf32>
    %110 = arith.mulf %109, %108 : vector<8x128xf32>
    %111 = math.tanh %110 : vector<8x128xf32>
    %cst_68 = arith.constant 1.000000e+00 : f32
    %112 = vector.broadcast %cst_68 : f32 to vector<8x128xf32>
    %113 = arith.addf %111, %112 : vector<8x128xf32>
    %cst_69 = arith.constant 5.000000e-01 : f32
    %114 = vector.broadcast %cst_69 : f32 to vector<8x128xf32>
    %115 = arith.mulf %114, %113 : vector<8x128xf32>
    %116 = vector.extract_strided_slice %107 {offsets = [0, 128], sizes = [8, 128], strides = [1, 1]} : vector<8x512xf32> to vector<8x128xf32>
    %cst_70 = arith.constant 5.000000e-01 : f32
    %117 = vector.broadcast %cst_70 : f32 to vector<8x128xf32>
    %118 = arith.mulf %117, %116 : vector<8x128xf32>
    %119 = math.tanh %118 : vector<8x128xf32>
    %cst_71 = arith.constant 1.000000e+00 : f32
    %120 = vector.broadcast %cst_71 : f32 to vector<8x128xf32>
    %121 = arith.addf %119, %120 : vector<8x128xf32>
    %cst_72 = arith.constant 5.000000e-01 : f32
    %122 = vector.broadcast %cst_72 : f32 to vector<8x128xf32>
    %123 = arith.mulf %122, %121 : vector<8x128xf32>
    %124 = vector.extract_strided_slice %107 {offsets = [0, 256], sizes = [8, 128], strides = [1, 1]} : vector<8x512xf32> to vector<8x128xf32>
    %125 = math.tanh %124 : vector<8x128xf32>
    %126 = vector.extract_strided_slice %107 {offsets = [0, 384], sizes = [8, 128], strides = [1, 1]} : vector<8x512xf32> to vector<8x128xf32>
    %cst_73 = arith.constant 5.000000e-01 : f32
    %127 = vector.broadcast %cst_73 : f32 to vector<8x128xf32>
    %128 = arith.mulf %127, %126 : vector<8x128xf32>
    %129 = math.tanh %128 : vector<8x128xf32>
    %cst_74 = arith.constant 1.000000e+00 : f32
    %130 = vector.broadcast %cst_74 : f32 to vector<8x128xf32>
    %131 = arith.addf %129, %130 : vector<8x128xf32>
    %cst_75 = arith.constant 5.000000e-01 : f32
    %132 = vector.broadcast %cst_75 : f32 to vector<8x128xf32>
    %133 = arith.mulf %132, %131 : vector<8x128xf32>
    %134 = arith.mulf %123, %10 : vector<8x128xf32>
    %135 = arith.mulf %115, %125 : vector<8x128xf32>
    %136 = arith.addf %134, %135 : vector<8x128xf32>
    %137 = math.tanh %136 : vector<8x128xf32>
    %138 = arith.mulf %133, %137 : vector<8x128xf32>
    %c1_76 = arith.constant 1 : index
    %c0_77 = arith.constant 0 : index
    %c0_78 = arith.constant 0 : index
    %139 = vector.load %arg20[%c1_76, %c0_77, %c0_78] : memref<2x8x128xf32, #tpu.memory_space<vmem>>, vector<1x8x128xf32>
    %140 = vector.shape_cast %139 : vector<1x8x128xf32> to vector<8x128xf32>
    %141 = vector.shape_cast %138 : vector<8x128xf32> to vector<1x8x128xf32>
    tpu.vector_store %arg20[%c1_76, %c0_77, %c0_78], %141 {strides = array<i32>} : memref<2x8x128xf32, #tpu.memory_space<vmem>>, vector<1x8x128xf32>,
    %c1_79 = arith.constant 1 : index
    %c0_80 = arith.constant 0 : index
    %c0_81 = arith.constant 0 : index
    %142 = vector.load %arg21[%c1_79, %c0_80, %c0_81] : memref<2x8x128xf32, #tpu.memory_space<vmem>>, vector<1x8x128xf32>
    %143 = vector.shape_cast %142 : vector<1x8x128xf32> to vector<8x128xf32>
    %144 = vector.shape_cast %136 : vector<8x128xf32> to vector<1x8x128xf32>
    tpu.vector_store %arg21[%c1_79, %c0_80, %c0_81], %144 {strides = array<i32>} : memref<2x8x128xf32, #tpu.memory_space<vmem>>, vector<1x8x128xf32>,
    %c0_82 = arith.constant 0 : index
    %c0_83 = arith.constant 0 : index
    %c0_84 = arith.constant 0 : index
    %145 = vector.load %arg18[%c0_82, %c0_83, %c0_84] : memref<1x8x128xf32, #tpu.memory_space<vmem>>, vector<1x8x128xf32>
    %146 = vector.shape_cast %145 : vector<1x8x128xf32> to vector<8x128xf32>
    %147 = vector.shape_cast %138 : vector<8x128xf32> to vector<1x8x128xf32>
    tpu.vector_store %arg18[%c0_82, %c0_83, %c0_84], %147 {strides = array<i32>} : memref<1x8x128xf32, #tpu.memory_space<vmem>>, vector<1x8x128xf32>,
    %c0_85 = arith.constant 0 : index
    %c0_86 = arith.constant 0 : index
    %c0_87 = arith.constant 0 : index
    %148 = vector.load %arg19[%c0_85, %c0_86, %c0_87] : memref<1x8x128xf32, #tpu.memory_space<vmem>>, vector<1x8x128xf32>
    %149 = vector.shape_cast %148 : vector<1x8x128xf32> to vector<8x128xf32>
    %150 = vector.shape_cast %56 : vector<8x128xf32> to vector<1x8x128xf32>
    tpu.vector_store %arg19[%c0_85, %c0_86, %c0_87], %150 {strides = array<i32>} : memref<1x8x128xf32, #tpu.memory_space<vmem>>, vector<1x8x128xf32>,
    return
  }
  func.func @transform_0(%arg0: i32, %arg1: i32) -> (i32, i32, i32) {
    %c0_i32 = arith.constant 0 : i32
    %c0_i32_0 = arith.constant 0 : i32
    return %arg1, %arg0, %c0_i32 : i32, i32, i32
  }
  func.func @transform_1(%arg0: i32, %arg1: i32) -> (i32, i32, i32) {
    %c0_i32 = arith.constant 0 : i32
    %c0_i32_0 = arith.constant 0 : i32
    %c0_i32_1 = arith.constant 0 : i32
    return %arg0, %c0_i32, %c0_i32_0 : i32, i32, i32
  }
  func.func @transform_2(%arg0: i32, %arg1: i32) -> (i32, i32, i32) {
    %c0_i32 = arith.constant 0 : i32
    %c0_i32_0 = arith.constant 0 : i32
    %c0_i32_1 = arith.constant 0 : i32
    return %arg0, %c0_i32, %c0_i32_0 : i32, i32, i32
  }
  func.func @transform_3(%arg0: i32, %arg1: i32) -> (i32, i32) {
    %c0_i32 = arith.constant 0 : i32
    %c0_i32_0 = arith.constant 0 : i32
    return %arg0, %c0_i32 : i32, i32
  }
  func.func @transform_4(%arg0: i32, %arg1: i32) -> (i32, i32) {
    %c0_i32 = arith.constant 0 : i32
    %c0_i32_0 = arith.constant 0 : i32
    return %arg0, %c0_i32 : i32, i32
  }
  func.func @transform_5(%arg0: i32, %arg1: i32) -> (i32, i32) {
    %c0_i32 = arith.constant 0 : i32
    %c0_i32_0 = arith.constant 0 : i32
    return %arg0, %c0_i32 : i32, i32
  }
  func.func @transform_6(%arg0: i32, %arg1: i32) -> (i32, i32) {
    %c0_i32 = arith.constant 0 : i32
    %c0_i32_0 = arith.constant 0 : i32
    %c0_i32_1 = arith.constant 0 : i32
    return %c0_i32, %c0_i32_0 : i32, i32
  }
  func.func @transform_7(%arg0: i32, %arg1: i32) -> (i32, i32) {
    %c0_i32 = arith.constant 0 : i32
    %c0_i32_0 = arith.constant 0 : i32
    %c0_i32_1 = arith.constant 0 : i32
    return %c0_i32, %c0_i32_0 : i32, i32
  }
  func.func @transform_8(%arg0: i32, %arg1: i32) -> (i32, i32) {
    %c0_i32 = arith.constant 0 : i32
    %c0_i32_0 = arith.constant 0 : i32
    %c0_i32_1 = arith.constant 0 : i32
    return %c0_i32, %c0_i32_0 : i32, i32
  }
  func.func @transform_9(%arg0: i32, %arg1: i32) -> (i32, i32) {
    %c0_i32 = arith.constant 0 : i32
    %c0_i32_0 = arith.constant 0 : i32
    %c0_i32_1 = arith.constant 0 : i32
    return %c0_i32, %c0_i32_0 : i32, i32
  }
  func.func @transform_10(%arg0: i32, %arg1: i32) -> (i32, i32) {
    %c0_i32 = arith.constant 0 : i32
    %c0_i32_0 = arith.constant 0 : i32
    %c0_i32_1 = arith.constant 0 : i32
    return %c0_i32, %c0_i32_0 : i32, i32
  }
  func.func @transform_11(%arg0: i32, %arg1: i32) -> (i32, i32) {
    %c0_i32 = arith.constant 0 : i32
    %c0_i32_0 = arith.constant 0 : i32
    %c0_i32_1 = arith.constant 0 : i32
    return %c0_i32, %c0_i32_0 : i32, i32
  }
  func.func @transform_12(%arg0: i32, %arg1: i32) -> (i32, i32) {
    %c0_i32 = arith.constant 0 : i32
    %c0_i32_0 = arith.constant 0 : i32
    %c0_i32_1 = arith.constant 0 : i32
    return %c0_i32, %c0_i32_0 : i32, i32
  }
  func.func @transform_13(%arg0: i32, %arg1: i32) -> (i32, i32) {
    %c0_i32 = arith.constant 0 : i32
    %c0_i32_0 = arith.constant 0 : i32
    %c0_i32_1 = arith.constant 0 : i32
    return %c0_i32, %c0_i32_0 : i32, i32
  }
  func.func @transform_14(%arg0: i32, %arg1: i32) -> (i32, i32) {
    %c0_i32 = arith.constant 0 : i32
    %c0_i32_0 = arith.constant 0 : i32
    %c0_i32_1 = arith.constant 0 : i32
    return %c0_i32, %c0_i32_0 : i32, i32
  }
  func.func @transform_15(%arg0: i32, %arg1: i32) -> (i32, i32) {
    %c0_i32 = arith.constant 0 : i32
    %c0_i32_0 = arith.constant 0 : i32
    %c0_i32_1 = arith.constant 0 : i32
    return %c0_i32, %c0_i32_0 : i32, i32
  }
  func.func @transform_16(%arg0: i32, %arg1: i32) -> (i32, i32, i32) {
    %c0_i32 = arith.constant 0 : i32
    %c0_i32_0 = arith.constant 0 : i32
    return %arg1, %arg0, %c0_i32 : i32, i32, i32
  }
  func.func @transform_17(%arg0: i32, %arg1: i32) -> (i32, i32, i32) {
    %c0_i32 = arith.constant 0 : i32
    %c0_i32_0 = arith.constant 0 : i32
    return %arg1, %arg0, %c0_i32 : i32, i32, i32
  }
}

</mosaic_0001>

<bundles_post_ra>
// kernel: tpu_custom_call.1
= control target key start
LH: loop header
LB: loop body
LE: loop exit
PB: predicated region body
PF: predicated region fallthrough
CT: control target
= control target key end

     0   :  { %s18498_s0 = inlined_call_operand.hbm [shape: bf16[7,16,128], index: 0, kind: input, shape index: {}]   ;;  %s18499_s1 = inlined_call_operand.hbm [shape: bf16[16,128,128], index: 1, kind: input, shape index: {}]   ;;  %s18500_s2 = inlined_call_operand.hbm [shape: bf16[16,128,128], index: 2, kind: input, shape index: {}]   ;;  %s18501_s3 = inlined_call_operand.hbm [shape: f32[16,128], index: 3, kind: input, shape index: {}]   ;;  %s18502_s4 = inlined_call_operand.hbm [shape: f32[16,128], index: 4, kind: input, shape index: {}]   ;;  %s18503_s5 = inlined_call_operand.hbm [shape: f32[16,128], index: 5, kind: input, shape index: {}]   ;;  %s18504_s6 = inlined_call_operand.hbm [shape: bf16[128,128], index: 6, kind: input, shape index: {}]   ;;  %s18505_s7 = inlined_call_operand.hbm [shape: f32[1,128], index: 7, kind: input, shape index: {}]   ;;  %s18506_s8 = inlined_call_operand.hbm [shape: f32[1,128], index: 8, kind: input, shape index: {}]   ;;  %s18507_s9 = inlined_call_operand.hbm [shape: bf16[128,512], index: 9, kind: input, shape index: {}]   ;;  %s18508_s10 = inlined_call_operand.hbm [shape: bf16[128,512], index: 10, kind: input, shape index: {}]   ;;  %s18509_s11 = inlined_call_operand.hbm [shape: bf16[128,512], index: 11, kind: input, shape index: {}]   ;;  %s18510_s12 = inlined_call_operand.vmem [shape: f32[1,512], index: 12, kind: input, shape index: {}]   ;;  %s18511_s13 = inlined_call_operand.hbm [shape: bf16[128,512], index: 13, kind: input, shape index: {}]   ;;  %s18512_s14 = inlined_call_operand.hbm [shape: bf16[128,512], index: 14, kind: input, shape index: {}]   ;;  %s18513_s15 = inlined_call_operand.vmem [shape: f32[1,512], index: 15, kind: input, shape index: {}]   ;;  %s18514_s16 = inlined_call_operand.hbm [shape: f32[7,16,128], index: 16, kind: output, shape index: {0}]   ;;  %s18515_s17 = inlined_call_operand.hbm [shape: f32[7,16,128], index: 17, kind: output, shape index: {1}]  }
   0x1   :  { %18935 = sst [smem:[#allocation254_spill]] %s18498_s0 }
   0x2   :  { %18936 = sst [smem:[#allocation255_spill]] %s18499_s1 }
   0x3   :  { %18937 = sst [smem:[#allocation256_spill]] %s18500_s2 }
   0x4   :  { %18938 = sst [smem:[#allocation257_spill]] %s18501_s3 }
   0x5   :  { %18939 = sst [smem:[#allocation258_spill]] %s18502_s4 }
   0x6   :  { %18940 = sst [smem:[#allocation259_spill]] %s18503_s5 }
   0x7   :  { %18941 = sst [smem:[#allocation260_spill]] %s18504_s6 }
   0x8   :  { %18942 = sst [smem:[#allocation261_spill]] %s18505_s7 }
   0x9   :  { %18943 = sst [smem:[#allocation262_spill]] %s18506_s8 }
   0xa   :  { %18944 = sst [smem:[#allocation263_spill]] %s18507_s9 }
   0xb   :  { %18945 = sst [smem:[#allocation264_spill]] %s18508_s10 }
   0xc   :  { %18946 = sst [smem:[#allocation265_spill]] %s18509_s11 }
   0xd   :  { %18947 = sst [smem:[#allocation266_spill]] %s18510_s12 }
   0xe   :  { %18948 = sst [smem:[#allocation267_spill]] %s18511_s13 }
   0xf   :  { %18949 = sst [smem:[#allocation268_spill]] %s18512_s14 }
  0x10   :  { %18950 = sst [smem:[#allocation269_spill]] %s18513_s15 }
  0x11   :  { %18951 = sst [smem:[#allocation270_spill]] %s18514_s16 }
  0x12   :  { %18952 = sst [smem:[#allocation271_spill]] %s18515_s17 }
  0x13   :  { %23 = vsyncpa [#allocation5], 0 }
  0x14   :  { %25 = vsyncpa [#allocation5 + $0x1], 0 }
  0x15   :  { %26 = vsyncpa [#allocation8], 0 }
  0x16   :  { %28 = vsyncpa [#allocation8 + $0x1], 0 }
  0x17   :  { %29 = vsyncpa [#allocation11], 0 }
  0x18   :  { %31 = vsyncpa [#allocation11 + $0x1], 0 }
  0x19   :  { %32 = vsyncpa [#allocation14], 0 }
  0x1a   :  { %34 = vsyncpa [#allocation14 + $0x1], 0 }
  0x1b   :  { %35 = vsyncpa [#allocation17], 0 }
  0x1c   :  { %36 = vsyncpa [#allocation20], 0 }
  0x1d   :  { %37 = vsyncpa [#allocation23], 0 }
  0x1e   :  { %38 = vsyncpa [#allocation26], 0 }
  0x1f   :  { %39 = vsyncpa [#allocation6], 0 }
  0x20   :  { %41 = vsyncpa [#allocation6 + $0x1], 0 }
  0x21   :  { %42 = vsyncpa [#allocation29], 0 }
  0x22   :  { %44 = vsyncpa [#allocation29 + $0x1], 0  ;;  %s12389_s24 = smov 0   ;;  %s12391_s25 = smov 0  }
  0x23   :  { %s12393_s26 = smov 0   ;;  %s12395_s27 = smov 0  }
  0x24   :  { %s12397_s28 = smov 0   ;;  %s12399_s29 = smov 0  }
  0x25   :  { %s12401_s0 = smov 0   ;;  %s12403_s30 = smov 0  }
  0x26   :  { %s12405_s18 = smov 0   ;;  %s12407_s19 = smov 0  }
  0x27   :  { %s12409_s1 = smov 0  }
  0x28 LB: > { %18953 = sst [smem:[#allocation41_spill]] %s12248_s25  ;;  %s12445_s20 = sadd.s32 4294967295, %s12284_s1   ;;  %s12284_s1 = sphi %s12409_s1, %s50_s1   ;;  %s12280_s19 = sphi %s12407_s19, %s20400_s19   ;;  %s12276_s18 = sphi %s12405_s18, %s20399_s18   ;;  %s12272_s30 = sphi %s12403_s30, %s20398_s30   ;;  %s12268_s0 = sphi %s12401_s0, %s20397_s0   ;;  %s12264_s29 = sphi %s12399_s29, %s20405_s29   ;;  %s12260_s28 = sphi %s12397_s28, %s20404_s28   ;;  %s12256_s27 = sphi %s12395_s27, %s20403_s27   ;;  %s12252_s26 = sphi %s12393_s26, %s20402_s26   ;;  %s12248_s25 = sphi %s12391_s25, %s20401_s25   ;;  %s12244_s24 = sphi %s12389_s24, %s20395_s24  }
  0x29   : > { %18954 = sst [smem:[#allocation42_spill]] %s12256_s27  ;;  %p9393_p0 = scmp.ge.s32.totalorder %s12284_s1, 1 }
  0x2a   : > { %18955 = sst [smem:[#allocation43_spill]] %s12268_s0  ;;  %p18532_p1 = scmp.eq.s32.totalorder %s12445_s20, 0 }
  0x2b   : > { %18956 = sst [smem:[#allocation44_spill]] %s12272_s30  ;;  %p491_p2 = scmp.lt.s32.totalorder %s12284_s1, 15 }
  0x2c   : > { %18957 = sst [smem:[#allocation45_spill]] %s12276_s18  ;;  %s12286_s17 = smov [#allocation15]  }
  0x2d   : > { %18958 = sst [smem:[#allocation46_spill]] %s12280_s19  ;;  %p12453_p3 = pnand %p9393_p0, %p491_p2 }
  0x2e   : > { %s18959_s6 = sld [smem:[#allocation260_spill]]  ;;  %s504_s15 = sshll.u32 %s12286_s17, 4  ;;  %s505_s15 = int_to_ptr.vmem [resolvable:$true] %s504_s15 }
  0x2f   : > { %s18960_s16 = scalar_select %p12453_p3, 1, 0 }
  0x30   : > { %p11105_p4 = pneg %p12453_p3  ;;  %s18963_s7 = sld [smem:[#allocation261_spill]] }
  0x31   : > { %18961 = sst [smem:[#allocation47_spill]] %s18960_s16  ;;  %s18523_s22 = smov 64  }
  0x32   : > { %p12461_p5 = pnand %p11105_p4, %p18532_p1  ;;  %s12289_s17 = smov [#allocation16]  }
  0x33   : > { %s519_s16 = sshll.u32 %s12289_s17, 4  ;;  %s18964_s9 = sld [smem:[#allocation263_spill]]  ;;  %s520_s16 = int_to_ptr.vmem [resolvable:$true] %s519_s16 }
  0x34   : > { %s502_s23 = sshll.u32 %s18959_s6, 4  ;;  %s18525_s6 = smov 4   ;;  %s503_s23 = int_to_ptr.hbm [resolvable:$true] %s502_s23 }
  0x35   : > { %11108 = dma.hbm_to_vmem [thread:$0]  (!%p12461_p5), %s503_s23, 1024, %s505_s15, [#allocation14], %s18523_s22, %s18523_s22, %s18525_s6  }
  0x36   : > { %s517_s21 = sshll.u32 %s18963_s7, 4  ;;  %s12290_s12 = smov [#allocation19]   ;;  %s518_s21 = int_to_ptr.hbm [resolvable:$true] %s517_s21 }
  0x37   : > { %11111 = dma.hbm_to_vmem [thread:$0]  (!%p12461_p5), %s518_s21, 16, %s520_s16, [#allocation17]  }
  0x38   : > { %s542_s15 = sshll.u32 %s12290_s12, 4  ;;  %s18965_s11 = sld [smem:[#allocation265_spill]]  ;;  %s543_s15 = int_to_ptr.vmem [resolvable:$true] %s542_s15 }
  0x39   : > { %s540_s14 = sshll.u32 %s18964_s9, 4  ;;  %s18519_s5 = smov 256   ;;  %s541_s14 = int_to_ptr.hbm [resolvable:$true] %s540_s14 }
  0x3a   : > { %s18521_s17 = smov 16   ;;  %s12293_s16 = smov [#allocation22]  }
  0x3b   : > { %11117 = dma.hbm_to_vmem [thread:$0]  (!%p12461_p5), %s541_s14, 4096, %s543_s15, [#allocation20], %s18519_s5, %s18519_s5, %s18521_s17  }
  0x3c   : > { %s570_s21 = sshll.u32 %s12293_s16, 4  ;;  %p79_p6 = scmp.eq.s32.totalorder %s12284_s1, 0  ;;  %s571_s21 = int_to_ptr.vmem [resolvable:$true] %s570_s21 }
  0x3d   : > { %p104_p7 = scmp.ne.s32.totalorder %s12252_s26, %s12248_s25  ;;  %p110_p8 = scmp.ne.s32.totalorder %s12248_s25, %s12244_s24 }
  0x3e   : > { %s568_s4 = sshll.u32 %s18965_s11, 4  ;;  %p18533_p9 = scmp.lt.s32.totalorder %s12284_s1, 14  ;;  %s569_s4 = int_to_ptr.hbm [resolvable:$true] %s568_s4 }
  0x3f   : > { %11123 = dma.hbm_to_vmem [thread:$0]  (!%p12461_p5), %s569_s4, 4096, %s571_s21, [#allocation23], %s18519_s5, %s18519_s5, %s18521_s17  }
  0x40   : > { %s12499_s0 = sand.u32 1, %s12284_s1   ;;  %p106_p10 = por %p104_p7, %p79_p6 }
  0x41   : > { %p12505_p11 = por %p110_p8, %p18532_p1  ;;  %s641_s15 = sand.u32 1, %s12252_s26  }
  0x42   : > { %s9406_s23 = sshll.u32 %s641_s15, 9  ;;  %s10503_s4 = sshll.u32 %s12280_s19, 9 }
  0x43   : > { %s18966_s14 = scalar_select %p12505_p11, 1, 0 }
  0x44   : > { %s18968_s12 = sld [smem:[#allocation255_spill]]  ;;  %s643_s17 = scalar_lea.vmem [#allocation7], %s9406_s23 }
  0x45   : > { %18967 = sst [smem:[#allocation48_spill]] %s18966_s14  ;;  %s652_s22 = sshll.u32 %s643_s17, 4  ;;  %s653_s22 = int_to_ptr.vmem [resolvable:$true] %s652_s22 }
  0x46   : > { %p12516_p12 = pnand %p18533_p9, %p106_p10  ;;  %s18970_s2 = sld [smem:[#allocation256_spill]] }
  0x47   : > { %s666_s14 = scalar_lea.vmem [#allocation9], %s9406_s23  ;;  %s18530_s17 = scalar_lea.sflag [#allocation8], %s12499_s0 }
  0x48   : > { %s12523_s16 = sshll.u32 %s666_s14, 4  ;;  %s18973_s21 = smov 64  }
  0x49   : > { %18971 = sst [smem:[#allocation49_spill]] %s12523_s16  ;;  %s12536_s7 = sshll.u32 %s641_s15, 3 }
  0x4a   : > { %s649_s5 = scalar_lea.hbm %s18968_s12, %s10503_s4  ;;  %s18972_s12 = smov 4  }
  0x4b   : > { %s650_s24 = sshll.u32 %s649_s5, 4  ;;  %s12539_s9 = sshll.u32 %s12280_s19, 3  ;;  %s651_s24 = int_to_ptr.hbm [resolvable:$true] %s650_s24 }
  0x4c   : > { %s672_s11 = scalar_lea.hbm %s18970_s2, %s10503_s4  ;;  %s18974_s3 = sld [smem:[#allocation257_spill]] }
  0x4d   : > { %s673_s5 = sshll.u32 %s672_s11, 4  ;;  %s689_s4 = scalar_lea.vmem [#allocation10], %s12536_s7  ;;  %s12533_s5 = int_to_ptr.hbm [resolvable:$true] %s673_s5 }
  0x4e   : > { %11136 = dma.hbm_to_vmem [thread:$0]  (!%p12516_p12), %s651_s24, 8192, %s653_s22, %s18530_s17, %s18973_s21, %s18973_s21, %s18972_s12  }
  0x4f   : > { %s697_s2 = sshll.u32 %s689_s4, 4  ;;  %s18975_s8 = sld [smem:[#allocation262_spill]]  ;;  %s698_s2 = int_to_ptr.vmem [resolvable:$true] %s697_s2 }
  0x50   : > { %s18534_s17 = scalar_lea.sflag [#allocation11], %s12499_s0  ;;  %s12294_s16 = smov [#allocation18]  }
  0x51   : > { %s531_s21 = sshll.u32 %s12294_s16, 4  ;;  %s18976_s10 = sld [smem:[#allocation264_spill]]  ;;  %s532_s21 = int_to_ptr.vmem [resolvable:$true] %s531_s21 }
  0x52   : > { %s693_s11 = scalar_lea.hbm %s18974_s3, %s12539_s9  ;;  %s18977_s13 = sld [smem:[#allocation267_spill]] }
  0x53   : > { %s695_s25 = sshll.u32 %s693_s11, 4  ;;  %s12295_s3 = smov [#allocation21]   ;;  %s696_s25 = int_to_ptr.hbm [resolvable:$true] %s695_s25 }
  0x54   : > { %11142 = dma.hbm_to_vmem [thread:$0]  (!%p12516_p12), %s696_s25, 128, %s698_s2, %s18534_s17  }
  0x55   : > { %s529_s15 = sshll.u32 %s18975_s8, 4  ;;  %s556_s2 = sshll.u32 %s12295_s3, 4  ;;  %s530_s15 = int_to_ptr.hbm [resolvable:$true] %s529_s15  ;;  %s557_s2 = int_to_ptr.vmem [resolvable:$true] %s556_s2 }
  0x56   : > { %11114 = dma.hbm_to_vmem [thread:$0]  (!%p12461_p5), %s530_s15, 16, %s532_s21, [#allocation17]  }
  0x57   : > { %s554_s4 = sshll.u32 %s18976_s10, 4  ;;  %s18978_s25 = smov 16   ;;  %s555_s4 = int_to_ptr.hbm [resolvable:$true] %s554_s4 }
  0x58   : > { %s585_s24 = sshll.u32 %s18977_s13, 4  ;;  %s18979_s16 = smov 256   ;;  %s586_s24 = int_to_ptr.hbm [resolvable:$true] %s585_s24 }
  0x59   : > { %11120 = dma.hbm_to_vmem [thread:$0]  (!%p12461_p5), %s555_s4, 4096, %s557_s2, [#allocation20], %s18979_s16, %s18979_s16, %s18978_s25  }
  0x5a   : > { %s12296_s21 = smov [#allocation24]   ;;  %s18980_s11 = sld [smem:[#allocation268_spill]] }
  0x5b   : > { %s587_s15 = sshll.u32 %s12296_s21, 4  ;;  %s12297_s3 = smov [#allocation25]   ;;  %s588_s15 = int_to_ptr.vmem [resolvable:$true] %s587_s15 }
  0x5c   : > { %11126 = dma.hbm_to_vmem [thread:$0]  (!%p12461_p5), %s586_s24, 4096, %s588_s15, [#allocation23], %s18979_s16, %s18979_s16, %s18978_s25  }
  0x5d   : > { %s601_s4 = sshll.u32 %s12297_s3, 4  ;;  %s9392_s2 = sadd.s32 4294967294, %s12284_s1   ;;  %s602_s4 = int_to_ptr.vmem [resolvable:$true] %s601_s4 }
  0x5e   : > { %s59_s21 = sadd.s32 1, %s12276_s18  ;;  %s62_s14 = sadd.s32 1, %s12280_s19 }
  0x5f   : > { %p60_p13 = scmp.ge.s32.totalorder %s59_s21, 7  ;;  %s71_s23 = sadd.s32 1, %s12264_s29 }
  0x60   : > { %s599_s22 = sshll.u32 %s18980_s11, 4  ;;  %p78_p0 = scmp.ne.s32.totalorder %s12264_s29, %s12260_s28  ;;  %s600_s22 = int_to_ptr.hbm [resolvable:$true] %s599_s22 }
  0x61   : > { %11129 = dma.hbm_to_vmem [thread:$0]  (!%p12461_p5), %s600_s22, 4096, %s602_s4, [#allocation26], %s18979_s16, %s18979_s16, %s18978_s25  }
  0x62   : > { %p84_p2 = scmp.ne.s32.totalorder %s12260_s28, %s12256_s27  ;;  %s20407_s21 = smov (%p60_p13, %s59_s21), 0 }
  0x63   : > { %18981 = sst [smem:[#allocation50_spill]] %s20407_s21  ;;  %s20409_s14 = smov (!%p60_p13, %s62_s14), %s12280_s19 }
  0x64   : > { %s66_s30 = ssub.s32 %s12276_s18, %s20407_s21  ;;  %p12595_p4 = por %p79_p6, %p78_p0 }
  0x65   : > { %p64_p5 = scmp.ge.s32.totalorder %s20409_s14, 2  ;;  %p12601_p7 = por %p18532_p1, %p84_p2 }
  0x66   : > { %p450_p8 = scmp.eq.s32.totalorder %s12445_s20, 13  ;;  %p456_p10 = scmp.eq.s32.totalorder %s9392_s2, 13 }
  0x67   : > { %s20411_s14 = smov (%p64_p5, %s20409_s14), 0  ;;  %s618_s22 = sand.u32 1, %s12264_s29  }
  0x68   : > { %18984 = sst [smem:[#allocation51_spill]] %s20411_s14  ;;  %p12608_p13 = por %p450_p8, %p78_p0 }
  0x69   : > { %p12612_p6 = por %p456_p10, %p84_p2  ;;  %s67_s11 = ssub.s32 %s12280_s19, %s20411_s14 }
  0x6a   : > { %s68_s3 = sor.u32 %s67_s11, %s66_s30  ;;  %p95_p1 = scmp.eq.s32.totalorder %s67_s11, 0 }
  0x6b   : > { %s18986_s15 = scalar_select %p12612_p6, 1, 0 }
  0x6c   : > { %p69_p9 = scmp.eq.s32.totalorder %s68_s3, 0  ;;  %s18988_s4 = sadd.s32 1, %s12252_s26 }
  0x6d   : > { %18987 = sst [smem:[#allocation52_spill]] %s18986_s15  ;;  %s9403_s10 = sshll.u32 %s618_s22, 2 }
  0x6e   : > { %s12622_s2 = scalar_select %p95_p1, %s12252_s26, %s18988_s4  }
  0x6f   : > { %s18990_s17 = sld [smem:[#allocation49_spill]]  ;;  %s9404_s13 = sshll.u32 %s12276_s18, 1 }
  0x70   : > { %18989 = sst [smem:[#allocation53_spill]] %s12622_s2  ;;  %s626_s14 = sadd.s32 %s12280_s19, %s9404_s13 }
  0x71   : > { %s12625_s8 = scalar_select %p69_p9, %s12264_s29, %s71_s23  }
  0x72   : > { %s9405_s21 = sshll.u32 %s626_s14, 2  ;;  %s622_s15 = scalar_lea.vmem [#allocation4], %s9403_s10 }
  0x73   : > { %s632_s30 = sshll.u32 %s622_s15, 4  ;;  %s18991_s27 = sld [smem:[#allocation254_spill]]  ;;  %s633_s30 = int_to_ptr.vmem [resolvable:$true] %s632_s30 }
  0x74   : > { %p18992_p1 = scmp.lt.s32.totalorder %s12284_s1, 14  ;;  %s18993_s13 = sld [smem:[#allocation258_spill]] }
  0x75   : > { %s619_s10 = scalar_lea.sflag [#allocation5], %s618_s22  ;;  %s18994_s15 = smov 64  }
  0x76   : > { %p11131_p9 = pnand %p18992_p1, %p12595_p4  ;;  %s708_s24 = scalar_lea.vmem [#allocation12], %s12536_s7 }
  0x77   : > { %s716_s3 = sshll.u32 %s708_s24, 4  ;;  %s18998_s22 = sld [smem:[#allocation259_spill]]  ;;  %s717_s3 = int_to_ptr.vmem [resolvable:$true] %s716_s3 }
  0x78   : > { %s724_s19 = scalar_lea.sflag [#allocation14], %s12499_s0 }
  0x79   : > { %s628_s4 = scalar_lea.hbm %s18991_s27, %s9405_s21  ;;  %s18995_s27 = scalar_lea.sflag [#allocation8], %s12499_s0 }
  0x7a   : > { %s630_s2 = sshll.u32 %s628_s4, 4  ;;  %s712_s14 = scalar_lea.hbm %s18993_s13, %s12539_s9  ;;  %s631_s2 = int_to_ptr.hbm [resolvable:$true] %s630_s2 }
  0x7b   : > { %11133 = dma.hbm_to_vmem [thread:$0]  (!%p11131_p9), %s631_s2, 64, %s633_s30, %s619_s10  }
  0x7c   : > { %s18996_s21 = int_to_ptr.vmem [resolvable:$true] %s18990_s17  ;;  %s714_s11 = sshll.u32 %s712_s14, 4  ;;  %s715_s11 = int_to_ptr.hbm [resolvable:$true] %s714_s11 }
  0x7d   : > { %11139 = dma.hbm_to_vmem [thread:$0]  (!%p12516_p12), %s12533_s5, 8192, %s18996_s21, %s18995_s27, %s18994_s15, %s18994_s15, %s18972_s12  }
  0x7e   : > { %s18997_s4 = scalar_lea.sflag [#allocation11], %s12499_s0  ;;  %s731_s13 = scalar_lea.hbm %s18998_s22, %s12539_s9 }
  0x7f   : > { %11145 = dma.hbm_to_vmem [thread:$0]  (!%p12516_p12), %s715_s11, 128, %s717_s3, %s18997_s4  }
  0x80   : > { %s727_s2 = scalar_lea.vmem [#allocation13], %s12536_s7  ;;  %s733_s10 = sshll.u32 %s731_s13, 4  ;;  %s734_s10 = int_to_ptr.hbm [resolvable:$true] %s733_s10 }
  0x81   : > { %s735_s30 = sshll.u32 %s727_s2, 4  ;;  %744 = sbr.rel (%p12453_p3) target bundleno = 3667 (0xe53), region = 84  ;;  %s736_s30 = int_to_ptr.vmem [resolvable:$true] %s735_s30 }
  0x82   : > { %11148 = dma.hbm_to_vmem [thread:$0]  (!%p12516_p12), %s734_s10, 128, %s736_s30, %s724_s19  }
  0x86   : > { %s12666_s17 = sand.u32 1, %s12260_s28  }
  0x87   : > { %s9421_s12 = sshll.u32 %s12666_s17, 2  ;;  %s747_s14 = scalar_lea.sflag [#allocation5], %s12666_s17 }
  0x88   : > { %s12670_s9 = scalar_lea.vmem [#allocation4], %s9421_s12 }
  0x89   : > { %12199 = dma.done.wait (%p12601_p7), %s747_s14, 64  }
  0x8a   : > { %12201 = vsyncadd (%p12601_p7), %s747_s14, 4294967232  ;;  %s19000_s6 = sld [smem:[#allocation41_spill]]  ;;  %s756_s0 = sand.u32 1, %s12445_s20  }
  0x8b   : > { %s757_s27 = scalar_lea.sflag [#allocation8], %s756_s0 }
  0x90   : > { %s758_s7 = sand.u32 1, %s19000_s6  }
  0x91   : > { %s9422_s15 = sshll.u32 %s758_s7, 9 }
  0x92   : > { %s12678_s21 = scalar_lea.vmem [#allocation7], %s9422_s15 }
  0x93   : > { %12203 = dma.done.wait (%p12505_p11), %s757_s27, 16384  }
  0x94   : > { %12205 = vsyncadd (%p12505_p11), %s757_s27, 4294950912  ;;  %s12684_s11 = sshll.u32 %s758_s7, 3  ;;  %s12686_s25 = scalar_lea.vmem [#allocation9], %s9422_s15 }
  0x95   : > { %s777_s24 = scalar_lea.sflag [#allocation11], %s756_s0  ;;  %s780_s3 = scalar_lea.vmem [#allocation10], %s12684_s11 }
  0x96   : > { %12207 = dma.done.wait (%p12505_p11), %s777_s24, 256  }
  0x97   : > { %12209 = vsyncadd (%p12505_p11), %s777_s24, 4294967040  ;;  %s790_s4 = scalar_lea.vmem [#allocation12], %s12684_s11  ;;  %s797_s18 = scalar_lea.sflag [#allocation14], %s756_s0 }
  0x98   : > { %s800_s23 = scalar_lea.vmem [#allocation13], %s12684_s11 }
  0x99   : > { %12211 = dma.done.wait (%p12505_p11), %s797_s18, 128  }
  0x9a   : > { %12213 = vsyncadd (%p12505_p11), %s797_s18, 4294967168  ;;  %p19002_p3 = scmp.eq.s32.totalorder %s12445_s20, 0 }
  0x9c   : > { %12215 = dma.done.wait (%p19002_p3), [#allocation14], 1024   ;;  %p19003_p12 = pmov %p19002_p3 }
  0x9d   : > { %p19004_p0 = pmov %p19002_p3 }
  0x9e   : > { %12217 = vsyncadd (%p19003_p12), [#allocation14], 4294966272 }
  0x9f   : > { %12219 = dma.done.wait (%p19004_p0), [#allocation17], 32   ;;  %p19005_p2 = pmov %p19004_p0 }
  0xa0   : > { %p19006_p4 = pmov %p19004_p0 }
  0xa1   : > { %12221 = vsyncadd (%p19005_p2), [#allocation17], 4294967264 }
  0xa2   : > { %12223 = dma.done.wait (%p19006_p4), [#allocation20], 8192   ;;  %p19007_p5 = pmov %p19004_p0 }
  0xa3   : > { %p19008_p11 = pmov %p19004_p0 }
  0xa4   : > { %12225 = vsyncadd (%p19007_p5), [#allocation20], 4294959104 }
  0xa5   : > { %12227 = dma.done.wait (%p19008_p11), [#allocation23], 8192   ;;  %p19009_p7 = pmov %p19004_p0 }
  0xa6   : > { %p19010_p8 = pmov %p19004_p0 }
  0xa7   : > { %12229 = vsyncadd (%p19009_p7), [#allocation23], 4294959104 }
  0xa8   : > { %12231 = dma.done.wait (%p19010_p8), [#allocation26], 4096   ;;  %p19011_p10 = pmov %p19004_p0 }
  0xa9   : > { %s9435_s22 = sshll.u32 %s12666_s17, 3  ;;  %s19012_s30 = sld [smem:[#allocation43_spill]] }
  0xaa   : > { %12233 = vsyncadd (%p19011_p10), [#allocation26], 4294963200  ;;  %s12720_s13 = scalar_lea.vmem [#allocation27], %s9435_s22  ;;  %s12722_s2 = scalar_lea.vmem [#allocation28], %s9435_s22 }
  0xaf   : > { %p9437_p1 = scmp.ne.s32.totalorder %s19012_s30, 0 }
  0xb1   : > { %927 = sbr.rel (%p9437_p1) target bundleno = 187 (0xbb), region = 144 }
  0xb6   : > { %v928_v0 = vld [vmem:[%s790_s4] sm:$0xff]  ;;  %v930_v1 = vld [vmem:[%s800_s23] sm:$0xff] }
  0xb7   : > { %929 = vst [vmem:[#allocation2] sm:$0xff] %v928_v0 }
  0xb8   : > { %931 = vst [vmem:[#allocation3 + $0x8] sm:$0xff] %v930_v1 }
  0xb9   : > { %934 = vst [vmem:[#allocation2 + $0x8] sm:$0xff] %v928_v0 }
  0xba   : > { %937 = vst [vmem:[#allocation3] sm:$0xff] %v930_v1 }
  0xbb PF: > { %v10513_v2 = vld [vmem:[#allocation15 + $0x38] sm:$0xff]  ;;  %v10512_v3 = vld [vmem:[#allocation15 + $0x30] sm:$0xff]  ;;  %v10511_v4 = vld [vmem:[#allocation15 + $0x28] sm:$0xff]  ;;  %vm4043_vm0 = vcmask 130112   ;;  %vm4047_vm1 = vcmask 195712   ;;  %vm4051_vm2 = vcmask 261312  }
  0xbc   : > { %1013 = vmatpush.bf16.msra.mxu0 %v10513_v2  ;;  %v10510_v5 = vld [vmem:[#allocation15 + $0x20] sm:$0xff]  ;;  %v10509_v6 = vld [vmem:[#allocation15 + $0x18] sm:$0xff]  ;;  %v10508_v7 = vld [vmem:[#allocation15 + $0x10] sm:$0xff]  ;;  %vm4055_vm3 = vcmask 326912   ;;  %vm4059_vm4 = vcmask 392512   ;;  %vm4063_vm5 = vcmask 458112  }
  0xbd   : > { %v10507_v8 = vld [vmem:[#allocation15 + $0x8] sm:$0xff]  ;;  %v10506_v9 = vld [vmem:[#allocation15] sm:$0xff]  ;;  %v10994_v15 = vld [vmem:[%s12686_s25 + $0x8] sm:$0xff]   ;;  %vm18685_vm6 = vcmask 523712   ;;  %vm4071_vm7 = vcmask 589312   ;;  %vm4075_vm8 = vcmask 654912  }
  0xbe   : > { %v11397_v12 = vld [vmem:[#allocation16] ss:$0 sm:$0xff]  ;;  %v10739_v16 = vld [vmem:[%s12686_s25] sm:$0xff]   ;;  %v10744_v19 = vunpack.c.l.bf16 %v10994_v15  ;;  %v12737_v23 = vld [vmem:[#allocation18] ss:$0 sm:$0xff]  ;;  %v10745_v27 = vunpack.c.h.bf16 %v10994_v15  ;;  %vm18688_vm9 = vcmask 720512  }
  0xbf   : > { %v10995_v13 = vld [vmem:[%s12686_s25 + $0x10] sm:$0xff]   ;;  %v10740_v20 = vunpack.c.l.bf16 %v10739_v16  ;;  %v10741_v28 = vunpack.c.h.bf16 %v10739_v16  ;;  %v10997_v39 = vld [vmem:[%s12686_s25 + $0x20] sm:$0xff]   ;;  %v10996_v40 = vld [vmem:[%s12686_s25 + $0x18] sm:$0xff]   ;;  %vm18686_vm10 = vcmask 786112   ;;  %vm18687_vm11 = vcmask 851712   ;;  %s20371_s5 = sld [smem:[#allocation266_spill]] }
  0xc0   : > { %1014 = vmatpush.bf16.msra.mxu0 %v10512_v3  ;;  %v940_v10 = vld [vmem:[#allocation2 + $0x8] sm:$0xff]  ;;  %v10748_v18 = vunpack.c.l.bf16 %v10995_v13  ;;  %v10749_v24 = vunpack.c.h.bf16 %v10995_v13  ;;  %v10756_v42 = vunpack.c.l.bf16 %v10997_v39  ;;  %v10753_v45 = vunpack.c.h.bf16 %v10996_v40  ;;  %v10998_v53 = vld [vmem:[%s12686_s25 + $0x28] sm:$0xff]   ;;  %v11000_v2 = vld [vmem:[%s12686_s25 + $0x38] sm:$0xff]   ;;  %s20375_s12 = sld [smem:[#allocation43_spill]]  ;;  %s9083_s24 = sshll.u32 %s12722_s2, 4  ;;  %s9084_s24 = int_to_ptr.vmem [resolvable:$true] %s9083_s24 }
  0xc1   : > { %v12725_v11 = vpack.c.bf16 %v940_v10, %v940_v10  ;;  %v10752_v46 = vunpack.c.l.bf16 %v10996_v40  ;;  %v10761_v55 = vunpack.c.h.bf16 %v10998_v53  ;;  %v10760_v58 = vunpack.c.l.bf16 %v10998_v53  ;;  %v10999_v3 = vld [vmem:[%s12686_s25 + $0x30] sm:$0xff]   ;;  %s20378_s14 = sld [smem:[#allocation44_spill]]  ;;  %s9053_s4 = scalar_lea.sflag [#allocation29], %s12666_s17 }
  0xc2   : > { %v10757_v59 = vunpack.c.h.bf16 %v10997_v39  ;;  %vm4091_vm12 = vcmask 917312   ;;  %vm4095_vm13 = vcmask 982912   ;;  %vm4099_vm14 = vcmask 1048512   ;;  %s20379_s0 = sld [smem:[#allocation269_spill]] }
  0xc3   : > { %19013 = vst [vmem:[#allocation54_spill] sm:$0xff] %v12725_v11  ;;  %vm18689_vm15 = vcmask 1041409   ;;  %s20387_s11 = sld [smem:[#allocation271_spill]] }
  0xc4   : > { %1015 = vmatpush.bf16.msra.mxu0 %v10511_v4 }
  0xc8   : > { %1016 = vmatpush.bf16.msra.mxu0 %v10510_v5  ;;  %v10768_v5 = vunpack.c.l.bf16 %v11000_v2 }
  0xc9   : > { %s12118_s20 = scalar_lea.hbm %s20387_s11, 112 }
  0xcc   : > { %1017 = vmatpush.bf16.msra.mxu0 %v10509_v6 }
  0xd0   : > { %1018 = vmatpush.bf16.msra.mxu0 %v10508_v7 }
  0xd4   : > { %1019 = vmatpush.bf16.msra.mxu0 %v10507_v8  ;;  %v10765_v8 = vunpack.c.h.bf16 %v10999_v3 }
  0xd8   : > { %1020 = vmatpush.bf16.msra.mxu0 %v10506_v9  ;;  %v10764_v9 = vunpack.c.l.bf16 %v10999_v3 }
  0xdb   : > { %1021 = vmatmul.bf16.vlgmr.msra.gmra.mxu0 %v12725_v11 }
 0x158   : > { %v1022_v14 = vpop.f32.mrf.mxu0 }
 0x159   : > { %v12731_v17 = vadd.f32 %v11397_v12, %v1022_v14 }
 0x15b   : > { %v12734_v21 = vperm.slane %v12731_v17, 0  ;;  %v1697_v10 = vrot.slane %v12731_v17, 1 }
 0x15d   : > { %v1852_v22 = vadd.f32 %v10748_v18, %v12734_v21  ;;  %v1850_v25 = vadd.f32 %v10744_v19, %v12734_v21  ;;  %v1848_v26 = vadd.f32 %v10740_v20, %v12734_v21  ;;  %v1853_v34 = vadd.f32 %v10749_v24, %v12734_v21  ;;  %v11001_v19 = vld [vmem:[%s12686_s25 + $0x40] sm:$0xff]  }
 0x15e   : > { %v1851_v37 = vadd.f32 %v10745_v27, %v12734_v21  ;;  %v1849_v38 = vadd.f32 %v10741_v28, %v12734_v21  ;;  %v1856_v48 = vadd.f32 %v10756_v42, %v12734_v21  ;;  %v1855_v51 = vadd.f32 %v10753_v45, %v12734_v21 }
 0x15f   : > { %v1980_v30 = vmax.f32 %v1852_v22, 0.0  ;;  %v1978_v31 = vmax.f32 %v1850_v25, 0.0  ;;  %v1976_v32 = vmax.f32 %v1848_v26, 0.0  ;;  %v1981_v41 = vmax.f32 %v1853_v34, 0.0 }
 0x160   : > { %v1024_v29 = vpop.f32.mrf.mxu0  ;;  %v1979_v43 = vmax.f32 %v1851_v37, 0.0  ;;  %v1977_v44 = vmax.f32 %v1849_v38, 0.0  ;;  %v1854_v52 = vadd.f32 %v10752_v46, %v12734_v21  ;;  %v1984_v54 = vmax.f32 %v1856_v48, 0.0  ;;  %v11004_v48 = vld [vmem:[%s12686_s25 + $0x58] sm:$0xff]  }
 0x161   : > { %v2112_v33 = vmul.f32 %v12737_v23, %v1980_v30  ;;  %v2110_v35 = vmul.f32 %v12737_v23, %v1978_v31  ;;  %v2108_v36 = vmul.f32 %v12737_v23, %v1976_v32  ;;  %v2113_v47 = vmul.f32 %v12737_v23, %v1981_v41 }
 0x162   : > { %v2111_v49 = vmul.f32 %v12737_v23, %v1979_v43  ;;  %v2109_v50 = vmul.f32 %v12737_v23, %v1977_v44  ;;  %v1983_v56 = vmax.f32 %v1855_v51, 0.0  ;;  %v1982_v57 = vmax.f32 %v1854_v52, 0.0 }
 0x163   : > { %2244 = vadd.xlane.f32.xlu2 %v2112_v33  ;;  %2240 = vadd.xlane.f32.xlu1 %v2110_v35  ;;  %v2116_v60 = vmul.f32 %v12737_v23, %v1984_v54  ;;  %v1859_v61 = vadd.f32 %v10761_v55, %v12734_v21  ;;  %v1858_v0 = vadd.f32 %v10760_v58, %v12734_v21  ;;  %v12772_v20 = vperm.slane %v1697_v10, 0  ;;  %v11003_v35 = vld [vmem:[%s12686_s25 + $0x50] sm:$0xff]  }
 0x164   : > { %2236 = vadd.xlane.f32.xlu0 %v2108_v36  ;;  %v2115_v62 = vmul.f32 %v12737_v23, %v1983_v56  ;;  %v2114_v63 = vmul.f32 %v12737_v23, %v1982_v57  ;;  %v1857_v1 = vadd.f32 %v10757_v59, %v12734_v21  ;;  %v1862_v13 = vadd.f32 %v10768_v5, %v12734_v21  ;;  %v11002_v36 = vld [vmem:[%s12686_s25 + $0x48] sm:$0xff]  }
 0x165   : > { %v1987_v4 = vmax.f32 %v1859_v61, 0.0  ;;  %v1986_v6 = vmax.f32 %v1858_v0, 0.0  ;;  %v1861_v16 = vadd.f32 %v10765_v8, %v12734_v21  ;;  %v1860_v18 = vadd.f32 %v10764_v9, %v12734_v21  ;;  %v11006_v61 = vld [vmem:[%s12686_s25 + $0x68] sm:$0xff]  }
 0x166   : > { %v1985_v7 = vmax.f32 %v1857_v1, 0.0  ;;  %v1990_v22 = vmax.f32 %v1862_v13, 0.0  ;;  %v10773_v24 = vunpack.c.h.bf16 %v11001_v19  ;;  %v10769_v27 = vunpack.c.h.bf16 %v11000_v2 }
 0x167   : > { %v2119_v12 = vmul.f32 %v12737_v23, %v1987_v4  ;;  %v2118_v14 = vmul.f32 %v12737_v23, %v1986_v6  ;;  %v1989_v25 = vmax.f32 %v1861_v16, 0.0  ;;  %v1988_v26 = vmax.f32 %v1860_v18, 0.0 }
 0x168   : > { %v2117_v15 = vmul.f32 %v12737_v23, %v1985_v7  ;;  %v10772_v28 = vunpack.c.l.bf16 %v11001_v19  ;;  %v2122_v29 = vmul.f32 %v12737_v23, %v1990_v22  ;;  %v1865_v30 = vadd.f32 %v10773_v24, %v12772_v20 }
 0x169   : > { %v2121_v31 = vmul.f32 %v12737_v23, %v1989_v25  ;;  %v2120_v32 = vmul.f32 %v12737_v23, %v1988_v26  ;;  %v1863_v33 = vadd.f32 %v10769_v27, %v12734_v21  ;;  %v10780_v38 = vunpack.c.l.bf16 %v11003_v35 }
 0x16a   : > { %v1864_v34 = vadd.f32 %v10772_v28, %v12772_v20  ;;  %v1993_v37 = vmax.f32 %v1865_v30, 0.0  ;;  %v10776_v41 = vunpack.c.l.bf16 %v11002_v36  ;;  %v10777_v42 = vunpack.c.h.bf16 %v11002_v36  ;;  %v11009_v30 = vld [vmem:[%s12686_s25 + $0x80] sm:$0xff]  }
 0x16b   : > { %2246 = vadd.xlane.f32.xlu2 %v2113_v47  ;;  %2242 = vadd.xlane.f32.xlu1 %v2111_v49  ;;  %v1991_v39 = vmax.f32 %v1863_v33, 0.0  ;;  %v1868_v44 = vadd.f32 %v10780_v38, %v12772_v20  ;;  %v10781_v53 = vunpack.c.h.bf16 %v11003_v35  ;;  %v10784_v54 = vunpack.c.l.bf16 %v11004_v48 }
 0x16c   : > { %2238 = vadd.xlane.f32.xlu0 %v2109_v50  ;;  %v1992_v40 = vmax.f32 %v1864_v34, 0.0  ;;  %v2125_v43 = vmul.f32 %v12737_v23, %v1993_v37  ;;  %v1866_v46 = vadd.f32 %v10776_v41, %v12772_v20  ;;  %v1867_v47 = vadd.f32 %v10777_v42, %v12772_v20 }
 0x16d   : > { %v2123_v21 = vmul.f32 %v12737_v23, %v1991_v39  ;;  %v1996_v49 = vmax.f32 %v1868_v44, 0.0  ;;  %v10785_v50 = vunpack.c.h.bf16 %v11004_v48  ;;  %v1869_v59 = vadd.f32 %v10781_v53, %v12772_v20 }
 0x16e   : > { %v2124_v45 = vmul.f32 %v12737_v23, %v1992_v40  ;;  %v1994_v51 = vmax.f32 %v1866_v46, 0.0  ;;  %v1995_v52 = vmax.f32 %v1867_v47, 0.0  ;;  %v10792_v0 = vunpack.c.l.bf16 %v11006_v61 }
 0x16f   : > { %v2128_v55 = vmul.f32 %v12737_v23, %v1996_v49  ;;  %v1871_v56 = vadd.f32 %v10785_v50, %v12772_v20  ;;  %v1997_v1 = vmax.f32 %v1869_v59, 0.0  ;;  %v10793_v18 = vunpack.c.h.bf16 %v11006_v61 }
 0x170   : > { %v2126_v57 = vmul.f32 %v12737_v23, %v1994_v51  ;;  %v2127_v58 = vmul.f32 %v12737_v23, %v1995_v52  ;;  %v1874_v6 = vadd.f32 %v10792_v0, %v12772_v20  ;;  %v1698_v22 = vrot.slane %v12731_v17, 2 }
 0x171   : > { %v2129_v7 = vmul.f32 %v12737_v23, %v1997_v1  ;;  %v1875_v28 = vadd.f32 %v10793_v18, %v12772_v20  ;;  %v10804_v34 = vunpack.c.l.bf16 %v11009_v30  ;;  %v10805_v49 = vunpack.c.h.bf16 %v11009_v30 }
 0x172   : > { %v2002_v13 = vmax.f32 %v1874_v6, 0.0  ;;  %v11013_v6 = vld [vmem:[%s12686_s25 + $0xa0] sm:$0xff]  }
 0x173   : > { %2252 = vadd.xlane.f32.xlu2 %v2116_v60  ;;  %2250 = vadd.xlane.f32.xlu1 %v2115_v62  ;;  %v1870_v60 = vadd.f32 %v10784_v54, %v12772_v20  ;;  %v11005_v62 = vld [vmem:[%s12686_s25 + $0x60] sm:$0xff]   ;;  %v2003_v35 = vmax.f32 %v1875_v28, 0.0 }
 0x174   : > { %2248 = vadd.xlane.f32.xlu0 %v2114_v63  ;;  %v1999_v63 = vmax.f32 %v1871_v56, 0.0  ;;  %v10788_v3 = vunpack.c.l.bf16 %v11005_v62  ;;  %v10789_v4 = vunpack.c.h.bf16 %v11005_v62  ;;  %v2134_v24 = vmul.f32 %v12737_v23, %v2002_v13  ;;  %v11012_v56 = vld [vmem:[%s12686_s25 + $0x98] sm:$0xff]  }
 0x175   : > { %v1998_v2 = vmax.f32 %v1870_v60, 0.0  ;;  %v2135_v41 = vmul.f32 %v12737_v23, %v2003_v35  ;;  %v10816_v59 = vunpack.c.l.bf16 %v11012_v56  ;;  %v10820_v13 = vunpack.c.l.bf16 %v11013_v6 }
 0x176   : > { %v2131_v5 = vmul.f32 %v12737_v23, %v1999_v63  ;;  %v1872_v9 = vadd.f32 %v10788_v3, %v12772_v20  ;;  %v1873_v10 = vadd.f32 %v10789_v4, %v12772_v20 }
 0x177   : > { %v2130_v8 = vmul.f32 %v12737_v23, %v1998_v2 }
 0x178   : > { %v2001_v16 = vmax.f32 %v1873_v10, 0.0 }
 0x17a   : > { %v2133_v27 = vmul.f32 %v12737_v23, %v2001_v16 }
 0x17b   : > { %2258 = vadd.xlane.f32.xlu2 %v2119_v12  ;;  %2256 = vadd.xlane.f32.xlu1 %v2118_v14  ;;  %v11007_v12 = vld [vmem:[%s12686_s25 + $0x70] sm:$0xff]  }
 0x17c   : > { %2254 = vadd.xlane.f32.xlu0 %v2117_v15  ;;  %v10797_v14 = vunpack.c.h.bf16 %v11007_v12  ;;  %v2000_v15 = vmax.f32 %v1872_v9, 0.0  ;;  %v10796_v19 = vunpack.c.l.bf16 %v11007_v12  ;;  %v10817_v12 = vunpack.c.h.bf16 %v11012_v56 }
 0x17e   : > { %v1877_v25 = vadd.f32 %v10797_v14, %v12772_v20  ;;  %v2132_v26 = vmul.f32 %v12737_v23, %v2000_v15 }
 0x180   : > { %v2005_v33 = vmax.f32 %v1877_v25, 0.0  ;;  %v11014_v25 = vld [vmem:[%s12686_s25 + $0xa8] sm:$0xff]  }
 0x181   : > { %v10824_v30 = vunpack.c.l.bf16 %v11014_v25 }
 0x182   : > { %v2137_v39 = vmul.f32 %v12737_v23, %v2005_v33 }
 0x183   : > { %2264 = vadd.xlane.f32.xlu2 %v2122_v29  ;;  %2262 = vadd.xlane.f32.xlu1 %v2121_v31  ;;  %v1876_v29 = vadd.f32 %v10796_v19, %v12772_v20  ;;  %v11008_v31 = vld [vmem:[%s12686_s25 + $0x78] sm:$0xff]  }
 0x184   : > { %2260 = vadd.xlane.f32.xlu0 %v2120_v32  ;;  %v12813_v32 = vperm.slane %v1698_v22, 0  ;;  %v10800_v37 = vunpack.c.l.bf16 %v11008_v31  ;;  %v10801_v38 = vunpack.c.h.bf16 %v11008_v31  ;;  %v10825_v31 = vunpack.c.h.bf16 %v11014_v25 }
 0x185   : > { %v2004_v36 = vmax.f32 %v1876_v29, 0.0 }
 0x186   : > { %v1880_v40 = vadd.f32 %v10804_v34, %v12813_v32  ;;  %v1879_v44 = vadd.f32 %v10801_v38, %v12772_v20  ;;  %v1881_v54 = vadd.f32 %v10805_v49, %v12813_v32  ;;  %v1886_v1 = vadd.f32 %v10816_v59, %v12813_v32 }
 0x187   : > { %v2136_v42 = vmul.f32 %v12737_v23, %v2004_v36  ;;  %v1887_v19 = vadd.f32 %v10817_v12, %v12813_v32  ;;  %v1888_v22 = vadd.f32 %v10820_v13, %v12813_v32  ;;  %v1891_v38 = vadd.f32 %v10825_v31, %v12813_v32 }
 0x188   : > { %v2007_v48 = vmax.f32 %v1879_v44, 0.0  ;;  %v2009_v60 = vmax.f32 %v1881_v54, 0.0 }
 0x189   : > { %v2015_v28 = vmax.f32 %v1887_v19, 0.0  ;;  %v2016_v29 = vmax.f32 %v1888_v22, 0.0 }
 0x18a   : > { %v2141_v2 = vmul.f32 %v12737_v23, %v2009_v60 }
 0x18b   : > { %2270 = vadd.xlane.f32.xlu2 %v2125_v43  ;;  %2268 = vadd.xlane.f32.xlu1 %v2124_v45  ;;  %v1878_v43 = vadd.f32 %v10800_v37, %v12772_v20  ;;  %v2008_v45 = vmax.f32 %v1880_v40, 0.0  ;;  %v2139_v20 = vmul.f32 %v12737_v23, %v2007_v48  ;;  %v2147_v35 = vmul.f32 %v12737_v23, %v2015_v28 }
 0x18c   : > { %2266 = vadd.xlane.f32.xlu0 %v2123_v21  ;;  %v11010_v21 = vld [vmem:[%s12686_s25 + $0x88] sm:$0xff]   ;;  %v2148_v36 = vmul.f32 %v12737_v23, %v2016_v29  ;;  %v1890_v37 = vadd.f32 %v10824_v30, %v12813_v32 }
 0x18d   : > { %v10809_v46 = vunpack.c.h.bf16 %v11010_v21  ;;  %v2006_v47 = vmax.f32 %v1878_v43, 0.0  ;;  %v10808_v50 = vunpack.c.l.bf16 %v11010_v21  ;;  %v2140_v51 = vmul.f32 %v12737_v23, %v2008_v45 }
 0x18e   : > { %v2019_v43 = vmax.f32 %v1891_v38, 0.0  ;;  %v1699_v45 = vrot.slane %v12731_v17, 3 }
 0x18f   : > { %v1883_v52 = vadd.f32 %v10809_v46, %v12813_v32  ;;  %v2138_v53 = vmul.f32 %v12737_v23, %v2006_v47 }
 0x190   : > { %v2151_v49 = vmul.f32 %v12737_v23, %v2019_v43 }
 0x193   : > { %2276 = vadd.xlane.f32.xlu2 %v2128_v55  ;;  %2274 = vadd.xlane.f32.xlu1 %v2127_v58  ;;  %v1882_v55 = vadd.f32 %v10808_v50, %v12813_v32  ;;  %v2011_v58 = vmax.f32 %v1883_v52, 0.0  ;;  %v11018_v52 = vld [vmem:[%s12686_s25 + $0xc8] sm:$0xff]  }
 0x194   : > { %2272 = vadd.xlane.f32.xlu0 %v2126_v57  ;;  %v11011_v57 = vld [vmem:[%s12686_s25 + $0x90] sm:$0xff]  }
 0x195   : > { %v2010_v61 = vmax.f32 %v1882_v55, 0.0  ;;  %v10812_v62 = vunpack.c.l.bf16 %v11011_v57  ;;  %v10813_v63 = vunpack.c.h.bf16 %v11011_v57  ;;  %v2143_v0 = vmul.f32 %v12737_v23, %v2011_v58 }
 0x196   : > { %v10840_v55 = vunpack.c.l.bf16 %v11018_v52 }
 0x197   : > { %v2142_v3 = vmul.f32 %v12737_v23, %v2010_v61  ;;  %v1884_v4 = vadd.f32 %v10812_v62, %v12813_v32 }
 0x199   : > { %v2012_v9 = vmax.f32 %v1884_v4, 0.0 }
 0x19b   : > { %2282 = vadd.xlane.f32.xlu2 %v2131_v5  ;;  %2280 = vadd.xlane.f32.xlu1 %v2130_v8  ;;  %v1885_v5 = vadd.f32 %v10813_v63, %v12813_v32  ;;  %v10821_v8 = vunpack.c.h.bf16 %v11013_v6  ;;  %v2144_v16 = vmul.f32 %v12737_v23, %v2012_v9  ;;  %v10841_v6 = vunpack.c.h.bf16 %v11018_v52 }
 0x19c   : > { %2278 = vadd.xlane.f32.xlu0 %v2129_v7  ;;  %v2014_v7 = vmax.f32 %v1886_v1, 0.0  ;;  %v11019_v1 = vld [vmem:[%s12686_s25 + $0xd0] sm:$0xff]  }
 0x19d   : > { %v2013_v10 = vmax.f32 %v1885_v5, 0.0  ;;  %v1889_v15 = vadd.f32 %v10821_v8, %v12813_v32 }
 0x19e   : > { %v2146_v14 = vmul.f32 %v12737_v23, %v2014_v7  ;;  %v10844_v7 = vunpack.c.l.bf16 %v11019_v1 }
 0x19f   : > { %v2145_v18 = vmul.f32 %v12737_v23, %v2013_v10 }
 0x1a3   : > { %2288 = vadd.xlane.f32.xlu2 %v2134_v24  ;;  %2286 = vadd.xlane.f32.xlu1 %v2133_v27  ;;  %v11015_v24 = vld [vmem:[%s12686_s25 + $0xb0] sm:$0xff]  }
 0x1a4   : > { %2284 = vadd.xlane.f32.xlu0 %v2132_v26  ;;  %v2017_v26 = vmax.f32 %v1889_v15, 0.0  ;;  %v10828_v27 = vunpack.c.l.bf16 %v11015_v24  ;;  %v10829_v44 = vunpack.c.h.bf16 %v11015_v24  ;;  %v11021_v15 = vld [vmem:[%s12686_s25 + $0xe0] sm:$0xff]  }
 0x1a5   : > { %v10852_v19 = vunpack.c.l.bf16 %v11021_v15 }
 0x1a6   : > { %v2149_v33 = vmul.f32 %v12737_v23, %v2017_v26  ;;  %v1892_v34 = vadd.f32 %v10828_v27, %v12813_v32  ;;  %v1893_v50 = vadd.f32 %v10829_v44, %v12813_v32 }
 0x1a8   : > { %v2020_v40 = vmax.f32 %v1892_v34, 0.0  ;;  %v2021_v56 = vmax.f32 %v1893_v50, 0.0  ;;  %v11022_v34 = vld [vmem:[%s12686_s25 + $0xe8] sm:$0xff]  }
 0x1aa   : > { %v2152_v46 = vmul.f32 %v12737_v23, %v2020_v40  ;;  %v10856_v40 = vunpack.c.l.bf16 %v11022_v34 }
 0x1ab   : > { %2294 = vadd.xlane.f32.xlu2 %v2137_v39  ;;  %2292 = vadd.xlane.f32.xlu1 %v2136_v42  ;;  %v11016_v39 = vld [vmem:[%s12686_s25 + $0xb8] sm:$0xff]   ;;  %v2018_v42 = vmax.f32 %v1890_v37, 0.0 }
 0x1ac   : > { %2290 = vadd.xlane.f32.xlu0 %v2135_v41  ;;  %v10833_v41 = vunpack.c.h.bf16 %v11016_v39  ;;  %v10832_v21 = vunpack.c.l.bf16 %v11016_v39  ;;  %v10853_v39 = vunpack.c.h.bf16 %v11021_v15 }
 0x1ad   : > { %v2150_v48 = vmul.f32 %v12737_v23, %v2018_v42 }
 0x1ae   : > { %v1895_v47 = vadd.f32 %v10833_v41, %v12813_v32 }
 0x1b0   : > { %v2023_v54 = vmax.f32 %v1895_v47, 0.0  ;;  %v11023_v47 = vld [vmem:[%s12686_s25 + $0xf0] sm:$0xff]  }
 0x1b1   : > { %v10860_v52 = vunpack.c.l.bf16 %v11023_v47 }
 0x1b2   : > { %v2155_v60 = vmul.f32 %v12737_v23, %v2023_v54  ;;  %v1700_v54 = vrot.slane %v12731_v17, 4 }
 0x1b3   : > { %2300 = vadd.xlane.f32.xlu2 %v2140_v51  ;;  %2298 = vadd.xlane.f32.xlu1 %v2139_v20  ;;  %v1894_v51 = vadd.f32 %v10832_v21, %v12813_v32  ;;  %v12861_v20 = vperm.slane %v1699_v45, 0  ;;  %v2153_v32 = vmul.f32 %v12737_v23, %v2021_v56 }
 0x1b4   : > { %2296 = vadd.xlane.f32.xlu0 %v2138_v53  ;;  %v11017_v53 = vld [vmem:[%s12686_s25 + $0xc0] sm:$0xff]  }
 0x1b5   : > { %v2022_v57 = vmax.f32 %v1894_v51, 0.0  ;;  %v10836_v58 = vunpack.c.l.bf16 %v11017_v53  ;;  %v10837_v59 = vunpack.c.h.bf16 %v11017_v53  ;;  %v1898_v61 = vadd.f32 %v10840_v55, %v12861_v20 }
 0x1b6   : > { %v1899_v13 = vadd.f32 %v10841_v6, %v12861_v20  ;;  %v1904_v28 = vadd.f32 %v10852_v19, %v12861_v20  ;;  %v1905_v21 = vadd.f32 %v10853_v39, %v12861_v20  ;;  %v1906_v45 = vadd.f32 %v10856_v40, %v12861_v20 }
 0x1b7   : > { %v2154_v62 = vmul.f32 %v12737_v23, %v2022_v57  ;;  %v1896_v63 = vadd.f32 %v10836_v58, %v12861_v20  ;;  %v10861_v53 = vunpack.c.h.bf16 %v11023_v47 }
 0x1b8   : > { %v2027_v22 = vmax.f32 %v1899_v13, 0.0  ;;  %v2033_v50 = vmax.f32 %v1905_v21, 0.0  ;;  %v2034_v51 = vmax.f32 %v1906_v45, 0.0  ;;  %v11026_v13 = vld [vmem:[%s12686_s25 + $0x108] sm:$0xff]   ;;  %v11029_v21 = vld [vmem:[%s12686_s25 + $0x120] sm:$0xff]  }
 0x1b9   : > { %v2024_v4 = vmax.f32 %v1896_v63, 0.0  ;;  %v10872_v19 = vunpack.c.l.bf16 %v11026_v13 }
 0x1ba   : > { %v2159_v29 = vmul.f32 %v12737_v23, %v2027_v22  ;;  %v2165_v57 = vmul.f32 %v12737_v23, %v2033_v50  ;;  %v2166_v58 = vmul.f32 %v12737_v23, %v2034_v51  ;;  %v10873_v22 = vunpack.c.h.bf16 %v11026_v13 }
 0x1bb   : > { %2306 = vadd.xlane.f32.xlu2 %v2143_v0  ;;  %2304 = vadd.xlane.f32.xlu1 %v2142_v3  ;;  %v1897_v0 = vadd.f32 %v10837_v59, %v12861_v20  ;;  %v10845_v3 = vunpack.c.h.bf16 %v11019_v1  ;;  %v2156_v10 = vmul.f32 %v12737_v23, %v2024_v4  ;;  %v1908_v59 = vadd.f32 %v10860_v52, %v12861_v20 }
 0x1bc   : > { %2302 = vadd.xlane.f32.xlu0 %v2141_v2  ;;  %v2026_v2 = vmax.f32 %v1898_v61, 0.0  ;;  %v11025_v61 = vld [vmem:[%s12686_s25 + $0x100] sm:$0xff]   ;;  %v10884_v50 = vunpack.c.l.bf16 %v11029_v21  ;;  %v10885_v51 = vunpack.c.h.bf16 %v11029_v21  ;;  %v11035_v21 = vld [vmem:[%s12686_s25 + $0x150] sm:$0xff]  }
 0x1bd   : > { %v2025_v5 = vmax.f32 %v1897_v0, 0.0  ;;  %v1901_v9 = vadd.f32 %v10845_v3, %v12861_v20  ;;  %v10869_v63 = vunpack.c.h.bf16 %v11025_v61  ;;  %v2036_v0 = vmax.f32 %v1908_v59, 0.0 }
 0x1be   : > { %v2158_v8 = vmul.f32 %v12737_v23, %v2026_v2  ;;  %v10868_v3 = vunpack.c.l.bf16 %v11025_v61 }
 0x1bf   : > { %v2157_v12 = vmul.f32 %v12737_v23, %v2025_v5 }
 0x1c3   : > { %2312 = vadd.xlane.f32.xlu2 %v2146_v14  ;;  %2310 = vadd.xlane.f32.xlu1 %v2145_v18  ;;  %v1900_v14 = vadd.f32 %v10844_v7, %v12861_v20  ;;  %v2029_v18 = vmax.f32 %v1901_v9, 0.0  ;;  %v2168_v7 = vmul.f32 %v12737_v23, %v2036_v0 }
 0x1c4   : > { %2308 = vadd.xlane.f32.xlu0 %v2144_v16  ;;  %v11020_v16 = vld [vmem:[%s12686_s25 + $0xd8] sm:$0xff]  }
 0x1c5   : > { %v2028_v24 = vmax.f32 %v1900_v14, 0.0  ;;  %v10848_v25 = vunpack.c.l.bf16 %v11020_v16  ;;  %v10849_v26 = vunpack.c.h.bf16 %v11020_v16  ;;  %v2161_v27 = vmul.f32 %v12737_v23, %v2029_v18 }
 0x1c7   : > { %v2160_v30 = vmul.f32 %v12737_v23, %v2028_v24  ;;  %v1902_v31 = vadd.f32 %v10848_v25, %v12861_v20 }
 0x1c9   : > { %v2030_v37 = vmax.f32 %v1902_v31, 0.0 }
 0x1cb   : > { %2318 = vadd.xlane.f32.xlu2 %v2149_v33  ;;  %2316 = vadd.xlane.f32.xlu1 %v2148_v36  ;;  %v1903_v33 = vadd.f32 %v10849_v26, %v12861_v20  ;;  %v10857_v36 = vunpack.c.h.bf16 %v11022_v34  ;;  %v2162_v43 = vmul.f32 %v12737_v23, %v2030_v37 }
 0x1cc   : > { %2314 = vadd.xlane.f32.xlu0 %v2147_v35  ;;  %v2032_v35 = vmax.f32 %v1904_v28, 0.0 }
 0x1cd   : > { %v2031_v38 = vmax.f32 %v1903_v33, 0.0  ;;  %v1907_v42 = vadd.f32 %v10857_v36, %v12861_v20 }
 0x1ce   : > { %v2164_v41 = vmul.f32 %v12737_v23, %v2032_v35 }
 0x1cf   : > { %v2163_v44 = vmul.f32 %v12737_v23, %v2031_v38 }
 0x1d3   : > { %2324 = vadd.xlane.f32.xlu2 %v2152_v46  ;;  %2322 = vadd.xlane.f32.xlu1 %v2151_v49  ;;  %v11024_v46 = vld [vmem:[%s12686_s25 + $0xf8] sm:$0xff]  }
 0x1d4   : > { %2320 = vadd.xlane.f32.xlu0 %v2150_v48  ;;  %v2035_v48 = vmax.f32 %v1907_v42, 0.0  ;;  %v10864_v49 = vunpack.c.l.bf16 %v11024_v46  ;;  %v10865_v2 = vunpack.c.h.bf16 %v11024_v46 }
 0x1d6   : > { %v2167_v55 = vmul.f32 %v12737_v23, %v2035_v48  ;;  %v1910_v56 = vadd.f32 %v10864_v49, %v12861_v20  ;;  %v1911_v9 = vadd.f32 %v10865_v2, %v12861_v20  ;;  %v1701_v2 = vrot.slane %v12731_v17, 5 }
 0x1d7   : > { %v12905_v6 = vpop.xlane.xlu0 %2236 }
 0x1d8   : > { %v2039_v16 = vmax.f32 %v1911_v9, 0.0  ;;  %v12950_v13 = vperm.slane %v1701_v2, 0 }
 0x1db   : > { %2330 = vadd.xlane.f32.xlu2 %v2155_v60  ;;  %2328 = vadd.xlane.f32.xlu1 %v2154_v62  ;;  %v1909_v60 = vadd.f32 %v10861_v53, %v12861_v20  ;;  %v2038_v62 = vmax.f32 %v1910_v56, 0.0  ;;  %v2171_v20 = vmul.f32 %v12737_v23, %v2039_v16 }
 0x1dc   : > { %2326 = vadd.xlane.f32.xlu0 %v2153_v32  ;;  %v12901_v32 = vperm.slane %v1700_v54, 0 }
 0x1dd   : > { %v2037_v1 = vmax.f32 %v1909_v60, 0.0  ;;  %v2170_v4 = vmul.f32 %v12737_v23, %v2038_v62 }
 0x1de   : > { %v1913_v5 = vadd.f32 %v10869_v63, %v12901_v32  ;;  %v1915_v28 = vadd.f32 %v10873_v22, %v12901_v32  ;;  %v1920_v56 = vadd.f32 %v10884_v50, %v12901_v32 }
 0x1e0   : > { %v2041_v14 = vmax.f32 %v1913_v5, 0.0  ;;  %v2043_v35 = vmax.f32 %v1915_v28, 0.0  ;;  %v2048_v61 = vmax.f32 %v1920_v56, 0.0 }
 0x1e2   : > { %v2173_v24 = vmul.f32 %v12737_v23, %v2041_v14  ;;  %v2180_v5 = vmul.f32 %v12737_v23, %v2048_v61 }
 0x1e3   : > { %2336 = vadd.xlane.f32.xlu2 %v2158_v8  ;;  %2334 = vadd.xlane.f32.xlu1 %v2157_v12  ;;  %v2169_v8 = vmul.f32 %v12737_v23, %v2037_v1  ;;  %v11027_v12 = vld [vmem:[%s12686_s25 + $0x110] sm:$0xff]  }
 0x1e4   : > { %2332 = vadd.xlane.f32.xlu0 %v2156_v10  ;;  %v1912_v10 = vadd.f32 %v10868_v3, %v12901_v32  ;;  %v10876_v15 = vunpack.c.l.bf16 %v11027_v12  ;;  %v10877_v36 = vunpack.c.h.bf16 %v11027_v12  ;;  %v11032_v12 = vld [vmem:[%s12686_s25 + $0x138] sm:$0xff]  }
 0x1e5   : > { %v10897_v22 = vunpack.c.h.bf16 %v11032_v12 }
 0x1e6   : > { %v2040_v18 = vmax.f32 %v1912_v10, 0.0  ;;  %v1916_v25 = vadd.f32 %v10876_v15, %v12901_v32  ;;  %v1917_v42 = vadd.f32 %v10877_v36, %v12901_v32  ;;  %v11033_v10 = vld [vmem:[%s12686_s25 + $0x140] sm:$0xff]  }
 0x1e7   : > { %v10900_v15 = vunpack.c.l.bf16 %v11033_v10 }
 0x1e8   : > { %v2172_v26 = vmul.f32 %v12737_v23, %v2040_v18  ;;  %v2044_v31 = vmax.f32 %v1916_v25, 0.0  ;;  %v2045_v48 = vmax.f32 %v1917_v42, 0.0 }
 0x1e9   : > { %v1928_v25 = vadd.f32 %v10900_v15, %v12950_v13 }
 0x1ea   : > { %v2176_v38 = vmul.f32 %v12737_v23, %v2044_v31  ;;  %v2177_v54 = vmul.f32 %v12737_v23, %v2045_v48  ;;  %v11034_v31 = vld [vmem:[%s12686_s25 + $0x148] sm:$0xff]  }
 0x1eb   : > { %2342 = vadd.xlane.f32.xlu2 %v2161_v27  ;;  %2340 = vadd.xlane.f32.xlu1 %v2160_v30  ;;  %v1914_v27 = vadd.f32 %v10872_v19, %v12901_v32  ;;  %v12920_v30 = vpop.xlane.xlu0 %2238  ;;  %v10896_v19 = vunpack.c.l.bf16 %v11032_v12 }
 0x1ec   : > { %2338 = vadd.xlane.f32.xlu0 %v2159_v29  ;;  %v11028_v29 = vld [vmem:[%s12686_s25 + $0x118] sm:$0xff]   ;;  %19014 = vst [vmem:[#allocation55_spill] sm:$0xff] %v12920_v30 }
 0x1ed   : > { %v10881_v33 = vunpack.c.h.bf16 %v11028_v29  ;;  %v2042_v34 = vmax.f32 %v1914_v27, 0.0  ;;  %v10880_v37 = vunpack.c.l.bf16 %v11028_v29  ;;  %v1926_v28 = vadd.f32 %v10896_v19, %v12901_v32 }
 0x1ee   : > { %v1927_v29 = vadd.f32 %v10897_v22, %v12901_v32 }
 0x1ef   : > { %v1919_v39 = vadd.f32 %v10881_v33, %v12901_v32  ;;  %v2174_v40 = vmul.f32 %v12737_v23, %v2042_v34  ;;  %v2056_v33 = vmax.f32 %v1928_v25, 0.0  ;;  %v10905_v34 = vunpack.c.h.bf16 %v11034_v31 }
 0x1f0   : > { %v2055_v36 = vmax.f32 %v1927_v29, 0.0 }
 0x1f1   : > { %v2047_v45 = vmax.f32 %v1919_v39, 0.0  ;;  %v2188_v39 = vmul.f32 %v12737_v23, %v2056_v33 }
 0x1f3   : > { %2348 = vadd.xlane.f32.xlu2 %v2164_v41  ;;  %2346 = vadd.xlane.f32.xlu1 %v2163_v44  ;;  %v2175_v41 = vmul.f32 %v12737_v23, %v2043_v35  ;;  %v11030_v44 = vld [vmem:[%s12686_s25 + $0x128] sm:$0xff]   ;;  %v12930_v47 = vpop.xlane.xlu0 %2248  ;;  %v2179_v52 = vmul.f32 %v12737_v23, %v2047_v45  ;;  %v2054_v35 = vmax.f32 %v1926_v28, 0.0 }
 0x1f4   : > { %2344 = vadd.xlane.f32.xlu0 %v2162_v43  ;;  %v1918_v43 = vadd.f32 %v10880_v37, %v12901_v32  ;;  %v10888_v46 = vunpack.c.l.bf16 %v11030_v44  ;;  %19015 = vst [vmem:[#allocation56_spill] sm:$0xff] %v12930_v47  ;;  %v10889_v63 = vunpack.c.h.bf16 %v11030_v44  ;;  %v10901_v37 = vunpack.c.h.bf16 %v11033_v10  ;;  %v11036_v44 = vld [vmem:[%s12686_s25 + $0x158] sm:$0xff]  }
 0x1f6   : > { %v2046_v49 = vmax.f32 %v1918_v43, 0.0  ;;  %v1922_v53 = vadd.f32 %v10888_v46, %v12901_v32  ;;  %v1929_v42 = vadd.f32 %v10901_v37, %v12950_v13  ;;  %v12971_v46 = vpop.xlane.xlu2 %2244 }
 0x1f7   : > { %19019 = vst [vmem:[#allocation60_spill] sm:$0xff] %v12971_v46 }
 0x1f8   : > { %v2050_v59 = vmax.f32 %v1922_v53, 0.0  ;;  %v2057_v50 = vmax.f32 %v1929_v42, 0.0  ;;  %v10909_v53 = vunpack.c.h.bf16 %v11035_v21 }
 0x1fa   : > { %v2182_v3 = vmul.f32 %v12737_v23, %v2050_v59  ;;  %v2189_v56 = vmul.f32 %v12737_v23, %v2057_v50  ;;  %v1933_v59 = vadd.f32 %v10909_v53, %v12950_v13 }
 0x1fb   : > { %2354 = vadd.xlane.f32.xlu2 %v2167_v55  ;;  %2352 = vadd.xlane.f32.xlu1 %v2166_v58  ;;  %v2178_v55 = vmul.f32 %v12737_v23, %v2046_v49  ;;  %v11031_v58 = vld [vmem:[%s12686_s25 + $0x130] sm:$0xff]   ;;  %v12939_v1 = vpop.xlane.xlu0 %2254  ;;  %v10912_v49 = vunpack.c.l.bf16 %v11036_v44 }
 0x1fc   : > { %2350 = vadd.xlane.f32.xlu0 %v2165_v57  ;;  %v1921_v57 = vadd.f32 %v10885_v51, %v12901_v32  ;;  %v10893_v60 = vunpack.c.h.bf16 %v11031_v58  ;;  %v10892_v0 = vunpack.c.l.bf16 %v11031_v58  ;;  %19016 = vst [vmem:[#allocation57_spill] sm:$0xff] %v12939_v1  ;;  %v2061_v2 = vmax.f32 %v1933_v59, 0.0 }
 0x1fe   : > { %v2049_v62 = vmax.f32 %v1921_v57, 0.0  ;;  %v1924_v9 = vadd.f32 %v10892_v0, %v12901_v32  ;;  %v2193_v12 = vmul.f32 %v12737_v23, %v2061_v2 }
 0x200   : > { %v2052_v18 = vmax.f32 %v1924_v9, 0.0 }
 0x202   : > { %v2184_v27 = vmul.f32 %v12737_v23, %v2052_v18  ;;  %v11038_v18 = vld [vmem:[%s12686_s25 + $0x168] sm:$0xff]  }
 0x203   : > { %2360 = vadd.xlane.f32.xlu2 %v2170_v4  ;;  %2358 = vadd.xlane.f32.xlu1 %v2169_v8  ;;  %v1925_v4 = vadd.f32 %v10893_v60, %v12901_v32  ;;  %v1923_v8 = vadd.f32 %v10889_v63, %v12901_v32  ;;  %v2187_v32 = vmul.f32 %v12737_v23, %v2055_v36  ;;  %v11037_v60 = vld [vmem:[%s12686_s25 + $0x160] sm:$0xff]  }
 0x204   : > { %2356 = vadd.xlane.f32.xlu0 %v2168_v7  ;;  %v2181_v7 = vmul.f32 %v12737_v23, %v2049_v62  ;;  %v10917_v62 = vunpack.c.h.bf16 %v11037_v60 }
 0x205   : > { %v2053_v14 = vmax.f32 %v1925_v4, 0.0  ;;  %v2051_v16 = vmax.f32 %v1923_v8, 0.0  ;;  %v10916_v4 = vunpack.c.l.bf16 %v11037_v60 }
 0x206   : > { %v1937_v9 = vadd.f32 %v10917_v62, %v12950_v13 }
 0x207   : > { %v1936_v15 = vadd.f32 %v10916_v4, %v12950_v13 }
 0x208   : > { %v2065_v19 = vmax.f32 %v1937_v9, 0.0 }
 0x209   : > { %v2064_v25 = vmax.f32 %v1936_v15, 0.0 }
 0x20b   : > { %2366 = vadd.xlane.f32.xlu2 %v2173_v24  ;;  %2364 = vadd.xlane.f32.xlu1 %v2172_v26  ;;  %v2185_v24 = vmul.f32 %v12737_v23, %v2053_v14  ;;  %v2183_v26 = vmul.f32 %v12737_v23, %v2051_v16  ;;  %v11039_v16 = vld [vmem:[%s12686_s25 + $0x170] sm:$0xff]  }
 0x20c   : > { %2362 = vadd.xlane.f32.xlu0 %v2171_v20  ;;  %v12954_v20 = vpop.xlane.xlu0 %2260  ;;  %v10924_v22 = vunpack.c.l.bf16 %v11039_v16 }
 0x20d   : > { %19017 = vst [vmem:[#allocation58_spill] sm:$0xff] %v12954_v20 }
 0x20e   : > { %v1940_v33 = vadd.f32 %v10924_v22, %v12950_v13 }
 0x213   : > { %2372 = vadd.xlane.f32.xlu2 %v2176_v38  ;;  %2370 = vadd.xlane.f32.xlu1 %v2175_v41  ;;  %v10904_v38 = vunpack.c.l.bf16 %v11034_v31  ;;  %v2186_v41 = vmul.f32 %v12737_v23, %v2054_v35  ;;  %v2197_v31 = vmul.f32 %v12737_v23, %v2065_v19  ;;  %v13002_v35 = vld [vmem:[#allocation18] ss:$0 sm:$0xff] }
 0x214   : > { %2368 = vadd.xlane.f32.xlu0 %v2174_v40  ;;  %v1931_v40 = vadd.f32 %v10905_v34, %v12950_v13  ;;  %v12969_v45 = vpop.xlane.xlu0 %2266  ;;  %v2196_v37 = vmul.f32 %v13002_v35, %v2064_v25 }
 0x215   : > { %v1930_v43 = vadd.f32 %v10904_v38, %v12950_v13  ;;  %19018 = vst [vmem:[#allocation59_spill] sm:$0xff] %v12969_v45 }
 0x216   : > { %v2059_v48 = vmax.f32 %v1931_v40, 0.0  ;;  %v11040_v40 = vld [vmem:[%s12686_s25 + $0x178] sm:$0xff]  }
 0x217   : > { %v2058_v51 = vmax.f32 %v1930_v43, 0.0  ;;  %v10925_v43 = vunpack.c.h.bf16 %v11039_v16 }
 0x219   : > { %v2190_v57 = vmul.f32 %v12737_v23, %v2058_v51  ;;  %v1941_v53 = vadd.f32 %v10925_v43, %v12950_v13 }
 0x21b   : > { %2378 = vadd.xlane.f32.xlu2 %v2179_v52  ;;  %2376 = vadd.xlane.f32.xlu1 %v2178_v55  ;;  %v10908_v52 = vunpack.c.l.bf16 %v11035_v21  ;;  %v1934_v55 = vadd.f32 %v10912_v49, %v12950_v13  ;;  %v1702_v21 = vrot.slane %v12731_v17, 6  ;;  %v2069_v62 = vmax.f32 %v1941_v53, 0.0 }
 0x21c   : > { %2374 = vadd.xlane.f32.xlu0 %v2177_v54  ;;  %v2191_v54 = vmul.f32 %v12737_v23, %v2059_v48  ;;  %v12980_v63 = vpop.xlane.xlu0 %2272 }
 0x21d   : > { %v1932_v58 = vadd.f32 %v10908_v52, %v12950_v13  ;;  %v2062_v61 = vmax.f32 %v1934_v55, 0.0  ;;  %19020 = vst [vmem:[#allocation61_spill] sm:$0xff] %v12980_v63  ;;  %v11042_v55 = vld [vmem:[%s12686_s25 + $0x188] sm:$0xff]   ;;  %v13024_v59 = vperm.slane %v1702_v21, 0 }
 0x21f   : > { %v2060_v0 = vmax.f32 %v1932_v58, 0.0  ;;  %v2194_v8 = vmul.f32 %v12737_v23, %v2062_v61  ;;  %v10936_v61 = vunpack.c.l.bf16 %v11042_v55 }
 0x221   : > { %v2192_v10 = vmul.f32 %v12737_v23, %v2060_v0  ;;  %v2068_v23 = vmax.f32 %v1940_v33, 0.0  ;;  %v1946_v4 = vadd.f32 %v10936_v61, %v13024_v59  ;;  %v11046_v61 = vld [vmem:[%s12686_s25 + $0x1a8] sm:$0xff]  }
 0x223   : > { %2384 = vadd.xlane.f32.xlu2 %v2182_v3  ;;  %2382 = vadd.xlane.f32.xlu1 %v2181_v7  ;;  %v10913_v3 = vunpack.c.h.bf16 %v11036_v44  ;;  %v12984_v7 = vpop.xlane.xlu1 %2240  ;;  %v10928_v44 = vunpack.c.l.bf16 %v11040_v40  ;;  %v2200_v48 = vmul.f32 %v13002_v35, %v2068_v23  ;;  %v11044_v23 = vld [vmem:[%s12686_s25 + $0x198] sm:$0xff]  }
 0x224   : > { %2380 = vadd.xlane.f32.xlu0 %v2180_v5  ;;  %v12982_v5 = vpop.xlane.xlu2 %2246  ;;  %19021 = vst [vmem:[#allocation62_spill] sm:$0xff] %v12984_v7  ;;  %v12994_v28 = vpop.xlane.xlu0 %2278  ;;  %v10944_v21 = vunpack.c.l.bf16 %v11044_v23 }
 0x225   : > { %v1935_v14 = vadd.f32 %v10913_v3, %v12950_v13  ;;  %19022 = vst [vmem:[#allocation63_spill] sm:$0xff] %v12994_v28 }
 0x22b   : > { %2390 = vadd.xlane.f32.xlu2 %v2185_v24  ;;  %2388 = vadd.xlane.f32.xlu1 %v2184_v27  ;;  %v2063_v24 = vmax.f32 %v1935_v14, 0.0  ;;  %v10921_v27 = vunpack.c.h.bf16 %v11038_v18  ;;  %v13000_v34 = vpop.xlane.xlu1 %2242  ;;  %v11043_v14 = vld [vmem:[%s12686_s25 + $0x190] sm:$0xff]  }
 0x22c   : > { %2386 = vadd.xlane.f32.xlu0 %v2183_v26  ;;  %v10920_v26 = vunpack.c.l.bf16 %v11038_v18  ;;  %v12996_v29 = vpop.xlane.xlu2 %2252  ;;  %19023 = vst [vmem:[#allocation64_spill] sm:$0xff] %v13000_v34  ;;  %v13012_v50 = vpop.xlane.xlu0 %2284  ;;  %v2074_v18 = vmax.f32 %v1946_v4, 0.0  ;;  %v10941_v19 = vunpack.c.h.bf16 %v11043_v14  ;;  %v10952_v4 = vunpack.c.l.bf16 %v11046_v61 }
 0x22d   : > { %v2195_v36 = vmul.f32 %v13002_v35, %v2063_v24  ;;  %19024 = vst [vmem:[#allocation65_spill] sm:$0xff] %v13012_v50 }
 0x22e   : > { %v1938_v38 = vadd.f32 %v10920_v26, %v12950_v13  ;;  %v10937_v26 = vunpack.c.h.bf16 %v11042_v55  ;;  %v1949_v33 = vadd.f32 %v10941_v19, %v13024_v59 }
 0x233   : > { %2396 = vadd.xlane.f32.xlu2 %v2188_v39  ;;  %2394 = vadd.xlane.f32.xlu1 %v2187_v32  ;;  %v1939_v39 = vadd.f32 %v10921_v27, %v12950_v13  ;;  %v2066_v32 = vmax.f32 %v1938_v38, 0.0  ;;  %v13022_v58 = vpop.xlane.xlu1 %2250  ;;  %v10940_v27 = vunpack.c.l.bf16 %v11043_v14  ;;  %v1947_v38 = vadd.f32 %v10937_v26, %v13024_v59  ;;  %v11048_v26 = vld [vmem:[%s12686_s25 + $0x1b8] sm:$0xff]  }
 0x234   : > { %2392 = vadd.xlane.f32.xlu0 %v2186_v41  ;;  %v10929_v41 = vunpack.c.h.bf16 %v11040_v40  ;;  %19025 = vst [vmem:[#allocation66_spill] sm:$0xff] %v13022_v58  ;;  %v13033_v15 = vpop.xlane.xlu0 %2290  ;;  %v11045_v40 = vld [vmem:[%s12686_s25 + $0x1a0] sm:$0xff]  }
 0x235   : > { %v2067_v42 = vmax.f32 %v1939_v39, 0.0  ;;  %v2198_v51 = vmul.f32 %v13002_v35, %v2066_v32  ;;  %19026 = vst [vmem:[#allocation67_spill] sm:$0xff] %v13033_v15  ;;  %v1948_v39 = vadd.f32 %v10940_v27, %v13024_v59  ;;  %v10948_v32 = vunpack.c.l.bf16 %v11045_v40  ;;  %v11047_v27 = vld [vmem:[%s12686_s25 + $0x1b0] sm:$0xff]  }
 0x236   : > { %v1943_v49 = vadd.f32 %v10929_v41, %v12950_v13  ;;  %v2077_v41 = vmax.f32 %v1949_v33, 0.0  ;;  %v2075_v43 = vmax.f32 %v1947_v38, 0.0  ;;  %v10960_v33 = vunpack.c.l.bf16 %v11048_v26 }
 0x237   : > { %v2199_v52 = vmul.f32 %v13002_v35, %v2067_v42  ;;  %v1952_v53 = vadd.f32 %v10948_v32, %v13024_v59  ;;  %v10956_v38 = vunpack.c.l.bf16 %v11047_v27 }
 0x238   : > { %v2071_v60 = vmax.f32 %v1943_v49, 0.0 }
 0x23b   : > { %2402 = vadd.xlane.f32.xlu2 %v2191_v54  ;;  %2400 = vadd.xlane.f32.xlu1 %v2190_v57  ;;  %v1942_v54 = vadd.f32 %v10928_v44, %v12950_v13  ;;  %v11041_v57 = vld [vmem:[%s12686_s25 + $0x180] sm:$0xff]   ;;  %v2203_v13 = vmul.f32 %v13002_v35, %v2071_v60  ;;  %v13037_v22 = vpop.xlane.xlu1 %2256  ;;  %v2076_v44 = vmax.f32 %v1948_v39, 0.0  ;;  %v10957_v39 = vunpack.c.h.bf16 %v11047_v27 }
 0x23c   : > { %2398 = vadd.xlane.f32.xlu0 %v2189_v56  ;;  %v13019_v56 = vpop.xlane.xlu2 %2258  ;;  %v10932_v2 = vunpack.c.l.bf16 %v11041_v57  ;;  %v10933_v3 = vunpack.c.h.bf16 %v11041_v57  ;;  %19027 = vst [vmem:[#allocation68_spill] sm:$0xff] %v13037_v22  ;;  %v13047_v42 = vpop.xlane.xlu0 %2296  ;;  %v1950_v57 = vadd.f32 %v10944_v21, %v13024_v59  ;;  %v1956_v21 = vadd.f32 %v10956_v38, %v13024_v59 }
 0x23d   : > { %v2070_v0 = vmax.f32 %v1942_v54, 0.0  ;;  %19028 = vst [vmem:[#allocation69_spill] sm:$0xff] %v13047_v42  ;;  %v2207_v54 = vmul.f32 %v13002_v35, %v2075_v43  ;;  %v2208_v55 = vmul.f32 %v13002_v35, %v2076_v44 }
 0x23f   : > { %v2202_v9 = vmul.f32 %v13002_v35, %v2070_v0  ;;  %v10953_v0 = vunpack.c.h.bf16 %v11046_v61 }
 0x243   : > { %2408 = vadd.xlane.f32.xlu2 %v2194_v8  ;;  %2406 = vadd.xlane.f32.xlu1 %v2193_v12  ;;  %v2201_v8 = vmul.f32 %v13002_v35, %v2069_v62  ;;  %v1945_v12 = vadd.f32 %v10933_v3, %v13024_v59  ;;  %v2080_v62 = vmax.f32 %v1952_v53, 0.0 }
 0x244   : > { %2404 = vadd.xlane.f32.xlu0 %v2192_v10  ;;  %v1944_v10 = vadd.f32 %v10932_v2, %v13024_v59  ;;  %v13035_v16 = vpop.xlane.xlu2 %2264  ;;  %v2078_v2 = vmax.f32 %v1950_v57, 0.0 }
 0x245   : > { %v2073_v25 = vmax.f32 %v1945_v12, 0.0  ;;  %v1955_v12 = vadd.f32 %v10953_v0, %v13024_v59 }
 0x246   : > { %v2072_v24 = vmax.f32 %v1944_v10, 0.0  ;;  %v2212_v10 = vmul.f32 %v13002_v35, %v2080_v62  ;;  %v10961_v62 = vunpack.c.h.bf16 %v11048_v26 }
 0x24b   : > { %2414 = vadd.xlane.f32.xlu2 %v2197_v31  ;;  %2412 = vadd.xlane.f32.xlu1 %v2196_v37  ;;  %v2206_v31 = vmul.f32 %v13002_v35, %v2074_v18  ;;  %v2205_v37 = vmul.f32 %v13002_v35, %v2073_v25  ;;  %v2210_v18 = vmul.f32 %v13002_v35, %v2078_v2 }
 0x24c   : > { %2410 = vadd.xlane.f32.xlu0 %v2195_v36  ;;  %v2204_v36 = vmul.f32 %v13002_v35, %v2072_v24  ;;  %v13049_v49 = vpop.xlane.xlu2 %2270  ;;  %v1954_v25 = vadd.f32 %v10952_v4, %v13024_v59 }
 0x253   : > { %2420 = vadd.xlane.f32.xlu2 %v2200_v48  ;;  %2418 = vadd.xlane.f32.xlu1 %v2199_v52  ;;  %v10945_v48 = vunpack.c.h.bf16 %v11044_v23  ;;  %v2209_v52 = vmul.f32 %v13002_v35, %v2077_v41  ;;  %v1958_v41 = vadd.f32 %v10960_v33, %v13024_v59 }
 0x254   : > { %2416 = vadd.xlane.f32.xlu0 %v2198_v51  ;;  %v13051_v51 = vpop.xlane.xlu1 %2262 }
 0x255   : > { %19029 = vst [vmem:[#allocation70_spill] sm:$0xff] %v13051_v51  ;;  %v1951_v60 = vadd.f32 %v10945_v48, %v13024_v59  ;;  %v1957_v48 = vadd.f32 %v10957_v39, %v13024_v59 }
 0x257   : > { %v2079_v3 = vmax.f32 %v1951_v60, 0.0  ;;  %v2084_v60 = vmax.f32 %v1956_v21, 0.0  ;;  %v2085_v61 = vmax.f32 %v1957_v48, 0.0 }
 0x259   : > { %v2211_v19 = vmul.f32 %v13002_v35, %v2079_v3  ;;  %v2217_v4 = vmul.f32 %v13002_v35, %v2085_v61 }
 0x25b   : > { %2426 = vadd.xlane.f32.xlu2 %v2203_v13  ;;  %2424 = vadd.xlane.f32.xlu1 %v2202_v9  ;;  %v10949_v13 = vunpack.c.h.bf16 %v11045_v40  ;;  %v13062_v9 = vpop.xlane.xlu2 %2276  ;;  %v1703_v40 = vrot.slane %v12731_v17, 7 }
 0x25c   : > { %2422 = vadd.xlane.f32.xlu0 %v2201_v8  ;;  %v13060_v8 = vpop.xlane.xlu0 %2302  ;;  %v13066_v14 = vpop.xlane.xlu1 %2268 }
 0x25d   : > { %19030 = vst [vmem:[#allocation71_spill] sm:$0xff] %v13060_v8  ;;  %v1953_v24 = vadd.f32 %v10949_v13, %v13024_v59  ;;  %v13088_v17 = vperm.slane %v1703_v40, 0  ;;  %v2216_v13 = vmul.f32 %v13002_v35, %v2084_v60 }
 0x25e   : > { %19031 = vst [vmem:[#allocation72_spill] sm:$0xff] %v13066_v14 }
 0x263   : > { %2432 = vadd.xlane.f32.xlu2 %v2206_v31  ;;  %2430 = vadd.xlane.f32.xlu1 %v2205_v37  ;;  %v2083_v31 = vmax.f32 %v1955_v12, 0.0  ;;  %v2082_v37 = vmax.f32 %v1954_v25, 0.0  ;;  %v13084_v53 = vpop.xlane.xlu2 %2282 }
 0x264   : > { %2428 = vadd.xlane.f32.xlu0 %v2204_v36  ;;  %v2081_v36 = vmax.f32 %v1953_v24, 0.0  ;;  %v13077_v32 = vpop.xlane.xlu0 %2308 }
 0x265   : > { %v2215_v23 = vmul.f32 %v13002_v35, %v2083_v31  ;;  %19032 = vst [vmem:[#allocation73_spill] sm:$0xff] %v13077_v32  ;;  %v2214_v44 = vmul.f32 %v13002_v35, %v2082_v37 }
 0x266   : > { %v2213_v43 = vmul.f32 %v13002_v35, %v2081_v36 }
 0x26b   : > { %2438 = vadd.xlane.f32.xlu2 %v2209_v52  ;;  %2436 = vadd.xlane.f32.xlu1 %v2208_v55  ;;  %v11049_v52 = vld [vmem:[%s12686_s25 + $0x1c0] sm:$0xff]   ;;  %v2086_v55 = vmax.f32 %v1958_v41, 0.0  ;;  %v13100_v25 = vpop.xlane.xlu2 %2288 }
 0x26c   : > { %2434 = vadd.xlane.f32.xlu0 %v2207_v54  ;;  %v13086_v54 = vpop.xlane.xlu1 %2274  ;;  %v10965_v57 = vunpack.c.h.bf16 %v11049_v52  ;;  %v10964_v0 = vunpack.c.l.bf16 %v11049_v52  ;;  %v13098_v24 = vpop.xlane.xlu0 %2314 }
 0x26d   : > { %19033 = vst [vmem:[#allocation74_spill] sm:$0xff] %v13086_v54  ;;  %v2218_v2 = vmul.f32 %v13002_v35, %v2086_v55 }
 0x26e   : > { %v1961_v3 = vadd.f32 %v10965_v57, %v13088_v17  ;;  %v1960_v12 = vadd.f32 %v10964_v0, %v13088_v17  ;;  %19034 = vst [vmem:[#allocation75_spill] sm:$0xff] %v13098_v24 }
 0x270   : > { %v2089_v26 = vmax.f32 %v1961_v3, 0.0  ;;  %v2088_v36 = vmax.f32 %v1960_v12, 0.0 }
 0x272   : > { %v2221_v38 = vmul.f32 %v13002_v35, %v2089_v26 }
 0x273   : > { %2444 = vadd.xlane.f32.xlu2 %v2212_v10  ;;  %2442 = vadd.xlane.f32.xlu1 %v2211_v19  ;;  %v1959_v10 = vadd.f32 %v10961_v62, %v13024_v59  ;;  %v11050_v19 = vld [vmem:[%s12686_s25 + $0x1c8] sm:$0xff]   ;;  %v13113_v62 = vpop.xlane.xlu2 %2294 }
 0x274   : > { %2440 = vadd.xlane.f32.xlu0 %v2210_v18  ;;  %v11051_v18 = vld [vmem:[%s12686_s25 + $0x1d0] sm:$0xff]   ;;  %v13102_v31 = vpop.xlane.xlu1 %2280  ;;  %v10968_v37 = vunpack.c.l.bf16 %v11050_v19  ;;  %v10969_v59 = vunpack.c.h.bf16 %v11050_v19  ;;  %v13111_v52 = vpop.xlane.xlu0 %2320  ;;  %v11054_v19 = vld [vmem:[%s12686_s25 + $0x1e8] sm:$0xff]  }
 0x275   : > { %v10972_v27 = vunpack.c.l.bf16 %v11051_v18  ;;  %19035 = vst [vmem:[#allocation76_spill] sm:$0xff] %v13102_v31  ;;  %v2087_v33 = vmax.f32 %v1959_v10, 0.0  ;;  %v10973_v60 = vunpack.c.h.bf16 %v11051_v18  ;;  %v11053_v18 = vld [vmem:[%s12686_s25 + $0x1e0] sm:$0xff]  }
 0x276   : > { %v1962_v41 = vadd.f32 %v10968_v37, %v13088_v17  ;;  %19036 = vst [vmem:[#allocation77_spill] sm:$0xff] %v13111_v52  ;;  %v10980_v37 = vunpack.c.l.bf16 %v11053_v18 }
 0x277   : > { %v1964_v39 = vadd.f32 %v10972_v27, %v13088_v17  ;;  %v2219_v40 = vmul.f32 %v13002_v35, %v2087_v33  ;;  %v1965_v10 = vadd.f32 %v10973_v60, %v13088_v17  ;;  %v10984_v27 = vunpack.c.l.bf16 %v11054_v19  ;;  %v11055_v60 = vld [vmem:[%s12686_s25 + $0x1f0] sm:$0xff]  }
 0x278   : > { %v2090_v55 = vmax.f32 %v1962_v41, 0.0 }
 0x279   : > { %v2092_v21 = vmax.f32 %v1964_v39, 0.0  ;;  %v2093_v33 = vmax.f32 %v1965_v10, 0.0  ;;  %v1970_v41 = vadd.f32 %v10984_v27, %v13088_v17  ;;  %v10988_v10 = vunpack.c.l.bf16 %v11055_v60 }
 0x27b   : > { %2450 = vadd.xlane.f32.xlu2 %v2215_v23  ;;  %2448 = vadd.xlane.f32.xlu1 %v2214_v44  ;;  %v2220_v23 = vmul.f32 %v13002_v35, %v2088_v36  ;;  %v11052_v44 = vld [vmem:[%s12686_s25 + $0x1d8] sm:$0xff]  }
 0x27c   : > { %2446 = vadd.xlane.f32.xlu0 %v2213_v43  ;;  %v1963_v43 = vadd.f32 %v10969_v59, %v13088_v17  ;;  %v10977_v48 = vunpack.c.h.bf16 %v11052_v44  ;;  %v10976_v61 = vunpack.c.l.bf16 %v11052_v44  ;;  %v13115_v0 = vpop.xlane.xlu1 %2286  ;;  %v10981_v59 = vunpack.c.h.bf16 %v11053_v18  ;;  %v13125_v39 = vpop.xlane.xlu0 %2326 }
 0x27d   : > { %19037 = vst [vmem:[#allocation78_spill] sm:$0xff] %v13115_v0 }
 0x27e   : > { %v2091_v57 = vmax.f32 %v1963_v43, 0.0  ;;  %v1967_v3 = vadd.f32 %v10977_v48, %v13088_v17  ;;  %v1966_v12 = vadd.f32 %v10976_v61, %v13088_v17  ;;  %19038 = vst [vmem:[#allocation79_spill] sm:$0xff] %v13125_v39  ;;  %v2098_v61 = vmax.f32 %v1970_v41, 0.0 }
 0x280   : > { %v2095_v26 = vmax.f32 %v1967_v3, 0.0  ;;  %v2094_v36 = vmax.f32 %v1966_v12, 0.0  ;;  %v2230_v12 = vmul.f32 %v13002_v35, %v2098_v61 }
 0x282   : > { %v2226_v48 = vmul.f32 %v13002_v35, %v2094_v36 }
 0x283   : > { %2456 = vadd.xlane.f32.xlu2 %v2218_v2  ;;  %2454 = vadd.xlane.f32.xlu1 %v2217_v4  ;;  %v2224_v2 = vmul.f32 %v13002_v35, %v2092_v21  ;;  %v2223_v4 = vmul.f32 %v13002_v35, %v2091_v57  ;;  %v2225_v21 = vmul.f32 %v13002_v35, %v2093_v33 }
 0x284   : > { %2452 = vadd.xlane.f32.xlu0 %v2216_v13  ;;  %v2222_v13 = vmul.f32 %v13002_v35, %v2090_v55  ;;  %v13134_v44 = vpop.xlane.xlu1 %2292  ;;  %v1968_v55 = vadd.f32 %v10980_v37, %v13088_v17  ;;  %v1969_v57 = vadd.f32 %v10981_v59, %v13088_v17  ;;  %v1972_v37 = vadd.f32 %v10988_v10, %v13088_v17 }
 0x285   : > { %19039 = vst [vmem:[#allocation80_spill] sm:$0xff] %v13134_v44 }
 0x286   : > { %v2096_v3 = vmax.f32 %v1968_v55, 0.0  ;;  %v2100_v55 = vmax.f32 %v1972_v37, 0.0 }
 0x288   : > { %v2228_v27 = vmul.f32 %v13002_v35, %v2096_v3  ;;  %v2232_v3 = vmul.f32 %v13002_v35, %v2100_v55 }
 0x28b   : > { %2462 = vadd.xlane.f32.xlu2 %v2221_v38  ;;  %2460 = vadd.xlane.f32.xlu1 %v2220_v23  ;;  %v18541_v38 = vlaneseq  ;;  %v2227_v23 = vmul.f32 %v13002_v35, %v2095_v26  ;;  %v13145_v26 = vpop.xlane.xlu0 %2332 }
 0x28c   : > { %2458 = vadd.xlane.f32.xlu0 %v2219_v40  ;;  %v13127_v40 = vpop.xlane.xlu2 %2300  ;;  %19040 = vst [vmem:[#allocation81_spill] sm:$0xff] %v13145_v26  ;;  %v13157_v41 = vpop.xlane.xlu1 %2298 }
 0x28d   : > { %v13132_v43 = vshrl.u32 %v18541_v38, 7  ;;  %19041 = vst [vmem:[#allocation82_spill] sm:$0xff] %v13157_v41 }
 0x28f   : > { %11314 = vset.pattern.permute.xlu0 %v13132_v43  ;;  %11275 = vset.pattern.permute.xlu2 %v13132_v43  ;;  %v13221_v38 = vadd.s32 32, %v13132_v43  ;;  %v13226_v11 = vadd.s32 80, %v13132_v43 }
 0x293   : > { %2468 = vadd.xlane.f32.xlu2 %v2224_v2  ;;  %2466 = vadd.xlane.f32.xlu1 %v2223_v4  ;;  %v10989_v2 = vunpack.c.h.bf16 %v11055_v60  ;;  %v10985_v4 = vunpack.c.h.bf16 %v11054_v19  ;;  %v13155_v19 = vadd.s32 16, %v13132_v43  ;;  %v13165_v10 = vpop.xlane.xlu0 %2338 }
 0x294   : > { %2464 = vadd.xlane.f32.xlu0 %v2222_v13  ;;  %v2097_v13 = vmax.f32 %v1969_v57, 0.0  ;;  %v13151_v59 = vpop.xlane.xlu2 %2306  ;;  %19042 = vst [vmem:[#allocation83_spill] sm:$0xff] %v13165_v10  ;;  %v13242_v10 = vadd.s32 48, %v13132_v43 }
 0x295   : > { %v1973_v18 = vadd.f32 %v10989_v2, %v13088_v17  ;;  %v1971_v36 = vadd.f32 %v10985_v4, %v13088_v17  ;;  %11276 = vset.pattern.permute.xlu1 %v13155_v19 }
 0x296   : > { %v2229_v33 = vmul.f32 %v13002_v35, %v2097_v13 }
 0x29b   : > { %2474 = vadd.xlane.f32.xlu2 %v2227_v23  ;;  %2472 = vadd.xlane.f32.xlu1 %v2226_v48  ;;  %v11056_v23 = vld [vmem:[%s12686_s25 + $0x1f8] sm:$0xff]   ;;  %v2099_v48 = vmax.f32 %v1971_v36, 0.0 }
 0x29c   : > { %2470 = vadd.xlane.f32.xlu0 %v2225_v21  ;;  %v2101_v21 = vmax.f32 %v1973_v18, 0.0  ;;  %v10992_v57 = vunpack.c.l.bf16 %v11056_v23  ;;  %v10993_v60 = vunpack.c.h.bf16 %v11056_v23  ;;  %v13169_v18 = vpop.xlane.xlu1 %2304  ;;  %v13173_v23 = vpop.xlane.xlu0 %2344 }
 0x29d   : > { %v2231_v2 = vmul.f32 %v13002_v35, %v2099_v48  ;;  %19043 = vst [vmem:[#allocation84_spill] sm:$0xff] %v13169_v18  ;;  %v13181_v48 = vld [vmem:[%s780_s3] sm:$0xff] }
 0x29e   : > { %v2233_v61 = vmul.f32 %v13002_v35, %v2101_v21  ;;  %v1974_v13 = vadd.f32 %v10992_v57, %v13088_v17  ;;  %v1975_v4 = vadd.f32 %v10993_v60, %v13088_v17  ;;  %19044 = vst [vmem:[#allocation85_spill] sm:$0xff] %v13173_v23  ;;  %v13184_v55 = vperm.slane %v13181_v48, 0 }
 0x29f   : > { %v13237_v23 = vadd.s32 56, %v13132_v43  ;;  %v13442_v46 = vperm.slane %v13181_v48, 2 }
 0x2a3   : > { %2480 = vadd.xlane.f32.xlu2 %v2230_v12  ;;  %2478 = vadd.xlane.f32.xlu1 %v2229_v33  ;;  %v13167_v12 = vpop.xlane.xlu2 %2312  ;;  %v2103_v33 = vmax.f32 %v1975_v4, 0.0 }
 0x2a4   : > { %2476 = vadd.xlane.f32.xlu0 %v2228_v27  ;;  %v2102_v27 = vmax.f32 %v1974_v13, 0.0  ;;  %v13177_v21 = vpop.xlane.xlu1 %2310  ;;  %v13186_v57 = vpop.xlane.xlu0 %2350 }
 0x2a5   : > { %v2235_v37 = vmul.f32 %v13002_v35, %v2103_v33  ;;  %19045 = vst [vmem:[#allocation86_spill] sm:$0xff] %v13177_v21  ;;  %v13291_v21 = vadd.s32 88, %v13132_v43 }
 0x2a6   : > { %v2234_v36 = vmul.f32 %v13002_v35, %v2102_v27  ;;  %19046 = vst [vmem:[#allocation87_spill] sm:$0xff] %v13186_v57  ;;  %v13194_v35 = vperm.slane %v13181_v48, 3  ;;  %v13208_v27 = vadd.s32 40, %v13132_v43 }
 0x2ab   : > { %2486 = vadd.xlane.f32.xlu2 %v2233_v61  ;;  %2484 = vadd.xlane.f32.xlu1 %v2232_v3  ;;  %v13175_v17 = vpop.xlane.xlu2 %2318 }
 0x2ac   : > { %2482 = vadd.xlane.f32.xlu0 %v2231_v2  ;;  %v13190_v61 = vpop.xlane.xlu1 %2316  ;;  %v13197_v2 = vadd.s32 24, %v13132_v43  ;;  %v13200_v3 = vpop.xlane.xlu0 %2356 }
 0x2ad   : > { %19047 = vst [vmem:[#allocation88_spill] sm:$0xff] %v13190_v61  ;;  %v13283_v61 = vperm.slane %v13181_v48, 4 }
 0x2ae   : > { %19048 = vst [vmem:[#allocation89_spill] sm:$0xff] %v13200_v3 }
 0x2b3   : > { %2490 = vadd.xlane.f32.xlu1 %v2235_v37  ;;  %v13188_v60 = vpop.xlane.xlu2 %2324 }
 0x2b4   : > { %2488 = vadd.xlane.f32.xlu0 %v2234_v36  ;;  %v13205_v4 = vpop.xlane.xlu1 %2322  ;;  %v13213_v33 = vpop.xlane.xlu0 %2362 }
 0x2b5   : > { %19049 = vst [vmem:[#allocation90_spill] sm:$0xff] %v13205_v4 }
 0x2b6   : > { %19050 = vst [vmem:[#allocation91_spill] sm:$0xff] %v13213_v33 }
 0x2bb   : > { %v13202_v13 = vpop.xlane.xlu2 %2330 }
 0x2bc   : > { %v13218_v37 = vpop.xlane.xlu1 %2328  ;;  %v13229_v3 = vpop.xlane.xlu0 %2368 }
 0x2bd   : > { %19051 = vst [vmem:[#allocation92_spill] sm:$0xff] %v13218_v37 }
 0x2be   : > { %19052 = vst [vmem:[#allocation93_spill] sm:$0xff] %v13229_v3 }
 0x2c3   : > { %2499 = vperm.xlu2 %11275, %v13184_v55   ;;  %v13215_v36 = vpop.xlane.xlu2 %2336 }
 0x2c4   : > { %v13233_v57 = vpop.xlane.xlu1 %2334  ;;  %v13244_v26 = vpop.xlane.xlu0 %2374 }
 0x2c5   : > { %19053 = vst [vmem:[#allocation94_spill] sm:$0xff] %v13233_v57  ;;  %v13253_v57 = vadd.s32 120, %v13132_v43 }
 0x2c6   : > { %19054 = vst [vmem:[#allocation95_spill] sm:$0xff] %v13244_v26 }
 0x2c8   : > { %2790 = vperm.xlu0 %11314, %v13194_v35  }
 0x2cb   : > { %11277 = vset.pattern.permute.xlu2 %v13197_v2  ;;  %v13231_v33 = vpop.xlane.xlu2 %2342 }
 0x2cc   : > { %2511 = vperm.xlu1 %11276, %v13184_v55   ;;  %v13249_v39 = vpop.xlane.xlu1 %2340  ;;  %v13257_v37 = vpop.xlane.xlu0 %2380 }
 0x2cd   : > { %19055 = vst [vmem:[#allocation96_spill] sm:$0xff] %v13249_v39  ;;  %v13266_v39 = vadd.s32 72, %v13132_v43 }
 0x2ce   : > { %19056 = vst [vmem:[#allocation97_spill] sm:$0xff] %v13257_v37 }
 0x2d0   : > { %11319 = vset.pattern.permute.xlu0 %v13208_v27 }
 0x2d3   : > { %2517 = vperm.xlu2 %11277, %v13184_v55   ;;  %v13247_v3 = vpop.xlane.xlu2 %2348 }
 0x2d4   : > { %11279 = vset.pattern.permute.xlu1 %v13208_v27  ;;  %v13262_v26 = vpop.xlane.xlu1 %2346  ;;  %v13270_v4 = vpop.xlane.xlu0 %2386 }
 0x2d5   : > { %19057 = vst [vmem:[#allocation98_spill] sm:$0xff] %v13262_v26  ;;  %v13279_v26 = vadd.s32 96, %v13132_v43 }
 0x2d6   : > { %19058 = vst [vmem:[#allocation99_spill] sm:$0xff] %v13270_v4 }
 0x2d8   : > { %2820 = vperm.xlu0 %11319, %v13194_v35  }
 0x2db   : > { %11278 = vset.pattern.permute.xlu2 %v13221_v38  ;;  %v13259_v52 = vpop.xlane.xlu2 %2354 }
 0x2dc   : > { %2529 = vperm.xlu1 %11279, %v13184_v55   ;;  %v13275_v37 = vpop.xlane.xlu1 %2352  ;;  %v13286_v32 = vpop.xlane.xlu0 %2392 }
 0x2dd   : > { %19059 = vst [vmem:[#allocation100_spill] sm:$0xff] %v13275_v37 }
 0x2de   : > { %19060 = vst [vmem:[#allocation101_spill] sm:$0xff] %v13286_v32 }
 0x2e0   : > { %11324 = vset.pattern.permute.xlu0 %v13226_v11 }
 0x2e3   : > { %2523 = vperm.xlu2 %11278, %v13184_v55   ;;  %v13272_v24 = vpop.xlane.xlu2 %2360 }
 0x2e4   : > { %11281 = vset.pattern.permute.xlu1 %v13237_v23  ;;  %v13293_v37 = vpop.xlane.xlu1 %2358  ;;  %v13298_v8 = vpop.xlane.xlu0 %2398 }
 0x2e5   : > { %19061 = vst [vmem:[#allocation102_spill] sm:$0xff] %v13293_v37  ;;  %v13308_v37 = vadd.s32 112, %v13132_v43 }
 0x2e6   : > { %19062 = vst [vmem:[#allocation103_spill] sm:$0xff] %v13298_v8 }
 0x2e8   : > { %2850 = vperm.xlu0 %11324, %v13194_v35  }
 0x2eb   : > { %11280 = vset.pattern.permute.xlu2 %v13242_v10  ;;  %v13288_v4 = vpop.xlane.xlu2 %2366 }
 0x2ec   : > { %2541 = vperm.xlu1 %11281, %v13184_v55   ;;  %v13303_v32 = vpop.xlane.xlu1 %2364  ;;  %v13311_v42 = vpop.xlane.xlu0 %2404 }
 0x2ed   : > { %19063 = vst [vmem:[#allocation104_spill] sm:$0xff] %v13303_v32  ;;  %v13321_v32 = vadd.s32 8, %v13132_v43 }
 0x2ee   : > { %19064 = vst [vmem:[#allocation105_spill] sm:$0xff] %v13311_v42 }
 0x2f0   : > { %11329 = vset.pattern.permute.xlu0 %v13253_v57 }
 0x2f3   : > { %2535 = vperm.xlu2 %11280, %v13184_v55   ;;  %v13301_v18 = vpop.xlane.xlu2 %2372 }
 0x2f4   : > { %11283 = vset.pattern.permute.xlu1 %v13226_v11  ;;  %v13316_v8 = vpop.xlane.xlu1 %2370  ;;  %v13324_v15 = vpop.xlane.xlu0 %2410 }
 0x2f5   : > { %19065 = vst [vmem:[#allocation106_spill] sm:$0xff] %v13316_v8  ;;  %v13333_v8 = vperm.slane %v13181_v48, 1 }
 0x2f6   : > { %19066 = vst [vmem:[#allocation107_spill] sm:$0xff] %v13324_v15 }
 0x2f8   : > { %2880 = vperm.xlu0 %11329, %v13194_v35  }
 0x2fb   : > { %11282 = vset.pattern.permute.xlu2 %v13266_v39  ;;  %v13313_v41 = vpop.xlane.xlu2 %2378 }
 0x2fc   : > { %2559 = vperm.xlu1 %11283, %v13184_v55   ;;  %v13329_v42 = vpop.xlane.xlu1 %2376  ;;  %v13337_v50 = vpop.xlane.xlu0 %2416 }
 0x2fd   : > { %19067 = vst [vmem:[#allocation108_spill] sm:$0xff] %v13329_v42  ;;  %v13346_v42 = vperm.slane %v13181_v48, 5 }
 0x2fe   : > { %19068 = vst [vmem:[#allocation109_spill] sm:$0xff] %v13337_v50 }
 0x300   : > { %11334 = vset.pattern.permute.xlu0 %v13221_v38 }
 0x303   : > { %2553 = vperm.xlu2 %11282, %v13184_v55   ;;  %v13326_v44 = vpop.xlane.xlu2 %2384 }
 0x304   : > { %11285 = vset.pattern.permute.xlu1 %v13279_v26  ;;  %v13341_v15 = vpop.xlane.xlu1 %2382  ;;  %v13349_v28 = vpop.xlane.xlu0 %2422 }
 0x305   : > { %19069 = vst [vmem:[#allocation110_spill] sm:$0xff] %v13341_v15  ;;  %v13358_v15 = vadd.s32 64, %v13132_v43 }
 0x306   : > { %19070 = vst [vmem:[#allocation111_spill] sm:$0xff] %v13349_v28 }
 0x308   : > { %2911 = vperm.xlu0 %11334, %v13283_v61  }
 0x30b   : > { %11284 = vset.pattern.permute.xlu2 %v13291_v21  ;;  %v13339_v0 = vpop.xlane.xlu2 %2390 }
 0x30c   : > { %2571 = vperm.xlu1 %11285, %v13184_v55   ;;  %v13354_v50 = vpop.xlane.xlu1 %2388  ;;  %v13362_v63 = vpop.xlane.xlu0 %2428 }
 0x30d   : > { %19071 = vst [vmem:[#allocation112_spill] sm:$0xff] %v13354_v50 }
 0x30e   : > { %19072 = vst [vmem:[#allocation113_spill] sm:$0xff] %v13362_v63  ;;  %v13382_v63 = vadd.s32 104, %v13132_v43 }
 0x310   : > { %11339 = vset.pattern.permute.xlu0 %v13266_v39 }
 0x313   : > { %2565 = vperm.xlu2 %11284, %v13184_v55   ;;  %v13352_v31 = vpop.xlane.xlu2 %2396 }
 0x314   : > { %11287 = vset.pattern.permute.xlu1 %v13253_v57  ;;  %v13367_v28 = vpop.xlane.xlu1 %2394  ;;  %v13372_v50 = vpop.xlane.xlu0 %2434 }
 0x315   : > { %19073 = vst [vmem:[#allocation114_spill] sm:$0xff] %v13367_v28 }
 0x316   : > { %19074 = vst [vmem:[#allocation115_spill] sm:$0xff] %v13372_v50 }
 0x318   : > { %2941 = vperm.xlu0 %11339, %v13283_v61  }
 0x31b   : > { %11286 = vset.pattern.permute.xlu2 %v13308_v37  ;;  %v13364_v54 = vpop.xlane.xlu2 %2402 }
 0x31c   : > { %2589 = vperm.xlu1 %11287, %v13184_v55   ;;  %v13377_v14 = vpop.xlane.xlu1 %2400  ;;  %v13385_v28 = vpop.xlane.xlu0 %2440 }
 0x31d   : > { %19075 = vst [vmem:[#allocation116_spill] sm:$0xff] %v13377_v14 }
 0x31e   : > { %19076 = vst [vmem:[#allocation117_spill] sm:$0xff] %v13385_v28 }
 0x320   : > { %11344 = vset.pattern.permute.xlu0 %v13308_v37 }
 0x323   : > { %2583 = vperm.xlu2 %11286, %v13184_v55   ;;  %v13374_v45 = vpop.xlane.xlu2 %2408 }
 0x324   : > { %11289 = vset.pattern.permute.xlu1 %v13321_v32  ;;  %v13389_v50 = vpop.xlane.xlu1 %2406  ;;  %v13394_v14 = vpop.xlane.xlu0 %2446 }
 0x325   : > { %19077 = vst [vmem:[#allocation118_spill] sm:$0xff] %v13389_v50 }
 0x326   : > { %19078 = vst [vmem:[#allocation119_spill] sm:$0xff] %v13394_v14 }
 0x328   : > { %2971 = vperm.xlu0 %11344, %v13283_v61  }
 0x32b   : > { %11288 = vset.pattern.permute.xlu2 %v13132_v43  ;;  %v13387_v20 = vpop.xlane.xlu2 %2414 }
 0x32c   : > { %2602 = vperm.xlu1 %11289, %v13333_v8   ;;  %v13399_v1 = vpop.xlane.xlu1 %2412  ;;  %v13404_v28 = vpop.xlane.xlu0 %2452 }
 0x32d   : > { %19080 = vst [vmem:[#allocation121_spill] sm:$0xff] %v13399_v1 }
 0x32e   : > { %19081 = vst [vmem:[#allocation122_spill] sm:$0xff] %v13404_v28  ;;  %v13424_v28 = vperm.slane %v13181_v48, 6 }
 0x330   : > { %11349 = vset.pattern.permute.xlu0 %v13197_v2 }
 0x333   : > { %2596 = vperm.xlu2 %11288, %v13333_v8   ;;  %v13397_v51 = vpop.xlane.xlu2 %2420 }
 0x334   : > { %11291 = vset.pattern.permute.xlu1 %v13221_v38  ;;  %19079 = vst [vmem:[#allocation120_spill] sm:$0xff] %v13397_v51  ;;  %v13409_v22 = vpop.xlane.xlu1 %2418  ;;  %v13414_v14 = vpop.xlane.xlu0 %2458 }
 0x335   : > { %19083 = vst [vmem:[#allocation124_spill] sm:$0xff] %v13409_v22 }
 0x336   : > { %19084 = vst [vmem:[#allocation125_spill] sm:$0xff] %v13414_v14 }
 0x338   : > { %3002 = vperm.xlu0 %11349, %v13346_v42  }
 0x33b   : > { %11290 = vset.pattern.permute.xlu2 %v13197_v2  ;;  %v13406_v50 = vpop.xlane.xlu2 %2426 }
 0x33c   : > { %2620 = vperm.xlu1 %11291, %v13333_v8   ;;  %19082 = vst [vmem:[#allocation123_spill] sm:$0xff] %v13406_v50  ;;  %v13419_v47 = vpop.xlane.xlu1 %2424  ;;  %v13427_v22 = vpop.xlane.xlu0 %2464 }
 0x33d   : > { %19086 = vst [vmem:[#allocation127_spill] sm:$0xff] %v13419_v47 }
 0x33e   : > { %19087 = vst [vmem:[#allocation128_spill] sm:$0xff] %v13427_v22 }
 0x340   : > { %11350 = vset.pattern.permute.xlu0 %v13358_v15 }
 0x343   : > { %2614 = vperm.xlu2 %11290, %v13333_v8   ;;  %v13416_v1 = vpop.xlane.xlu2 %2432 }
 0x344   : > { %11293 = vset.pattern.permute.xlu1 %v13242_v10  ;;  %19085 = vst [vmem:[#allocation126_spill] sm:$0xff] %v13416_v1  ;;  %v13431_v14 = vpop.xlane.xlu1 %2430  ;;  %v13436_v47 = vpop.xlane.xlu0 %2470 }
 0x345   : > { %19089 = vst [vmem:[#allocation130_spill] sm:$0xff] %v13431_v14 }
 0x346   : > { %19090 = vst [vmem:[#allocation131_spill] sm:$0xff] %v13436_v47 }
 0x348   : > { %2547 = vperm.xlu0 %11350, %v13184_v55  }
 0x34b   : > { %11292 = vset.pattern.permute.xlu2 %v13208_v27  ;;  %v13429_v58 = vpop.xlane.xlu2 %2438 }
 0x34c   : > { %2632 = vperm.xlu1 %11293, %v13333_v8   ;;  %19088 = vst [vmem:[#allocation129_spill] sm:$0xff] %v13429_v58  ;;  %v13444_v22 = vpop.xlane.xlu1 %2436  ;;  %v13449_v14 = vpop.xlane.xlu0 %2476 }
 0x34d   : > { %19092 = vst [vmem:[#allocation133_spill] sm:$0xff] %v13444_v22 }
 0x34e   : > { %19093 = vst [vmem:[#allocation134_spill] sm:$0xff] %v13449_v14 }
 0x350   : > { %3032 = vperm.xlu0 %11350, %v13346_v42  }
 0x353   : > { %2626 = vperm.xlu2 %11292, %v13333_v8   ;;  %v13439_v34 = vpop.xlane.xlu2 %2444 }
 0x354   : > { %11295 = vset.pattern.permute.xlu1 %v13266_v39  ;;  %19091 = vst [vmem:[#allocation132_spill] sm:$0xff] %v13439_v34  ;;  %v13454_v47 = vpop.xlane.xlu1 %2442  ;;  %v13459_v22 = vpop.xlane.xlu0 %2482 }
 0x355   : > { %19095 = vst [vmem:[#allocation136_spill] sm:$0xff] %v13454_v47 }
 0x356   : > { %19096 = vst [vmem:[#allocation137_spill] sm:$0xff] %v13459_v22 }
 0x358   : > { %11355 = vset.pattern.permute.xlu0 %v13382_v63 }
 0x35b   : > { %11294 = vset.pattern.permute.xlu2 %v13358_v15  ;;  %v13451_v30 = vpop.xlane.xlu2 %2450 }
 0x35c   : > { %2650 = vperm.xlu1 %11295, %v13333_v8   ;;  %19094 = vst [vmem:[#allocation135_spill] sm:$0xff] %v13451_v30  ;;  %v13464_v34 = vpop.xlane.xlu1 %2448  ;;  %v13469_v14 = vpop.xlane.xlu0 %2488 }
 0x35d   : > { %19098 = vst [vmem:[#allocation139_spill] sm:$0xff] %v13464_v34 }
 0x35e   : > { %19099 = vst [vmem:[#allocation140_spill] sm:$0xff] %v13469_v14 }
 0x360   : > { %2577 = vperm.xlu0 %11355, %v13184_v55  }
 0x363   : > { %2644 = vperm.xlu2 %11294, %v13333_v8   ;;  %v13461_v7 = vpop.xlane.xlu2 %2456 }
 0x364   : > { %11297 = vset.pattern.permute.xlu1 %v13291_v21  ;;  %19097 = vst [vmem:[#allocation138_spill] sm:$0xff] %v13461_v7  ;;  %v13473_v30 = vpop.xlane.xlu1 %2454  ;;  %v13478_v22 = vpop.permute.xlu0 %2790 }
 0x365   : > { %19101 = vst [vmem:[#allocation142_spill] sm:$0xff] %v13473_v30 }
 0x366   : > { %19102 = vst [vmem:[#allocation143_spill] sm:$0xff] %v13478_v22 }
 0x368   : > { %3062 = vperm.xlu0 %11355, %v13346_v42  }
 0x36b   : > { %11296 = vset.pattern.permute.xlu2 %v13226_v11  ;;  %v13471_v47 = vpop.xlane.xlu2 %2462 }
 0x36c   : > { %2662 = vperm.xlu1 %11297, %v13333_v8   ;;  %19100 = vst [vmem:[#allocation141_spill] sm:$0xff] %v13471_v47  ;;  %v13483_v7 = vpop.xlane.xlu1 %2460  ;;  %v13487_v14 = vpop.permute.xlu0 %2820 }
 0x36d   : > { %19104 = vst [vmem:[#allocation145_spill] sm:$0xff] %v13483_v7 }
 0x370   : > { %11360 = vset.pattern.permute.xlu0 %v13155_v19 }
 0x373   : > { %2656 = vperm.xlu2 %11296, %v13333_v8   ;;  %v13481_v34 = vpop.xlane.xlu2 %2468 }
 0x374   : > { %11299 = vset.pattern.permute.xlu1 %v13308_v37  ;;  %19103 = vst [vmem:[#allocation144_spill] sm:$0xff] %v13481_v34  ;;  %v13493_v30 = vpop.xlane.xlu1 %2466  ;;  %v13496_v22 = vpop.permute.xlu0 %2850 }
 0x375   : > { %19106 = vst [vmem:[#allocation147_spill] sm:$0xff] %v13493_v30  ;;  %v13510_v30 = vperm.slane %v13181_v48, 7 }
 0x376   : > { %19107 = vst [vmem:[#allocation148_spill] sm:$0xff] %v13496_v22 }
 0x378   : > { %2608 = vperm.xlu0 %11360, %v13333_v8  }
 0x37b   : > { %11298 = vset.pattern.permute.xlu2 %v13382_v63 }
 0x37c   : > { %2680 = vperm.xlu1 %11299, %v13333_v8   ;;  %v13503_v34 = vpop.xlane.xlu1 %2472  ;;  %v13505_v47 = vpop.permute.xlu0 %2880 }
 0x37d   : > { %19109 = vst [vmem:[#allocation150_spill] sm:$0xff] %v13503_v34 }
 0x37e   : > { %19110 = vst [vmem:[#allocation151_spill] sm:$0xff] %v13505_v47 }
 0x380   : > { %3093 = vperm.xlu0 %11360, %v13424_v28  }
 0x383   : > { %2674 = vperm.xlu2 %11298, %v13333_v8  }
 0x384   : > { %11301 = vset.pattern.permute.xlu1 %v13132_v43 }
 0x388   : > { %11365 = vset.pattern.permute.xlu0 %v13237_v23 }
 0x38b   : > { %11300 = vset.pattern.permute.xlu2 %v13253_v57 }
 0x38c   : > { %2693 = vperm.xlu1 %11301, %v13442_v46  }
 0x390   : > { %2638 = vperm.xlu0 %11365, %v13333_v8  }
 0x393   : > { %2686 = vperm.xlu2 %11300, %v13333_v8  }
 0x394   : > { %11303 = vset.pattern.permute.xlu1 %v13197_v2 }
 0x398   : > { %3123 = vperm.xlu0 %11365, %v13424_v28  }
 0x39b   : > { %11302 = vset.pattern.permute.xlu2 %v13155_v19 }
 0x39c   : > { %2711 = vperm.xlu1 %11303, %v13442_v46  }
 0x3a0   : > { %11370 = vset.pattern.permute.xlu0 %v13279_v26 }
 0x3a3   : > { %2705 = vperm.xlu2 %11302, %v13442_v46  }
 0x3a4   : > { %11305 = vset.pattern.permute.xlu1 %v13208_v27 }
 0x3a8   : > { %2668 = vperm.xlu0 %11370, %v13333_v8   ;;  %v13490_v8 = vpop.xlane.xlu2 %2474 }
 0x3a9   : > { %19105 = vst [vmem:[#allocation146_spill] sm:$0xff] %v13490_v8 }
 0x3ab   : > { %11304 = vset.pattern.permute.xlu2 %v13221_v38 }
 0x3ac   : > { %2723 = vperm.xlu1 %11305, %v13442_v46  }
 0x3b0   : > { %3153 = vperm.xlu0 %11370, %v13424_v28   ;;  %v13500_v7 = vpop.xlane.xlu2 %2480 }
 0x3b1   : > { %19108 = vst [vmem:[#allocation149_spill] sm:$0xff] %v13500_v7  ;;  %v13517_v7 = vpop.xlane.xlu1 %2478 }
 0x3b2   : > { %19112 = vst [vmem:[#allocation153_spill] sm:$0xff] %v13517_v7 }
 0x3b3   : > { %2717 = vperm.xlu2 %11304, %v13442_v46  }
 0x3b4   : > { %11307 = vset.pattern.permute.xlu1 %v13358_v15 }
 0x3b8   : > { %11375 = vset.pattern.permute.xlu0 %v13321_v32  ;;  %v13515_v22 = vpop.xlane.xlu2 %2486 }
 0x3b9   : > { %19111 = vst [vmem:[#allocation152_spill] sm:$0xff] %v13515_v22  ;;  %v13525_v47 = vpop.xlane.xlu1 %2484 }
 0x3ba   : > { %19114 = vst [vmem:[#allocation155_spill] sm:$0xff] %v13525_v47 }
 0x3bb   : > { %11306 = vset.pattern.permute.xlu2 %v13237_v23 }
 0x3bc   : > { %2741 = vperm.xlu1 %11307, %v13442_v46  }
 0x3c0   : > { %2505 = vperm.xlu0 %11375, %v13184_v55   ;;  %v13513_v55 = vpop.permute.xlu0 %2911  ;;  %v2500_v48 = vpop.permute.xlu2 %2499 }
 0x3c1   : > { %v13535_v8 = vpop.xlane.xlu1 %2490 }
 0x3c2   : > { %19117 = vst [vmem:[#allocation158_spill] sm:$0xff] %v13535_v8 }
 0x3c3   : > { %2735 = vperm.xlu2 %11306, %v13442_v46  }
 0x3c4   : > { %11309 = vset.pattern.permute.xlu1 %v13226_v11 }
 0x3c8   : > { %2699 = vperm.xlu0 %11375, %v13442_v46   ;;  %v13522_v34 = vpop.permute.xlu0 %2941  ;;  %v13532_v7 = vpop.permute.xlu2 %2517 }
 0x3c9   : > { %19113 = vst [vmem:[#allocation154_spill] sm:$0xff] %v13522_v34  ;;  %v13544_v58 = vpop.permute.xlu1 %2511 }
 0x3ca   : > { %19116 = vst [vmem:[#allocation157_spill] sm:$0xff] %v13532_v7 }
 0x3cb   : > { %11308 = vset.pattern.permute.xlu2 %v13266_v39  ;;  %19119 = vst [vmem:[#allocation160_spill] sm:$0xff] %v13544_v58 }
 0x3cc   : > { %2753 = vperm.xlu1 %11309, %v13442_v46  }
 0x3d0   : > { %3184 = vperm.xlu0 %11375, %v13510_v30   ;;  %v13529_v22 = vpop.permute.xlu0 %2971  ;;  %v13541_v47 = vpop.permute.xlu2 %2523 }
 0x3d1   : > { %19115 = vst [vmem:[#allocation156_spill] sm:$0xff] %v13529_v22  ;;  %v2530_v8 = vpop.permute.xlu1 %2529 }
 0x3d2   : > { %19118 = vst [vmem:[#allocation159_spill] sm:$0xff] %v13541_v47 }
 0x3d3   : > { %2747 = vperm.xlu2 %11308, %v13442_v46  }
 0x3d4   : > { %11311 = vset.pattern.permute.xlu1 %v13382_v63 }
 0x3d8   : > { %11380 = vset.pattern.permute.xlu0 %v13242_v10  ;;  %v13538_v34 = vpop.permute.xlu0 %3002  ;;  %v13548_v7 = vpop.permute.xlu2 %2535 }
 0x3d9   : > { %19120 = vst [vmem:[#allocation161_spill] sm:$0xff] %v13548_v7  ;;  %v13558_v58 = vpop.permute.xlu1 %2541 }
 0x3da   : > { %19123 = vst [vmem:[#allocation164_spill] sm:$0xff] %v13558_v58 }
 0x3db   : > { %11310 = vset.pattern.permute.xlu2 %v13279_v26 }
 0x3dc   : > { %2771 = vperm.xlu1 %11311, %v13442_v46  }
 0x3e0   : > { %2729 = vperm.xlu0 %11380, %v13442_v46   ;;  %v2548_v22 = vpop.permute.xlu0 %2547  ;;  %v13555_v47 = vpop.permute.xlu2 %2553 }
 0x3e1   : > { %19122 = vst [vmem:[#allocation163_spill] sm:$0xff] %v13555_v47  ;;  %v13565_v51 = vpop.permute.xlu1 %2559 }
 0x3e2   : > { %19125 = vst [vmem:[#allocation166_spill] sm:$0xff] %v13565_v51  ;;  %v13580_v51 = vadd.f32 %v2530_v8, %v12982_v5 }
 0x3e3   : > { %2765 = vperm.xlu2 %11310, %v13442_v46  }
 0x3e4   : > { %11313 = vset.pattern.permute.xlu1 %v13253_v57  ;;  %19128 = vst [vmem:[#allocation169_spill] sm:$0xff] %v13580_v51 }
 0x3e8   : > { %3214 = vperm.xlu0 %11380, %v13510_v30   ;;  %v13552_v1 = vpop.permute.xlu0 %3032  ;;  %v2566_v7 = vpop.permute.xlu2 %2565 }
 0x3e9   : > { %19121 = vst [vmem:[#allocation162_spill] sm:$0xff] %v13552_v1  ;;  %v18544_v1 = vmov 0   ;;  %v13576_v58 = vpop.permute.xlu1 %2571 }
 0x3eb   : > { %11312 = vset.pattern.permute.xlu2 %v13308_v37 }
 0x3ec   : > { %2783 = vperm.xlu1 %11313, %v13442_v46  }
 0x3f0   : > { %11385 = vset.pattern.permute.xlu0 %v13291_v21  ;;  %v13561_v50 = vpop.permute.xlu0 %2577 }
 0x3f1   : > { %19124 = vst [vmem:[#allocation165_spill] sm:$0xff] %v13561_v50  ;;  %v2584_v50 = vpop.permute.xlu2 %2583 }
 0x3f3   : > { %2777 = vperm.xlu2 %11312, %v13442_v46  }
 0x3f4   : > { %11316 = vset.pattern.permute.xlu1 %v13155_v19 }
 0x3f8   : > { %2759 = vperm.xlu0 %11385, %v13442_v46   ;;  %v13569_v46 = vadd.f32 %v2500_v48, %v12905_v6  ;;  %v13573_v47 = vpop.permute.xlu0 %3062 }
 0x3f9   : > { %19127 = vst [vmem:[#allocation168_spill] sm:$0xff] %v13573_v47  ;;  %v13585_v48 = vpop.permute.xlu2 %2596 }
 0x3fa   : > { %19126 = vst [vmem:[#allocation167_spill] sm:$0xff] %v13569_v46 }
 0x3fb   : > { %11315 = vset.pattern.permute.xlu2 %v13321_v32 }
 0x3fc   : > { %2802 = vperm.xlu1 %11316, %v13194_v35  }
 0x400   : > { %3244 = vperm.xlu0 %11385, %v13510_v30   ;;  %v13583_v6 = vpop.permute.xlu0 %2608 }
 0x401   : > { %19129 = vst [vmem:[#allocation170_spill] sm:$0xff] %v13583_v6  ;;  %v13595_v47 = vpop.permute.xlu2 %2614 }
 0x402   : > { %19131 = vst [vmem:[#allocation172_spill] sm:$0xff] %v13595_v47 }
 0x403   : > { %2796 = vperm.xlu2 %11315, %v13194_v35  }
 0x404   : > { %11318 = vset.pattern.permute.xlu1 %v13221_v38 }
 0x408   : > { %11394 = vset.pattern.permute.xlu0 %v18544_v1  ;;  %v13588_v1 = vpop.permute.xlu1 %2589  ;;  %v13598_v8 = vpop.permute.xlu0 %3093 }
 0x409   : > { %3655 = vperm.xlu0 %11394, %v13569_v46   ;;  %v13592_v46 = vadd.f32 %v2548_v22, %v12996_v29  ;;  %v13605_v6 = vpop.permute.xlu2 %2626 }
 0x40a   : > { %19133 = vst [vmem:[#allocation174_spill] sm:$0xff] %v13605_v6 }
 0x40b   : > { %11317 = vset.pattern.permute.xlu2 %v13197_v2  ;;  %19130 = vst [vmem:[#allocation171_spill] sm:$0xff] %v13592_v46 }
 0x40c   : > { %2814 = vperm.xlu1 %11318, %v13194_v35  }
 0x410   : > { %v2603_v5 = vpop.permute.xlu1 %2602  ;;  %v2639_v22 = vpop.permute.xlu0 %2638 }
 0x411   : > { %3670 = vperm.xlu0 %11394, %v13580_v51   ;;  %v13602_v51 = vadd.f32 %v2566_v7, %v13019_v56  ;;  %v13613_v47 = vpop.permute.xlu2 %2644 }
 0x413   : > { %2808 = vperm.xlu2 %11317, %v13194_v35   ;;  %19132 = vst [vmem:[#allocation173_spill] sm:$0xff] %v13602_v51 }
 0x414   : > { %11321 = vset.pattern.permute.xlu1 %v13237_v23 }
 0x418   : > { %v2621_v29 = vpop.permute.xlu1 %2620  ;;  %v13619_v56 = vpop.permute.xlu0 %3123 }
 0x419   : > { %3679 = vperm.xlu0 %11394, %v13592_v46   ;;  %v13610_v46 = vadd.f32 %v2584_v50, %v13035_v16  ;;  %19135 = vst [vmem:[#allocation176_spill] sm:$0xff] %v13619_v56  ;;  %v2657_v6 = vpop.permute.xlu2 %2656 }
 0x41b   : > { %11320 = vset.pattern.permute.xlu2 %v13242_v10  ;;  %19134 = vst [vmem:[#allocation175_spill] sm:$0xff] %v13610_v46 }
 0x41c   : > { %2832 = vperm.xlu1 %11321, %v13194_v35  }
 0x420   : > { %v13616_v7 = vpop.permute.xlu1 %2632  ;;  %v13629_v16 = vpop.permute.xlu0 %2668 }
 0x421   : > { %3688 = vperm.xlu0 %11394, %v13602_v51   ;;  %v13622_v51 = vadd.f32 %v2603_v5, %v13049_v49  ;;  %19137 = vst [vmem:[#allocation178_spill] sm:$0xff] %v13629_v16  ;;  %v2675_v56 = vpop.permute.xlu2 %2674  ;;  %v13640_v5 = vadd.f32 %v2639_v22, %v13084_v53 }
 0x423   : > { %2826 = vperm.xlu2 %11320, %v13194_v35   ;;  %19136 = vst [vmem:[#allocation177_spill] sm:$0xff] %v13622_v51 }
 0x424   : > { %11323 = vset.pattern.permute.xlu1 %v13266_v39  ;;  %19139 = vst [vmem:[#allocation180_spill] sm:$0xff] %v13640_v5 }
 0x428   : > { %v13626_v50 = vpop.permute.xlu1 %2650 }
 0x429   : > { %3697 = vperm.xlu0 %11394, %v13610_v46   ;;  %v13632_v46 = vadd.f32 %v2621_v29, %v13062_v9  ;;  %v13645_v16 = vpop.permute.xlu2 %2686  ;;  %v13652_v29 = vadd.f32 %v2657_v6, %v13100_v25 }
 0x42b   : > { %11322 = vset.pattern.permute.xlu2 %v13358_v15  ;;  %19138 = vst [vmem:[#allocation179_spill] sm:$0xff] %v13632_v46 }
 0x42c   : > { %2844 = vperm.xlu1 %11323, %v13194_v35   ;;  %19141 = vst [vmem:[#allocation182_spill] sm:$0xff] %v13652_v29 }
 0x430   : > { %v13636_v49 = vpop.permute.xlu1 %2662 }
 0x431   : > { %3706 = vperm.xlu0 %11394, %v13622_v51   ;;  %v13642_v51 = vpop.permute.xlu0 %3153  ;;  %v13657_v53 = vpop.permute.xlu2 %2705 }
 0x432   : > { %19140 = vst [vmem:[#allocation181_spill] sm:$0xff] %v13642_v51 }
 0x433   : > { %2838 = vperm.xlu2 %11322, %v13194_v35   ;;  %19142 = vst [vmem:[#allocation183_spill] sm:$0xff] %v13657_v53 }
 0x434   : > { %11326 = vset.pattern.permute.xlu1 %v13279_v26 }
 0x438   : > { %v13648_v9 = vpop.permute.xlu1 %2680 }
 0x439   : > { %3715 = vperm.xlu0 %11394, %v13632_v46   ;;  %v13654_v46 = vpop.permute.xlu0 %2505  ;;  %v13667_v25 = vpop.permute.xlu2 %2717 }
 0x43b   : > { %11325 = vset.pattern.permute.xlu2 %v13291_v21 }
 0x43c   : > { %2862 = vperm.xlu1 %11326, %v13194_v35  }
 0x440   : > { %v2694_v22 = vpop.permute.xlu1 %2693 }
 0x441   : > { %3724 = vperm.xlu0 %11394, %v13640_v5   ;;  %v13662_v5 = vadd.f32 %v2675_v56, %v13113_v62  ;;  %v13665_v51 = vpop.permute.xlu0 %2699  ;;  %v13675_v53 = vpop.permute.xlu2 %2735 }
 0x442   : > { %19145 = vst [vmem:[#allocation186_spill] sm:$0xff] %v13675_v53 }
 0x443   : > { %2856 = vperm.xlu2 %11325, %v13194_v35   ;;  %19143 = vst [vmem:[#allocation184_spill] sm:$0xff] %v13662_v5 }
 0x444   : > { %11328 = vset.pattern.permute.xlu1 %v13308_v37 }
 0x448   : > { %v2712_v6 = vpop.permute.xlu1 %2711 }
 0x449   : > { %3733 = vperm.xlu0 %11394, %v13652_v29   ;;  %v13672_v29 = vadd.f32 %v2694_v22, %v13127_v40  ;;  %v13680_v56 = vpop.permute.xlu0 %3184 }
 0x44b   : > { %11327 = vset.pattern.permute.xlu2 %v13382_v63  ;;  %19144 = vst [vmem:[#allocation185_spill] sm:$0xff] %v13672_v29 }
 0x44c   : > { %2874 = vperm.xlu1 %11328, %v13194_v35  }
 0x450   : > { %v13678_v62 = vpop.permute.xlu1 %2723 }
 0x451   : > { %3742 = vperm.xlu0 %11394, %v13662_v5   ;;  %v2748_v5 = vpop.permute.xlu2 %2747 }
 0x452   : > { %v2730_v22 = vpop.permute.xlu0 %2729 }
 0x453   : > { %2868 = vperm.xlu2 %11327, %v13194_v35   ;;  %v13684_v35 = vadd.f32 %v2712_v6, %v13151_v59  ;;  %v13700_v6 = vadd.f32 %v2748_v5, %v13175_v17 }
 0x454   : > { %11331 = vset.pattern.permute.xlu1 %v13321_v32 }
 0x455   : > { %19146 = vst [vmem:[#allocation187_spill] sm:$0xff] %v13684_v35 }
 0x456   : > { %19148 = vst [vmem:[#allocation189_spill] sm:$0xff] %v13700_v6 }
 0x458   : > { %v13688_v40 = vpop.permute.xlu1 %2741 }
 0x459   : > { %3751 = vperm.xlu0 %11394, %v13672_v29   ;;  %v13692_v29 = vadd.f32 %v2730_v22, %v13167_v12  ;;  %v2766_v53 = vpop.permute.xlu2 %2765 }
 0x45a   : > { %v13710_v22 = vadd.f32 %v2766_v53, %v13188_v60 }
 0x45b   : > { %11330 = vset.pattern.permute.xlu2 %v13132_v43  ;;  %19147 = vst [vmem:[#allocation188_spill] sm:$0xff] %v13692_v29 }
 0x45c   : > { %2893 = vperm.xlu1 %11331, %v13283_v61   ;;  %19149 = vst [vmem:[#allocation190_spill] sm:$0xff] %v13710_v22 }
 0x460   : > { %v13696_v59 = vpop.permute.xlu1 %2753 }
 0x461   : > { %3760 = vperm.xlu0 %11394, %v13684_v35   ;;  %v13704_v35 = vpop.permute.xlu2 %2777 }
 0x463   : > { %2887 = vperm.xlu2 %11330, %v13283_v61  }
 0x464   : > { %11333 = vset.pattern.permute.xlu1 %v13197_v2 }
 0x468   : > { %v13706_v12 = vpop.permute.xlu1 %2771 }
 0x469   : > { %3769 = vperm.xlu0 %11394, %v13692_v29   ;;  %v13714_v29 = vpop.permute.xlu2 %2796 }
 0x46b   : > { %11332 = vset.pattern.permute.xlu2 %v13155_v19 }
 0x46c   : > { %2905 = vperm.xlu1 %11333, %v13283_v61  }
 0x470   : > { %v2784_v17 = vpop.permute.xlu1 %2783 }
 0x471   : > { %3778 = vperm.xlu0 %11394, %v13700_v6   ;;  %v13718_v5 = vadd.f32 %v2784_v17, %v13202_v13  ;;  %v13722_v6 = vpop.permute.xlu2 %2808  ;;  %v13735_v13 = vadd.f32 %v13487_v14, %v13231_v33 }
 0x473   : > { %2899 = vperm.xlu2 %11332, %v13283_v61   ;;  %19150 = vst [vmem:[#allocation191_spill] sm:$0xff] %v13718_v5 }
 0x474   : > { %11336 = vset.pattern.permute.xlu1 %v13242_v10  ;;  %19152 = vst [vmem:[#allocation193_spill] sm:$0xff] %v13735_v13 }
 0x478   : > { %v2803_v60 = vpop.permute.xlu1 %2802 }
 0x479   : > { %3787 = vperm.xlu0 %11394, %v13710_v22   ;;  %v13726_v53 = vadd.f32 %v2803_v60, %v13215_v36 }
 0x47b   : > { %11335 = vset.pattern.permute.xlu2 %v13208_v27  ;;  %19151 = vst [vmem:[#allocation192_spill] sm:$0xff] %v13726_v53 }
 0x47c   : > { %2923 = vperm.xlu1 %11336, %v13283_v61  }
 0x47d   : > { %v13730_v22 = vpop.permute.xlu2 %2826 }
 0x480   : > { %v13749_v33 = vpop.permute.xlu1 %2814 }
 0x481   : > { %3796 = vperm.xlu0 %11394, %v13718_v5  }
 0x483   : > { %2917 = vperm.xlu2 %11335, %v13283_v61  }
 0x484   : > { %11338 = vset.pattern.permute.xlu1 %v13358_v15 }
 0x489   : > { %3805 = vperm.xlu0 %11394, %v13726_v53  }
 0x48b   : > { %11337 = vset.pattern.permute.xlu2 %v13237_v23 }
 0x48c   : > { %2935 = vperm.xlu1 %11338, %v13283_v61  }
 0x48d   : > { %v2839_v17 = vpop.permute.xlu2 %2838 }
 0x48e   : > { %v13741_v36 = vadd.f32 %v2839_v17, %v13247_v3  ;;  %v13754_v3 = vpop.permute.xlu1 %2832 }
 0x490   : > { %19153 = vst [vmem:[#allocation194_spill] sm:$0xff] %v13741_v36 }
 0x491   : > { %3814 = vperm.xlu0 %11394, %v13735_v13  }
 0x493   : > { %2929 = vperm.xlu2 %11337, %v13283_v61  }
 0x494   : > { %11341 = vset.pattern.permute.xlu1 %v13291_v21 }
 0x499   : > { %3823 = vperm.xlu0 %11394, %v13741_v36  }
 0x49b   : > { %11340 = vset.pattern.permute.xlu2 %v13226_v11 }
 0x49c   : > { %2953 = vperm.xlu1 %11341, %v13283_v61  }
 0x49d   : > { %v2857_v60 = vpop.permute.xlu2 %2856 }
 0x49e   : > { %v13747_v14 = vadd.f32 %v2857_v60, %v13259_v52  ;;  %v13758_v17 = vpop.permute.xlu1 %2844 }
 0x4a0   : > { %19154 = vst [vmem:[#allocation195_spill] sm:$0xff] %v13747_v14 }
 0x4a1   : > { %3832 = vperm.xlu0 %11394, %v13747_v14  }
 0x4a3   : > { %2947 = vperm.xlu2 %11340, %v13283_v61  }
 0x4a4   : > { %11343 = vset.pattern.permute.xlu1 %v13382_v63 }
 0x4ab   : > { %11342 = vset.pattern.permute.xlu2 %v13279_v26 }
 0x4ac   : > { %2965 = vperm.xlu1 %11343, %v13283_v61  }
 0x4ad   : > { %v13773_v36 = vpop.permute.xlu2 %2868 }
 0x4ae   : > { %v13762_v52 = vpop.permute.xlu1 %2862 }
 0x4b3   : > { %2959 = vperm.xlu2 %11342, %v13283_v61  }
 0x4b4   : > { %11346 = vset.pattern.permute.xlu1 %v13132_v43 }
 0x4bb   : > { %11345 = vset.pattern.permute.xlu2 %v13253_v57 }
 0x4bc   : > { %2984 = vperm.xlu1 %11346, %v13346_v42  }
 0x4be   : > { %v2875_v60 = vpop.permute.xlu1 %2874 }
 0x4bf   : > { %v13767_v14 = vadd.f32 %v2875_v60, %v13272_v24  ;;  %v13781_v24 = vpop.permute.xlu2 %2887 }
 0x4c1   : > { %19155 = vst [vmem:[#allocation196_spill] sm:$0xff] %v13767_v14  ;;  %3841 = vperm.xlu0 %11394, %v13767_v14  }
 0x4c3   : > { %2977 = vperm.xlu2 %11345, %v13283_v61   ;;  %v13786_v61 = vadd.f32 %v13513_v55, %v13301_v18 }
 0x4c4   : > { %11348 = vset.pattern.permute.xlu1 %v13155_v19 }
 0x4c5   : > { %19157 = vst [vmem:[#allocation198_spill] sm:$0xff] %v13786_v61 }
 0x4cb   : > { %11347 = vset.pattern.permute.xlu2 %v13321_v32 }
 0x4cc   : > { %2996 = vperm.xlu1 %11348, %v13346_v42  }
 0x4cd   : > { %v13790_v60 = vpop.permute.xlu2 %2899 }
 0x4ce   : > { %v2894_v13 = vpop.permute.xlu1 %2893 }
 0x4cf   : > { %v13777_v53 = vadd.f32 %v2894_v13, %v13288_v4 }
 0x4d1   : > { %19156 = vst [vmem:[#allocation197_spill] sm:$0xff] %v13777_v53  ;;  %3850 = vperm.xlu0 %11394, %v13777_v53  }
 0x4d3   : > { %2990 = vperm.xlu2 %11347, %v13346_v42  }
 0x4d4   : > { %11352 = vset.pattern.permute.xlu1 %v13208_v27 }
 0x4d9   : > { %3859 = vperm.xlu0 %11394, %v13786_v61  }
 0x4db   : > { %11351 = vset.pattern.permute.xlu2 %v13221_v38 }
 0x4dc   : > { %3014 = vperm.xlu1 %11352, %v13346_v42  }
 0x4dd   : > { %v13794_v4 = vpop.permute.xlu2 %2917 }
 0x4de   : > { %v13810_v53 = vpop.permute.xlu1 %2905 }
 0x4e3   : > { %3008 = vperm.xlu2 %11351, %v13346_v42  }
 0x4e4   : > { %11354 = vset.pattern.permute.xlu1 %v13237_v23 }
 0x4eb   : > { %11353 = vset.pattern.permute.xlu2 %v13242_v10 }
 0x4ec   : > { %3026 = vperm.xlu1 %11354, %v13346_v42  }
 0x4ed   : > { %v2930_v18 = vpop.permute.xlu2 %2929 }
 0x4ee   : > { %v13800_v55 = vadd.f32 %v2930_v18, %v13313_v41  ;;  %v13815_v41 = vpop.permute.xlu1 %2923 }
 0x4f0   : > { %19158 = vst [vmem:[#allocation199_spill] sm:$0xff] %v13800_v55  ;;  %3868 = vperm.xlu0 %11394, %v13800_v55  }
 0x4f3   : > { %3020 = vperm.xlu2 %11353, %v13346_v42  }
 0x4f4   : > { %11357 = vset.pattern.permute.xlu1 %v13226_v11 }
 0x4fb   : > { %11356 = vset.pattern.permute.xlu2 %v13266_v39 }
 0x4fc   : > { %3044 = vperm.xlu1 %11357, %v13346_v42  }
 0x4fd   : > { %v2948_v13 = vpop.permute.xlu2 %2947 }
 0x4fe   : > { %v13808_v61 = vadd.f32 %v2948_v13, %v13326_v44  ;;  %v13819_v18 = vpop.permute.xlu1 %2935 }
 0x500   : > { %19159 = vst [vmem:[#allocation200_spill] sm:$0xff] %v13808_v61  ;;  %3877 = vperm.xlu0 %11394, %v13808_v61  }
 0x503   : > { %3038 = vperm.xlu2 %11356, %v13346_v42  }
 0x504   : > { %11359 = vset.pattern.permute.xlu1 %v13279_v26 }
 0x50b   : > { %11358 = vset.pattern.permute.xlu2 %v13291_v21 }
 0x50c   : > { %3056 = vperm.xlu1 %11359, %v13346_v42  }
 0x50d   : > { %v13834_v55 = vpop.permute.xlu2 %2959 }
 0x50e   : > { %v13823_v44 = vpop.permute.xlu1 %2953 }
 0x513   : > { %3050 = vperm.xlu2 %11358, %v13346_v42  }
 0x514   : > { %11362 = vset.pattern.permute.xlu1 %v13253_v57 }
 0x51b   : > { %11361 = vset.pattern.permute.xlu2 %v13308_v37 }
 0x51c   : > { %3074 = vperm.xlu1 %11362, %v13346_v42  }
 0x51e   : > { %v2966_v13 = vpop.permute.xlu1 %2965 }
 0x51f   : > { %v13828_v61 = vadd.f32 %v2966_v13, %v13339_v0  ;;  %v13842_v0 = vpop.permute.xlu2 %2977 }
 0x521   : > { %19160 = vst [vmem:[#allocation201_spill] sm:$0xff] %v13828_v61  ;;  %3886 = vperm.xlu0 %11394, %v13828_v61  }
 0x523   : > { %3068 = vperm.xlu2 %11361, %v13346_v42   ;;  %v13847_v42 = vadd.f32 %v13538_v34, %v13364_v54 }
 0x524   : > { %11364 = vset.pattern.permute.xlu1 %v13321_v32 }
 0x525   : > { %19162 = vst [vmem:[#allocation203_spill] sm:$0xff] %v13847_v42 }
 0x52b   : > { %11363 = vset.pattern.permute.xlu2 %v13132_v43 }
 0x52c   : > { %3087 = vperm.xlu1 %11364, %v13424_v28  }
 0x52d   : > { %v13851_v32 = vpop.permute.xlu2 %2990 }
 0x52e   : > { %v2985_v14 = vpop.permute.xlu1 %2984 }
 0x52f   : > { %v13838_v5 = vadd.f32 %v2985_v14, %v13352_v31 }
 0x531   : > { %19161 = vst [vmem:[#allocation202_spill] sm:$0xff] %v13838_v5  ;;  %3895 = vperm.xlu0 %11394, %v13838_v5   ;;  %v19167_v5 = vld [vmem:[#allocation123_spill] sm:$0xff] }
 0x533   : > { %3081 = vperm.xlu2 %11363, %v13424_v28  }
 0x534   : > { %11367 = vset.pattern.permute.xlu1 %v13221_v38 }
 0x539   : > { %3904 = vperm.xlu0 %11394, %v13847_v42  }
 0x53b   : > { %11366 = vset.pattern.permute.xlu2 %v13197_v2 }
 0x53c   : > { %3105 = vperm.xlu1 %11367, %v13424_v28  }
 0x53d   : > { %v13855_v31 = vpop.permute.xlu2 %3008 }
 0x53e   : > { %v13871_v13 = vpop.permute.xlu1 %2996 }
 0x543   : > { %3099 = vperm.xlu2 %11366, %v13424_v28  }
 0x544   : > { %11369 = vset.pattern.permute.xlu1 %v13242_v10 }
 0x54b   : > { %11368 = vset.pattern.permute.xlu2 %v13208_v27 }
 0x54c   : > { %3117 = vperm.xlu1 %11369, %v13424_v28  }
 0x54d   : > { %v3021_v34 = vpop.permute.xlu2 %3020 }
 0x54e   : > { %v13861_v54 = vadd.f32 %v3021_v34, %v13374_v45  ;;  %v13876_v45 = vpop.permute.xlu1 %3014 }
 0x550   : > { %19163 = vst [vmem:[#allocation204_spill] sm:$0xff] %v13861_v54  ;;  %3913 = vperm.xlu0 %11394, %v13861_v54  }
 0x553   : > { %3111 = vperm.xlu2 %11368, %v13424_v28  }
 0x554   : > { %11372 = vset.pattern.permute.xlu1 %v13266_v39 }
 0x55b   : > { %11371 = vset.pattern.permute.xlu2 %v13358_v15 }
 0x55c   : > { %3135 = vperm.xlu1 %11372, %v13424_v28  }
 0x55d   : > { %v3039_v14 = vpop.permute.xlu2 %3038 }
 0x55e   : > { %v13869_v10 = vadd.f32 %v3039_v14, %v13387_v20  ;;  %v13880_v34 = vpop.permute.xlu1 %3026 }
 0x560   : > { %19164 = vst [vmem:[#allocation205_spill] sm:$0xff] %v13869_v10  ;;  %3922 = vperm.xlu0 %11394, %v13869_v10  }
 0x563   : > { %3129 = vperm.xlu2 %11371, %v13424_v28  }
 0x564   : > { %11374 = vset.pattern.permute.xlu1 %v13291_v21  ;;  %v19165_v21 = vld [vmem:[#allocation120_spill] sm:$0xff] }
 0x56b   : > { %11373 = vset.pattern.permute.xlu2 %v13226_v11 }
 0x56c   : > { %3147 = vperm.xlu1 %11374, %v13424_v28  }
 0x56d   : > { %v13895_v54 = vpop.permute.xlu2 %3050 }
 0x56e   : > { %v13884_v20 = vpop.permute.xlu1 %3044 }
 0x573   : > { %3141 = vperm.xlu2 %11373, %v13424_v28  }
 0x574   : > { %11377 = vset.pattern.permute.xlu1 %v13308_v37 }
 0x57b   : > { %11376 = vset.pattern.permute.xlu2 %v13382_v63 }
 0x57c   : > { %3165 = vperm.xlu1 %11377, %v13424_v28  }
 0x57e   : > { %v3057_v14 = vpop.permute.xlu1 %3056 }
 0x57f   : > { %v13889_v10 = vadd.f32 %v3057_v14, %v19165_v21  ;;  %v13903_v14 = vpop.permute.xlu2 %3068  ;;  %v19169_v21 = vld [vmem:[#allocation126_spill] sm:$0xff] }
 0x581   : > { %19166 = vst [vmem:[#allocation120_spill] sm:$0xff] %v13889_v10  ;;  %3931 = vperm.xlu0 %11394, %v13889_v10  }
 0x583   : > { %3159 = vperm.xlu2 %11376, %v13424_v28  }
 0x584   : > { %11379 = vset.pattern.permute.xlu1 %v13132_v43  ;;  %v13908_v43 = vadd.f32 %v13598_v8, %v19169_v21 }
 0x586   : > { %19170 = vst [vmem:[#allocation126_spill] sm:$0xff] %v13908_v43 }
 0x58b   : > { %11378 = vset.pattern.permute.xlu2 %v13253_v57 }
 0x58c   : > { %3178 = vperm.xlu1 %11379, %v13510_v30  }
 0x58d   : > { %v13912_v10 = vpop.permute.xlu2 %3081 }
 0x58e   : > { %v3075_v42 = vpop.permute.xlu1 %3074 }
 0x58f   : > { %v13899_v61 = vadd.f32 %v3075_v42, %v19167_v5 }
 0x591   : > { %19168 = vst [vmem:[#allocation123_spill] sm:$0xff] %v13899_v61  ;;  %3940 = vperm.xlu0 %11394, %v13899_v61   ;;  %v14006_v61 = vpop.permute.xlu0 %3214 }
 0x593   : > { %3171 = vperm.xlu2 %11378, %v13424_v28  }
 0x594   : > { %11382 = vset.pattern.permute.xlu1 %v13197_v2  ;;  %v19171_v2 = vld [vmem:[#allocation129_spill] sm:$0xff] }
 0x599   : > { %3949 = vperm.xlu0 %11394, %v13908_v43  }
 0x59b   : > { %11381 = vset.pattern.permute.xlu2 %v13155_v19 }
 0x59c   : > { %3196 = vperm.xlu1 %11382, %v13510_v30  }
 0x59d   : > { %v13916_v5 = vpop.permute.xlu2 %3099 }
 0x5a3   : > { %3190 = vperm.xlu2 %11381, %v13510_v30  }
 0x5a4   : > { %11384 = vset.pattern.permute.xlu1 %v13208_v27  ;;  %v19173_v27 = vld [vmem:[#allocation132_spill] sm:$0xff] }
 0x5ab   : > { %11383 = vset.pattern.permute.xlu2 %v13221_v38  ;;  %v13932_v38 = vpop.permute.xlu1 %3087 }
 0x5ac   : > { %3208 = vperm.xlu1 %11384, %v13510_v30  }
 0x5ad   : > { %v3112_v28 = vpop.permute.xlu2 %3111 }
 0x5ae   : > { %v13922_v8 = vadd.f32 %v3112_v28, %v19171_v2 }
 0x5b0   : > { %19172 = vst [vmem:[#allocation129_spill] sm:$0xff] %v13922_v8  ;;  %3958 = vperm.xlu0 %11394, %v13922_v8  }
 0x5b3   : > { %3202 = vperm.xlu2 %11383, %v13510_v30   ;;  %v13937_v21 = vpop.permute.xlu1 %3105 }
 0x5b4   : > { %11387 = vset.pattern.permute.xlu1 %v13358_v15 }
 0x5bb   : > { %11386 = vset.pattern.permute.xlu2 %v13237_v23 }
 0x5bc   : > { %3226 = vperm.xlu1 %11387, %v13510_v30  }
 0x5bd   : > { %v3130_v19 = vpop.permute.xlu2 %3129 }
 0x5be   : > { %v13930_v42 = vadd.f32 %v3130_v19, %v19173_v27  ;;  %v13941_v15 = vpop.permute.xlu1 %3117  ;;  %v19179_v27 = vld [vmem:[#allocation62_spill] sm:$0xff] }
 0x5c0   : > { %19174 = vst [vmem:[#allocation132_spill] sm:$0xff] %v13930_v42  ;;  %3967 = vperm.xlu0 %11394, %v13930_v42  }
 0x5c3   : > { %3220 = vperm.xlu2 %11386, %v13510_v30  }
 0x5c4   : > { %11389 = vset.pattern.permute.xlu1 %v13226_v11  ;;  %v19175_v11 = vld [vmem:[#allocation135_spill] sm:$0xff] }
 0x5cb   : > { %11388 = vset.pattern.permute.xlu2 %v13266_v39 }
 0x5cc   : > { %3238 = vperm.xlu1 %11389, %v13510_v30  }
 0x5cd   : > { %v13956_v39 = vpop.permute.xlu2 %3141 }
 0x5ce   : > { %v13945_v23 = vpop.permute.xlu1 %3135 }
 0x5d3   : > { %3232 = vperm.xlu2 %11388, %v13510_v30  }
 0x5d4   : > { %11391 = vset.pattern.permute.xlu1 %v13382_v63 }
 0x5db   : > { %11390 = vset.pattern.permute.xlu2 %v13279_v26  ;;  %v19177_v26 = vld [vmem:[#allocation138_spill] sm:$0xff] }
 0x5dc   : > { %3256 = vperm.xlu1 %11391, %v13510_v30  }
 0x5de   : > { %v3148_v28 = vpop.permute.xlu1 %3147 }
 0x5df   : > { %v13950_v2 = vadd.f32 %v3148_v28, %v19175_v11  ;;  %v19180_v28 = vld [vmem:[#allocation160_spill] sm:$0xff] }
 0x5e0   : > { %v13966_v11 = vadd.f32 %v19180_v28, %v19179_v27  ;;  %v19188_v27 = vld [vmem:[#allocation159_spill] sm:$0xff] }
 0x5e1   : > { %19176 = vst [vmem:[#allocation135_spill] sm:$0xff] %v13950_v2  ;;  %3976 = vperm.xlu0 %11394, %v13950_v2   ;;  %v13968_v2 = vpop.permute.xlu2 %3159 }
 0x5e2   : > { %19181 = vst [vmem:[#allocation62_spill] sm:$0xff] %v13966_v11 }
 0x5e3   : > { %3250 = vperm.xlu2 %11390, %v13510_v30  }
 0x5e4   : > { %11393 = vset.pattern.permute.xlu1 %v13253_v57  ;;  %v19182_v57 = vmov 0  }
 0x5eb   : > { %11392 = vset.pattern.permute.xlu2 %v13308_v37  ;;  %v19183_v37 = vld [vmem:[#allocation141_spill] sm:$0xff] }
 0x5ec   : > { %3268 = vperm.xlu1 %11393, %v13510_v30   ;;  %v13974_v42 = vadd.f32 %v13680_v56, %v19183_v37  ;;  %v19190_v56 = vld [vmem:[#allocation64_spill] sm:$0xff]  ;;  %v19191_v37 = vld [vmem:[#allocation157_spill] sm:$0xff] }
 0x5ed   : > { %v13992_v8 = vadd.f32 %v19191_v37, %v19190_v56  ;;  %19199 = vst [vmem:[#allocation157_spill] sm:$0xff] %v14006_v61  ;;  %v19209_v61 = vld [vmem:[#allocation165_spill] sm:$0xff] }
 0x5ee   : > { %v3166_v63 = vpop.permute.xlu1 %3165  ;;  %19184 = vst [vmem:[#allocation160_spill] sm:$0xff] %v13974_v42 }
 0x5ef   : > { %v13960_v19 = vadd.f32 %v3166_v63, %v19177_v26  ;;  %v19185_v63 = vld [vmem:[#allocation55_spill] sm:$0xff] }
 0x5f0   : > { %v13978_v26 = vadd.f32 %v13654_v46, %v19185_v63  ;;  %v19193_v46 = vld [vmem:[#allocation66_spill] sm:$0xff]  ;;  %v19194_v63 = vld [vmem:[#allocation164_spill] sm:$0xff] }
 0x5f1   : > { %19178 = vst [vmem:[#allocation138_spill] sm:$0xff] %v13960_v19  ;;  %3985 = vperm.xlu0 %11394, %v13960_v19   ;;  %v13987_v19 = vpop.permute.xlu2 %3171  ;;  %v13996_v43 = vadd.f32 %v19194_v63, %v19193_v46  ;;  %v19203_v46 = vld [vmem:[#allocation144_spill] sm:$0xff] }
 0x5f2   : > { %19186 = vst [vmem:[#allocation141_spill] sm:$0xff] %v13978_v26 }
 0x5f3   : > { %3262 = vperm.xlu2 %11392, %v13510_v30   ;;  %v19187_v30 = vld [vmem:[#allocation60_spill] sm:$0xff]  ;;  %19195 = vst [vmem:[#allocation159_spill] sm:$0xff] %v13996_v43 }
 0x5f4   : > { %11396 = vset.pattern.permute.xlu1 %v19182_v57  ;;  %v13984_v28 = vadd.f32 %v19188_v27, %v19187_v30  ;;  %19192 = vst [vmem:[#allocation60_spill] sm:$0xff] %v13992_v8  ;;  %v19196_v30 = vld [vmem:[#allocation56_spill] sm:$0xff]  ;;  %v19197_v27 = vld [vmem:[#allocation161_spill] sm:$0xff] }
 0x5f5   : > { %3661 = vperm.xlu1 %11396, %v13966_v11   ;;  %v19201_v11 = vld [vmem:[#allocation166_spill] sm:$0xff] }
 0x5f6   : > { %19189 = vst [vmem:[#allocation55_spill] sm:$0xff] %v13984_v28 }
 0x5f9   : > { %3994 = vperm.xlu0 %11394, %v13974_v42   ;;  %v14004_v42 = vadd.f32 %v19197_v27, %v19196_v30  ;;  %v14022_v27 = vpop.permute.xlu0 %2759 }
 0x5fb   : > { %11395 = vset.pattern.permute.xlu2 %v19182_v57  ;;  %19198 = vst [vmem:[#allocation64_spill] sm:$0xff] %v14004_v42 }
 0x5fc   : > { %3658 = vperm.xlu2 %11395, %v13978_v26   ;;  %v19208_v26 = vld [vmem:[#allocation70_spill] sm:$0xff] }
 0x5fd   : > { %3667 = vperm.xlu1 %11396, %v13984_v28   ;;  %v13999_v57 = vpop.permute.xlu2 %3190  ;;  %v19200_v28 = vld [vmem:[#allocation68_spill] sm:$0xff] }
 0x5fe   : > { %v14010_v56 = vadd.f32 %v19201_v11, %v19200_v28  ;;  %v14026_v11 = vadd.f32 %v19209_v61, %v19208_v26  ;;  %v19211_v28 = vld [vmem:[#allocation58_spill] sm:$0xff]  ;;  %v14045_v26 = vpop.permute.xlu1 %3178 }
 0x600   : > { %19202 = vst [vmem:[#allocation66_spill] sm:$0xff] %v14010_v56 }
 0x601   : > { %19210 = vst [vmem:[#allocation161_spill] sm:$0xff] %v14026_v11 }
 0x604   : > { %3664 = vperm.xlu2 %11395, %v13992_v8   ;;  %v19206_v8 = vld [vmem:[#allocation163_spill] sm:$0xff] }
 0x605   : > { %3676 = vperm.xlu1 %11396, %v13996_v43   ;;  %v19205_v43 = vld [vmem:[#allocation57_spill] sm:$0xff] }
 0x606   : > { %v14020_v30 = vadd.f32 %v19206_v8, %v19205_v43  ;;  %v14039_v43 = vpop.permute.xlu0 %3244 }
 0x608   : > { %19207 = vst [vmem:[#allocation56_spill] sm:$0xff] %v14020_v30 }
 0x60c   : > { %3673 = vperm.xlu2 %11395, %v14004_v42  }
 0x60d   : > { %v3203_v37 = vpop.permute.xlu2 %3202  ;;  %3685 = vperm.xlu1 %11396, %v14010_v56   ;;  %v19215_v56 = vld [vmem:[#allocation146_spill] sm:$0xff] }
 0x60e   : > { %v14014_v63 = vadd.f32 %v3203_v37, %v19203_v46  ;;  %v14032_v37 = vadd.f32 %v13576_v58, %v19211_v28  ;;  %v19213_v46 = vld [vmem:[#allocation72_spill] sm:$0xff]  ;;  %v19217_v58 = vld [vmem:[#allocation59_spill] sm:$0xff] }
 0x60f   : > { %v14050_v28 = vadd.f32 %v13588_v1, %v19217_v58 }
 0x610   : > { %19204 = vst [vmem:[#allocation164_spill] sm:$0xff] %v14014_v63  ;;  %4003 = vperm.xlu0 %11394, %v14014_v63   ;;  %v14036_v63 = vadd.f32 %v13585_v48, %v19213_v46  ;;  %v19219_v48 = vld [vmem:[#allocation74_spill] sm:$0xff]  ;;  %v19220_v46 = vld [vmem:[#allocation172_spill] sm:$0xff] }
 0x611   : > { %19212 = vst [vmem:[#allocation68_spill] sm:$0xff] %v14032_v37 }
 0x612   : > { %19214 = vst [vmem:[#allocation166_spill] sm:$0xff] %v14036_v63 }
 0x613   : > { %19218 = vst [vmem:[#allocation57_spill] sm:$0xff] %v14050_v28 }
 0x614   : > { %3682 = vperm.xlu2 %11395, %v14020_v30   ;;  %v19223_v30 = vld [vmem:[#allocation170_spill] sm:$0xff] }
 0x615   : > { %3694 = vperm.xlu1 %11396, %v14026_v11   ;;  %v14054_v11 = vadd.f32 %v19220_v46, %v19219_v48  ;;  %v19228_v46 = vld [vmem:[#allocation63_spill] sm:$0xff] }
 0x617   : > { %19221 = vst [vmem:[#allocation163_spill] sm:$0xff] %v14054_v11 }
 0x61c   : > { %3691 = vperm.xlu2 %11395, %v14032_v37   ;;  %v19231_v37 = vld [vmem:[#allocation78_spill] sm:$0xff] }
 0x61d   : > { %v3221_v8 = vpop.permute.xlu2 %3220  ;;  %3703 = vperm.xlu1 %11396, %v14036_v63   ;;  %v19222_v63 = vld [vmem:[#allocation61_spill] sm:$0xff] }
 0x61e   : > { %v14042_v61 = vadd.f32 %v3221_v8, %v19215_v56  ;;  %v14058_v56 = vpop.permute.xlu0 %3655  ;;  %v14060_v8 = vpop.permute.xlu1 %3196  ;;  %v14064_v42 = vadd.f32 %v19223_v30, %v19222_v63  ;;  %v14082_v63 = vadd.f32 %v13626_v50, %v19231_v37  ;;  %v19233_v30 = vld [vmem:[#allocation65_spill] sm:$0xff] }
 0x620   : > { %19216 = vst [vmem:[#allocation144_spill] sm:$0xff] %v14042_v61  ;;  %4012 = vperm.xlu0 %11394, %v14042_v61   ;;  %v19225_v61 = vld [vmem:[#allocation76_spill] sm:$0xff] }
 0x621   : > { %19224 = vst [vmem:[#allocation70_spill] sm:$0xff] %v14064_v42  ;;  %v14068_v1 = vadd.f32 %v13616_v7, %v19225_v61  ;;  %v14090_v61 = vadd.f32 %v13613_v47, %v19233_v30  ;;  %v19242_v30 = vld [vmem:[#allocation82_spill] sm:$0xff] }
 0x622   : > { %19232 = vst [vmem:[#allocation146_spill] sm:$0xff] %v14082_v63 }
 0x623   : > { %19226 = vst [vmem:[#allocation165_spill] sm:$0xff] %v14068_v1 }
 0x624   : > { %3700 = vperm.xlu2 %11395, %v14050_v28   ;;  %19234 = vst [vmem:[#allocation59_spill] sm:$0xff] %v14090_v61 }
 0x625   : > { %3712 = vperm.xlu1 %11396, %v14054_v11   ;;  %v19229_v11 = vld [vmem:[#allocation174_spill] sm:$0xff] }
 0x626   : > { %v14072_v58 = vpop.permute.xlu1 %3208  ;;  %v14074_v48 = vpop.permute.xlu0 %3670  ;;  %v14078_v28 = vadd.f32 %v19229_v11, %v19228_v46  ;;  %v19238_v46 = vld [vmem:[#allocation149_spill] sm:$0xff] }
 0x627   : > { %19227 = vst [vmem:[#allocation58_spill] sm:$0xff] %v14074_v48  ;;  %v19236_v48 = vld [vmem:[#allocation178_spill] sm:$0xff] }
 0x628   : > { %19230 = vst [vmem:[#allocation72_spill] sm:$0xff] %v14078_v28 }
 0x62c   : > { %3709 = vperm.xlu2 %11395, %v14064_v42   ;;  %v19235_v42 = vld [vmem:[#allocation80_spill] sm:$0xff] }
 0x62d   : > { %3721 = vperm.xlu1 %11396, %v14068_v1   ;;  %v14096_v11 = vadd.f32 %v19236_v48, %v19235_v42  ;;  %v14099_v50 = vpop.permute.xlu2 %3232  ;;  %v14112_v42 = vadd.f32 %v13645_v16, %v19242_v30 }
 0x62e   : > { %v14086_v7 = vpop.permute.xlu1 %3226  ;;  %v14092_v1 = vpop.permute.xlu0 %3679 }
 0x62f   : > { %19237 = vst [vmem:[#allocation74_spill] sm:$0xff] %v14096_v11 }
 0x630   : > { %19243 = vst [vmem:[#allocation170_spill] sm:$0xff] %v14112_v42 }
 0x634   : > { %3718 = vperm.xlu2 %11395, %v14078_v28   ;;  %v19240_v28 = vld [vmem:[#allocation67_spill] sm:$0xff] }
 0x635   : > { %3730 = vperm.xlu1 %11396, %v14082_v63   ;;  %v14107_v47 = vadd.f32 %v13636_v49, %v19240_v28  ;;  %v19247_v49 = vld [vmem:[#allocation84_spill] sm:$0xff]  ;;  %v19248_v28 = vld [vmem:[#allocation183_spill] sm:$0xff] }
 0x636   : > { %v14115_v48 = vpop.permute.xlu0 %3688 }
 0x637   : > { %19241 = vst [vmem:[#allocation61_spill] sm:$0xff] %v14107_v47 }
 0x638   : > { %19244 = vst [vmem:[#allocation76_spill] sm:$0xff] %v14115_v48 }
 0x63c   : > { %3727 = vperm.xlu2 %11395, %v14090_v61  }
 0x63d   : > { %3739 = vperm.xlu1 %11396, %v14096_v11   ;;  %v14117_v61 = vpop.permute.xlu2 %3250  ;;  %v14126_v11 = vadd.f32 %v19248_v28, %v19247_v49 }
 0x63e   : > { %v3239_v37 = vpop.permute.xlu1 %3238  ;;  %v14132_v30 = vpop.permute.xlu0 %3697 }
 0x63f   : > { %v14103_v63 = vadd.f32 %v3239_v37, %v19238_v46  ;;  %v19245_v37 = vld [vmem:[#allocation69_spill] sm:$0xff]  ;;  %19249 = vst [vmem:[#allocation174_spill] sm:$0xff] %v14126_v11 }
 0x640   : > { %v14122_v46 = vadd.f32 %v13648_v9, %v19245_v37  ;;  %19250 = vst [vmem:[#allocation78_spill] sm:$0xff] %v14132_v30  ;;  %v19255_v37 = vld [vmem:[#allocation86_spill] sm:$0xff] }
 0x641   : > { %19239 = vst [vmem:[#allocation172_spill] sm:$0xff] %v14103_v63  ;;  %4021 = vperm.xlu0 %11394, %v14103_v63   ;;  %v14144_v49 = vadd.f32 %v13678_v62, %v19255_v37 }
 0x642   : > { %19246 = vst [vmem:[#allocation63_spill] sm:$0xff] %v14122_v46 }
 0x643   : > { %19256 = vst [vmem:[#allocation178_spill] sm:$0xff] %v14144_v49 }
 0x644   : > { %3736 = vperm.xlu2 %11395, %v14107_v47   ;;  %v19251_v47 = vld [vmem:[#allocation152_spill] sm:$0xff] }
 0x645   : > { %3748 = vperm.xlu1 %11396, %v14112_v42   ;;  %v19253_v42 = vld [vmem:[#allocation71_spill] sm:$0xff] }
 0x646   : > { %v14139_v9 = vadd.f32 %v13665_v51, %v19253_v42  ;;  %v19259_v51 = vld [vmem:[#allocation88_spill] sm:$0xff] }
 0x647   : > { %v14158_v42 = vadd.f32 %v13688_v40, %v19259_v51 }
 0x648   : > { %19254 = vst [vmem:[#allocation80_spill] sm:$0xff] %v14139_v9 }
 0x649   : > { %19260 = vst [vmem:[#allocation67_spill] sm:$0xff] %v14158_v42 }
 0x64c   : > { %3745 = vperm.xlu2 %11395, %v14122_v46  }
 0x64d   : > { %v14129_v16 = vpop.permute.xlu2 %3262  ;;  %3757 = vperm.xlu1 %11396, %v14126_v11   ;;  %v14150_v11 = vpop.permute.xlu0 %3706 }
 0x64e   : > { %v3257_v63 = vpop.permute.xlu1 %3256 }
 0x64f   : > { %v14135_v48 = vadd.f32 %v3257_v63, %v19251_v47  ;;  %v19257_v63 = vld [vmem:[#allocation73_spill] sm:$0xff] }
 0x650   : > { %v14154_v47 = vadd.f32 %v13667_v25, %v19257_v63  ;;  %v19265_v25 = vld [vmem:[#allocation90_spill] sm:$0xff] }
 0x651   : > { %19252 = vst [vmem:[#allocation65_spill] sm:$0xff] %v14135_v48  ;;  %4030 = vperm.xlu0 %11394, %v14135_v48   ;;  %v19261_v48 = vld [vmem:[#allocation75_spill] sm:$0xff]  ;;  %v14174_v63 = vadd.f32 %v14022_v27, %v19265_v25 }
 0x652   : > { %19258 = vst [vmem:[#allocation149_spill] sm:$0xff] %v14154_v47 }
 0x653   : > { %19266 = vst [vmem:[#allocation84_spill] sm:$0xff] %v14174_v63 }
 0x654   : > { %3754 = vperm.xlu2 %11395, %v14139_v9  }
 0x655   : > { %3766 = vperm.xlu1 %11396, %v14144_v49   ;;  %v19262_v49 = vld [vmem:[#allocation186_spill] sm:$0xff]  ;;  %v14170_v46 = vpop.permute.xlu0 %3715 }
 0x656   : > { %v14148_v28 = vpop.permute.xlu2 %3658  ;;  %v14168_v9 = vadd.f32 %v19262_v49, %v19261_v48  ;;  %19264 = vst [vmem:[#allocation69_spill] sm:$0xff] %v14170_v46  ;;  %v19269_v48 = vld [vmem:[#allocation92_spill] sm:$0xff] }
 0x657   : > { %v14188_v49 = vadd.f32 %v13704_v35, %v19269_v48 }
 0x658   : > { %19263 = vst [vmem:[#allocation82_spill] sm:$0xff] %v14168_v9 }
 0x659   : > { %19270 = vst [vmem:[#allocation152_spill] sm:$0xff] %v14188_v49 }
 0x65c   : > { %3763 = vperm.xlu2 %11395, %v14154_v47  }
 0x65d   : > { %3775 = vperm.xlu1 %11396, %v14158_v42   ;;  %v19267_v42 = vld [vmem:[#allocation77_spill] sm:$0xff]  ;;  %v14191_v27 = vpop.permute.xlu0 %3724 }
 0x65e   : > { %v14162_v62 = vpop.permute.xlu2 %3664  ;;  %v14164_v37 = vpop.permute.xlu1 %3268  ;;  %v14184_v47 = vadd.f32 %v13696_v59, %v19267_v42  ;;  %19271 = vst [vmem:[#allocation71_spill] sm:$0xff] %v14191_v27  ;;  %v19275_v59 = vld [vmem:[#allocation94_spill] sm:$0xff] }
 0x65f   : > { %v14204_v42 = vadd.f32 %v13714_v29, %v19275_v59 }
 0x660   : > { %19268 = vst [vmem:[#allocation183_spill] sm:$0xff] %v14184_v47 }
 0x661   : > { %19276 = vst [vmem:[#allocation88_spill] sm:$0xff] %v14204_v42 }
 0x664   : > { %3772 = vperm.xlu2 %11395, %v14168_v9   ;;  %v19273_v9 = vld [vmem:[#allocation79_spill] sm:$0xff] }
 0x665   : > { %3784 = vperm.xlu1 %11396, %v14174_v63   ;;  %v14200_v46 = vadd.f32 %v13706_v12, %v19273_v9  ;;  %v14210_v48 = vpop.permute.xlu0 %3733  ;;  %v19281_v12 = vld [vmem:[#allocation96_spill] sm:$0xff] }
 0x666   : > { %v14178_v40 = vpop.permute.xlu2 %3673  ;;  %v14220_v9 = vadd.f32 %v13749_v33, %v19281_v12 }
 0x667   : > { %v14180_v51 = vpop.permute.xlu1 %3661  ;;  %19274 = vst [vmem:[#allocation73_spill] sm:$0xff] %v14200_v46 }
 0x668   : > { %19282 = vst [vmem:[#allocation90_spill] sm:$0xff] %v14220_v9 }
 0x66c   : > { %3781 = vperm.xlu2 %11395, %v14184_v47   ;;  %v19278_v47 = vld [vmem:[#allocation81_spill] sm:$0xff] }
 0x66d   : > { %3793 = vperm.xlu1 %11396, %v14188_v49  }
 0x66e   : > { %v14194_v25 = vpop.permute.xlu2 %3682 }
 0x66f   : > { %19272 = vst [vmem:[#allocation86_spill] sm:$0xff] %v14194_v25  ;;  %v14196_v63 = vpop.permute.xlu1 %3667  ;;  %v19279_v25 = vld [vmem:[#allocation143_spill] sm:$0xff] }
 0x670   : > { %v14216_v27 = vadd.f32 %v19279_v25, %v19278_v47  ;;  %v19287_v47 = vld [vmem:[#allocation98_spill] sm:$0xff] }
 0x671   : > { %v14236_v25 = vadd.f32 %v13754_v3, %v19287_v47 }
 0x672   : > { %19280 = vst [vmem:[#allocation186_spill] sm:$0xff] %v14216_v27 }
 0x673   : > { %19288 = vst [vmem:[#allocation94_spill] sm:$0xff] %v14236_v25 }
 0x674   : > { %3790 = vperm.xlu2 %11395, %v14200_v46   ;;  %v19285_v46 = vld [vmem:[#allocation83_spill] sm:$0xff] }
 0x675   : > { %3802 = vperm.xlu1 %11396, %v14204_v42   ;;  %v14228_v42 = vpop.permute.xlu0 %3742 }
 0x676   : > { %v14208_v35 = vpop.permute.xlu2 %3691 }
 0x677   : > { %19277 = vst [vmem:[#allocation75_spill] sm:$0xff] %v14208_v35  ;;  %v14212_v49 = vpop.permute.xlu1 %3676  ;;  %v14232_v35 = vadd.f32 %v13722_v6, %v19285_v46  ;;  %v19292_v6 = vld [vmem:[#allocation100_spill] sm:$0xff] }
 0x678   : > { %v19293_v46 = vld [vmem:[#allocation148_spill] sm:$0xff] }
 0x679   : > { %19286 = vst [vmem:[#allocation79_spill] sm:$0xff] %v14232_v35 }
 0x67c   : > { %3799 = vperm.xlu2 %11395, %v14216_v27  }
 0x67d   : > { %3811 = vperm.xlu1 %11396, %v14220_v9   ;;  %v19290_v9 = vld [vmem:[#allocation85_spill] sm:$0xff] }
 0x67e   : > { %v14224_v29 = vpop.permute.xlu2 %3700  ;;  %v14246_v27 = vadd.f32 %v13730_v22, %v19290_v9  ;;  %v19298_v22 = vld [vmem:[#allocation102_spill] sm:$0xff] }
 0x67f   : > { %19283 = vst [vmem:[#allocation77_spill] sm:$0xff] %v14224_v29  ;;  %v14226_v59 = vpop.permute.xlu1 %3685  ;;  %v14248_v29 = vpop.permute.xlu0 %3751  ;;  %v14266_v9 = vadd.f32 %v13773_v36, %v19298_v22 }
 0x680   : > { %19284 = vst [vmem:[#allocation92_spill] sm:$0xff] %v14226_v59  ;;  %v14252_v59 = vadd.f32 %v19293_v46, %v19292_v6 }
 0x681   : > { %19291 = vst [vmem:[#allocation143_spill] sm:$0xff] %v14246_v27 }
 0x682   : > { %19294 = vst [vmem:[#allocation96_spill] sm:$0xff] %v14252_v59 }
 0x683   : > { %19299 = vst [vmem:[#allocation85_spill] sm:$0xff] %v14266_v9 }
 0x684   : > { %3808 = vperm.xlu2 %11395, %v14232_v35  }
 0x685   : > { %3820 = vperm.xlu1 %11396, %v14236_v25   ;;  %v19296_v25 = vld [vmem:[#allocation87_spill] sm:$0xff] }
 0x686   : > { %v14240_v33 = vpop.permute.xlu2 %3709  ;;  %v14262_v35 = vadd.f32 %v13758_v17, %v19296_v25  ;;  %v19303_v17 = vld [vmem:[#allocation104_spill] sm:$0xff] }
 0x687   : > { %v14242_v12 = vpop.permute.xlu1 %3694  ;;  %v14269_v6 = vpop.permute.xlu0 %3760  ;;  %v14282_v25 = vadd.f32 %v13781_v24, %v19303_v17 }
 0x688   : > { %19289 = vst [vmem:[#allocation81_spill] sm:$0xff] %v14242_v12 }
 0x689   : > { %19297 = vst [vmem:[#allocation98_spill] sm:$0xff] %v14262_v35 }
 0x68a   : > { %19304 = vst [vmem:[#allocation87_spill] sm:$0xff] %v14282_v25 }
 0x68c   : > { %3817 = vperm.xlu2 %11395, %v14246_v27   ;;  %v19301_v27 = vld [vmem:[#allocation89_spill] sm:$0xff] }
 0x68d   : > { %3829 = vperm.xlu1 %11396, %v14252_v59   ;;  %v14278_v12 = vadd.f32 %v13762_v52, %v19301_v27  ;;  %v19309_v52 = vld [vmem:[#allocation106_spill] sm:$0xff] }
 0x68e   : > { %v14256_v3 = vpop.permute.xlu2 %3718  ;;  %v14298_v27 = vadd.f32 %v13810_v53, %v19309_v52 }
 0x68f   : > { %19295 = vst [vmem:[#allocation83_spill] sm:$0xff] %v14256_v3  ;;  %v14258_v47 = vpop.permute.xlu1 %3703  ;;  %v14288_v22 = vpop.permute.xlu0 %3769 }
 0x690   : > { %19302 = vst [vmem:[#allocation148_spill] sm:$0xff] %v14278_v12 }
 0x691   : > { %19310 = vst [vmem:[#allocation104_spill] sm:$0xff] %v14298_v27 }
 0x694   : > { %3826 = vperm.xlu2 %11395, %v14262_v35   ;;  %v19306_v35 = vld [vmem:[#allocation91_spill] sm:$0xff] }
 0x695   : > { %3838 = vperm.xlu1 %11396, %v14266_v9  }
 0x696   : > { %v14272_v46 = vpop.permute.xlu2 %3727 }
 0x697   : > { %19300 = vst [vmem:[#allocation100_spill] sm:$0xff] %v14272_v46  ;;  %v14274_v59 = vpop.permute.xlu1 %3712  ;;  %v19307_v46 = vld [vmem:[#allocation151_spill] sm:$0xff] }
 0x698   : > { %v14294_v3 = vadd.f32 %v19307_v46, %v19306_v35  ;;  %v19315_v35 = vld [vmem:[#allocation108_spill] sm:$0xff] }
 0x699   : > { %v14314_v46 = vadd.f32 %v13815_v41, %v19315_v35 }
 0x69a   : > { %19308 = vst [vmem:[#allocation89_spill] sm:$0xff] %v14294_v3 }
 0x69c   : > { %3835 = vperm.xlu2 %11395, %v14278_v12   ;;  %v19313_v12 = vld [vmem:[#allocation93_spill] sm:$0xff] }
 0x69d   : > { %3847 = vperm.xlu1 %11396, %v14282_v25   ;;  %v14306_v25 = vpop.permute.xlu0 %3778  ;;  %19316 = vst [vmem:[#allocation93_spill] sm:$0xff] %v14314_v46 }
 0x69e   : > { %v14286_v36 = vpop.permute.xlu2 %3736 }
 0x69f   : > { %19305 = vst [vmem:[#allocation102_spill] sm:$0xff] %v14286_v36  ;;  %v14290_v9 = vpop.permute.xlu1 %3721  ;;  %v14310_v36 = vadd.f32 %v13790_v60, %v19313_v12  ;;  %v19320_v60 = vld [vmem:[#allocation110_spill] sm:$0xff] }
 0x6a0   : > { %v19321_v12 = vld [vmem:[#allocation154_spill] sm:$0xff] }
 0x6a1   : > { %19314 = vst [vmem:[#allocation106_spill] sm:$0xff] %v14310_v36 }
 0x6a4   : > { %3844 = vperm.xlu2 %11395, %v14294_v3  }
 0x6a5   : > { %3856 = vperm.xlu1 %11396, %v14298_v27   ;;  %v19318_v27 = vld [vmem:[#allocation95_spill] sm:$0xff] }
 0x6a6   : > { %v14302_v24 = vpop.permute.xlu2 %3745  ;;  %v14324_v3 = vadd.f32 %v13794_v4, %v19318_v27  ;;  %v19326_v4 = vld [vmem:[#allocation112_spill] sm:$0xff] }
 0x6a7   : > { %19311 = vst [vmem:[#allocation91_spill] sm:$0xff] %v14302_v24  ;;  %v14304_v17 = vpop.permute.xlu1 %3730  ;;  %v14326_v24 = vpop.permute.xlu0 %3787  ;;  %v14344_v27 = vadd.f32 %v13834_v55, %v19326_v4 }
 0x6a8   : > { %19312 = vst [vmem:[#allocation151_spill] sm:$0xff] %v14304_v17  ;;  %v14330_v17 = vadd.f32 %v19321_v12, %v19320_v60 }
 0x6a9   : > { %19319 = vst [vmem:[#allocation95_spill] sm:$0xff] %v14324_v3 }
 0x6aa   : > { %19322 = vst [vmem:[#allocation110_spill] sm:$0xff] %v14330_v17 }
 0x6ab   : > { %19327 = vst [vmem:[#allocation112_spill] sm:$0xff] %v14344_v27 }
 0x6ac   : > { %3853 = vperm.xlu2 %11395, %v14310_v36  }
 0x6ad   : > { %3865 = vperm.xlu1 %11396, %v14314_v46   ;;  %v19324_v46 = vld [vmem:[#allocation97_spill] sm:$0xff] }
 0x6ae   : > { %v14318_v53 = vpop.permute.xlu2 %3754  ;;  %v14340_v36 = vadd.f32 %v13819_v18, %v19324_v46  ;;  %v19332_v18 = vld [vmem:[#allocation114_spill] sm:$0xff] }
 0x6af   : > { %v14320_v52 = vpop.permute.xlu1 %3739  ;;  %v14347_v60 = vpop.permute.xlu0 %3796  ;;  %v14360_v46 = vadd.f32 %v13842_v0, %v19332_v18 }
 0x6b0   : > { %19317 = vst [vmem:[#allocation108_spill] sm:$0xff] %v14320_v52 }
 0x6b1   : > { %19325 = vst [vmem:[#allocation97_spill] sm:$0xff] %v14340_v36 }
 0x6b2   : > { %19328 = vst [vmem:[#allocation206_spill] sm:$0xff] %v14347_v60 }
 0x6b3   : > { %19333 = vst [vmem:[#allocation114_spill] sm:$0xff] %v14360_v46 }
 0x6b4   : > { %3862 = vperm.xlu2 %11395, %v14324_v3   ;;  %v19330_v3 = vld [vmem:[#allocation99_spill] sm:$0xff] }
 0x6b5   : > { %3874 = vperm.xlu1 %11396, %v14330_v17  }
 0x6b6   : > { %v14334_v41 = vpop.permute.xlu2 %3763 }
 0x6b7   : > { %v14336_v35 = vpop.permute.xlu1 %3748  ;;  %v14366_v4 = vpop.permute.xlu0 %3805 }
 0x6b8   : > { %19323 = vst [vmem:[#allocation154_spill] sm:$0xff] %v14336_v35  ;;  %v14356_v35 = vadd.f32 %v13823_v44, %v19330_v3  ;;  %v19338_v44 = vld [vmem:[#allocation116_spill] sm:$0xff] }
 0x6b9   : > { %v14376_v3 = vadd.f32 %v13871_v13, %v19338_v44 }
 0x6ba   : > { %19331 = vst [vmem:[#allocation99_spill] sm:$0xff] %v14356_v35 }
 0x6bc   : > { %3871 = vperm.xlu2 %11395, %v14340_v36   ;;  %v19335_v36 = vld [vmem:[#allocation101_spill] sm:$0xff] }
 0x6bd   : > { %3883 = vperm.xlu1 %11396, %v14344_v27  }
 0x6be   : > { %v14350_v12 = vpop.permute.xlu2 %3772 }
 0x6bf   : > { %19329 = vst [vmem:[#allocation207_spill] sm:$0xff] %v14350_v12  ;;  %v14352_v17 = vpop.permute.xlu1 %3757  ;;  %v19336_v12 = vld [vmem:[#allocation156_spill] sm:$0xff] }
 0x6c0   : > { %v14372_v52 = vadd.f32 %v19336_v12, %v19335_v36  ;;  %19339 = vst [vmem:[#allocation156_spill] sm:$0xff] %v14376_v3  ;;  %v19344_v36 = vld [vmem:[#allocation118_spill] sm:$0xff] }
 0x6c1   : > { %v14392_v12 = vadd.f32 %v13876_v45, %v19344_v36 }
 0x6c2   : > { %19337 = vst [vmem:[#allocation101_spill] sm:$0xff] %v14372_v52 }
 0x6c3   : > { %19345 = vst [vmem:[#allocation118_spill] sm:$0xff] %v14392_v12 }
 0x6c4   : > { %3880 = vperm.xlu2 %11395, %v14356_v35   ;;  %v19342_v35 = vld [vmem:[#allocation103_spill] sm:$0xff] }
 0x6c5   : > { %3892 = vperm.xlu1 %11396, %v14360_v46   ;;  %v14384_v46 = vpop.permute.xlu0 %3814 }
 0x6c6   : > { %v14364_v55 = vpop.permute.xlu2 %3781 }
 0x6c7   : > { %19334 = vst [vmem:[#allocation208_spill] sm:$0xff] %v14364_v55  ;;  %v14368_v27 = vpop.permute.xlu1 %3766  ;;  %v14388_v55 = vadd.f32 %v13851_v32, %v19342_v35  ;;  %v19350_v32 = vld [vmem:[#allocation121_spill] sm:$0xff]  ;;  %v19351_v35 = vld [vmem:[#allocation162_spill] sm:$0xff] }
 0x6c9   : > { %19343 = vst [vmem:[#allocation103_spill] sm:$0xff] %v14388_v55 }
 0x6cc   : > { %3889 = vperm.xlu2 %11395, %v14372_v52  }
 0x6cd   : > { %3901 = vperm.xlu1 %11396, %v14376_v3   ;;  %v19348_v3 = vld [vmem:[#allocation105_spill] sm:$0xff] }
 0x6ce   : > { %v14380_v0 = vpop.permute.xlu2 %3790  ;;  %v14402_v52 = vadd.f32 %v13855_v31, %v19348_v3  ;;  %v19357_v31 = vld [vmem:[#allocation124_spill] sm:$0xff] }
 0x6cf   : > { %19340 = vst [vmem:[#allocation116_spill] sm:$0xff] %v14380_v0  ;;  %v14382_v18 = vpop.permute.xlu1 %3775  ;;  %v14404_v0 = vpop.permute.xlu0 %3823  ;;  %v14422_v3 = vadd.f32 %v13895_v54, %v19357_v31 }
 0x6d0   : > { %19341 = vst [vmem:[#allocation209_spill] sm:$0xff] %v14382_v18  ;;  %v14408_v18 = vadd.f32 %v19351_v35, %v19350_v32 }
 0x6d1   : > { %19349 = vst [vmem:[#allocation105_spill] sm:$0xff] %v14402_v52 }
 0x6d2   : > { %19352 = vst [vmem:[#allocation121_spill] sm:$0xff] %v14408_v18 }
 0x6d3   : > { %19358 = vst [vmem:[#allocation124_spill] sm:$0xff] %v14422_v3 }
 0x6d4   : > { %3898 = vperm.xlu2 %11395, %v14388_v55  }
 0x6d5   : > { %3910 = vperm.xlu1 %11396, %v14392_v12   ;;  %v19355_v12 = vld [vmem:[#allocation107_spill] sm:$0xff] }
 0x6d6   : > { %v14396_v13 = vpop.permute.xlu2 %3799  ;;  %v14418_v55 = vadd.f32 %v13880_v34, %v19355_v12  ;;  %v19362_v34 = vld [vmem:[#allocation127_spill] sm:$0xff] }
 0x6d7   : > { %19346 = vst [vmem:[#allocation210_spill] sm:$0xff] %v14396_v13  ;;  %v14398_v44 = vpop.permute.xlu1 %3784  ;;  %v14425_v32 = vpop.permute.xlu0 %3832  ;;  %v14438_v12 = vadd.f32 %v13903_v14, %v19362_v34  ;;  %v19464_v13 = vld [vmem:[#allocation71_spill] sm:$0xff] }
 0x6d8   : > { %19347 = vst [vmem:[#allocation211_spill] sm:$0xff] %v14398_v44  ;;  %v19368_v44 = vld [vmem:[#allocation168_spill] sm:$0xff] }
 0x6d9   : > { %19356 = vst [vmem:[#allocation107_spill] sm:$0xff] %v14418_v55 }
 0x6da   : > { %19363 = vst [vmem:[#allocation127_spill] sm:$0xff] %v14438_v12 }
 0x6dc   : > { %3907 = vperm.xlu2 %11395, %v14402_v52   ;;  %v19360_v52 = vld [vmem:[#allocation109_spill] sm:$0xff] }
 0x6dd   : > { %3919 = vperm.xlu1 %11396, %v14408_v18  }
 0x6de   : > { %v14412_v45 = vpop.permute.xlu2 %3808 }
 0x6df   : > { %19353 = vst [vmem:[#allocation162_spill] sm:$0xff] %v14412_v45  ;;  %v14414_v36 = vpop.permute.xlu1 %3793  ;;  %v14441_v54 = vpop.permute.xlu0 %3841 }
 0x6e0   : > { %19354 = vst [vmem:[#allocation212_spill] sm:$0xff] %v14414_v36  ;;  %v14434_v36 = vadd.f32 %v13884_v20, %v19360_v52  ;;  %v19370_v20 = vld [vmem:[#allocation130_spill] sm:$0xff] }
 0x6e1   : > { %19364 = vst [vmem:[#allocation214_spill] sm:$0xff] %v14441_v54  ;;  %v14454_v52 = vadd.f32 %v13932_v38, %v19370_v20 }
 0x6e2   : > { %19361 = vst [vmem:[#allocation109_spill] sm:$0xff] %v14434_v36 }
 0x6e3   : > { %19371 = vst [vmem:[#allocation168_spill] sm:$0xff] %v14454_v52 }
 0x6e4   : > { %3916 = vperm.xlu2 %11395, %v14418_v55   ;;  %v19367_v55 = vld [vmem:[#allocation111_spill] sm:$0xff] }
 0x6e5   : > { %3928 = vperm.xlu1 %11396, %v14422_v3  }
 0x6e6   : > { %v14428_v35 = vpop.permute.xlu2 %3817 }
 0x6e7   : > { %19359 = vst [vmem:[#allocation213_spill] sm:$0xff] %v14428_v35  ;;  %v14430_v18 = vpop.permute.xlu1 %3802  ;;  %v14450_v35 = vadd.f32 %v19368_v44, %v19367_v55  ;;  %v14457_v14 = vpop.permute.xlu0 %3850  ;;  %v19376_v55 = vld [vmem:[#allocation133_spill] sm:$0xff] }
 0x6e8   : > { %v14470_v44 = vadd.f32 %v13937_v21, %v19376_v55 }
 0x6e9   : > { %19369 = vst [vmem:[#allocation111_spill] sm:$0xff] %v14450_v35 }
 0x6ea   : > { %19377 = vst [vmem:[#allocation133_spill] sm:$0xff] %v14470_v44 }
 0x6ec   : > { %3925 = vperm.xlu2 %11395, %v14434_v36   ;;  %v19374_v36 = vld [vmem:[#allocation113_spill] sm:$0xff] }
 0x6ed   : > { %3937 = vperm.xlu1 %11396, %v14438_v12  }
 0x6ee   : > { %v14444_v31 = vpop.permute.xlu2 %3826 }
 0x6ef   : > { %19365 = vst [vmem:[#allocation215_spill] sm:$0xff] %v14444_v31  ;;  %v14446_v3 = vpop.permute.xlu1 %3811  ;;  %v14466_v31 = vadd.f32 %v13912_v10, %v19374_v36  ;;  %v14476_v20 = vpop.permute.xlu0 %3859  ;;  %v19382_v10 = vld [vmem:[#allocation136_spill] sm:$0xff] }
 0x6f0   : > { %19366 = vst [vmem:[#allocation216_spill] sm:$0xff] %v14446_v3  ;;  %v19383_v36 = vld [vmem:[#allocation176_spill] sm:$0xff]  ;;  %v19458_v3 = vld [vmem:[#allocation58_spill] sm:$0xff] }
 0x6f1   : > { %19375 = vst [vmem:[#allocation113_spill] sm:$0xff] %v14466_v31 }
 0x6f4   : > { %3934 = vperm.xlu2 %11395, %v14450_v35   ;;  %v19380_v35 = vld [vmem:[#allocation115_spill] sm:$0xff] }
 0x6f5   : > { %3946 = vperm.xlu1 %11396, %v14454_v52  }
 0x6f6   : > { %v14460_v34 = vpop.permute.xlu2 %3835 }
 0x6f7   : > { %19372 = vst [vmem:[#allocation130_spill] sm:$0xff] %v14460_v34  ;;  %v14462_v12 = vpop.permute.xlu1 %3820  ;;  %v14482_v34 = vadd.f32 %v13916_v5, %v19380_v35  ;;  %v14492_v55 = vpop.permute.xlu0 %3868  ;;  %v19389_v5 = vld [vmem:[#allocation139_spill] sm:$0xff] }
 0x6f8   : > { %19373 = vst [vmem:[#allocation217_spill] sm:$0xff] %v14462_v12  ;;  %v14486_v12 = vadd.f32 %v19383_v36, %v19382_v10  ;;  %v14502_v35 = vadd.f32 %v13956_v39, %v19389_v5 }
 0x6f9   : > { %19381 = vst [vmem:[#allocation115_spill] sm:$0xff] %v14482_v34 }
 0x6fa   : > { %19384 = vst [vmem:[#allocation136_spill] sm:$0xff] %v14486_v12 }
 0x6fb   : > { %19390 = vst [vmem:[#allocation139_spill] sm:$0xff] %v14502_v35 }
 0x6fc   : > { %3943 = vperm.xlu2 %11395, %v14466_v31   ;;  %v19387_v31 = vld [vmem:[#allocation117_spill] sm:$0xff] }
 0x6fd   : > { %3955 = vperm.xlu1 %11396, %v14470_v44  }
 0x6fe   : > { %v14474_v38 = vpop.permute.xlu2 %3844 }
 0x6ff   : > { %19378 = vst [vmem:[#allocation218_spill] sm:$0xff] %v14474_v38  ;;  %v14478_v52 = vpop.permute.xlu1 %3829  ;;  %v14498_v38 = vadd.f32 %v13941_v15, %v19387_v31  ;;  %v14508_v36 = vpop.permute.xlu0 %3877  ;;  %v19395_v15 = vld [vmem:[#allocation142_spill] sm:$0xff] }
 0x700   : > { %19379 = vst [vmem:[#allocation219_spill] sm:$0xff] %v14478_v52  ;;  %v14518_v31 = vadd.f32 %v13968_v2, %v19395_v15  ;;  %v19401_v52 = vld [vmem:[#allocation181_spill] sm:$0xff] }
 0x701   : > { %19388 = vst [vmem:[#allocation117_spill] sm:$0xff] %v14498_v38 }
 0x702   : > { %19396 = vst [vmem:[#allocation142_spill] sm:$0xff] %v14518_v31 }
 0x704   : > { %3952 = vperm.xlu2 %11395, %v14482_v34   ;;  %v19393_v34 = vld [vmem:[#allocation119_spill] sm:$0xff] }
 0x705   : > { %3964 = vperm.xlu1 %11396, %v14486_v12  }
 0x706   : > { %v14490_v21 = vpop.permute.xlu2 %3853 }
 0x707   : > { %19385 = vst [vmem:[#allocation176_spill] sm:$0xff] %v14490_v21  ;;  %v14494_v44 = vpop.permute.xlu1 %3838  ;;  %v14524_v5 = vpop.permute.xlu0 %3886 }
 0x708   : > { %19386 = vst [vmem:[#allocation220_spill] sm:$0xff] %v14494_v44  ;;  %v14514_v44 = vadd.f32 %v13945_v23, %v19393_v34  ;;  %v19403_v23 = vld [vmem:[#allocation145_spill] sm:$0xff] }
 0x709   : > { %19398 = vst [vmem:[#allocation224_spill] sm:$0xff] %v14524_v5  ;;  %v14534_v34 = vadd.f32 %v14045_v26, %v19403_v23 }
 0x70a   : > { %19394 = vst [vmem:[#allocation119_spill] sm:$0xff] %v14514_v44 }
 0x70b   : > { %19404 = vst [vmem:[#allocation181_spill] sm:$0xff] %v14534_v34 }
 0x70c   : > { %3961 = vperm.xlu2 %11395, %v14498_v38   ;;  %v19400_v38 = vld [vmem:[#allocation122_spill] sm:$0xff] }
 0x70d   : > { %3973 = vperm.xlu1 %11396, %v14502_v35  }
 0x70e   : > { %v14506_v10 = vpop.permute.xlu2 %3862 }
 0x70f   : > { %19391 = vst [vmem:[#allocation221_spill] sm:$0xff] %v14506_v10  ;;  %v14510_v12 = vpop.permute.xlu1 %3847  ;;  %v14530_v10 = vadd.f32 %v19401_v52, %v19400_v38  ;;  %v14540_v15 = vpop.permute.xlu0 %3895  ;;  %v19409_v52 = vld [vmem:[#allocation147_spill] sm:$0xff] }
 0x710   : > { %19392 = vst [vmem:[#allocation222_spill] sm:$0xff] %v14510_v12  ;;  %v14550_v38 = vadd.f32 %v14060_v8, %v19409_v52 }
 0x711   : > { %19402 = vst [vmem:[#allocation122_spill] sm:$0xff] %v14530_v10 }
 0x712   : > { %19410 = vst [vmem:[#allocation147_spill] sm:$0xff] %v14550_v38 }
 0x714   : > { %3970 = vperm.xlu2 %11395, %v14514_v44   ;;  %v19407_v44 = vld [vmem:[#allocation125_spill] sm:$0xff] }
 0x715   : > { %3982 = vperm.xlu1 %11396, %v14518_v31  }
 0x716   : > { %v14522_v39 = vpop.permute.xlu2 %3871 }
 0x717   : > { %19397 = vst [vmem:[#allocation223_spill] sm:$0xff] %v14522_v39  ;;  %v14526_v35 = vpop.permute.xlu1 %3856  ;;  %v14546_v39 = vadd.f32 %v13987_v19, %v19407_v44  ;;  %v19415_v19 = vld [vmem:[#allocation150_spill] sm:$0xff]  ;;  %v19416_v44 = vld [vmem:[#allocation157_spill] sm:$0xff] }
 0x718   : > { %19399 = vst [vmem:[#allocation225_spill] sm:$0xff] %v14526_v35 }
 0x719   : > { %19408 = vst [vmem:[#allocation125_spill] sm:$0xff] %v14546_v39 }
 0x71c   : > { %3979 = vperm.xlu2 %11395, %v14530_v10   ;;  %v19413_v10 = vld [vmem:[#allocation128_spill] sm:$0xff] }
 0x71d   : > { %3991 = vperm.xlu1 %11396, %v14534_v34   ;;  %v14558_v34 = vpop.permute.xlu0 %3904 }
 0x71e   : > { %v14538_v2 = vpop.permute.xlu2 %3880 }
 0x71f   : > { %19405 = vst [vmem:[#allocation145_spill] sm:$0xff] %v14538_v2  ;;  %v14542_v31 = vpop.permute.xlu1 %3865  ;;  %v14562_v2 = vadd.f32 %v13999_v57, %v19413_v10  ;;  %v19422_v57 = vld [vmem:[#allocation153_spill] sm:$0xff] }
 0x720   : > { %19406 = vst [vmem:[#allocation226_spill] sm:$0xff] %v14542_v31  ;;  %v14566_v31 = vadd.f32 %v19416_v44, %v19415_v19  ;;  %v14582_v10 = vadd.f32 %v14099_v50, %v19422_v57 }
 0x721   : > { %19414 = vst [vmem:[#allocation128_spill] sm:$0xff] %v14562_v2 }
 0x722   : > { %19417 = vst [vmem:[#allocation150_spill] sm:$0xff] %v14566_v31 }
 0x723   : > { %19423 = vst [vmem:[#allocation153_spill] sm:$0xff] %v14582_v10 }
 0x724   : > { %3988 = vperm.xlu2 %11395, %v14546_v39   ;;  %v19420_v39 = vld [vmem:[#allocation131_spill] sm:$0xff] }
 0x725   : > { %4000 = vperm.xlu1 %11396, %v14550_v38   ;;  %v14574_v38 = vpop.permute.xlu0 %3913 }
 0x726   : > { %v14554_v26 = vpop.permute.xlu2 %3889 }
 0x727   : > { %19411 = vst [vmem:[#allocation227_spill] sm:$0xff] %v14554_v26  ;;  %v14556_v23 = vpop.permute.xlu1 %3874  ;;  %v14578_v26 = vadd.f32 %v14072_v58, %v19420_v39  ;;  %v19428_v58 = vld [vmem:[#allocation155_spill] sm:$0xff] }
 0x728   : > { %19412 = vst [vmem:[#allocation228_spill] sm:$0xff] %v14556_v23  ;;  %v14598_v39 = vadd.f32 %v14117_v61, %v19428_v58 }
 0x729   : > { %19421 = vst [vmem:[#allocation131_spill] sm:$0xff] %v14578_v26 }
 0x72a   : > { %19429 = vst [vmem:[#allocation155_spill] sm:$0xff] %v14598_v39 }
 0x72c   : > { %3997 = vperm.xlu2 %11395, %v14562_v2   ;;  %v19426_v2 = vld [vmem:[#allocation134_spill] sm:$0xff] }
 0x72d   : > { %4009 = vperm.xlu1 %11396, %v14566_v31   ;;  %v14590_v31 = vpop.permute.xlu0 %3922 }
 0x72e   : > { %v14570_v8 = vpop.permute.xlu2 %3898 }
 0x72f   : > { %19418 = vst [vmem:[#allocation157_spill] sm:$0xff] %v14570_v8  ;;  %v14572_v52 = vpop.permute.xlu1 %3883 }
 0x730   : > { %19419 = vst [vmem:[#allocation229_spill] sm:$0xff] %v14572_v52  ;;  %v14594_v52 = vadd.f32 %v14086_v7, %v19426_v2  ;;  %v19435_v7 = vld [vmem:[#allocation158_spill] sm:$0xff] }
 0x731   : > { %v14614_v2 = vadd.f32 %v14164_v37, %v19435_v7 }
 0x732   : > { %19427 = vst [vmem:[#allocation134_spill] sm:$0xff] %v14594_v52 }
 0x733   : > { %19436 = vst [vmem:[#allocation158_spill] sm:$0xff] %v14614_v2 }
 0x734   : > { %4006 = vperm.xlu2 %11395, %v14578_v26   ;;  %v19433_v26 = vld [vmem:[#allocation137_spill] sm:$0xff] }
 0x735   : > { %4018 = vperm.xlu1 %11396, %v14582_v10   ;;  %v14606_v10 = vpop.permute.xlu0 %3931 }
 0x736   : > { %v14586_v19 = vpop.permute.xlu2 %3907  ;;  %19432 = vst [vmem:[#allocation234_spill] sm:$0xff] %v14606_v10 }
 0x737   : > { %19424 = vst [vmem:[#allocation230_spill] sm:$0xff] %v14586_v19  ;;  %v14588_v44 = vpop.permute.xlu1 %3892 }
 0x738   : > { %19425 = vst [vmem:[#allocation231_spill] sm:$0xff] %v14588_v44  ;;  %v14610_v44 = vadd.f32 %v14039_v43, %v19433_v26 }
 0x73a   : > { %19434 = vst [vmem:[#allocation137_spill] sm:$0xff] %v14610_v44 }
 0x73c   : > { %4015 = vperm.xlu2 %11395, %v14594_v52   ;;  %v19440_v52 = vld [vmem:[#allocation140_spill] sm:$0xff] }
 0x73d   : > { %4027 = vperm.xlu1 %11396, %v14598_v39   ;;  %v14622_v39 = vpop.permute.xlu0 %3940  ;;  %v14626_v23 = vadd.f32 %v14129_v16, %v19440_v52 }
 0x73e   : > { %v14602_v50 = vpop.permute.xlu2 %3916  ;;  %19439 = vst [vmem:[#allocation237_spill] sm:$0xff] %v14622_v39  ;;  %v19483_v39 = vld [vmem:[#allocation102_spill] sm:$0xff] }
 0x73f   : > { %19430 = vst [vmem:[#allocation232_spill] sm:$0xff] %v14602_v50  ;;  %v14604_v57 = vpop.permute.xlu1 %3901 }
 0x740   : > { %19431 = vst [vmem:[#allocation233_spill] sm:$0xff] %v14604_v57 }
 0x741   : > { %19441 = vst [vmem:[#allocation140_spill] sm:$0xff] %v14626_v23 }
 0x744   : > { %4024 = vperm.xlu2 %11395, %v14610_v44  }
 0x745   : > { %4036 = vperm.xlu1 %11396, %v14614_v2   ;;  %v14633_v26 = vpop.permute.xlu0 %3949 }
 0x746   : > { %v14618_v61 = vpop.permute.xlu2 %3925 }
 0x747   : > { %19437 = vst [vmem:[#allocation235_spill] sm:$0xff] %v14618_v61  ;;  %v14620_v58 = vpop.permute.xlu1 %3910  ;;  %v19496_v5 = vld [vmem:[#allocation233_spill] sm:$0xff] }
 0x748   : > { %19438 = vst [vmem:[#allocation236_spill] sm:$0xff] %v14620_v58 }
 0x74c   : > { %4033 = vperm.xlu2 %11395, %v14626_v23  }
 0x74d   : > { %v14639_v44 = vpop.permute.xlu0 %3958 }
 0x74e   : > { %v14629_v43 = vpop.permute.xlu2 %3934  ;;  %19446 = vst [vmem:[#allocation242_spill] sm:$0xff] %v14639_v44 }
 0x74f   : > { %19442 = vst [vmem:[#allocation238_spill] sm:$0xff] %v14629_v43  ;;  %v14631_v37 = vpop.permute.xlu1 %3919  ;;  %v19452_v43 = vlaneseq }
 0x750   : > { %19443 = vst [vmem:[#allocation239_spill] sm:$0xff] %v14631_v37 }
 0x751   : > { %v14652_v37 = vand.u32 127, %v19452_v43 }
 0x753   : > { %v14657_v58 = vadd.s32 4294967288, %v14652_v37  ;;  %v4040_v43 = vperm.slane %v14058_v56, %v14652_v37  ;;  %v14673_v35 = vadd.s32 4294967264, %v14652_v37  ;;  %v14691_v45 = vadd.s32 4294967208, %v14652_v37 }
 0x755   : > { %v14645_v16 = vpop.permute.xlu0 %3967  ;;  %v4054_v56 = vperm.slane %v14196_v63, %v14673_v35 }
 0x756   : > { %v14635_v7 = vpop.permute.xlu2 %3943  ;;  %19449 = vst [vmem:[#allocation245_spill] sm:$0xff] %v14645_v16 }
 0x757   : > { %19444 = vst [vmem:[#allocation240_spill] sm:$0xff] %v14635_v7  ;;  %v14637_v2 = vpop.permute.xlu1 %3928  ;;  %v14676_v7 = vadd.s32 4294967256, %v14652_v37 }
 0x758   : > { %19445 = vst [vmem:[#allocation241_spill] sm:$0xff] %v14637_v2  ;;  %v14660_v2 = vadd.s32 4294967280, %v14652_v37 }
 0x75d   : > { %v14654_v19 = vpop.permute.xlu0 %3976 }
 0x75e   : > { %v14641_v61 = vpop.permute.xlu2 %3952  ;;  %19453 = vst [vmem:[#allocation248_spill] sm:$0xff] %v14654_v19  ;;  %v4104_v19 = vperm.slane %v14240_v33, %v14660_v2  ;;  %v19463_v33 = vld [vmem:[#allocation69_spill] sm:$0xff]  ;;  %v19497_v54 = vld [vmem:[#allocation240_spill] sm:$0xff] }
 0x75f   : > { %19447 = vst [vmem:[#allocation243_spill] sm:$0xff] %v14641_v61  ;;  %v14643_v50 = vpop.permute.xlu1 %3937  ;;  %v4108_v30 = vperm.slane %v19463_v33, %v14673_v35 }
 0x760   : > { %19448 = vst [vmem:[#allocation244_spill] sm:$0xff] %v14643_v50  ;;  %v4042_v50 = vperm.slane %v14148_v28, %v14657_v58  ;;  %v14679_v28 = vadd.s32 4294967272, %v14652_v37 }
 0x762   : > { %v4050_v8 = vperm.slane %v14162_v62, %v14679_v28  ;;  %v14708_v62 = vadd.s32 4294967240, %v14652_v37 }
 0x764   : > { %v4114_v16 = vperm.slane %v19464_v13, %v14708_v62  ;;  %v4137_v13 = vperm.slane %v14269_v6, %v14679_v28  ;;  %v19468_v6 = vld [vmem:[#allocation86_spill] sm:$0xff] }
 0x765   : > { %v14682_v57 = vpop.permute.xlu0 %3985 }
 0x766   : > { %v14647_v52 = vpop.permute.xlu2 %3961  ;;  %19456 = vst [vmem:[#allocation251_spill] sm:$0xff] %v14682_v57  ;;  %v19460_v57 = vld [vmem:[#allocation76_spill] sm:$0xff] }
 0x767   : > { %19450 = vst [vmem:[#allocation246_spill] sm:$0xff] %v14647_v52  ;;  %v14649_v23 = vpop.permute.xlu1 %3946  ;;  %v4046_v52 = vperm.slane %v14180_v51, %v14660_v2  ;;  %v14685_v51 = vadd.s32 4294967232, %v14652_v37 }
 0x768   : > { %19451 = vst [vmem:[#allocation247_spill] sm:$0xff] %v14649_v23 }
 0x769   : > { %v4070_v23 = vperm.slane %v14092_v1, %v14685_v51 }
 0x76e   : > { %v14664_v61 = vpop.permute.xlu2 %3970 }
 0x76f   : > { %19454 = vst [vmem:[#allocation249_spill] sm:$0xff] %v14664_v61  ;;  %v14668_v21 = vpop.permute.xlu1 %3955  ;;  %v4044_v61 = vsel %vm4043_vm0, %v4042_v50, %v4040_v43  ;;  %v4101_v50 = vperm.slane %v14258_v47, %v14652_v37  ;;  %v14698_v43 = vadd.s32 4294967184, %v14652_v37 }
 0x770   : > { %19455 = vst [vmem:[#allocation250_spill] sm:$0xff] %v14668_v21  ;;  %v4048_v21 = vsel %vm4047_vm1, %v4046_v52, %v4044_v61  ;;  %v4058_v61 = vperm.slane %v19458_v3, %v14676_v7  ;;  %v4102_v52 = vperm.slane %v14150_v11, %v14657_v58  ;;  %v14716_v3 = vadd.s32 4294967216, %v14652_v37 }
 0x771   : > { %19457 = vst [vmem:[#allocation252_spill] sm:$0xff] %v14698_v43  ;;  %v4052_v63 = vsel %vm4051_vm2, %v4050_v8, %v4048_v21  ;;  %v4106_v21 = vperm.slane %v14274_v59, %v14679_v28  ;;  %v4066_v59 = vperm.slane %v14212_v49, %v14708_v62 }
 0x772   : > { %v4056_v47 = vsel %vm4055_vm3, %v4054_v56, %v4052_v63  ;;  %v4103_v11 = vsel %vm4043_vm0, %v4102_v52, %v4101_v50  ;;  %v14726_v56 = vadd.s32 4294967192, %v14652_v37  ;;  %v14729_v63 = vadd.s32 4294967248, %v14652_v37 }
 0x773   : > { %v4060_v50 = vsel %vm4059_vm4, %v4058_v61, %v4056_v47  ;;  %v14740_v52 = vadd.s32 4294967200, %v14652_v37  ;;  %v14750_v61 = vadd.s32 4294967176, %v14652_v37  ;;  %v14752_v47 = vpop.permute.xlu0 %3994 }
 0x774   : > { %19462 = vst [vmem:[#allocation253_spill] sm:$0xff] %v14726_v56  ;;  %v4062_v8 = vperm.slane %v14178_v40, %v14729_v63 }
 0x775   : > { %19465 = vst [vmem:[#allocation69_spill] sm:$0xff] %v14750_v61 }
 0x776   : > { %v14721_v1 = vpop.permute.xlu2 %3979 }
 0x777   : > { %v14711_v12 = vpop.permute.xlu1 %3964  ;;  %19461 = vst [vmem:[#allocation76_spill] sm:$0xff] %v14721_v1  ;;  %v4105_v1 = vsel %vm4047_vm1, %v4104_v19, %v4103_v11  ;;  %v4132_v19 = vperm.slane %v14248_v29, %v14652_v37  ;;  %v4064_v11 = vsel %vm4063_vm5, %v4062_v8, %v4060_v50  ;;  %v4112_v29 = vperm.slane %v14290_v9, %v14729_v63  ;;  %v19467_v9 = vld [vmem:[#allocation92_spill] sm:$0xff] }
 0x778   : > { %19459 = vst [vmem:[#allocation58_spill] sm:$0xff] %v14711_v12  ;;  %v14734_v12 = vadd.s32 4294967224, %v14652_v37  ;;  %v4107_v49 = vsel %vm4051_vm2, %v4106_v21, %v4105_v1  ;;  %v4068_v21 = vsel %vm18685_vm6, %v4066_v59, %v4064_v11  ;;  %v19466_v11 = vld [vmem:[#allocation83_spill] sm:$0xff]  ;;  %v4078_v40 = vperm.slane %v19467_v9, %v14716_v3 }
 0x779   : > { %v4109_v44 = vsel %vm4055_vm3, %v4108_v30, %v4107_v49  ;;  %v4110_v1 = vperm.slane %v19466_v11, %v14676_v7  ;;  %v4072_v49 = vsel %vm4071_vm7, %v4070_v23, %v4068_v21  ;;  %v4133_v59 = vperm.slane %v14318_v53, %v14657_v58  ;;  %v19470_v53 = vld [vmem:[#allocation151_spill] sm:$0xff] }
 0x77a   : > { %v4074_v33 = vperm.slane %v19468_v6, %v14734_v12  ;;  %v4135_v9 = vperm.slane %v14352_v17, %v14660_v2 }
 0x77b   : > { %v4111_v50 = vsel %vm4059_vm4, %v4110_v1, %v4109_v44  ;;  %v14810_v11 = vpop.permute.xlu0 %4003  ;;  %v4118_v44 = vperm.slane %v19470_v53, %v14734_v12 }
 0x77c   : > { %v4113_v21 = vsel %vm4063_vm5, %v4112_v29, %v4111_v50  ;;  %v4076_v1 = vsel %vm4075_vm8, %v4074_v33, %v4072_v49  ;;  %v4134_v33 = vsel %vm4043_vm0, %v4133_v59, %v4132_v19  ;;  %v19471_v29 = vld [vmem:[#allocation100_spill] sm:$0xff]  ;;  %v19474_v59 = vld [vmem:[#allocation81_spill] sm:$0xff] }
 0x77d   : > { %v4080_v17 = vsel %vm18688_vm9, %v4078_v40, %v4076_v1  ;;  %v4115_v30 = vsel %vm18685_vm6, %v4114_v16, %v4113_v21  ;;  %v4116_v6 = vperm.slane %v19471_v29, %v14685_v51  ;;  %v4136_v40 = vsel %vm4047_vm1, %v4135_v9, %v4134_v33  ;;  %v19475_v29 = vld [vmem:[#allocation75_spill] sm:$0xff]  ;;  %v19480_v16 = vld [vmem:[#allocation210_spill] sm:$0xff] }
 0x77e   : > { %v14794_v60 = vpop.permute.xlu2 %3988  ;;  %v19473_v21 = vperm.slane %v19460_v57, %v14691_v45  ;;  %v4090_v53 = vperm.slane %v19474_v59, %v14726_v56  ;;  %v4086_v9 = vperm.slane %v19475_v29, %v14740_v52  ;;  %v4259_v59 = vperm.slane %v14633_v26, %v14660_v2 }
 0x77f   : > { %v14774_v8 = vpop.permute.xlu1 %3973  ;;  %19469 = vst [vmem:[#allocation71_spill] sm:$0xff] %v14794_v60  ;;  %v4117_v33 = vsel %vm4071_vm7, %v4116_v6, %v4115_v30  ;;  %v4139_v29 = vperm.slane %v14334_v41, %v14673_v35  ;;  %v4164_v30 = vperm.slane %v14430_v18, %v14657_v58  ;;  %v19476_v6 = vld [vmem:[#allocation242_spill] sm:$0xff]  ;;  %v19479_v18 = vld [vmem:[#allocation108_spill] sm:$0xff]  ;;  %v4122_v60 = vperm.slane %v19483_v39, %v14691_v45 }
 0x780   : > { %v4084_v19 = vsel %vm18686_vm10, %v19473_v21, %v4080_v17  ;;  %v4119_v57 = vsel %vm4075_vm8, %v4118_v44, %v4117_v33  ;;  %v4138_v17 = vsel %vm4051_vm2, %v4137_v13, %v4136_v40  ;;  %v4141_v21 = vperm.slane %v14368_v27, %v14676_v7  ;;  %v19477_v44 = vld [vmem:[#allocation245_spill] sm:$0xff]  ;;  %v19495_v39 = vld [vmem:[#allocation162_spill] sm:$0xff] }
 0x781   : > { %v4088_v23 = vsel %vm18687_vm11, %v4086_v9, %v4084_v19  ;;  %v19478_v19 = vperm.slane %v14210_v48, %v14716_v3  ;;  %v4124_v9 = vperm.slane %v19479_v18, %v14740_v52  ;;  %v4140_v33 = vsel %vm4055_vm3, %v4139_v29, %v4138_v17 }
 0x782   : > { %v4092_v27 = vsel %vm4091_vm12, %v4090_v53, %v4088_v23  ;;  %v4163_v13 = vperm.slane %v19480_v16, %v14652_v37  ;;  %v4142_v48 = vsel %vm4059_vm4, %v4141_v21, %v4140_v33  ;;  %v19485_v23 = vld [vmem:[#allocation78_spill] sm:$0xff]  ;;  %v19487_v33 = vperm.slane %v14288_v22, %v14729_v63  ;;  %v19493_v22 = vld [vmem:[#allocation157_spill] sm:$0xff] }
 0x783   : > { %v14863_v40 = vpop.permute.xlu0 %4012  ;;  %v4121_v41 = vsel %vm18688_vm9, %v19478_v19, %v4119_v57  ;;  %v4288_v57 = vperm.slane %v14752_v47, %v14657_v58  ;;  %v19484_v19 = vld [vmem:[#allocation77_spill] sm:$0xff]  ;;  %v19486_v50 = vperm.slane %v19485_v23, %v14698_v43  ;;  %v19489_v23 = vld [vmem:[#allocation247_spill] sm:$0xff] }
 0x784   : > { %v4098_v17 = vperm.slane %v19484_v19, %v14750_v61  ;;  %v4165_v29 = vsel %vm4043_vm0, %v4164_v30, %v4163_v13  ;;  %v4123_v21 = vsel %vm18686_vm10, %v4122_v60, %v4121_v41  ;;  %v4144_v19 = vsel %vm4063_vm5, %v19487_v33, %v4142_v48  ;;  %v19488_v30 = vld [vmem:[#allocation222_spill] sm:$0xff]  ;;  %v19494_v33 = vld [vmem:[#allocation209_spill] sm:$0xff] }
 0x785   : > { %v4096_v53 = vsel %vm4095_vm13, %v19486_v50, %v4092_v27  ;;  %v4125_v47 = vsel %vm18687_vm11, %v4124_v9, %v4123_v21  ;;  %v4194_v13 = vperm.slane %v19488_v30, %v14652_v37  ;;  %v4257_v16 = vperm.slane %v19489_v23, %v14657_v58  ;;  %v19490_v50 = vld [vmem:[#allocation207_spill] sm:$0xff]  ;;  %v19492_v9 = vld [vmem:[#allocation216_spill] sm:$0xff] }
 0x786   : > { %v14865_v26 = vpop.permute.xlu2 %3997  ;;  %v4145_v27 = vperm.slane %v19490_v50, %v14708_v62  ;;  %v19491_v60 = vperm.slane %v14366_v4, %v14660_v2  ;;  %v4170_v21 = vperm.slane %v19492_v9, %v14673_v35  ;;  %v4226_v48 = vperm.slane %v19493_v22, %v14657_v58 }
 0x787   : > { %v14830_v1 = vpop.permute.xlu1 %3982  ;;  %v4147_v30 = vperm.slane %v19494_v33, %v14685_v51  ;;  %v4168_v23 = vperm.slane %v19495_v39, %v14679_v28  ;;  %v4228_v50 = vperm.slane %v19496_v5, %v14660_v2  ;;  %v4256_v4 = vperm.slane %v19497_v54, %v14652_v37 }
 0x788   : > { %19472 = vst [vmem:[#allocation83_spill] sm:$0xff] %v14830_v1  ;;  %v4167_v41 = vsel %vm4047_vm1, %v19491_v60, %v4165_v29  ;;  %v19498_v29 = vld [vmem:[#allocation91_spill] sm:$0xff]  ;;  %v19499_v9 = vperm.slane %v14228_v42, %v14726_v56  ;;  %v14933_v33 = vsel %vm4099_vm14, %v4098_v17, %v4096_v53  ;;  %v4146_v39 = vsel %vm18685_vm6, %v4145_v27, %v4144_v19 }
 0x789   : > { %v4128_v60 = vperm.slane %v19498_v29, %v14698_v43  ;;  %v4169_v5 = vsel %vm4051_vm2, %v4168_v23, %v4167_v41  ;;  %v19500_v54 = vperm.slane %v14457_v14, %v14657_v58  ;;  %v19501_v29 = vld [vmem:[#allocation225_spill] sm:$0xff]  ;;  %v4258_v42 = vsel %vm4043_vm0, %v4257_v16, %v4256_v4  ;;  %v19504_v41 = vld [vmem:[#allocation208_spill] sm:$0xff] }
 0x78a   : > { %v4127_v22 = vsel %vm4091_vm12, %v19499_v9, %v4125_v47  ;;  %v4199_v49 = vperm.slane %v19501_v29, %v14679_v28  ;;  %v4171_v47 = vsel %vm4055_vm3, %v4170_v21, %v4169_v5  ;;  %v19502_v9 = vld [vmem:[#allocation176_spill] sm:$0xff]  ;;  %v19503_v17 = vperm.slane %v14540_v15, %v14652_v37  ;;  %v19505_v5 = vld [vmem:[#allocation213_spill] sm:$0xff] }
 0x78b   : > { %v14930_v10 = vpop.permute.xlu0 %4021  ;;  %v4196_v1 = vsel %vm4043_vm0, %v19500_v54, %v4194_v13  ;;  %v4197_v53 = vperm.slane %v19502_v9, %v14660_v2  ;;  %v4151_v23 = vperm.slane %v19504_v41, %v14716_v3  ;;  %v4148_v16 = vsel %vm4071_vm7, %v4147_v30, %v4146_v39  ;;  %v19508_v30 = vld [vmem:[#allocation217_spill] sm:$0xff] }
 0x78c   : > { %v4227_v19 = vsel %vm4043_vm0, %v4226_v48, %v19503_v17  ;;  %v4306_v13 = vperm.slane %v14930_v10, %v14716_v3  ;;  %v4174_v54 = vperm.slane %v19505_v5, %v14729_v63  ;;  %v4260_v48 = vsel %vm4047_vm1, %v4259_v59, %v4258_v42  ;;  %v19511_v42 = vld [vmem:[#allocation236_spill] sm:$0xff] }
 0x78d   : > { %v4229_v21 = vsel %vm4047_vm1, %v4228_v50, %v4227_v19  ;;  %v4198_v15 = vsel %vm4047_vm1, %v4197_v53, %v4196_v1  ;;  %v19507_v9 = vperm.slane %v14384_v46, %v14676_v7  ;;  %v4176_v39 = vperm.slane %v19508_v30, %v14708_v62  ;;  %v19509_v19 = vld [vmem:[#allocation243_spill] sm:$0xff] }
 0x78e   : > { %v4007_v27 = vpop.permute.xlu2 %4006  ;;  %v4200_v50 = vsel %vm4051_vm2, %v4199_v49, %v4198_v15  ;;  %v4261_v41 = vperm.slane %v19509_v19, %v14679_v28  ;;  %v19510_v1 = vperm.slane %v14558_v34, %v14679_v28  ;;  %v4234_v53 = vperm.slane %v19511_v42, %v14676_v7  ;;  %v19513_v15 = vld [vmem:[#allocation230_spill] sm:$0xff]  ;;  %v19516_v19 = vld [vmem:[#allocation221_spill] sm:$0xff] }
 0x78f   : > { %v3992_v18 = vpop.permute.xlu1 %3991  ;;  %v4173_v17 = vsel %vm4059_vm4, %v19507_v9, %v4171_v47  ;;  %v19512_v5 = vperm.slane %v14306_v25, %v14734_v12  ;;  %v4290_v34 = vperm.slane %v14865_v26, %v14660_v2  ;;  %v19518_v42 = vperm.slane %v19476_v6, %v14676_v7 }
 0x790   : > { %v4287_v14 = vperm.slane %v3992_v18, %v14652_v37  ;;  %v19506_v18 = vld [vmem:[#allocation250_spill] sm:$0xff]  ;;  %v4231_v59 = vsel %vm4051_vm2, %v19510_v1, %v4229_v21  ;;  %v4262_v9 = vsel %vm4051_vm2, %v4261_v41, %v4260_v48  ;;  %v4175_v21 = vsel %vm4063_vm5, %v4174_v54, %v4173_v17 }
 0x791   : > { %v4263_v29 = vperm.slane %v19506_v18, %v14673_v35  ;;  %v4150_v49 = vsel %vm4075_vm8, %v19512_v5, %v4148_v16  ;;  %v4232_v18 = vperm.slane %v19513_v15, %v14673_v35  ;;  %v4177_v30 = vsel %vm18685_vm6, %v4176_v39, %v4175_v21  ;;  %v19524_v21 = vld [vmem:[#allocation239_spill] sm:$0xff] }
 0x792   : > { %v4289_v46 = vsel %vm4043_vm0, %v4288_v57, %v4287_v14  ;;  %v19514_v57 = vperm.slane %v14476_v20, %v14673_v35  ;;  %v4203_v48 = vperm.slane %v19516_v19, %v14676_v7  ;;  %v4129_v54 = vsel %vm4095_vm13, %v4128_v60, %v4127_v22  ;;  %v19517_v20 = vld [vmem:[#allocation154_spill] sm:$0xff]  ;;  %v19520_v22 = vld [vmem:[#allocation211_spill] sm:$0xff] }
 0x793   : > { %v4264_v16 = vsel %vm4055_vm3, %v4263_v29, %v4262_v9  ;;  %v4233_v41 = vsel %vm4055_vm3, %v4232_v18, %v4231_v59  ;;  %v4291_v26 = vsel %vm4047_vm1, %v4290_v34, %v4289_v46  ;;  %v4130_v17 = vperm.slane %v19517_v20, %v14750_v61  ;;  %v19519_v46 = vld [vmem:[#allocation58_spill] sm:$0xff] }
 0x794   : > { %v4202_v14 = vsel %vm4055_vm3, %v19514_v57, %v4200_v50  ;;  %v4235_v50 = vsel %vm4059_vm4, %v4234_v53, %v4233_v41  ;;  %v4152_v29 = vsel %vm18688_vm9, %v4151_v23, %v4150_v49  ;;  %v4266_v59 = vsel %vm4059_vm4, %v19518_v42, %v4264_v16  ;;  %v19522_v49 = vld [vmem:[#allocation246_spill] sm:$0xff]  ;;  %v19528_v41 = vld [vmem:[#allocation215_spill] sm:$0xff] }
 0x795   : > { %v4204_v39 = vsel %vm4059_vm4, %v4203_v48, %v4202_v14  ;;  %v4269_v5 = vperm.slane %v19519_v46, %v14708_v62  ;;  %v4153_v15 = vperm.slane %v19520_v22, %v14691_v45  ;;  %v19521_v53 = vperm.slane %v14404_v0, %v14685_v51  ;;  %v19531_v46 = vld [vmem:[#allocation223_spill] sm:$0xff] }
 0x796   : > { %v4267_v18 = vperm.slane %v19522_v49, %v14729_v63  ;;  %v4016_v6 = vpop.permute.xlu2 %4015  ;;  %v19523_v9 = vperm.slane %v14574_v38, %v14729_v63  ;;  %v4240_v57 = vperm.slane %v19524_v21, %v14685_v51  ;;  %v19525_v14 = vperm.slane %v14810_v11, %v14673_v35  ;;  %v19535_v21 = vld [vmem:[#allocation249_spill] sm:$0xff] }
 0x797   : > { %v4001_v4 = vpop.permute.xlu1 %4000  ;;  %v4296_v48 = vperm.slane %v4007_v27, %v14676_v7  ;;  %v19529_v11 = vperm.slane %v14492_v55, %v14708_v62  ;;  %v4154_v42 = vsel %vm18686_vm10, %v4153_v15, %v4152_v29  ;;  %v15057_v22 = vsel %vm4099_vm14, %v4130_v17, %v4129_v54 }
 0x798   : > { %v4292_v47 = vperm.slane %v4001_v4, %v14679_v28  ;;  %v19515_v4 = vld [vmem:[#allocation226_spill] sm:$0xff]  ;;  %v4237_v34 = vsel %vm4063_vm5, %v19523_v9, %v4235_v50  ;;  %v4268_v38 = vsel %vm4063_vm5, %v4267_v18, %v4266_v59  ;;  %v19530_v50 = vld [vmem:[#allocation228_spill] sm:$0xff]  ;;  %v4209_v59 = vperm.slane %v19531_v46, %v14685_v51 }
 0x799   : > { %v4205_v25 = vperm.slane %v19515_v4, %v14729_v63  ;;  %v19532_v15 = vperm.slane %v19477_v44, %v14685_v51  ;;  %v4275_v18 = vperm.slane %v14774_v8, %v14716_v3  ;;  %v19533_v54 = vperm.slane %v14326_v24, %v14740_v52  ;;  %v19537_v8 = vld [vmem:[#allocation241_spill] sm:$0xff] }
 0x79a   : > { %v4293_v1 = vsel %vm4051_vm2, %v4292_v47, %v4291_v26  ;;  %v4179_v47 = vsel %vm4071_vm7, %v19521_v53, %v4177_v30  ;;  %v19527_v30 = vld [vmem:[#allocation232_spill] sm:$0xff]  ;;  %v4180_v26 = vperm.slane %v19528_v41, %v14734_v12  ;;  %v19536_v44 = vperm.slane %v14590_v31, %v14734_v12 }
 0x79b   : > { %v4206_v23 = vsel %vm4063_vm5, %v4205_v25, %v4204_v39  ;;  %v4295_v0 = vsel %vm4055_vm3, %v19525_v14, %v4293_v1  ;;  %v19526_v25 = vld [vmem:[#allocation219_spill] sm:$0xff]  ;;  %v4238_v19 = vperm.slane %v19527_v30, %v14708_v62  ;;  %v4211_v1 = vperm.slane %v19530_v50, %v14734_v12 }
 0x79c   : > { %v4182_v16 = vperm.slane %v19526_v25, %v14716_v3  ;;  %v4208_v20 = vsel %vm18685_vm6, %v19529_v11, %v4206_v23  ;;  %v4270_v39 = vsel %vm18685_vm6, %v4269_v5, %v4268_v38  ;;  %v4181_v55 = vsel %vm4075_vm8, %v4180_v26, %v4179_v47  ;;  %v19534_v47 = vld [vmem:[#allocation212_spill] sm:$0xff]  ;;  %v19540_v38 = vld [vmem:[#allocation235_spill] sm:$0xff] }
 0x79d   : > { %v4239_v27 = vsel %vm18685_vm6, %v4238_v19, %v4237_v34  ;;  %v4210_v29 = vsel %vm4071_vm7, %v4209_v59, %v4208_v20  ;;  %v4272_v49 = vsel %vm4071_vm7, %v19532_v15, %v4270_v39  ;;  %v4156_v17 = vsel %vm18687_vm11, %v19533_v54, %v4154_v42  ;;  %v19541_v26 = vld [vmem:[#allocation220_spill] sm:$0xff]  ;;  %v19544_v42 = vld [vmem:[#allocation130_spill] sm:$0xff]  ;;  %v19549_v54 = vld [vmem:[#allocation83_spill] sm:$0xff] }
 0x79e   : > { %v4241_v53 = vsel %vm4071_vm7, %v4240_v57, %v4239_v27  ;;  %v4183_v5 = vsel %vm18688_vm9, %v4182_v16, %v4181_v55  ;;  %v4159_v9 = vperm.slane %v19534_v47, %v14698_v43  ;;  %v4212_v34 = vsel %vm4075_vm8, %v4211_v1, %v4210_v29  ;;  %v4025_v39 = vpop.permute.xlu2 %4024  ;;  %v19547_v15 = vld [vmem:[#allocation248_spill] sm:$0xff] }
 0x79f   : > { %v4010_v60 = vpop.permute.xlu1 %4009  ;;  %v4273_v57 = vperm.slane %v19535_v21, %v14734_v12  ;;  %v19538_v24 = vperm.slane %v14863_v40, %v14708_v62  ;;  %v19539_v30 = vperm.slane %v14425_v32, %v14691_v45  ;;  %v4244_v31 = vperm.slane %v19540_v38, %v14716_v3  ;;  %v19543_v32 = vld [vmem:[#allocation229_spill] sm:$0xff]  ;;  %v19554_v38 = vld [vmem:[#allocation238_spill] sm:$0xff] }
 0x7a0   : > { %v4298_v4 = vperm.slane %v4010_v60, %v14729_v63  ;;  %v4297_v60 = vsel %vm4059_vm4, %v4296_v48, %v4295_v0  ;;  %v4243_v0 = vsel %vm4075_vm8, %v19536_v44, %v4241_v53  ;;  %v4302_v41 = vperm.slane %v4016_v6, %v14685_v51  ;;  %v19545_v6 = vld [vmem:[#allocation145_spill] sm:$0xff] }
 0x7a1   : > { %v4185_v19 = vsel %vm18686_vm10, %v19539_v30, %v4183_v5  ;;  %v4274_v48 = vsel %vm4075_vm8, %v4273_v57, %v4272_v49  ;;  %v4188_v40 = vperm.slane %v19541_v26, %v14726_v56  ;;  %v19542_v11 = vperm.slane %v14508_v36, %v14716_v3  ;;  %v19546_v36 = vld [vmem:[#allocation116_spill] sm:$0xff]  ;;  %v19555_v26 = vld [vmem:[#allocation214_spill] sm:$0xff] }
 0x7a2   : > { %v4299_v23 = vsel %vm4063_vm5, %v4298_v4, %v4297_v60  ;;  %v4246_v4 = vperm.slane %v19537_v8, %v14691_v45  ;;  %v4217_v50 = vperm.slane %v19543_v32, %v14740_v52  ;;  %v4276_v1 = vsel %vm18688_vm9, %v4275_v18, %v4274_v48  ;;  %v19551_v8 = vld [vmem:[#allocation234_spill] sm:$0xff]  ;;  %v19559_v32 = vld [vmem:[#allocation231_spill] sm:$0xff] }
 0x7a3   : > { %v4301_v25 = vsel %vm18685_vm6, %v19538_v24, %v4299_v23  ;;  %v4214_v20 = vsel %vm18688_vm9, %v19542_v11, %v4212_v34  ;;  %v4186_v46 = vperm.slane %v19544_v42, %v14740_v52  ;;  %v4215_v59 = vperm.slane %v19545_v6, %v14691_v45  ;;  %v19560_v42 = vld [vmem:[#allocation218_spill] sm:$0xff] }
 0x7a4   : > { %v4245_v27 = vsel %vm18688_vm9, %v4244_v31, %v4243_v0  ;;  %v4303_v60 = vsel %vm4071_vm7, %v4302_v41, %v4301_v25  ;;  %v4157_v55 = vperm.slane %v19546_v36, %v14726_v56  ;;  %vm18690_vm6 = vcmask 1042434   ;;  %v19553_v25 = vld [vmem:[#allocation244_spill] sm:$0xff]  ;;  %v19562_v36 = vld [vmem:[#allocation206_spill] sm:$0xff] }
 0x7a5   : > { %v4247_v53 = vsel %vm18686_vm10, %v4246_v4, %v4245_v27  ;;  %v4187_v5 = vsel %vm18687_vm11, %v4186_v46, %v4185_v19  ;;  %v4216_v29 = vsel %vm18686_vm10, %v4215_v59, %v4214_v20  ;;  %v19548_v49 = vperm.slane %v19547_v15, %v14691_v45  ;;  %v4031_v19 = vpop.permute.xlu0 %4030  ;;  %v19557_v20 = vld [vmem:[#allocation224_spill] sm:$0xff]  ;;  %v19561_v46 = vld [vmem:[#allocation227_spill] sm:$0xff] }
 0x7a6   : > { %v4281_v47 = vperm.slane %v19549_v54, %v14726_v56  ;;  %v4158_v34 = vsel %vm4091_vm12, %v4157_v55, %v4156_v17  ;;  %v4189_v21 = vsel %vm4091_vm12, %v4188_v40, %v4187_v5  ;;  %v4218_v57 = vsel %vm18687_vm11, %v4217_v50, %v4216_v29 }
 0x7a7   : > { %v4019_v14 = vpop.permute.xlu1 %4018  ;;  %v4278_v18 = vsel %vm18686_vm10, %v19548_v49, %v4276_v1  ;;  %v4160_v0 = vsel %vm4095_vm13, %v4159_v9, %v4158_v34  ;;  %v19552_v4 = vperm.slane %v19551_v8, %v14740_v52  ;;  %v4250_v31 = vperm.slane %v19554_v38, %v14726_v56  ;;  %v4034_v49 = vpop.permute.xlu2 %4033 }
 0x7a8   : > { %v4304_v16 = vperm.slane %v4019_v14, %v14734_v12  ;;  %v19550_v14 = vld [vmem:[#allocation76_spill] sm:$0xff]  ;;  %v4308_v48 = vperm.slane %v4025_v39, %v14691_v45  ;;  %v19556_v40 = vperm.slane %v19555_v26, %v14698_v43  ;;  %v19558_v10 = vperm.slane %v19557_v20, %v14726_v56 }
 0x7a9   : > { %v4279_v44 = vperm.slane %v19550_v14, %v14740_v52  ;;  %v4249_v24 = vsel %vm18687_vm11, %v19552_v4, %v4247_v53  ;;  %v4223_v50 = vperm.slane %v19559_v32, %v14750_v61  ;;  %v4192_v39 = vperm.slane %v19560_v42, %v14750_v61  ;;  %v19571_v32 = vld [vmem:[#allocation167_spill] sm:$0xff] }
 0x7aa   : > { %v4305_v23 = vsel %vm4075_vm8, %v4304_v16, %v4303_v60  ;;  %v4252_v16 = vperm.slane %v19553_v25, %v14698_v43  ;;  %v4191_v11 = vsel %vm4095_vm13, %v19556_v40, %v4189_v21  ;;  %v4221_v6 = vperm.slane %v19561_v46, %v14698_v43  ;;  %v19572_v46 = vld [vmem:[#allocation177_spill] sm:$0xff] }
 0x7ab   : > { %v4307_v17 = vsel %vm18688_vm9, %v4306_v13, %v4305_v23  ;;  %v4280_v9 = vsel %vm18687_vm11, %v4279_v44, %v4278_v18  ;;  %v4220_v13 = vsel %vm4091_vm12, %v19558_v10, %v4218_v57  ;;  %v4251_v59 = vsel %vm4091_vm12, %v4250_v31, %v4249_v24  ;;  %v19564_v18 = vld [vmem:[#allocation251_spill] sm:$0xff]  ;;  %v19570_v10 = vld [vmem:[#allocation141_spill] sm:$0xff] }
 0x7ac   : > { %v4282_v1 = vsel %vm4091_vm12, %v4281_v47, %v4280_v9  ;;  %v4309_v27 = vsel %vm18686_vm10, %v4308_v48, %v4307_v17  ;;  %v4312_v60 = vperm.slane %v4031_v19, %v14726_v56  ;;  %v19563_v55 = vperm.slane %v19562_v36, %v14750_v61  ;;  %v19566_v57 = vld [vmem:[#allocation71_spill] sm:$0xff] }
 0x7ad   : > { %v4253_v23 = vsel %vm4095_vm13, %v4252_v16, %v4251_v59  ;;  %v4193_v29 = vsel %vm4099_vm14, %v4192_v39, %v4191_v11  ;;  %v4222_v15 = vsel %vm4095_vm13, %v4221_v6, %v4220_v13  ;;  %v19565_v54 = vperm.slane %v19564_v18, %v14698_v43  ;;  %v19569_v11 = vld [vmem:[#allocation68_spill] sm:$0xff] }
 0x7ae   : > { %v4162_v53 = vsel %vm4099_vm14, %v19563_v55, %v4160_v0  ;;  %vm4322_vm10 = vcmask 1043459   ;;  %v4319_v34 = vsel %vm18689_vm15, %v15057_v22, %v14933_v33  ;;  %v4224_v21 = vsel %vm4099_vm14, %v4223_v50, %v4222_v15  ;;  %v19567_v0 = vld [vmem:[#allocation237_spill] sm:$0xff]  ;;  %v19573_v59 = vld [vmem:[#allocation60_spill] sm:$0xff] }
 0x7af   : > { %v4028_v30 = vpop.permute.xlu1 %4027  ;;  %v4284_v47 = vsel %vm4095_vm13, %v19565_v54, %v4282_v1  ;;  %v4285_v14 = vperm.slane %v19566_v57, %v14750_v61  ;;  %v4321_v44 = vsel %vm18690_vm6, %v4162_v53, %v4319_v34  ;;  %v19568_v8 = vperm.slane %v19567_v0, %v14750_v61  ;;  %v19579_v54 = vld [vmem:[#allocation169_spill] sm:$0xff]  ;;  %v19580_v34 = vld [vmem:[#allocation55_spill] sm:$0xff] }
 0x7b0   : > { %v4310_v41 = vperm.slane %v4028_v30, %v14740_v52  ;;  %vm18830_vm9 = vcmask 1045509   ;;  %v4314_v25 = vperm.slane %v4034_v49, %v14698_v43  ;;  %v4323_v22 = vsel %vm4322_vm10, %v4193_v29, %v4321_v44  ;;  %v19578_v49 = vld [vmem:[#allocation179_spill] sm:$0xff] }
 0x7b1   : > { %v4255_v4 = vsel %vm4099_vm14, %v19568_v8, %v4253_v23  ;;  %v4286_v33 = vsel %vm4099_vm14, %v4285_v14, %v4284_v47  ;;  %vm18829_vm15 = vcmask 1046534   ;;  %vm18828_vm6 = vcmask 1047559  }
 0x7b2   : > { %v4311_v5 = vsel %vm18687_vm11, %v4310_v41, %v4309_v27  ;;  %vm18831_vm11 = vcmask 1044484  }
 0x7b3   : > { %v4313_v24 = vsel %vm4091_vm12, %v4312_v60, %v4311_v5  ;;  %v4325_v30 = vsel %vm18831_vm11, %v4224_v21, %v4323_v22  ;;  %v19574_v60 = vld [vmem:[#allocation62_spill] sm:$0xff]  ;;  %v19586_v22 = vld [vmem:[#allocation64_spill] sm:$0xff]  ;;  %vm19902_vm11 = vcmask 523712  }
 0x7b4   : > { %v4315_v19 = vsel %vm4095_vm13, %v4314_v25, %v4313_v24  ;;  %v4327_v38 = vsel %vm18830_vm9, %v4255_v4, %v4325_v30  ;;  %v19584_v24 = vld [vmem:[#allocation180_spill] sm:$0xff] }
 0x7b5   : > { %v4329_v9 = vsel %vm18829_vm15, %v4286_v33, %v4327_v38 }
 0x7b7   : > { %v4037_v16 = vpop.permute.xlu1 %4036 }
 0x7b8   : > { %v4316_v17 = vperm.slane %v4037_v16, %v14750_v61  ;;  %v19585_v16 = vld [vmem:[#allocation159_spill] sm:$0xff] }
 0x7ba   : > { %v4317_v31 = vsel %vm4099_vm14, %v4316_v17, %v4315_v19 }
 0x7bb   : > { %v4331_v48 = vsel %vm18828_vm6, %v4317_v31, %v4329_v9  ;;  %vm19887_vm6 = vcmask 523712  }
 0x7bc   : > { %4333 = vmax.xlane.f32.xlu0 %v4331_v48  ;;  %vm19888_vm15 = vmmov %vm19887_vm6 }
 0x82f   : > { %v15198_v41 = vpop.xlane.xlu0 %4333 }
 0x830   : > { %v15201_v26 = vperm.slane %v15198_v41, 0  ;;  %v15204_v40 = vperm.slane %v15198_v41, 1 }
 0x832   : > { %v4364_v20 = vsub.f32 %v19569_v11, %v15201_v26  ;;  %v4353_v13 = vsub.f32 %v19570_v10, %v15201_v26  ;;  %v4352_v50 = vsub.f32 %v19571_v32, %v15201_v26  ;;  %v4369_v6 = vsub.f32 %v19572_v46, %v15204_v40  ;;  %v19590_v11 = vld [vmem:[#allocation182_spill] sm:$0xff]  ;;  %v19591_v10 = vld [vmem:[#allocation56_spill] sm:$0xff]  ;;  %v19592_v32 = vld [vmem:[#allocation171_spill] sm:$0xff] }
 0x833   : > { %v4355_v27 = vsub.f32 %v19573_v59, %v15201_v26  ;;  %v4354_v36 = vsub.f32 %v19574_v60, %v15201_v26  ;;  %v4372_v18 = vsub.f32 %v19578_v49, %v15204_v40  ;;  %v4357_v47 = vsub.f32 %v19579_v54, %v15201_v26 }
 0x834   : > { %v4504_v1 = vmul.f32 1.442695, %v4364_v20  ;;  %v4482_v42 = vmul.f32 1.442695, %v4353_v13  ;;  %v4480_v39 = vmul.f32 1.442695, %v4352_v50  ;;  %v4356_v21 = vsub.f32 %v19580_v34, %v15201_v26 }
 0x835   : > { %v4514_v55 = vmul.f32 1.442695, %v4369_v6  ;;  %v4486_v53 = vmul.f32 1.442695, %v4355_v27  ;;  %v4484_v5 = vmul.f32 1.442695, %v4354_v36  ;;  %v4375_v25 = vsub.f32 %v19584_v24, %v15204_v40 }
 0x836   : > { %11399 = vpow2.f32 %v4504_v1  ;;  %v4520_v57 = vmul.f32 1.442695, %v4372_v18  ;;  %v4490_v14 = vmul.f32 1.442695, %v4357_v47  ;;  %v4488_v0 = vmul.f32 1.442695, %v4356_v21 }
 0x837   : > { %11401 = vpow2.f32 %v4482_v42  ;;  %v4359_v33 = vsub.f32 %v19585_v16, %v15201_v26  ;;  %v4358_v17 = vsub.f32 %v19586_v22, %v15201_v26  ;;  %v4526_v30 = vmul.f32 1.442695, %v4375_v25  ;;  %v19596_v27 = vld [vmem:[#allocation184_spill] sm:$0xff]  ;;  %v19597_v36 = vld [vmem:[#allocation173_spill] sm:$0xff]  ;;  %v19603_v24 = vld [vmem:[#allocation175_spill] sm:$0xff] }
 0x838   : > { %11403 = vpow2.f32 %v4480_v39  ;;  %v4378_v20 = vsub.f32 %v19590_v11, %v15204_v40  ;;  %v4361_v13 = vsub.f32 %v19591_v10, %v15201_v26  ;;  %v4360_v50 = vsub.f32 %v19592_v32, %v15201_v26  ;;  %v19604_v16 = vld [vmem:[#allocation161_spill] sm:$0xff] }
 0x839   : > { %11405 = vpow2.f32 %v4514_v55  ;;  %v4494_v19 = vmul.f32 1.442695, %v4359_v33  ;;  %v4492_v31 = vmul.f32 1.442695, %v4358_v17  ;;  %v4381_v60 = vsub.f32 %v19596_v27, %v15204_v40 }
 0x83a   : > { %11407 = vpow2.f32 %v4486_v53  ;;  %v4532_v1 = vmul.f32 1.442695, %v4378_v20  ;;  %v4498_v42 = vmul.f32 1.442695, %v4361_v13  ;;  %v4496_v46 = vmul.f32 1.442695, %v4360_v50 }
 0x83b   : > { %11409 = vpow2.f32 %v4484_v5  ;;  %v4363_v55 = vsub.f32 %v19597_v36, %v15201_v26  ;;  %v19598_v53 = vld [vmem:[#allocation66_spill] sm:$0xff]  ;;  %v15279_v49 = vperm.slane %v15198_v41, 2  ;;  %v4538_v18 = vmul.f32 1.442695, %v4381_v60  ;;  %v19608_v20 = vld [vmem:[#allocation187_spill] sm:$0xff]  ;;  %v19610_v50 = vld [vmem:[#allocation57_spill] sm:$0xff] }
 0x83c   : > { %v15218_v23 = vpop.eup %11399  ;;  %11411 = vpow2.f32 %v4520_v57  ;;  %v4362_v5 = vsub.f32 %v19598_v53, %v15201_v26  ;;  %v4366_v25 = vsub.f32 %v19603_v24, %v15201_v26  ;;  %v4365_v33 = vsub.f32 %v19604_v16, %v15201_v26  ;;  %v19609_v13 = vld [vmem:[#allocation166_spill] sm:$0xff]  ;;  %v19614_v53 = vld [vmem:[#allocation188_spill] sm:$0xff] }
 0x83d   : > { %19575 = vst [vmem:[#allocation92_spill] sm:$0xff] %v15218_v23  ;;  %v15220_v29 = vpop.eup %11401  ;;  %4901 = vperm.xlu0 %11394, %v15218_v23   ;;  %11413 = vpow2.f32 %v4490_v14  ;;  %v4502_v54 = vmul.f32 1.442695, %v4363_v55  ;;  %v19602_v14 = vld [vmem:[#allocation185_spill] sm:$0xff]  ;;  %v4387_v10 = vsub.f32 %v19608_v20, %v15279_v49  ;;  %v4368_v32 = vsub.f32 %v19609_v13, %v15204_v40 }
 0x83e   : > { %19576 = vst [vmem:[#allocation86_spill] sm:$0xff] %v15220_v29  ;;  %v15223_v15 = vpop.eup %11403  ;;  %4868 = vperm.xlu1 %11396, %v15220_v29   ;;  %11415 = vpow2.f32 %v4488_v0  ;;  %v4500_v34 = vmul.f32 1.442695, %v4362_v5  ;;  %v4384_v0 = vsub.f32 %v19602_v14, %v15279_v49  ;;  %v4508_v17 = vmul.f32 1.442695, %v4366_v25 }
 0x83f   : > { %19577 = vst [vmem:[#allocation151_spill] sm:$0xff] %v15223_v15  ;;  %4865 = vperm.xlu2 %11395, %v15223_v15   ;;  %v15233_v44 = vpop.eup %11405  ;;  %11417 = vpow2.f32 %v4526_v30  ;;  %v4390_v5 = vsub.f32 %v19614_v53, %v15279_v49  ;;  %v19626_v53 = vld [vmem:[#allocation190_spill] sm:$0xff] }
 0x840   : > { %19581 = vst [vmem:[#allocation100_spill] sm:$0xff] %v15233_v44  ;;  %v15235_v8 = vpop.eup %11407  ;;  %11419 = vpow2.f32 %v4494_v19  ;;  %v4544_v22 = vmul.f32 1.442695, %v4384_v0  ;;  %v4506_v19 = vmul.f32 1.442695, %v4365_v33 }
 0x841   : > { %19582 = vst [vmem:[#allocation81_spill] sm:$0xff] %v15235_v8  ;;  %v15238_v4 = vpop.eup %11409  ;;  %11421 = vpow2.f32 %v4492_v31  ;;  %v4556_v14 = vmul.f32 1.442695, %v4390_v5  ;;  %v4396_v5 = vsub.f32 %v19626_v53, %v15279_v49  ;;  %v15372_v53 = vperm.slane %v15198_v41, 3 }
 0x842   : > { %19583 = vst [vmem:[#allocation75_spill] sm:$0xff] %v15238_v4  ;;  %v15248_v38 = vpop.eup %11411  ;;  %11423 = vpow2.f32 %v4532_v1  ;;  %v4367_v1 = vsub.f32 %v19610_v50, %v15201_v26  ;;  %v19615_v26 = vld [vmem:[#allocation163_spill] sm:$0xff] }
 0x843   : > { %19587 = vst [vmem:[#allocation242_spill] sm:$0xff] %v15248_v38  ;;  %v15250_v9 = vpop.eup %11413  ;;  %11425 = vpow2.f32 %v4498_v42  ;;  %v4550_v42 = vmul.f32 1.442695, %v4387_v10  ;;  %v19622_v10 = vld [vmem:[#allocation72_spill] sm:$0xff] }
 0x844   : > { %19588 = vst [vmem:[#allocation245_spill] sm:$0xff] %v15250_v9  ;;  %v15253_v48 = vpop.eup %11415  ;;  %11427 = vpow2.f32 %v4496_v46  ;;  %v4512_v46 = vmul.f32 1.442695, %v4368_v32  ;;  %v4510_v60 = vmul.f32 1.442695, %v4367_v1  ;;  %v4373_v13 = vsub.f32 %v19622_v10, %v15204_v40 }
 0x845   : > { %4916 = vperm.xlu0 %11394, %v15233_v44   ;;  %19589 = vst [vmem:[#allocation108_spill] sm:$0xff] %v15253_v48  ;;  %v15263_v39 = vpop.eup %11417  ;;  %11429 = vpow2.f32 %v4538_v18  ;;  %v4371_v18 = vsub.f32 %v19615_v26, %v15204_v40  ;;  %v19627_v26 = vld [vmem:[#allocation146_spill] sm:$0xff] }
 0x846   : > { %4874 = vperm.xlu1 %11396, %v15235_v8   ;;  %19593 = vst [vmem:[#allocation210_spill] sm:$0xff] %v15263_v39  ;;  %v15265_v6 = vpop.eup %11419  ;;  %11431 = vpow2.f32 %v4502_v54  ;;  %v19616_v54 = vld [vmem:[#allocation70_spill] sm:$0xff] }
 0x847   : > { %4871 = vperm.xlu2 %11395, %v15238_v4   ;;  %19594 = vst [vmem:[#allocation102_spill] sm:$0xff] %v15265_v6  ;;  %v15268_v59 = vpop.eup %11421  ;;  %11433 = vpow2.f32 %v4500_v34  ;;  %v4370_v34 = vsub.f32 %v19616_v54, %v15204_v40  ;;  %v4518_v0 = vmul.f32 1.442695, %v4371_v18  ;;  %v4377_v18 = vsub.f32 %v19627_v26, %v15204_v40  ;;  %v19628_v54 = vld [vmem:[#allocation59_spill] sm:$0xff] }
 0x848   : > { %19595 = vst [vmem:[#allocation77_spill] sm:$0xff] %v15268_v59  ;;  %v15281_v47 = vpop.eup %11423  ;;  %11435 = vpow2.f32 %v4544_v22  ;;  %v19620_v22 = vld [vmem:[#allocation189_spill] sm:$0xff] }
 0x849   : > { %19599 = vst [vmem:[#allocation78_spill] sm:$0xff] %v15281_v47  ;;  %v15283_v21 = vpop.eup %11425  ;;  %11437 = vpow2.f32 %v4508_v17  ;;  %v4516_v25 = vmul.f32 1.442695, %v4370_v34  ;;  %v4393_v17 = vsub.f32 %v19620_v22, %v15279_v49  ;;  %v4376_v34 = vsub.f32 %v19628_v54, %v15204_v40 }
 0x84a   : > { %19600 = vst [vmem:[#allocation222_spill] sm:$0xff] %v15283_v21  ;;  %v15286_v57 = vpop.eup %11427  ;;  %11439 = vpow2.f32 %v4506_v19  ;;  %v19621_v19 = vld [vmem:[#allocation165_spill] sm:$0xff] }
 0x84b   : > { %19601 = vst [vmem:[#allocation247_spill] sm:$0xff] %v15286_v57  ;;  %v15296_v30 = vpop.eup %11429  ;;  %11441 = vpow2.f32 %v4550_v42  ;;  %v4374_v20 = vsub.f32 %v19621_v19, %v15204_v40  ;;  %v4562_v32 = vmul.f32 1.442695, %v4393_v17  ;;  %v4522_v42 = vmul.f32 1.442695, %v4373_v13  ;;  %v19633_v13 = vld [vmem:[#allocation74_spill] sm:$0xff] }
 0x84c   : > { %19605 = vst [vmem:[#allocation207_spill] sm:$0xff] %v15296_v30  ;;  %v15298_v31 = vpop.eup %11431  ;;  %11443 = vpow2.f32 %v4512_v46  ;;  %v4528_v22 = vmul.f32 1.442695, %v4376_v34 }
 0x84d   : > { %4925 = vperm.xlu0 %11394, %v15248_v38   ;;  %19606 = vst [vmem:[#allocation216_spill] sm:$0xff] %v15298_v31  ;;  %v15301_v11 = vpop.eup %11433  ;;  %11445 = vpow2.f32 %v4510_v60  ;;  %v4524_v50 = vmul.f32 1.442695, %v4374_v20  ;;  %v19632_v20 = vld [vmem:[#allocation191_spill] sm:$0xff] }
 0x84e   : > { %4880 = vperm.xlu1 %11396, %v15250_v9   ;;  %19607 = vst [vmem:[#allocation157_spill] sm:$0xff] %v15301_v11  ;;  %v15311_v27 = vpop.eup %11435  ;;  %11447 = vpow2.f32 %v4556_v14  ;;  %v4568_v14 = vmul.f32 1.442695, %v4396_v5  ;;  %v4399_v10 = vsub.f32 %v19632_v20, %v15279_v49  ;;  %v19639_v20 = vld [vmem:[#allocation170_spill] sm:$0xff] }
 0x84f   : > { %4877 = vperm.xlu2 %11395, %v15253_v48   ;;  %19611 = vst [vmem:[#allocation209_spill] sm:$0xff] %v15311_v27  ;;  %v15313_v36 = vpop.eup %11437  ;;  %11449 = vpow2.f32 %v4518_v0  ;;  %v4530_v0 = vmul.f32 1.442695, %v4377_v18 }
 0x850   : > { %19612 = vst [vmem:[#allocation162_spill] sm:$0xff] %v15313_v36  ;;  %v15316_v55 = vpop.eup %11439  ;;  %11451 = vpow2.f32 %v4516_v25  ;;  %v4574_v5 = vmul.f32 1.442695, %v4399_v10  ;;  %v4383_v10 = vsub.f32 %v19639_v20, %v15204_v40 }
 0x851   : > { %19613 = vst [vmem:[#allocation233_spill] sm:$0xff] %v15316_v55  ;;  %v15326_v24 = vpop.eup %11441  ;;  %11453 = vpow2.f32 %v4562_v32  ;;  %v4380_v32 = vsub.f32 %v19633_v13, %v15204_v40  ;;  %v19640_v13 = vld [vmem:[#allocation63_spill] sm:$0xff] }
 0x852   : > { %19617 = vst [vmem:[#allocation240_spill] sm:$0xff] %v15326_v24  ;;  %v15328_v16 = vpop.eup %11443  ;;  %11455 = vpow2.f32 %v4524_v50  ;;  %v19634_v50 = vld [vmem:[#allocation61_spill] sm:$0xff] }
 0x853   : > { %19618 = vst [vmem:[#allocation91_spill] sm:$0xff] %v15328_v16  ;;  %v15331_v33 = vpop.eup %11445  ;;  %11457 = vpow2.f32 %v4522_v42  ;;  %v4379_v42 = vsub.f32 %v19634_v50, %v15204_v40  ;;  %v4536_v26 = vmul.f32 1.442695, %v4380_v32  ;;  %v4382_v32 = vsub.f32 %v19640_v13, %v15204_v40  ;;  %v19645_v40 = vld [vmem:[#allocation174_spill] sm:$0xff] }
 0x854   : > { %19619 = vst [vmem:[#allocation225_spill] sm:$0xff] %v15331_v33  ;;  %v15341_v1 = vpop.eup %11447  ;;  %11459 = vpow2.f32 %v4568_v14 }
 0x855   : > { %4934 = vperm.xlu0 %11394, %v15263_v39   ;;  %19623 = vst [vmem:[#allocation176_spill] sm:$0xff] %v15341_v1  ;;  %v15343_v46 = vpop.eup %11449  ;;  %11461 = vpow2.f32 %v4530_v0  ;;  %v4534_v54 = vmul.f32 1.442695, %v4379_v42  ;;  %v19638_v0 = vld [vmem:[#allocation192_spill] sm:$0xff]  ;;  %v4542_v42 = vmul.f32 1.442695, %v4383_v10 }
 0x856   : > { %4886 = vperm.xlu1 %11396, %v15265_v6   ;;  %19624 = vst [vmem:[#allocation208_spill] sm:$0xff] %v15343_v46  ;;  %v15346_v60 = vpop.eup %11451  ;;  %11463 = vpow2.f32 %v4528_v22  ;;  %v4402_v22 = vsub.f32 %v19638_v0, %v15372_v53  ;;  %v4386_v0 = vsub.f32 %v19645_v40, %v15279_v49 }
 0x857   : > { %4883 = vperm.xlu2 %11395, %v15268_v59   ;;  %19625 = vst [vmem:[#allocation213_spill] sm:$0xff] %v15346_v60  ;;  %v15356_v25 = vpop.eup %11453  ;;  %11465 = vpow2.f32 %v4574_v5 }
 0x858   : > { %19629 = vst [vmem:[#allocation250_spill] sm:$0xff] %v15356_v25  ;;  %v15358_v17 = vpop.eup %11455  ;;  %11467 = vpow2.f32 %v4536_v26  ;;  %v4580_v50 = vmul.f32 1.442695, %v4402_v22  ;;  %v19644_v26 = vld [vmem:[#allocation193_spill] sm:$0xff]  ;;  %v19646_v22 = vld [vmem:[#allocation80_spill] sm:$0xff] }
 0x859   : > { %19630 = vst [vmem:[#allocation217_spill] sm:$0xff] %v15358_v17  ;;  %v15361_v19 = vpop.eup %11457  ;;  %11469 = vpow2.f32 %v4534_v54  ;;  %v4405_v54 = vsub.f32 %v19644_v26, %v15372_v53  ;;  %v4385_v20 = vsub.f32 %v19646_v22, %v15279_v49 }
 0x85a   : > { %19631 = vst [vmem:[#allocation243_spill] sm:$0xff] %v15361_v19  ;;  %v15374_v18 = vpop.eup %11459  ;;  %11471 = vpow2.f32 %v4580_v50 }
 0x85b   : > { %19635 = vst [vmem:[#allocation236_spill] sm:$0xff] %v15374_v18  ;;  %v15376_v34 = vpop.eup %11461  ;;  %11473 = vpow2.f32 %v4542_v42  ;;  %v4586_v13 = vmul.f32 1.442695, %v4405_v54  ;;  %v4546_v50 = vmul.f32 1.442695, %v4385_v20  ;;  %v19651_v54 = vld [vmem:[#allocation178_spill] sm:$0xff] }
 0x85c   : > { %19636 = vst [vmem:[#allocation230_spill] sm:$0xff] %v15376_v34  ;;  %v15379_v14 = vpop.eup %11463  ;;  %v4389_v40 = vsub.f32 %v19651_v54, %v15279_v49 }
 0x85d   : > { %4943 = vperm.xlu0 %11394, %v15281_v47   ;;  %19637 = vst [vmem:[#allocation226_spill] sm:$0xff] %v15379_v14 }
 0x85e   : > { %4892 = vperm.xlu1 %11396, %v15283_v21  }
 0x85f   : > { %4889 = vperm.xlu2 %11395, %v15286_v57  }
 0x865   : > { %4952 = vperm.xlu0 %11394, %v15296_v30  }
 0x866   : > { %4898 = vperm.xlu1 %11396, %v15298_v31  }
 0x867   : > { %4895 = vperm.xlu2 %11395, %v15301_v11  }
 0x86d   : > { %4961 = vperm.xlu0 %11394, %v15311_v27  }
 0x86e   : > { %4907 = vperm.xlu1 %11396, %v15313_v36  }
 0x86f   : > { %4904 = vperm.xlu2 %11395, %v15316_v55  }
 0x875   : > { %4970 = vperm.xlu0 %11394, %v15326_v24  }
 0x876   : > { %4913 = vperm.xlu1 %11396, %v15328_v16  }
 0x877   : > { %4910 = vperm.xlu2 %11395, %v15331_v33  }
 0x87d   : > { %4979 = vperm.xlu0 %11394, %v15341_v1  }
 0x87e   : > { %4922 = vperm.xlu1 %11396, %v15343_v46  }
 0x87f   : > { %4919 = vperm.xlu2 %11395, %v15346_v60  }
 0x885   : > { %4988 = vperm.xlu0 %11394, %v15356_v25  }
 0x886   : > { %4931 = vperm.xlu1 %11396, %v15358_v17  }
 0x887   : > { %4928 = vperm.xlu2 %11395, %v15361_v19   ;;  %v4540_v19 = vmul.f32 1.442695, %v4382_v32  ;;  %v4548_v32 = vmul.f32 1.442695, %v4386_v0  ;;  %v19652_v0 = vld [vmem:[#allocation149_spill] sm:$0xff] }
 0x888   : > { %v4388_v22 = vsub.f32 %v19652_v0, %v15279_v49 }
 0x889   : > { %11475 = vpow2.f32 %v4540_v19  ;;  %v19650_v19 = vld [vmem:[#allocation194_spill] sm:$0xff] }
 0x88a   : > { %11477 = vpow2.f32 %v4586_v13  ;;  %v4408_v42 = vsub.f32 %v19650_v19, %v15372_v53  ;;  %v4552_v13 = vmul.f32 1.442695, %v4388_v22 }
 0x88b   : > { %11479 = vpow2.f32 %v4548_v32  ;;  %v19656_v32 = vld [vmem:[#allocation195_spill] sm:$0xff] }
 0x88c   : > { %11481 = vpow2.f32 %v4546_v50  ;;  %v4411_v50 = vsub.f32 %v19656_v32, %v15372_v53 }
 0x88d   : > { %4997 = vperm.xlu0 %11394, %v15374_v18   ;;  %v15389_v18 = vpop.eup %11465 }
 0x88e   : > { %4940 = vperm.xlu1 %11396, %v15376_v34   ;;  %19641 = vst [vmem:[#allocation221_spill] sm:$0xff] %v15389_v18  ;;  %v15391_v34 = vpop.eup %11467 }
 0x88f   : > { %4937 = vperm.xlu2 %11395, %v15379_v14   ;;  %19642 = vst [vmem:[#allocation154_spill] sm:$0xff] %v15391_v34  ;;  %v15394_v5 = vpop.eup %11469 }
 0x890   : > { %19643 = vst [vmem:[#allocation58_spill] sm:$0xff] %v15394_v5 }
 0x895   : > { %5006 = vperm.xlu0 %11394, %v15389_v18   ;;  %v15406_v18 = vpop.eup %11471 }
 0x896   : > { %4949 = vperm.xlu1 %11396, %v15391_v34   ;;  %19647 = vst [vmem:[#allocation211_spill] sm:$0xff] %v15406_v18  ;;  %v15408_v34 = vpop.eup %11473 }
 0x897   : > { %4946 = vperm.xlu2 %11395, %v15394_v5   ;;  %19648 = vst [vmem:[#allocation246_spill] sm:$0xff] %v15408_v34  ;;  %v15411_v26 = vpop.eup %11475  ;;  %v4554_v5 = vmul.f32 1.442695, %v4389_v40  ;;  %v19658_v40 = vld [vmem:[#allocation82_spill] sm:$0xff] }
 0x898   : > { %19649 = vst [vmem:[#allocation239_spill] sm:$0xff] %v15411_v26  ;;  %v15423_v14 = vpop.eup %11477  ;;  %v4391_v0 = vsub.f32 %v19658_v40, %v15279_v49 }
 0x899   : > { %v15404_v10 = vpop.permute.xlu2 %4865  ;;  %19653 = vst [vmem:[#allocation219_spill] sm:$0xff] %v15423_v14 }
 0x89d   : > { %5015 = vperm.xlu0 %11394, %v15406_v18   ;;  %v4592_v18 = vmul.f32 1.442695, %v4408_v42  ;;  %v19657_v42 = vld [vmem:[#allocation67_spill] sm:$0xff] }
 0x89e   : > { %4958 = vperm.xlu1 %11396, %v15408_v34   ;;  %v15425_v34 = vpop.eup %11479  ;;  %v4392_v54 = vsub.f32 %v19657_v42, %v15279_v49 }
 0x89f   : > { %4955 = vperm.xlu2 %11395, %v15411_v26   ;;  %19654 = vst [vmem:[#allocation232_spill] sm:$0xff] %v15425_v34  ;;  %v15428_v19 = vpop.eup %11481  ;;  %11483 = vpow2.f32 %v4592_v18  ;;  %v4558_v18 = vmul.f32 1.442695, %v4391_v0  ;;  %v19664_v0 = vld [vmem:[#allocation183_spill] sm:$0xff] }
 0x8a0   : > { %19655 = vst [vmem:[#allocation215_spill] sm:$0xff] %v15428_v19  ;;  %11485 = vpow2.f32 %v4554_v5  ;;  %v4560_v26 = vmul.f32 1.442695, %v4392_v54  ;;  %v19662_v5 = vld [vmem:[#allocation196_spill] sm:$0xff] }
 0x8a1   : > { %v15421_v20 = vpop.permute.xlu2 %4871  ;;  %11487 = vpow2.f32 %v4552_v13  ;;  %v4414_v13 = vsub.f32 %v19662_v5, %v15372_v53 }
 0x8a3   : > { %v4604_v5 = vmul.f32 1.442695, %v4414_v13  ;;  %v19669_v13 = vld [vmem:[#allocation152_spill] sm:$0xff] }
 0x8a5   : > { %5024 = vperm.xlu0 %11394, %v15423_v14   ;;  %v4598_v14 = vmul.f32 1.442695, %v4411_v50  ;;  %v15440_v17 = vpop.eup %11483  ;;  %v19663_v50 = vld [vmem:[#allocation84_spill] sm:$0xff] }
 0x8a6   : > { %4967 = vperm.xlu1 %11396, %v15425_v34   ;;  %19659 = vst [vmem:[#allocation228_spill] sm:$0xff] %v15440_v17  ;;  %v15442_v34 = vpop.eup %11485  ;;  %v4395_v54 = vsub.f32 %v19663_v50, %v15279_v49 }
 0x8a7   : > { %4964 = vperm.xlu2 %11395, %v15428_v19   ;;  %19660 = vst [vmem:[#allocation223_spill] sm:$0xff] %v15442_v34  ;;  %v15445_v32 = vpop.eup %11487  ;;  %11489 = vpow2.f32 %v4598_v14  ;;  %v15462_v14 = vperm.slane %v15198_v41, 4 }
 0x8a8   : > { %19661 = vst [vmem:[#allocation212_spill] sm:$0xff] %v15445_v32  ;;  %11491 = vpow2.f32 %v4560_v26 }
 0x8a9   : > { %v15438_v22 = vpop.permute.xlu2 %4877  ;;  %11493 = vpow2.f32 %v4558_v18  ;;  %v19668_v18 = vld [vmem:[#allocation197_spill] sm:$0xff] }
 0x8aa   : > { %11495 = vpow2.f32 %v4604_v5 }
 0x8ad   : > { %5033 = vperm.xlu0 %11394, %v15440_v17   ;;  %v4394_v17 = vsub.f32 %v19664_v0, %v15279_v49  ;;  %v4417_v0 = vsub.f32 %v19668_v18, %v15462_v14 }
 0x8ae   : > { %4976 = vperm.xlu1 %11396, %v15442_v34   ;;  %v4566_v34 = vmul.f32 1.442695, %v4395_v54 }
 0x8af   : > { %4973 = vperm.xlu2 %11395, %v15445_v32   ;;  %v15451_v42 = vpop.permute.xlu0 %4901  ;;  %v15464_v32 = vpop.eup %11489  ;;  %v4564_v25 = vmul.f32 1.442695, %v4394_v17  ;;  %v4398_v17 = vsub.f32 %v19669_v13, %v15279_v49  ;;  %v4610_v5 = vmul.f32 1.442695, %v4417_v0 }
 0x8b0   : > { %v15455_v40 = vpop.permute.xlu1 %4868  ;;  %19665 = vst [vmem:[#allocation249_spill] sm:$0xff] %v15464_v32  ;;  %v15466_v26 = vpop.eup %11491  ;;  %11497 = vpow2.f32 %v4566_v34 }
 0x8b1   : > { %v15459_v19 = vpop.permute.xlu2 %4883  ;;  %19666 = vst [vmem:[#allocation241_spill] sm:$0xff] %v15466_v26  ;;  %v15469_v50 = vpop.eup %11493  ;;  %11499 = vpow2.f32 %v4564_v25  ;;  %v19674_v25 = vld [vmem:[#allocation198_spill] sm:$0xff] }
 0x8b2   : > { %19667 = vst [vmem:[#allocation235_spill] sm:$0xff] %v15469_v50  ;;  %v15485_v33 = vpop.eup %11495  ;;  %11501 = vpow2.f32 %v4610_v5  ;;  %v4420_v13 = vsub.f32 %v19674_v25, %v15462_v14 }
 0x8b3   : > { %19671 = vst [vmem:[#allocation220_spill] sm:$0xff] %v15485_v33 }
 0x8b4   : > { %v4616_v5 = vmul.f32 1.442695, %v4420_v13  ;;  %v19681_v13 = vld [vmem:[#allocation90_spill] sm:$0xff] }
 0x8b5   : > { %5042 = vperm.xlu0 %11394, %v15464_v32   ;;  %v19670_v32 = vld [vmem:[#allocation73_spill] sm:$0xff] }
 0x8b6   : > { %4985 = vperm.xlu1 %11396, %v15466_v26   ;;  %v4397_v46 = vsub.f32 %v19670_v32, %v15279_v49  ;;  %v4572_v26 = vmul.f32 1.442695, %v4398_v17  ;;  %v19675_v32 = vld [vmem:[#allocation88_spill] sm:$0xff]  ;;  %v19676_v17 = vld [vmem:[#allocation186_spill] sm:$0xff] }
 0x8b7   : > { %4982 = vperm.xlu2 %11395, %v15469_v50   ;;  %v15475_v60 = vpop.permute.xlu0 %4916  ;;  %v15487_v50 = vpop.eup %11497 }
 0x8b8   : > { %v15479_v54 = vpop.permute.xlu1 %4874  ;;  %v4570_v18 = vmul.f32 1.442695, %v4397_v46  ;;  %19672 = vst [vmem:[#allocation229_spill] sm:$0xff] %v15487_v50  ;;  %v15490_v34 = vpop.eup %11499  ;;  %11503 = vpow2.f32 %v4572_v26  ;;  %v4401_v46 = vsub.f32 %v19675_v32, %v15372_v53 }
 0x8b9   : > { %v15483_v1 = vpop.permute.xlu2 %4889  ;;  %19673 = vst [vmem:[#allocation130_spill] sm:$0xff] %v15490_v34  ;;  %v15506_v24 = vpop.eup %11501 }
 0x8ba   : > { %11505 = vpow2.f32 %v4570_v18  ;;  %19677 = vst [vmem:[#allocation145_spill] sm:$0xff] %v15506_v24  ;;  %v19680_v18 = vld [vmem:[#allocation199_spill] sm:$0xff] }
 0x8bb   : > { %11507 = vpow2.f32 %v4616_v5  ;;  %v4423_v32 = vsub.f32 %v19680_v18, %v15462_v14 }
 0x8bd   : > { %5051 = vperm.xlu0 %11394, %v15485_v33   ;;  %v4400_v33 = vsub.f32 %v19676_v17, %v15372_v53  ;;  %v4622_v5 = vmul.f32 1.442695, %v4423_v32  ;;  %v19688_v32 = vld [vmem:[#allocation94_spill] sm:$0xff] }
 0x8be   : > { %4994 = vperm.xlu1 %11396, %v15487_v50   ;;  %v4578_v50 = vmul.f32 1.442695, %v4401_v46 }
 0x8bf   : > { %4991 = vperm.xlu2 %11395, %v15490_v34   ;;  %v15496_v49 = vpop.permute.xlu0 %4925  ;;  %v4576_v25 = vmul.f32 1.442695, %v4400_v33  ;;  %v15508_v34 = vpop.eup %11503  ;;  %v4404_v33 = vsub.f32 %v19681_v13, %v15372_v53 }
 0x8c0   : > { %v15500_v0 = vpop.permute.xlu1 %4880  ;;  %19678 = vst [vmem:[#allocation116_spill] sm:$0xff] %v15508_v34  ;;  %v15511_v26 = vpop.eup %11505  ;;  %11509 = vpow2.f32 %v4578_v50 }
 0x8c1   : > { %v15504_v16 = vpop.permute.xlu2 %4895  ;;  %19679 = vst [vmem:[#allocation248_spill] sm:$0xff] %v15511_v26  ;;  %11511 = vpow2.f32 %v4576_v25  ;;  %v15527_v27 = vpop.eup %11507  ;;  %v19687_v25 = vld [vmem:[#allocation200_spill] sm:$0xff] }
 0x8c2   : > { %19684 = vst [vmem:[#allocation76_spill] sm:$0xff] %v15527_v27  ;;  %11513 = vpow2.f32 %v4622_v5  ;;  %v4426_v13 = vsub.f32 %v19687_v25, %v15462_v14 }
 0x8c4   : > { %v4628_v5 = vmul.f32 1.442695, %v4426_v13  ;;  %v19696_v13 = vld [vmem:[#allocation96_spill] sm:$0xff] }
 0x8c5   : > { %5060 = vperm.xlu0 %11394, %v15506_v24   ;;  %v19682_v24 = vld [vmem:[#allocation79_spill] sm:$0xff] }
 0x8c6   : > { %5003 = vperm.xlu1 %11396, %v15508_v34   ;;  %v4403_v55 = vsub.f32 %v19682_v24, %v15372_v53  ;;  %v4584_v34 = vmul.f32 1.442695, %v4404_v33 }
 0x8c7   : > { %5000 = vperm.xlu2 %11395, %v15511_v26   ;;  %v15517_v17 = vpop.permute.xlu0 %4934  ;;  %v15529_v26 = vpop.eup %11509 }
 0x8c8   : > { %v15521_v46 = vpop.permute.xlu1 %4886  ;;  %v4582_v18 = vmul.f32 1.442695, %v4403_v55  ;;  %19685 = vst [vmem:[#allocation234_spill] sm:$0xff] %v15529_v26  ;;  %v15532_v50 = vpop.eup %11511  ;;  %11515 = vpow2.f32 %v4584_v34  ;;  %v4407_v55 = vsub.f32 %v19688_v32, %v15372_v53 }
 0x8c9   : > { %v15525_v36 = vpop.permute.xlu2 %4904  ;;  %19686 = vst [vmem:[#allocation244_spill] sm:$0xff] %v15532_v50  ;;  %v15548_v30 = vpop.eup %11513 }
 0x8ca   : > { %19683 = vst [vmem:[#allocation83_spill] sm:$0xff] %v15525_v36  ;;  %11517 = vpow2.f32 %v4582_v18  ;;  %v19694_v18 = vld [vmem:[#allocation201_spill] sm:$0xff] }
 0x8cb   : > { %19691 = vst [vmem:[#allocation214_spill] sm:$0xff] %v15548_v30  ;;  %11519 = vpow2.f32 %v4628_v5  ;;  %v4429_v32 = vsub.f32 %v19694_v18, %v15462_v14  ;;  %v15570_v5 = vperm.slane %v15198_v41, 5 }
 0x8cd   : > { %5069 = vperm.xlu0 %11394, %v15527_v27   ;;  %v19689_v27 = vld [vmem:[#allocation143_spill] sm:$0xff]  ;;  %v4634_v18 = vmul.f32 1.442695, %v4429_v32  ;;  %v19702_v32 = vld [vmem:[#allocation85_spill] sm:$0xff] }
 0x8ce   : > { %5012 = vperm.xlu1 %11396, %v15529_v26   ;;  %v4406_v31 = vsub.f32 %v19689_v27, %v15372_v53  ;;  %v4590_v26 = vmul.f32 1.442695, %v4407_v55 }
 0x8cf   : > { %5009 = vperm.xlu2 %11395, %v15532_v50   ;;  %v15538_v24 = vpop.permute.xlu0 %4943  ;;  %v15550_v50 = vpop.eup %11515 }
 0x8d0   : > { %v15542_v33 = vpop.permute.xlu1 %4892  ;;  %v4588_v25 = vmul.f32 1.442695, %v4406_v31  ;;  %19692 = vst [vmem:[#allocation224_spill] sm:$0xff] %v15550_v50  ;;  %v15553_v34 = vpop.eup %11517  ;;  %11521 = vpow2.f32 %v4590_v26  ;;  %v4410_v31 = vsub.f32 %v19696_v13, %v15372_v53 }
 0x8d1   : > { %v15546_v23 = vpop.permute.xlu2 %4910  ;;  %19693 = vst [vmem:[#allocation231_spill] sm:$0xff] %v15553_v34 }
 0x8d2   : > { %19690 = vst [vmem:[#allocation238_spill] sm:$0xff] %v15546_v23  ;;  %11523 = vpow2.f32 %v4588_v25 }
 0x8d3   : > { %11525 = vpow2.f32 %v4634_v18 }
 0x8d5   : > { %5078 = vperm.xlu0 %11394, %v15548_v30   ;;  %v19697_v30 = vld [vmem:[#allocation98_spill] sm:$0xff] }
 0x8d6   : > { %5021 = vperm.xlu1 %11396, %v15550_v50   ;;  %v4409_v57 = vsub.f32 %v19697_v30, %v15372_v53  ;;  %v4596_v50 = vmul.f32 1.442695, %v4410_v31  ;;  %v19701_v30 = vld [vmem:[#allocation202_spill] sm:$0xff] }
 0x8d7   : > { %5018 = vperm.xlu2 %11395, %v15553_v34   ;;  %v15559_v27 = vpop.permute.xlu0 %4952  ;;  %v15572_v34 = vpop.eup %11519  ;;  %v4432_v25 = vsub.f32 %v19701_v30, %v15570_v5 }
 0x8d8   : > { %19695 = vst [vmem:[#allocation218_spill] sm:$0xff] %v15559_v27  ;;  %v15563_v55 = vpop.permute.xlu1 %4898  ;;  %v4594_v47 = vmul.f32 1.442695, %v4409_v57  ;;  %v15574_v26 = vpop.eup %11521  ;;  %11527 = vpow2.f32 %v4596_v50  ;;  %v4413_v57 = vsub.f32 %v19702_v32, %v15372_v53 }
 0x8d9   : > { %v15567_v21 = vpop.permute.xlu2 %4919  ;;  %19698 = vst [vmem:[#allocation227_spill] sm:$0xff] %v15572_v34  ;;  %v15577_v13 = vpop.eup %11523  ;;  %v4640_v18 = vmul.f32 1.442695, %v4432_v25  ;;  %v19709_v25 = vld [vmem:[#allocation87_spill] sm:$0xff] }
 0x8da   : > { %19699 = vst [vmem:[#allocation206_spill] sm:$0xff] %v15574_v26  ;;  %11529 = vpow2.f32 %v4594_v47  ;;  %v15593_v48 = vpop.eup %11525  ;;  %v19708_v47 = vld [vmem:[#allocation203_spill] sm:$0xff] }
 0x8db   : > { %19700 = vst [vmem:[#allocation251_spill] sm:$0xff] %v15577_v13  ;;  %11531 = vpow2.f32 %v4640_v18  ;;  %v4435_v32 = vsub.f32 %v19708_v47, %v15570_v5 }
 0x8dc   : > { %19705 = vst [vmem:[#allocation237_spill] sm:$0xff] %v15593_v48 }
 0x8dd   : > { %5087 = vperm.xlu0 %11394, %v15572_v34   ;;  %v19704_v34 = vld [vmem:[#allocation148_spill] sm:$0xff]  ;;  %v4646_v18 = vmul.f32 1.442695, %v4435_v32 }
 0x8de   : > { %5030 = vperm.xlu1 %11396, %v15574_v26   ;;  %v4412_v6 = vsub.f32 %v19704_v34, %v15372_v53  ;;  %v4602_v26 = vmul.f32 1.442695, %v4413_v57 }
 0x8df   : > { %5027 = vperm.xlu2 %11395, %v15577_v13   ;;  %v15583_v59 = vpop.permute.xlu0 %4961  ;;  %v15595_v13 = vpop.eup %11527 }
 0x8e0   : > { %v15587_v31 = vpop.permute.xlu1 %4907  ;;  %v4600_v30 = vmul.f32 1.442695, %v4412_v6  ;;  %19706 = vst [vmem:[#allocation68_spill] sm:$0xff] %v15595_v13  ;;  %v15598_v50 = vpop.eup %11529  ;;  %11533 = vpow2.f32 %v4602_v26  ;;  %v4416_v6 = vsub.f32 %v19709_v25, %v15462_v14 }
 0x8e1   : > { %19703 = vst [vmem:[#allocation71_spill] sm:$0xff] %v15587_v31  ;;  %v15591_v39 = vpop.permute.xlu2 %4928  ;;  %v15614_v4 = vpop.eup %11531 }
 0x8e2   : > { %19707 = vst [vmem:[#allocation141_spill] sm:$0xff] %v15598_v50  ;;  %11535 = vpow2.f32 %v4600_v30  ;;  %v19714_v30 = vld [vmem:[#allocation204_spill] sm:$0xff] }
 0x8e3   : > { %19711 = vst [vmem:[#allocation167_spill] sm:$0xff] %v15614_v4  ;;  %11537 = vpow2.f32 %v4646_v18  ;;  %v4438_v25 = vsub.f32 %v19714_v30, %v15570_v5 }
 0x8e5   : > { %5096 = vperm.xlu0 %11394, %v15593_v48   ;;  %v19710_v48 = vld [vmem:[#allocation89_spill] sm:$0xff]  ;;  %v4652_v18 = vmul.f32 1.442695, %v4438_v25 }
 0x8e6   : > { %5039 = vperm.xlu1 %11396, %v15595_v13   ;;  %v4415_v9 = vsub.f32 %v19710_v48, %v15372_v53  ;;  %v4608_v13 = vmul.f32 1.442695, %v4416_v6  ;;  %v19715_v53 = vld [vmem:[#allocation104_spill] sm:$0xff]  ;;  %v19716_v6 = vld [vmem:[#allocation106_spill] sm:$0xff]  ;;  %v19722_v25 = vld [vmem:[#allocation93_spill] sm:$0xff] }
 0x8e7   : > { %5036 = vperm.xlu2 %11395, %v15598_v50   ;;  %v15604_v34 = vpop.permute.xlu0 %4970  ;;  %v15616_v50 = vpop.eup %11533 }
 0x8e8   : > { %v15608_v57 = vpop.permute.xlu1 %4913  ;;  %v4606_v47 = vmul.f32 1.442695, %v4415_v9  ;;  %19712 = vst [vmem:[#allocation177_spill] sm:$0xff] %v15616_v50  ;;  %v15619_v26 = vpop.eup %11535  ;;  %11539 = vpow2.f32 %v4608_v13  ;;  %v4419_v9 = vsub.f32 %v19715_v53, %v15462_v14 }
 0x8e9   : > { %v15612_v38 = vpop.permute.xlu2 %4937  ;;  %19713 = vst [vmem:[#allocation60_spill] sm:$0xff] %v15619_v26  ;;  %v15635_v44 = vpop.eup %11537 }
 0x8ea   : > { %11541 = vpow2.f32 %v4606_v47  ;;  %19717 = vst [vmem:[#allocation62_spill] sm:$0xff] %v15635_v44  ;;  %v19720_v47 = vld [vmem:[#allocation205_spill] sm:$0xff] }
 0x8eb   : > { %11543 = vpow2.f32 %v4652_v18  ;;  %v4441_v53 = vsub.f32 %v19720_v47, %v15570_v5 }
 0x8ed   : > { %5105 = vperm.xlu0 %11394, %v15614_v4   ;;  %v4418_v4 = vsub.f32 %v19716_v6, %v15462_v14  ;;  %v4658_v18 = vmul.f32 1.442695, %v4441_v53  ;;  %v19730_v53 = vld [vmem:[#allocation110_spill] sm:$0xff] }
 0x8ee   : > { %5048 = vperm.xlu1 %11396, %v15616_v50   ;;  %v4614_v50 = vmul.f32 1.442695, %v4419_v9 }
 0x8ef   : > { %5045 = vperm.xlu2 %11395, %v15619_v26   ;;  %v15625_v48 = vpop.permute.xlu0 %4979  ;;  %v4612_v30 = vmul.f32 1.442695, %v4418_v4  ;;  %v15637_v26 = vpop.eup %11539  ;;  %v4422_v4 = vsub.f32 %v19722_v25, %v15462_v14 }
 0x8f0   : > { %v15629_v32 = vpop.permute.xlu1 %4922  ;;  %19718 = vst [vmem:[#allocation179_spill] sm:$0xff] %v15637_v26  ;;  %v15640_v13 = vpop.eup %11541  ;;  %11545 = vpow2.f32 %v4614_v50 }
 0x8f1   : > { %v15633_v8 = vpop.permute.xlu2 %4946  ;;  %19719 = vst [vmem:[#allocation169_spill] sm:$0xff] %v15640_v13  ;;  %11547 = vpow2.f32 %v4612_v30  ;;  %v15656_v11 = vpop.eup %11543  ;;  %v19728_v30 = vld [vmem:[#allocation120_spill] sm:$0xff] }
 0x8f2   : > { %19725 = vst [vmem:[#allocation159_spill] sm:$0xff] %v15656_v11  ;;  %11549 = vpow2.f32 %v4658_v18  ;;  %v4444_v25 = vsub.f32 %v19728_v30, %v15570_v5 }
 0x8f4   : > { %v4664_v18 = vmul.f32 1.442695, %v4444_v25  ;;  %v19737_v25 = vld [vmem:[#allocation112_spill] sm:$0xff] }
 0x8f5   : > { %5114 = vperm.xlu0 %11394, %v15635_v44   ;;  %v19723_v44 = vld [vmem:[#allocation95_spill] sm:$0xff] }
 0x8f6   : > { %5057 = vperm.xlu1 %11396, %v15637_v26   ;;  %v4421_v15 = vsub.f32 %v19723_v44, %v15462_v14  ;;  %v4620_v26 = vmul.f32 1.442695, %v4422_v4 }
 0x8f7   : > { %5054 = vperm.xlu2 %11395, %v15640_v13   ;;  %v15646_v6 = vpop.permute.xlu0 %4988  ;;  %v15658_v13 = vpop.eup %11545 }
 0x8f8   : > { %19721 = vst [vmem:[#allocation55_spill] sm:$0xff] %v15646_v6  ;;  %v15650_v9 = vpop.permute.xlu1 %4931  ;;  %v4618_v47 = vmul.f32 1.442695, %v4421_v15  ;;  %v15661_v50 = vpop.eup %11547  ;;  %11551 = vpow2.f32 %v4620_v26  ;;  %v4425_v15 = vsub.f32 %v19730_v53, %v15462_v14 }
 0x8f9   : > { %v15654_v29 = vpop.permute.xlu2 %4955  ;;  %19726 = vst [vmem:[#allocation64_spill] sm:$0xff] %v15658_v13  ;;  %v15677_v23 = vpop.eup %11549 }
 0x8fa   : > { %19724 = vst [vmem:[#allocation180_spill] sm:$0xff] %v15654_v29  ;;  %11553 = vpow2.f32 %v4618_v47  ;;  %v19735_v47 = vld [vmem:[#allocation123_spill] sm:$0xff] }
 0x8fb   : > { %19727 = vst [vmem:[#allocation182_spill] sm:$0xff] %v15661_v50  ;;  %11555 = vpow2.f32 %v4664_v18  ;;  %v4447_v53 = vsub.f32 %v19735_v47, %v15570_v5  ;;  %v15699_v18 = vperm.slane %v15198_v41, 6 }
 0x8fc   : > { %19732 = vst [vmem:[#allocation171_spill] sm:$0xff] %v15677_v23 }
 0x8fd   : > { %5123 = vperm.xlu0 %11394, %v15656_v11   ;;  %v19731_v11 = vld [vmem:[#allocation97_spill] sm:$0xff]  ;;  %v4670_v47 = vmul.f32 1.442695, %v4447_v53  ;;  %v19743_v53 = vld [vmem:[#allocation114_spill] sm:$0xff] }
 0x8fe   : > { %5066 = vperm.xlu1 %11396, %v15658_v13   ;;  %v4424_v29 = vsub.f32 %v19731_v11, %v15462_v14  ;;  %v4626_v13 = vmul.f32 1.442695, %v4425_v15 }
 0x8ff   : > { %5063 = vperm.xlu2 %11395, %v15661_v50   ;;  %v15667_v44 = vpop.permute.xlu0 %4997  ;;  %v15679_v50 = vpop.eup %11551 }
 0x900   : > { %19729 = vst [vmem:[#allocation56_spill] sm:$0xff] %v15667_v44  ;;  %v15671_v4 = vpop.permute.xlu1 %4940  ;;  %v4624_v30 = vmul.f32 1.442695, %v4424_v29  ;;  %v15682_v26 = vpop.eup %11553  ;;  %11557 = vpow2.f32 %v4626_v13  ;;  %v4428_v29 = vsub.f32 %v19737_v25, %v15462_v14 }
 0x901   : > { %v15675_v6 = vpop.permute.xlu2 %4964  ;;  %19733 = vst [vmem:[#allocation184_spill] sm:$0xff] %v15679_v50 }
 0x902   : > { %19734 = vst [vmem:[#allocation173_spill] sm:$0xff] %v15682_v26  ;;  %11559 = vpow2.f32 %v4624_v30 }
 0x903   : > { %11561 = vpow2.f32 %v4670_v47 }
 0x905   : > { %5132 = vperm.xlu0 %11394, %v15677_v23   ;;  %v19738_v23 = vld [vmem:[#allocation99_spill] sm:$0xff] }
 0x906   : > { %5075 = vperm.xlu1 %11396, %v15679_v50   ;;  %v4427_v44 = vsub.f32 %v19738_v23, %v15462_v14  ;;  %v4632_v50 = vmul.f32 1.442695, %v4428_v29  ;;  %v19742_v23 = vld [vmem:[#allocation126_spill] sm:$0xff]  ;;  %v4431_v29 = vsub.f32 %v19743_v53, %v15462_v14 }
 0x907   : > { %5072 = vperm.xlu2 %11395, %v15682_v26   ;;  %v15688_v11 = vpop.permute.xlu0 %5006  ;;  %v15701_v26 = vpop.eup %11555  ;;  %v4450_v30 = vsub.f32 %v19742_v23, %v15699_v18 }
 0x908   : > { %19736 = vst [vmem:[#allocation66_spill] sm:$0xff] %v15688_v11  ;;  %v15692_v15 = vpop.permute.xlu1 %4949  ;;  %v4630_v11 = vmul.f32 1.442695, %v4427_v44  ;;  %v15703_v13 = vpop.eup %11557  ;;  %11563 = vpow2.f32 %v4632_v50 }
 0x909   : > { %v15696_v61 = vpop.permute.xlu2 %4973  ;;  %19739 = vst [vmem:[#allocation185_spill] sm:$0xff] %v15701_v26  ;;  %v15706_v25 = vpop.eup %11559  ;;  %v4676_v47 = vmul.f32 1.442695, %v4450_v30 }
 0x90a   : > { %19740 = vst [vmem:[#allocation175_spill] sm:$0xff] %v15703_v13  ;;  %11565 = vpow2.f32 %v4630_v11  ;;  %v15722_v31 = vpop.eup %11561  ;;  %v19751_v11 = vld [vmem:[#allocation129_spill] sm:$0xff] }
 0x90b   : > { %19741 = vst [vmem:[#allocation161_spill] sm:$0xff] %v15706_v25  ;;  %11567 = vpow2.f32 %v4676_v47  ;;  %v4453_v53 = vsub.f32 %v19751_v11, %v15699_v18 }
 0x90c   : > { %19748 = vst [vmem:[#allocation188_spill] sm:$0xff] %v15722_v31 }
 0x90d   : > { %5141 = vperm.xlu0 %11394, %v15701_v26   ;;  %v19746_v26 = vld [vmem:[#allocation101_spill] sm:$0xff]  ;;  %v4682_v47 = vmul.f32 1.442695, %v4453_v53  ;;  %v19760_v53 = vld [vmem:[#allocation118_spill] sm:$0xff] }
 0x90e   : > { %5084 = vperm.xlu1 %11396, %v15703_v13   ;;  %v4430_v36 = vsub.f32 %v19746_v26, %v15462_v14  ;;  %v4638_v13 = vmul.f32 1.442695, %v4431_v29  ;;  %v19752_v14 = vld [vmem:[#allocation156_spill] sm:$0xff] }
 0x90f   : > { %5081 = vperm.xlu2 %11395, %v15706_v25   ;;  %v15714_v27 = vpop.permute.xlu0 %5015  ;;  %v15724_v25 = vpop.eup %11563  ;;  %v4434_v26 = vsub.f32 %v19752_v14, %v15570_v5 }
 0x910   : > { %19744 = vst [vmem:[#allocation187_spill] sm:$0xff] %v15714_v27  ;;  %v15716_v44 = vpop.permute.xlu1 %4958  ;;  %v4636_v23 = vmul.f32 1.442695, %v4430_v36  ;;  %v15727_v50 = vpop.eup %11565  ;;  %11569 = vpow2.f32 %v4638_v13  ;;  %v19753_v36 = vld [vmem:[#allocation103_spill] sm:$0xff] }
 0x911   : > { %19745 = vst [vmem:[#allocation166_spill] sm:$0xff] %v15716_v44  ;;  %v15720_v56 = vpop.permute.xlu2 %4982  ;;  %v4433_v29 = vsub.f32 %v19753_v36, %v15570_v5  ;;  %v15743_v27 = vpop.eup %11567 }
 0x912   : > { %19747 = vst [vmem:[#allocation57_spill] sm:$0xff] %v15720_v56  ;;  %11571 = vpow2.f32 %v4636_v23  ;;  %v19759_v23 = vld [vmem:[#allocation132_spill] sm:$0xff] }
 0x913   : > { %19749 = vst [vmem:[#allocation163_spill] sm:$0xff] %v15724_v25  ;;  %v4642_v11 = vmul.f32 1.442695, %v4433_v29  ;;  %11573 = vpow2.f32 %v4682_v47  ;;  %v4456_v14 = vsub.f32 %v19759_v23, %v15699_v18  ;;  %v19761_v29 = vld [vmem:[#allocation105_spill] sm:$0xff] }
 0x914   : > { %19750 = vst [vmem:[#allocation70_spill] sm:$0xff] %v15727_v50 }
 0x915   : > { %5150 = vperm.xlu0 %11394, %v15722_v31   ;;  %19756 = vst [vmem:[#allocation72_spill] sm:$0xff] %v15743_v27 }
 0x916   : > { %5093 = vperm.xlu1 %11396, %v15724_v25   ;;  %v4644_v25 = vmul.f32 1.442695, %v4434_v26  ;;  %v4437_v26 = vsub.f32 %v19760_v53, %v15570_v5 }
 0x917   : > { %5090 = vperm.xlu2 %11395, %v15727_v50   ;;  %v15741_v44 = vpop.permute.xlu0 %5024  ;;  %v15745_v50 = vpop.eup %11569 }
 0x918   : > { %v15735_v30 = vpop.permute.xlu1 %4967  ;;  %19755 = vst [vmem:[#allocation165_spill] sm:$0xff] %v15741_v44  ;;  %v15748_v13 = vpop.eup %11571  ;;  %11575 = vpow2.f32 %v4644_v25 }
 0x919   : > { %v15739_v31 = vpop.permute.xlu2 %4991  ;;  %19757 = vst [vmem:[#allocation190_spill] sm:$0xff] %v15745_v50  ;;  %11577 = vpow2.f32 %v4642_v11  ;;  %v15762_v47 = vpop.eup %11573  ;;  %v19767_v11 = vld [vmem:[#allocation135_spill] sm:$0xff] }
 0x91a   : > { %19754 = vst [vmem:[#allocation189_spill] sm:$0xff] %v15739_v31  ;;  %v4688_v31 = vmul.f32 1.442695, %v4456_v14  ;;  %v4459_v53 = vsub.f32 %v19767_v11, %v15699_v18  ;;  %v19768_v14 = vld [vmem:[#allocation121_spill] sm:$0xff] }
 0x91b   : > { %19758 = vst [vmem:[#allocation146_spill] sm:$0xff] %v15748_v13 }
 0x91c   : > { %19763 = vst [vmem:[#allocation191_spill] sm:$0xff] %v15762_v47  ;;  %11579 = vpow2.f32 %v4688_v31 }
 0x91d   : > { %5159 = vperm.xlu0 %11394, %v15743_v27   ;;  %v4436_v27 = vsub.f32 %v19761_v29, %v15570_v5 }
 0x91e   : > { %5102 = vperm.xlu1 %11396, %v15745_v50   ;;  %v4650_v50 = vmul.f32 1.442695, %v4437_v26  ;;  %v4440_v26 = vsub.f32 %v19768_v14, %v15570_v5 }
 0x91f   : > { %5099 = vperm.xlu2 %11395, %v15748_v13   ;;  %v15764_v43 = vpop.permute.xlu0 %5033  ;;  %v4648_v23 = vmul.f32 1.442695, %v4436_v27  ;;  %v15766_v13 = vpop.eup %11575  ;;  %v19770_v27 = vld [vmem:[#allocation107_spill] sm:$0xff] }
 0x920   : > { %v15756_v36 = vpop.permute.xlu1 %4976  ;;  %19764 = vst [vmem:[#allocation74_spill] sm:$0xff] %v15764_v43  ;;  %v15769_v25 = vpop.eup %11577  ;;  %11581 = vpow2.f32 %v4650_v50  ;;  %v4694_v43 = vmul.f32 1.442695, %v4459_v53  ;;  %v19777_v53 = vld [vmem:[#allocation124_spill] sm:$0xff] }
 0x921   : > { %v15760_v44 = vpop.permute.xlu2 %5000  ;;  %19765 = vst [vmem:[#allocation61_spill] sm:$0xff] %v15766_v13  ;;  %11583 = vpow2.f32 %v4648_v23  ;;  %v19776_v23 = vld [vmem:[#allocation138_spill] sm:$0xff] }
 0x922   : > { %19762 = vst [vmem:[#allocation59_spill] sm:$0xff] %v15760_v44  ;;  %v15783_v31 = vpop.eup %11579  ;;  %11585 = vpow2.f32 %v4694_v43 }
 0x923   : > { %19766 = vst [vmem:[#allocation192_spill] sm:$0xff] %v15769_v25 }
 0x924   : > { %19772 = vst [vmem:[#allocation193_spill] sm:$0xff] %v15783_v31 }
 0x925   : > { %5168 = vperm.xlu0 %11394, %v15762_v47   ;;  %v4439_v47 = vsub.f32 %v19770_v27, %v15570_v5  ;;  %v4462_v27 = vsub.f32 %v19776_v23, %v15699_v18 }
 0x926   : > { %5111 = vperm.xlu1 %11396, %v15766_v13   ;;  %v4656_v13 = vmul.f32 1.442695, %v4440_v26  ;;  %v15785_v11 = vpop.eup %11581 }
 0x927   : > { %5108 = vperm.xlu2 %11395, %v15769_v25   ;;  %v4654_v56 = vmul.f32 1.442695, %v4439_v47  ;;  %19773 = vst [vmem:[#allocation174_spill] sm:$0xff] %v15785_v11  ;;  %v15788_v50 = vpop.eup %11583  ;;  %v15790_v14 = vpop.permute.xlu0 %5042  ;;  %v4443_v47 = vsub.f32 %v19777_v53, %v15570_v5  ;;  %v4700_v43 = vmul.f32 1.442695, %v4462_v27 }
 0x928   : > { %v15777_v29 = vpop.permute.xlu1 %4985  ;;  %19774 = vst [vmem:[#allocation80_spill] sm:$0xff] %v15788_v50  ;;  %11587 = vpow2.f32 %v4656_v13  ;;  %v15807_v23 = vpop.eup %11585 }
 0x929   : > { %19769 = vst [vmem:[#allocation170_spill] sm:$0xff] %v15777_v29  ;;  %v15781_v44 = vpop.permute.xlu2 %5009  ;;  %11589 = vpow2.f32 %v4654_v56  ;;  %v19784_v56 = vld [vmem:[#allocation160_spill] sm:$0xff] }
 0x92a   : > { %19771 = vst [vmem:[#allocation63_spill] sm:$0xff] %v15781_v44  ;;  %11591 = vpow2.f32 %v4700_v43 }
 0x92b   : > { %19775 = vst [vmem:[#allocation194_spill] sm:$0xff] %v15790_v14  ;;  %v4662_v14 = vmul.f32 1.442695, %v4443_v47 }
 0x92c   : > { %19781 = vst [vmem:[#allocation195_spill] sm:$0xff] %v15807_v23 }
 0x92d   : > { %5177 = vperm.xlu0 %11394, %v15783_v31   ;;  %v19779_v31 = vld [vmem:[#allocation109_spill] sm:$0xff]  ;;  %11593 = vpow2.f32 %v4662_v14 }
 0x92e   : > { %5120 = vperm.xlu1 %11396, %v15785_v11   ;;  %v4442_v25 = vsub.f32 %v19779_v31, %v15570_v5  ;;  %v15805_v11 = vperm.slane %v15198_v41, 7  ;;  %v15809_v13 = vpop.eup %11587  ;;  %v19785_v41 = vld [vmem:[#allocation127_spill] sm:$0xff] }
 0x92f   : > { %5117 = vperm.xlu2 %11395, %v15788_v50   ;;  %19782 = vst [vmem:[#allocation67_spill] sm:$0xff] %v15809_v13  ;;  %v15812_v53 = vpop.eup %11589  ;;  %v4446_v27 = vsub.f32 %v19785_v41, %v15570_v5  ;;  %v15820_v47 = vpop.permute.xlu0 %5051 }
 0x930   : > { %v15798_v26 = vpop.permute.xlu1 %4994  ;;  %v4660_v50 = vmul.f32 1.442695, %v4442_v25  ;;  %19783 = vst [vmem:[#allocation82_spill] sm:$0xff] %v15812_v53  ;;  %v4465_v31 = vsub.f32 %v19784_v56, %v15805_v11  ;;  %v15828_v29 = vpop.eup %11591 }
 0x931   : > { %19778 = vst [vmem:[#allocation178_spill] sm:$0xff] %v15798_v26  ;;  %v15802_v44 = vpop.permute.xlu2 %5018 }
 0x932   : > { %19780 = vst [vmem:[#allocation149_spill] sm:$0xff] %v15802_v44  ;;  %11595 = vpow2.f32 %v4660_v50  ;;  %v4706_v43 = vmul.f32 1.442695, %v4465_v31  ;;  %v19793_v50 = vld [vmem:[#allocation164_spill] sm:$0xff] }
 0x933   : > { %19786 = vst [vmem:[#allocation196_spill] sm:$0xff] %v15820_v47  ;;  %v4468_v41 = vsub.f32 %v19793_v50, %v15805_v11 }
 0x934   : > { %19790 = vst [vmem:[#allocation197_spill] sm:$0xff] %v15828_v29  ;;  %11597 = vpow2.f32 %v4706_v43 }
 0x935   : > { %5186 = vperm.xlu0 %11394, %v15807_v23   ;;  %v19788_v23 = vld [vmem:[#allocation111_spill] sm:$0xff]  ;;  %v4712_v43 = vmul.f32 1.442695, %v4468_v41  ;;  %v19802_v41 = vld [vmem:[#allocation133_spill] sm:$0xff] }
 0x936   : > { %5129 = vperm.xlu1 %11396, %v15809_v13   ;;  %v4445_v44 = vsub.f32 %v19788_v23, %v15570_v5  ;;  %v4668_v13 = vmul.f32 1.442695, %v4446_v27  ;;  %v19794_v5 = vld [vmem:[#allocation168_spill] sm:$0xff] }
 0x937   : > { %5126 = vperm.xlu2 %11395, %v15812_v53   ;;  %v15830_v53 = vpop.eup %11593  ;;  %v4449_v23 = vsub.f32 %v19794_v5, %v15699_v18 }
 0x938   : > { %v15822_v25 = vpop.permute.xlu1 %5003  ;;  %v4666_v56 = vmul.f32 1.442695, %v4445_v44  ;;  %19791 = vst [vmem:[#allocation152_spill] sm:$0xff] %v15830_v53  ;;  %v15833_v14 = vpop.eup %11595  ;;  %11599 = vpow2.f32 %v4668_v13  ;;  %v19795_v44 = vld [vmem:[#allocation113_spill] sm:$0xff] }
 0x939   : > { %19787 = vst [vmem:[#allocation84_spill] sm:$0xff] %v15822_v25  ;;  %v15826_v26 = vpop.permute.xlu2 %5027  ;;  %v4448_v27 = vsub.f32 %v19795_v44, %v15699_v18  ;;  %v15847_v25 = vpop.permute.xlu0 %5060 }
 0x93a   : > { %19789 = vst [vmem:[#allocation183_spill] sm:$0xff] %v15826_v26  ;;  %11601 = vpow2.f32 %v4666_v56  ;;  %v15849_v26 = vpop.eup %11597  ;;  %v19801_v56 = vld [vmem:[#allocation144_spill] sm:$0xff] }
 0x93b   : > { %19792 = vst [vmem:[#allocation73_spill] sm:$0xff] %v15833_v14  ;;  %v4672_v50 = vmul.f32 1.442695, %v4448_v27  ;;  %11603 = vpow2.f32 %v4712_v43  ;;  %v4471_v5 = vsub.f32 %v19801_v56, %v15805_v11  ;;  %v19804_v27 = vld [vmem:[#allocation115_spill] sm:$0xff] }
 0x93c   : > { %19797 = vst [vmem:[#allocation88_spill] sm:$0xff] %v15847_v25 }
 0x93d   : > { %5195 = vperm.xlu0 %11394, %v15828_v29   ;;  %19798 = vst [vmem:[#allocation186_spill] sm:$0xff] %v15849_v26  ;;  %v4718_v25 = vmul.f32 1.442695, %v4471_v5  ;;  %v19811_v5 = vld [vmem:[#allocation136_spill] sm:$0xff] }
 0x93e   : > { %5138 = vperm.xlu1 %11396, %v15830_v53   ;;  %v4674_v53 = vmul.f32 1.442695, %v4449_v23  ;;  %v4452_v23 = vsub.f32 %v19802_v41, %v15699_v18 }
 0x93f   : > { %5135 = vperm.xlu2 %11395, %v15833_v14   ;;  %v15851_v14 = vpop.eup %11599 }
 0x940   : > { %v15841_v31 = vpop.permute.xlu1 %5012  ;;  %19799 = vst [vmem:[#allocation199_spill] sm:$0xff] %v15851_v14  ;;  %v15854_v13 = vpop.eup %11601  ;;  %11605 = vpow2.f32 %v4674_v53 }
 0x941   : > { %v15845_v29 = vpop.permute.xlu2 %5036  ;;  %19800 = vst [vmem:[#allocation90_spill] sm:$0xff] %v15854_v13  ;;  %11607 = vpow2.f32 %v4672_v50  ;;  %v15868_v43 = vpop.eup %11603  ;;  %v19810_v50 = vld [vmem:[#allocation172_spill] sm:$0xff] }
 0x942   : > { %19796 = vst [vmem:[#allocation198_spill] sm:$0xff] %v15845_v29  ;;  %v15870_v47 = vpop.permute.xlu0 %5069  ;;  %11609 = vpow2.f32 %v4718_v25  ;;  %v4474_v41 = vsub.f32 %v19810_v50, %v15805_v11 }
 0x943   : > { %19806 = vst [vmem:[#allocation94_spill] sm:$0xff] %v15868_v43 }
 0x944   : > { %19807 = vst [vmem:[#allocation143_spill] sm:$0xff] %v15870_v47  ;;  %v4724_v47 = vmul.f32 1.442695, %v4474_v41  ;;  %v19820_v41 = vld [vmem:[#allocation139_spill] sm:$0xff] }
 0x945   : > { %5204 = vperm.xlu0 %11394, %v15849_v26   ;;  %v4451_v26 = vsub.f32 %v19804_v27, %v15699_v18 }
 0x946   : > { %5147 = vperm.xlu1 %11396, %v15851_v14   ;;  %v4680_v14 = vmul.f32 1.442695, %v4452_v23  ;;  %v4455_v23 = vsub.f32 %v19811_v5, %v15699_v18 }
 0x947   : > { %5144 = vperm.xlu2 %11395, %v15854_v13   ;;  %v4678_v56 = vmul.f32 1.442695, %v4451_v26  ;;  %v15872_v13 = vpop.eup %11605  ;;  %v19813_v26 = vld [vmem:[#allocation117_spill] sm:$0xff] }
 0x948   : > { %v15862_v44 = vpop.permute.xlu1 %5021  ;;  %19808 = vst [vmem:[#allocation201_spill] sm:$0xff] %v15872_v13  ;;  %v15875_v53 = vpop.eup %11607  ;;  %11611 = vpow2.f32 %v4680_v14 }
 0x949   : > { %19803 = vst [vmem:[#allocation79_spill] sm:$0xff] %v15862_v44  ;;  %v15866_v29 = vpop.permute.xlu2 %5045  ;;  %11613 = vpow2.f32 %v4678_v56  ;;  %v15889_v25 = vpop.eup %11609  ;;  %v19819_v56 = vld [vmem:[#allocation65_spill] sm:$0xff] }
 0x94a   : > { %19805 = vst [vmem:[#allocation200_spill] sm:$0xff] %v15866_v29  ;;  %v15896_v5 = vpop.permute.xlu0 %5078  ;;  %11615 = vpow2.f32 %v4724_v47 }
 0x94b   : > { %19809 = vst [vmem:[#allocation96_spill] sm:$0xff] %v15875_v53 }
 0x94c   : > { %19815 = vst [vmem:[#allocation85_spill] sm:$0xff] %v15889_v25 }
 0x94d   : > { %5213 = vperm.xlu0 %11394, %v15868_v43   ;;  %v4454_v43 = vsub.f32 %v19813_v26, %v15699_v18  ;;  %19818 = vst [vmem:[#allocation87_spill] sm:$0xff] %v15896_v5  ;;  %v4477_v26 = vsub.f32 %v19819_v56, %v15805_v11 }
 0x94e   : > { %5156 = vperm.xlu1 %11396, %v15872_v13   ;;  %v4686_v13 = vmul.f32 1.442695, %v4455_v23  ;;  %v15891_v50 = vpop.eup %11611 }
 0x94f   : > { %5153 = vperm.xlu2 %11395, %v15875_v53   ;;  %v4684_v44 = vmul.f32 1.442695, %v4454_v43  ;;  %19816 = vst [vmem:[#allocation148_spill] sm:$0xff] %v15891_v50  ;;  %v15894_v14 = vpop.eup %11613  ;;  %v4458_v43 = vsub.f32 %v19820_v41, %v15699_v18  ;;  %v4730_v5 = vmul.f32 1.442695, %v4477_v26 }
 0x950   : > { %v15883_v27 = vpop.permute.xlu1 %5030  ;;  %19817 = vst [vmem:[#allocation203_spill] sm:$0xff] %v15894_v14  ;;  %11617 = vpow2.f32 %v4686_v13  ;;  %v15910_v47 = vpop.eup %11615 }
 0x951   : > { %19812 = vst [vmem:[#allocation98_spill] sm:$0xff] %v15883_v27  ;;  %v15887_v29 = vpop.permute.xlu2 %5054  ;;  %11619 = vpow2.f32 %v4684_v44  ;;  %v19827_v44 = vld [vmem:[#allocation142_spill] sm:$0xff] }
 0x952   : > { %19814 = vst [vmem:[#allocation202_spill] sm:$0xff] %v15887_v29  ;;  %11621 = vpow2.f32 %v4730_v5  ;;  %v15921_v26 = vpop.permute.xlu0 %5087 }
 0x953   : > { %19824 = vst [vmem:[#allocation104_spill] sm:$0xff] %v15910_v47 }
 0x954   : > { %19828 = vst [vmem:[#allocation93_spill] sm:$0xff] %v15921_v26 }
 0x955   : > { %5222 = vperm.xlu0 %11394, %v15889_v25   ;;  %v19822_v25 = vld [vmem:[#allocation119_spill] sm:$0xff] }
 0x956   : > { %5165 = vperm.xlu1 %11396, %v15891_v50   ;;  %v4457_v53 = vsub.f32 %v19822_v25, %v15699_v18  ;;  %v4692_v50 = vmul.f32 1.442695, %v4458_v43  ;;  %v15912_v56 = vpop.eup %11617  ;;  %v4461_v25 = vsub.f32 %v19827_v44, %v15699_v18 }
 0x957   : > { %5162 = vperm.xlu2 %11395, %v15894_v14   ;;  %19825 = vst [vmem:[#allocation106_spill] sm:$0xff] %v15912_v56  ;;  %v15915_v13 = vpop.eup %11619 }
 0x958   : > { %v15904_v23 = vpop.permute.xlu1 %5039  ;;  %v4690_v27 = vmul.f32 1.442695, %v4457_v53  ;;  %19826 = vst [vmem:[#allocation205_spill] sm:$0xff] %v15915_v13  ;;  %11623 = vpow2.f32 %v4692_v50  ;;  %v19830_v53 = vld [vmem:[#allocation122_spill] sm:$0xff]  ;;  %v4698_v14 = vmul.f32 1.442695, %v4461_v25 }
 0x959   : > { %19821 = vst [vmem:[#allocation89_spill] sm:$0xff] %v15904_v23  ;;  %v15908_v29 = vpop.permute.xlu2 %5063  ;;  %v4460_v43 = vsub.f32 %v19830_v53, %v15699_v18  ;;  %v15929_v23 = vpop.eup %11621  ;;  %v19836_v25 = vld [vmem:[#allocation125_spill] sm:$0xff] }
 0x95a   : > { %19823 = vst [vmem:[#allocation204_spill] sm:$0xff] %v15908_v29  ;;  %11625 = vpow2.f32 %v4690_v27  ;;  %v19835_v27 = vld [vmem:[#allocation181_spill] sm:$0xff] }
 0x95b   : > { %19832 = vst [vmem:[#allocation110_spill] sm:$0xff] %v15929_v23  ;;  %v4696_v5 = vmul.f32 1.442695, %v4460_v43  ;;  %11627 = vpow2.f32 %v4698_v14  ;;  %v4464_v44 = vsub.f32 %v19835_v27, %v15805_v11  ;;  %v4463_v43 = vsub.f32 %v19836_v25, %v15699_v18  ;;  %v19841_v14 = vld [vmem:[#allocation147_spill] sm:$0xff]  ;;  %v19843_v18 = vld [vmem:[#allocation128_spill] sm:$0xff] }
 0x95c   : > { %v4466_v25 = vsub.f32 %v19843_v18, %v15805_v11 }
 0x95d   : > { %5231 = vperm.xlu0 %11394, %v15910_v47   ;;  %11629 = vpow2.f32 %v4696_v5  ;;  %v4702_v26 = vmul.f32 1.442695, %v4463_v43  ;;  %v4467_v5 = vsub.f32 %v19841_v14, %v15805_v11 }
 0x95e   : > { %5174 = vperm.xlu1 %11396, %v15912_v56   ;;  %v15931_v56 = vpop.eup %11623 }
 0x95f   : > { %5171 = vperm.xlu2 %11395, %v15915_v13   ;;  %19833 = vst [vmem:[#allocation97_spill] sm:$0xff] %v15931_v56  ;;  %v4710_v43 = vmul.f32 1.442695, %v4467_v5  ;;  %v19850_v5 = vld [vmem:[#allocation131_spill] sm:$0xff] }
 0x960   : > { %v15923_v41 = vpop.permute.xlu1 %5048  ;;  %v15934_v50 = vpop.eup %11625  ;;  %v4469_v18 = vsub.f32 %v19850_v5, %v15805_v11 }
 0x961   : > { %19829 = vst [vmem:[#allocation95_spill] sm:$0xff] %v15923_v41  ;;  %v15927_v47 = vpop.permute.xlu2 %5072  ;;  %v15946_v41 = vpop.permute.xlu0 %5096 }
 0x962   : > { %19831 = vst [vmem:[#allocation120_spill] sm:$0xff] %v15927_v47  ;;  %v15948_v47 = vpop.eup %11627 }
 0x963   : > { %19834 = vst [vmem:[#allocation123_spill] sm:$0xff] %v15934_v50 }
 0x964   : > { %19838 = vst [vmem:[#allocation99_spill] sm:$0xff] %v15946_v41  ;;  %v4708_v41 = vmul.f32 1.442695, %v4466_v25 }
 0x965   : > { %5240 = vperm.xlu0 %11394, %v15929_v23   ;;  %v4704_v23 = vmul.f32 1.442695, %v4464_v44  ;;  %19839 = vst [vmem:[#allocation126_spill] sm:$0xff] %v15948_v47 }
 0x966   : > { %5183 = vperm.xlu1 %11396, %v15931_v56   ;;  %v15950_v56 = vpop.eup %11629 }
 0x967   : > { %5180 = vperm.xlu2 %11395, %v15934_v50   ;;  %19840 = vst [vmem:[#allocation114_spill] sm:$0xff] %v15950_v56  ;;  %11631 = vpow2.f32 %v4704_v23  ;;  %v19848_v23 = vld [vmem:[#allocation150_spill] sm:$0xff] }
 0x968   : > { %v15940_v53 = vpop.permute.xlu1 %5057  ;;  %11633 = vpow2.f32 %v4702_v26  ;;  %v4470_v26 = vsub.f32 %v19848_v23, %v15805_v11 }
 0x969   : > { %v15944_v13 = vpop.permute.xlu2 %5081  ;;  %v15962_v50 = vpop.permute.xlu0 %5105  ;;  %11635 = vpow2.f32 %v4710_v43 }
 0x96a   : > { %19837 = vst [vmem:[#allocation112_spill] sm:$0xff] %v15944_v13  ;;  %11637 = vpow2.f32 %v4708_v41  ;;  %v4716_v25 = vmul.f32 1.442695, %v4470_v26  ;;  %v19855_v41 = vld [vmem:[#allocation153_spill] sm:$0xff]  ;;  %v19857_v26 = vld [vmem:[#allocation134_spill] sm:$0xff] }
 0x96b   : > { %19845 = vst [vmem:[#allocation156_spill] sm:$0xff] %v15962_v50  ;;  %v4473_v43 = vsub.f32 %v19855_v41, %v15805_v11  ;;  %v4472_v5 = vsub.f32 %v19857_v26, %v15805_v11 }
 0x96c   : > { %11639 = vpow2.f32 %v4716_v25  ;;  %v19860_v25 = vld [vmem:[#allocation155_spill] sm:$0xff] }
 0x96d   : > { %v15964_v13 = vpop.eup %11631  ;;  %v4476_v41 = vsub.f32 %v19860_v25, %v15805_v11 }
 0x96e   : > { %5192 = vperm.xlu1 %11396, %v15948_v47   ;;  %19846 = vst [vmem:[#allocation103_spill] sm:$0xff] %v15964_v13  ;;  %v15966_v47 = vpop.eup %11633 }
 0x96f   : > { %5189 = vperm.xlu2 %11395, %v15950_v56   ;;  %19847 = vst [vmem:[#allocation132_spill] sm:$0xff] %v15966_v47  ;;  %v15978_v29 = vpop.eup %11635 }
 0x970   : > { %v15956_v27 = vpop.permute.xlu1 %5066  ;;  %19852 = vst [vmem:[#allocation135_spill] sm:$0xff] %v15978_v29 }
 0x971   : > { %19842 = vst [vmem:[#allocation101_spill] sm:$0xff] %v15956_v27  ;;  %v15960_v44 = vpop.permute.xlu2 %5090  ;;  %v15980_v27 = vpop.eup %11637 }
 0x972   : > { %19844 = vst [vmem:[#allocation129_spill] sm:$0xff] %v15960_v44  ;;  %v4714_v44 = vmul.f32 1.442695, %v4469_v18 }
 0x973   : > { %19853 = vst [vmem:[#allocation121_spill] sm:$0xff] %v15980_v27 }
 0x974   : > { %11641 = vpow2.f32 %v4714_v44 }
 0x976   : > { %5201 = vperm.xlu1 %11396, %v15964_v13   ;;  %v15982_v13 = vpop.permute.xlu0 %5114 }
 0x977   : > { %5198 = vperm.xlu2 %11395, %v15966_v47   ;;  %19854 = vst [vmem:[#allocation107_spill] sm:$0xff] %v15982_v13  ;;  %v4722_v47 = vmul.f32 1.442695, %v4473_v43  ;;  %v19863_v43 = vld [vmem:[#allocation137_spill] sm:$0xff] }
 0x978   : > { %v15972_v14 = vpop.permute.xlu1 %5075  ;;  %v4475_v26 = vsub.f32 %v19863_v43, %v15805_v11  ;;  %v19869_v43 = vld [vmem:[#allocation140_spill] sm:$0xff] }
 0x979   : > { %19849 = vst [vmem:[#allocation118_spill] sm:$0xff] %v15972_v14  ;;  %v15976_v56 = vpop.permute.xlu2 %5099  ;;  %v15994_v14 = vpop.eup %11639  ;;  %11643 = vpow2.f32 %v4722_v47  ;;  %v19867_v47 = vld [vmem:[#allocation158_spill] sm:$0xff] }
 0x97a   : > { %19851 = vst [vmem:[#allocation105_spill] sm:$0xff] %v15976_v56  ;;  %v4720_v56 = vmul.f32 1.442695, %v4472_v5  ;;  %v15996_v13 = vpop.eup %11641  ;;  %v4479_v25 = vsub.f32 %v19867_v47, %v15805_v11 }
 0x97b   : > { %19858 = vst [vmem:[#allocation124_spill] sm:$0xff] %v15994_v14 }
 0x97c   : > { %19859 = vst [vmem:[#allocation109_spill] sm:$0xff] %v15996_v13  ;;  %11645 = vpow2.f32 %v4720_v56 }
 0x97e   : > { %5210 = vperm.xlu1 %11396, %v15978_v29   ;;  %v16002_v44 = vpop.permute.xlu0 %5123  ;;  %v4728_v29 = vmul.f32 1.442695, %v4476_v41 }
 0x97f   : > { %5207 = vperm.xlu2 %11395, %v15980_v27   ;;  %19861 = vst [vmem:[#allocation160_spill] sm:$0xff] %v16002_v44  ;;  %v16010_v50 = vpop.eup %11643 }
 0x980   : > { %v15988_v23 = vpop.permute.xlu1 %5084  ;;  %19865 = vst [vmem:[#allocation164_spill] sm:$0xff] %v16010_v50  ;;  %11647 = vpow2.f32 %v4728_v29 }
 0x981   : > { %19856 = vst [vmem:[#allocation138_spill] sm:$0xff] %v15988_v23  ;;  %v15992_v18 = vpop.permute.xlu2 %5108  ;;  %v4726_v23 = vmul.f32 1.442695, %v4475_v26 }
 0x983   : > { %11649 = vpow2.f32 %v4726_v23 }
 0x986   : > { %5219 = vperm.xlu1 %11396, %v15994_v14   ;;  %v16012_v14 = vpop.eup %11645  ;;  %v16024_v26 = vpop.permute.xlu0 %5132 }
 0x987   : > { %5216 = vperm.xlu2 %11395, %v15996_v13   ;;  %19866 = vst [vmem:[#allocation168_spill] sm:$0xff] %v16012_v14  ;;  %v4478_v13 = vsub.f32 %v19869_v43, %v15805_v11 }
 0x988   : > { %v16004_v27 = vpop.permute.xlu1 %5093  ;;  %19871 = vst [vmem:[#allocation133_spill] sm:$0xff] %v16024_v26  ;;  %v5249_v26 = vperm.slane %v15455_v40, %v14657_v58  ;;  %v5253_v40 = vperm.slane %v15479_v54, %v14679_v28  ;;  %v5257_v54 = vperm.slane %v15500_v0, %v14676_v7  ;;  %v5288_v0 = vperm.slane %v15591_v39, %v14676_v7 }
 0x989   : > { %19862 = vst [vmem:[#allocation127_spill] sm:$0xff] %v16004_v27  ;;  %v16008_v5 = vpop.permute.xlu2 %5117  ;;  %v4734_v27 = vmul.f32 1.442695, %v4479_v25  ;;  %v4732_v44 = vmul.f32 1.442695, %v4478_v13 }
 0x98a   : > { %19864 = vst [vmem:[#allocation111_spill] sm:$0xff] %v16008_v5  ;;  %v16026_v5 = vpop.eup %11647 }
 0x98b   : > { %19872 = vst [vmem:[#allocation115_spill] sm:$0xff] %v16026_v5  ;;  %11651 = vpow2.f32 %v4734_v27 }
 0x98c   : > { %11653 = vpow2.f32 %v4732_v44 }
 0x98e   : > { %5228 = vperm.xlu1 %11396, %v16010_v50   ;;  %v16028_v50 = vpop.eup %11649  ;;  %v16036_v11 = vpop.permute.xlu0 %5141 }
 0x98f   : > { %5225 = vperm.xlu2 %11395, %v16012_v14   ;;  %19873 = vst [vmem:[#allocation172_spill] sm:$0xff] %v16028_v50 }
 0x990   : > { %v16018_v56 = vpop.permute.xlu1 %5102  ;;  %19875 = vst [vmem:[#allocation117_spill] sm:$0xff] %v16036_v11 }
 0x991   : > { %19868 = vst [vmem:[#allocation113_spill] sm:$0xff] %v16018_v56  ;;  %v16022_v41 = vpop.permute.xlu2 %5126  ;;  %v16038_v47 = vpop.eup %11651 }
 0x992   : > { %19870 = vst [vmem:[#allocation144_spill] sm:$0xff] %v16022_v41  ;;  %v16040_v25 = vpop.eup %11653 }
 0x993   : > { %19876 = vst [vmem:[#allocation65_spill] sm:$0xff] %v16038_v47 }
 0x994   : > { %19877 = vst [vmem:[#allocation139_spill] sm:$0xff] %v16040_v25 }
 0x996   : > { %5237 = vperm.xlu1 %11396, %v16026_v5   ;;  %v16048_v27 = vpop.permute.xlu0 %5150 }
 0x997   : > { %5234 = vperm.xlu2 %11395, %v16028_v50   ;;  %19879 = vst [vmem:[#allocation142_spill] sm:$0xff] %v16048_v27  ;;  %v5279_v27 = vperm.slane %v15608_v57, %v14652_v37 }
 0x998   : > { %v16032_v29 = vpop.permute.xlu1 %5111 }
 0x999   : > { %v16034_v23 = vpop.permute.xlu2 %5135 }
 0x99a   : > { %19874 = vst [vmem:[#allocation136_spill] sm:$0xff] %v16034_v23 }
 0x99e   : > { %5246 = vperm.xlu1 %11396, %v16038_v47   ;;  %v16054_v5 = vpop.permute.xlu0 %5159 }
 0x99f   : > { %5243 = vperm.xlu2 %11395, %v16040_v25  }
 0x9a0   : > { %v16044_v13 = vpop.permute.xlu1 %5120 }
 0x9a1   : > { %v16046_v43 = vpop.permute.xlu2 %5144 }
 0x9a2   : > { %19878 = vst [vmem:[#allocation119_spill] sm:$0xff] %v16046_v43 }
 0x9a6   : > { %v16062_v47 = vpop.permute.xlu0 %5168 }
 0x9a7   : > { %19883 = vst [vmem:[#allocation147_spill] sm:$0xff] %v16062_v47 }
 0x9a8   : > { %v16050_v50 = vpop.permute.xlu1 %5129 }
 0x9a9   : > { %19880 = vst [vmem:[#allocation122_spill] sm:$0xff] %v16050_v50  ;;  %v16052_v44 = vpop.permute.xlu2 %5153 }
 0x9ae   : > { %v16068_v43 = vpop.permute.xlu0 %5177 }
 0x9af   : > { %19885 = vst [vmem:[#allocation150_spill] sm:$0xff] %v16068_v43  ;;  %v5284_v43 = vperm.slane %v15629_v32, %v14679_v28  ;;  %v5286_v32 = vperm.slane %v15496_v49, %v14673_v35 }
 0x9b0   : > { %v16056_v14 = vpop.permute.xlu1 %5138 }
 0x9b1   : > { %19881 = vst [vmem:[#allocation181_spill] sm:$0xff] %v16056_v14  ;;  %v16058_v56 = vpop.permute.xlu2 %5162  ;;  %v5280_v14 = vperm.slane %v15475_v60, %v14657_v58  ;;  %v5282_v60 = vperm.slane %v15567_v21, %v14660_v2  ;;  %v5255_v21 = vperm.slane %v15438_v22, %v14673_v35 }
 0x9b8   : > { %v16060_v11 = vpop.permute.xlu1 %5147 }
 0x9b9   : > { %19882 = vst [vmem:[#allocation125_spill] sm:$0xff] %v16060_v11  ;;  %v16064_v25 = vpop.permute.xlu2 %5171  ;;  %v5248_v11 = vperm.slane %v15404_v10, %v14652_v37 }
 0x9ba   : > { %19884 = vst [vmem:[#allocation128_spill] sm:$0xff] %v16064_v25  ;;  %v5281_v25 = vsel %vm4043_vm0, %v5280_v14, %v5279_v27 }
 0x9bb   : > { %v5250_v57 = vsel %vm4043_vm0, %v5249_v26, %v5248_v11  ;;  %v5283_v10 = vsel %vm4047_vm1, %v5282_v60, %v5281_v25  ;;  %v16100_v26 = vpop.permute.xlu0 %5186  ;;  %v5311_v11 = vperm.slane %v15675_v6, %v14657_v58  ;;  %v5313_v25 = vperm.slane %v15735_v30, %v14660_v2 }
 0x9bc   : > { %v5285_v14 = vsel %vm4051_vm2, %v5284_v43, %v5283_v10  ;;  %v5310_v6 = vperm.slane %v15583_v59, %v14652_v37  ;;  %v5292_v30 = vperm.slane %v15517_v17, %v14708_v62  ;;  %v5265_v59 = vperm.slane %v15542_v33, %v14734_v12 }
 0x9bd   : > { %v5296_v17 = vperm.slane %v15671_v4, %v14734_v12  ;;  %v5269_v4 = vperm.slane %v15563_v55, %v14691_v45  ;;  %v5321_v55 = vperm.slane %v15625_v48, %v14729_v63  ;;  %v5342_v48 = vperm.slane %v15841_v31, %v14657_v58 }
 0x9be   : > { %v5312_v60 = vsel %vm4043_vm0, %v5311_v11, %v5310_v6  ;;  %v5271_v6 = vperm.slane %v15451_v42, %v14740_v52  ;;  %v19893_v42 = vld [vmem:[#allocation57_spill] sm:$0xff] }
 0x9c0   : > { %v16066_v23 = vpop.permute.xlu1 %5156 }
 0x9c1   : > { %v16076_v41 = vpop.permute.xlu2 %5180 }
 0x9c2   : > { %19886 = vst [vmem:[#allocation131_spill] sm:$0xff] %v16076_v41  ;;  %v5251_v41 = vperm.slane %v15421_v20, %v14660_v2  ;;  %v5287_v20 = vsel %vm4055_vm3, %v5286_v32, %v5285_v14  ;;  %v5314_v14 = vsel %vm4047_vm1, %v5313_v25, %v5312_v60  ;;  %v19892_v60 = vld [vmem:[#allocation170_spill] sm:$0xff] }
 0x9c3   : > { %v16147_v33 = vpop.permute.xlu0 %5195 }
 0x9c4   : > { %v5252_v47 = vsel %vm4047_vm1, %v5251_v41, %v5250_v57  ;;  %v5290_v41 = vperm.slane %v15650_v9, %v14729_v63  ;;  %v5261_v9 = vperm.slane %v15521_v46, %v14708_v62  ;;  %v5259_v57 = vperm.slane %v15459_v19, %v14729_v63 }
 0x9c5   : > { %v5254_v27 = vsel %vm4051_vm2, %v5253_v40, %v5252_v47  ;;  %v5289_v40 = vsel %vm4059_vm4, %v5288_v0, %v5287_v20  ;;  %v5315_v19 = vperm.slane %v15604_v34, %v14679_v28  ;;  %v5319_v20 = vperm.slane %v15756_v36, %v14676_v7 }
 0x9c6   : > { %v5256_v49 = vsel %vm4055_vm3, %v5255_v21, %v5254_v27  ;;  %v5291_v39 = vsel %vm4063_vm5, %v5290_v41, %v5289_v40  ;;  %v5263_v27 = vperm.slane %v15483_v1, %v14685_v51  ;;  %v5317_v1 = vperm.slane %v15696_v61, %v14673_v35 }
 0x9c7   : > { %v5258_v22 = vsel %vm4059_vm4, %v5257_v54, %v5256_v49  ;;  %v5293_v32 = vsel %vm19888_vm15, %v5292_v30, %v5291_v39  ;;  %v5294_v54 = vperm.slane %v15612_v38, %v14685_v51  ;;  %v5316_v21 = vsel %vm4051_vm2, %v5315_v19, %v5314_v14 }
 0x9c8   : > { %v16080_v50 = vpop.permute.xlu1 %5165  ;;  %v5260_v10 = vsel %vm4063_vm5, %v5259_v57, %v5258_v22  ;;  %v5267_v49 = vperm.slane %v15504_v16, %v14716_v3  ;;  %v5318_v0 = vsel %vm4055_vm3, %v5317_v1, %v5316_v21  ;;  %v5298_v22 = vperm.slane %v15538_v24, %v14716_v3  ;;  %v19903_v1 = vld [vmem:[#allocation218_spill] sm:$0xff] }
 0x9c9   : > { %v16116_v43 = vpop.permute.xlu2 %5189  ;;  %v5262_v46 = vsel %vm19887_vm6, %v5261_v9, %v5260_v10  ;;  %v5295_v38 = vsel %vm4071_vm7, %v5294_v54, %v5293_v32  ;;  %v5320_v61 = vsel %vm4059_vm4, %v5319_v20, %v5318_v0  ;;  %vm19889_vm6 = vcmask 720512   ;;  %v19900_v54 = vld [vmem:[#allocation83_spill] sm:$0xff] }
 0x9ca   : > { %v5264_v34 = vsel %vm4071_vm7, %v5263_v27, %v5262_v46  ;;  %v5297_v36 = vsel %vm4075_vm8, %v5296_v17, %v5295_v38  ;;  %vm19890_vm15 = vcmask 786112   ;;  %vm19891_vm9 = vmmov %vm19889_vm6  ;;  %v5302_v40 = vperm.slane %v15692_v15, %v14740_v52  ;;  %v19896_v15 = vld [vmem:[#allocation71_spill] sm:$0xff]  ;;  %v19899_v17 = vld [vmem:[#allocation253_spill] sm:$0xff] }
 0x9cb   : > { %v5266_v11 = vsel %vm4075_vm8, %v5265_v59, %v5264_v34  ;;  %v5299_v57 = vsel %vm19891_vm9, %v5298_v22, %v5297_v36  ;;  %v5300_v24 = vperm.slane %v15633_v8, %v14691_v45  ;;  %v5322_v39 = vsel %vm4063_vm5, %v5321_v55, %v5320_v61  ;;  %v19895_v59 = vld [vmem:[#allocation252_spill] sm:$0xff]  ;;  %v19898_v27 = vld [vmem:[#allocation63_spill] sm:$0xff]  ;;  %v16197_v34 = vpop.permute.xlu0 %5204  ;;  %v19905_v36 = vld [vmem:[#allocation238_spill] sm:$0xff] }
 0x9cc   : > { %v5268_v9 = vsel %vm19889_vm6, %v5267_v49, %v5266_v11  ;;  %v5325_v30 = vperm.slane %v19892_v60, %v14685_v51  ;;  %v5323_v10 = vperm.slane %v19893_v42, %v14708_v62  ;;  %vm19894_vm9 = vcmask 851712   ;;  %vm19897_vm6 = vmmov %vm19890_vm15  ;;  %v19904_v49 = vld [vmem:[#allocation69_spill] sm:$0xff]  ;;  %v19906_v61 = vld [vmem:[#allocation55_spill] sm:$0xff] }
 0x9cd   : > { %v5270_v16 = vsel %vm19890_vm15, %v5269_v4, %v5268_v9  ;;  %v5275_v19 = vperm.slane %v19896_v15, %v19895_v59  ;;  %v5301_v8 = vsel %vm19897_vm6, %v5300_v24, %v5299_v57  ;;  %v5341_v32 = vperm.slane %v19898_v27, %v14652_v37  ;;  %vm19901_vm15 = vmmov %vm19894_vm9  ;;  %v19907_v55 = vld [vmem:[#allocation187_spill] sm:$0xff]  ;;  %v19908_v57 = vld [vmem:[#allocation180_spill] sm:$0xff] }
 0x9ce   : > { %v5272_v46 = vsel %vm19894_vm9, %v5271_v6, %v5270_v16  ;;  %v5273_v21 = vperm.slane %v19900_v54, %v19899_v17  ;;  %v5303_v31 = vsel %vm19901_vm15, %v5302_v40, %v5301_v8  ;;  %v5324_v20 = vsel %vm19902_vm11, %v5323_v10, %v5322_v39  ;;  %v19909_v39 = vld [vmem:[#allocation166_spill] sm:$0xff]  ;;  %v19911_v15 = vld [vmem:[#allocation79_spill] sm:$0xff]  ;;  %v19912_v8 = vld [vmem:[#allocation189_spill] sm:$0xff] }
 0x9cf   : > { %v5304_v11 = vperm.slane %v19903_v1, %v19899_v17  ;;  %v5326_v4 = vsel %vm4071_vm7, %v5325_v30, %v5324_v20  ;;  %v5343_v38 = vsel %vm4043_vm0, %v5342_v48, %v5341_v32  ;;  %v5277_v0 = vperm.slane %v19905_v36, %v19904_v49  ;;  %v19910_v42 = vld [vmem:[#allocation178_spill] sm:$0xff]  ;;  %v19913_v32 = vld [vmem:[#allocation149_spill] sm:$0xff]  ;;  %vm19918_vm9 = vmmov %vm19897_vm6 }
 0x9d0   : > { %v16109_v47 = vpop.permute.xlu1 %5174  ;;  %v5274_v22 = vsel %vm4091_vm12, %v5273_v21, %v5272_v46  ;;  %v5327_v9 = vperm.slane %v19906_v61, %v14734_v12  ;;  %v5344_v6 = vperm.slane %v19907_v55, %v14660_v2  ;;  %v5306_v40 = vperm.slane %v19908_v57, %v19895_v59  ;;  %v19915_v1 = vld [vmem:[#allocation66_spill] sm:$0xff]  ;;  %vm19924_vm6 = vmmov %vm19901_vm15 }
 0x9d1   : > { %v16162_v25 = vpop.permute.xlu2 %5198  ;;  %v5276_v16 = vsel %vm4095_vm13, %v5275_v19, %v5274_v22  ;;  %v5305_v24 = vsel %vm4091_vm12, %v5304_v11, %v5303_v31  ;;  %v5308_v60 = vperm.slane %v19909_v39, %v19904_v49  ;;  %v5331_v10 = vperm.slane %v19910_v42, %v14691_v45  ;;  %v19914_v31 = vld [vmem:[#allocation56_spill] sm:$0xff]  ;;  %v19916_v22 = vld [vmem:[#allocation165_spill] sm:$0xff]  ;;  %v19920_v39 = vld [vmem:[#allocation59_spill] sm:$0xff] }
 0x9d2   : > { %v5328_v48 = vsel %vm4075_vm8, %v5327_v9, %v5326_v4  ;;  %v5345_v46 = vsel %vm4047_vm1, %v5344_v6, %v5343_v38  ;;  %v5348_v19 = vperm.slane %v19911_v15, %v14673_v35  ;;  %v5329_v27 = vperm.slane %v19912_v8, %v14716_v3 }
 0x9d3   : > { %v5346_v54 = vperm.slane %v19913_v32, %v14679_v28  ;;  %v16229_v21 = vsel %vm4099_vm14, %v5277_v0, %v5276_v16  ;;  %v5333_v20 = vperm.slane %v19914_v31, %v14740_v52  ;;  %v5339_v11 = vperm.slane %v19915_v1, %v19904_v49 }
 0x9d4   : > { %v5307_v4 = vsel %vm4095_vm13, %v5306_v40, %v5305_v24  ;;  %v5350_v61 = vperm.slane %v19916_v22, %v14676_v7  ;;  %vm19917_vm11 = vcmask 720512   ;;  %v5372_v16 = vperm.slane %v15940_v53, %v14652_v37  ;;  %v19919_v40 = vld [vmem:[#allocation74_spill] sm:$0xff]  ;;  %v19923_v53 = vld [vmem:[#allocation88_spill] sm:$0xff] }
 0x9d5   : > { %v16237_v36 = vsel %vm4099_vm14, %v5308_v60, %v5307_v4  ;;  %v5330_v9 = vsel %vm19917_vm11, %v5329_v27, %v5328_v48  ;;  %v5347_v0 = vsel %vm4051_vm2, %v5346_v54, %v5345_v46  ;;  %v5435_v57 = vperm.slane %v16066_v23, %v14657_v58  ;;  %v19921_v48 = vld [vmem:[#allocation194_spill] sm:$0xff]  ;;  %v19922_v46 = vld [vmem:[#allocation196_spill] sm:$0xff]  ;;  %v5214_v27 = vpop.permute.xlu0 %5213  ;;  %v19925_v54 = vld [vmem:[#allocation183_spill] sm:$0xff] }
 0x9d6   : > { %v5332_v55 = vsel %vm19918_vm9, %v5331_v10, %v5330_v9  ;;  %v5349_v6 = vsel %vm4055_vm3, %v5348_v19, %v5347_v0  ;;  %v5356_v24 = vperm.slane %v19919_v40, %v14685_v51  ;;  %v5335_v60 = vperm.slane %v19920_v39, %v19899_v17  ;;  %v19926_v4 = vld [vmem:[#allocation156_spill] sm:$0xff]  ;;  %v19927_v9 = vld [vmem:[#allocation98_spill] sm:$0xff] }
 0x9d7   : > { %v5362_v42 = vperm.slane %v19921_v48, %v14691_v45  ;;  %v5404_v10 = vperm.slane %v15992_v18, %v14657_v58  ;;  %v5368_v15 = vperm.slane %v19922_v46, %v19895_v59  ;;  %v5373_v19 = vperm.slane %v19923_v53, %v14657_v58  ;;  %v19977_v46 = vld [vmem:[#allocation202_spill] sm:$0xff] }
 0x9d8   : > { %v16149_v41 = vpop.permute.xlu1 %5183  ;;  %v5406_v23 = vperm.slane %v16032_v29, %v14660_v2  ;;  %v5434_v8 = vperm.slane %v16052_v44, %v14652_v37  ;;  %v5334_v32 = vsel %vm19924_vm6, %v5333_v20, %v5332_v55  ;;  %v5352_v31 = vperm.slane %v19925_v54, %v14729_v63  ;;  %v19928_v29 = vld [vmem:[#allocation101_spill] sm:$0xff]  ;;  %v19929_v20 = vld [vmem:[#allocation204_spill] sm:$0xff] }
 0x9d9   : > { %v16216_v30 = vpop.permute.xlu2 %5207  ;;  %v5351_v18 = vsel %vm4059_vm4, %v5350_v61, %v5349_v6  ;;  %v5403_v22 = vperm.slane %v19926_v4, %v14652_v37  ;;  %v5354_v0 = vperm.slane %v19927_v9, %v14708_v62  ;;  %v5374_v40 = vsel %vm4043_vm0, %v5373_v19, %v5372_v16  ;;  %v19930_v19 = vld [vmem:[#allocation107_spill] sm:$0xff] }
 0x9da   : > { %v5377_v39 = vperm.slane %v19928_v29, %v14679_v28  ;;  %v5436_v44 = vsel %vm4043_vm0, %v5435_v57, %v5434_v8  ;;  %v5375_v55 = vperm.slane %v19929_v20, %v14660_v2  ;;  %v5437_v61 = vperm.slane %v16054_v5, %v14660_v2 }
 0x9db   : > { %v5405_v53 = vsel %vm4043_vm0, %v5404_v10, %v5403_v22  ;;  %v16286_v4 = vsel %vm4091_vm12, %v5335_v60, %v5334_v32  ;;  %v5353_v16 = vsel %vm4063_vm5, %v5352_v31, %v5351_v18  ;;  %v5408_v57 = vperm.slane %v19930_v19, %v14679_v28  ;;  %v19931_v60 = vld [vmem:[#allocation143_spill] sm:$0xff]  ;;  %v19936_v19 = vld [vmem:[#allocation120_spill] sm:$0xff] }
 0x9dc   : > { %v5407_v8 = vsel %vm4047_vm1, %v5406_v23, %v5405_v53  ;;  %v5376_v10 = vsel %vm4047_vm1, %v5375_v55, %v5374_v40  ;;  %v5466_v5 = vperm.slane %v16197_v34, %v14657_v58  ;;  %v5438_v22 = vsel %vm4047_vm1, %v5437_v61, %v5436_v44  ;;  %v19934_v55 = vld [vmem:[#allocation111_spill] sm:$0xff] }
 0x9dd   : > { %v5379_v32 = vperm.slane %v19931_v60, %v14673_v35  ;;  %vm19932_vm15 = vcmask 523712   ;;  %v5378_v18 = vsel %vm4051_vm2, %v5377_v39, %v5376_v10  ;;  %v5439_v23 = vperm.slane %v16058_v56, %v14679_v28  ;;  %v19939_v60 = vld [vmem:[#allocation160_spill] sm:$0xff] }
 0x9de   : > { %v5355_v31 = vsel %vm19932_vm15, %v5354_v0, %v5353_v16  ;;  %v5409_v40 = vsel %vm4051_vm2, %v5408_v57, %v5407_v8  ;;  %v5412_v34 = vperm.slane %v16044_v13, %v14676_v7  ;;  %v5410_v0 = vperm.slane %v19934_v55, %v14673_v35  ;;  %v19935_v13 = vld [vmem:[#allocation118_spill] sm:$0xff]  ;;  %v19937_v8 = vld [vmem:[#allocation147_spill] sm:$0xff]  ;;  %vm19945_vm9 = vmmov %vm19932_vm15 }
 0x9df   : > { %v5440_v39 = vsel %vm4051_vm2, %v5439_v23, %v5438_v22  ;;  %v5468_v56 = vperm.slane %v16216_v30, %v14660_v2  ;;  %v5357_v53 = vsel %vm4071_vm7, %v5356_v24, %v5355_v31  ;;  %v5380_v61 = vsel %vm4055_vm3, %v5379_v32, %v5378_v18  ;;  %v19938_v24 = vld [vmem:[#allocation89_spill] sm:$0xff]  ;;  %v19940_v55 = vld [vmem:[#allocation87_spill] sm:$0xff]  ;;  %vm19947_vm6 = vmmov %vm19945_vm9 }
 0x9e0   : > { %v16185_v14 = vpop.permute.xlu1 %5192  ;;  %v5381_v57 = vperm.slane %v19936_v19, %v14676_v7  ;;  %v5411_v10 = vsel %vm4055_vm3, %v5410_v0, %v5409_v40  ;;  %v5360_v22 = vperm.slane %v19938_v24, %v14716_v3  ;;  %v5414_v32 = vperm.slane %v19939_v60, %v14729_v63  ;;  %vm19950_vm15 = vmmov %vm19947_vm6 }
 0x9e1   : > { %v16282_v6 = vpop.permute.xlu2 %5216  ;;  %v5413_v31 = vsel %vm4059_vm4, %v5412_v34, %v5411_v10  ;;  %v5472_v23 = vperm.slane %v5214_v27, %v14673_v35  ;;  %v5447_v40 = vperm.slane %v16109_v47, %v14708_v62  ;;  %v5385_v0 = vperm.slane %v19940_v55, %v14708_v62  ;;  %v19952_v55 = vld [vmem:[#allocation133_spill] sm:$0xff] }
 0x9e2   : > { %v5382_v18 = vsel %vm4059_vm4, %v5381_v57, %v5380_v61  ;;  %v5415_v27 = vsel %vm4063_vm5, %v5414_v32, %v5413_v31  ;;  %v19946_v32 = vld [vmem:[#allocation138_spill] sm:$0xff] }
 0x9e3   : > { %v5389_v31 = vperm.slane %v19946_v32, %v14734_v12  ;;  %v19959_v32 = vld [vmem:[#allocation136_spill] sm:$0xff] }
 0x9e8   : > { %v5202_v38 = vpop.permute.xlu1 %5201 }
 0x9e9   : > { %v5465_v54 = vperm.slane %v5202_v38, %v14652_v37  ;;  %v5441_v38 = vperm.slane %v16080_v50, %v14673_v35  ;;  %v19933_v50 = vld [vmem:[#allocation198_spill] sm:$0xff]  ;;  %v5226_v61 = vpop.permute.xlu2 %5225 }
 0x9ea   : > { %v5358_v20 = vperm.slane %v19933_v50, %v14734_v12 }
 0x9eb   : > { %v5467_v29 = vsel %vm4043_vm0, %v5466_v5, %v5465_v54  ;;  %v5383_v54 = vperm.slane %v19935_v13, %v14729_v63  ;;  %v5442_v16 = vsel %vm4055_vm3, %v5441_v38, %v5440_v39  ;;  %v5223_v5 = vpop.permute.xlu0 %5222  ;;  %v19941_v39 = vld [vmem:[#allocation200_spill] sm:$0xff] }
 0x9ec   : > { %v5469_v30 = vsel %vm4047_vm1, %v5468_v56, %v5467_v29  ;;  %v5364_v56 = vperm.slane %v19941_v39, %v14740_v52 }
 0x9ed   : > { %v5384_v34 = vsel %vm4063_vm5, %v5383_v54, %v5382_v18  ;;  %v19948_v18 = vld [vmem:[#allocation112_spill] sm:$0xff] }
 0x9ee   : > { %v5386_v60 = vsel %vm19945_vm9, %v5385_v0, %v5384_v34  ;;  %v5420_v0 = vperm.slane %v19952_v55, %v14734_v12  ;;  %vm19957_vm9 = vmmov %vm19947_vm6  ;;  %v19964_v55 = vld [vmem:[#allocation129_spill] sm:$0xff] }
 0x9f0   : > { %v5211_v9 = vpop.permute.xlu1 %5210 }
 0x9f1   : > { %v5470_v44 = vperm.slane %v5211_v9, %v14679_v28  ;;  %v5443_v9 = vperm.slane %v19937_v8, %v14676_v7  ;;  %v5359_v8 = vsel %vm4075_vm8, %v5358_v20, %v5357_v53  ;;  %v5387_v20 = vperm.slane %v19948_v18, %v14685_v51  ;;  %v19949_v53 = vld [vmem:[#allocation150_spill] sm:$0xff] }
 0x9f2   : > { %v5361_v24 = vsel %vm19917_vm11, %v5360_v22, %v5359_v8  ;;  %vm19953_vm11 = vcmask 786112   ;;  %v5480_v18 = vperm.slane %v5226_v61, %v14685_v51 }
 0x9f3   : > { %v5471_v38 = vsel %vm4051_vm2, %v5470_v44, %v5469_v30  ;;  %v5444_v50 = vsel %vm4059_vm4, %v5443_v9, %v5442_v16  ;;  %v19942_v44 = vld [vmem:[#allocation128_spill] sm:$0xff]  ;;  %v19943_v16 = vld [vmem:[#allocation122_spill] sm:$0xff]  ;;  %v5474_v30 = vperm.slane %v16282_v6, %v14676_v7  ;;  %v19951_v6 = vld [vmem:[#allocation93_spill] sm:$0xff]  ;;  %v5388_v34 = vsel %vm4071_vm7, %v5387_v20, %v5386_v60 }
 0x9f4   : > { %v5445_v13 = vperm.slane %v19942_v44, %v14729_v63  ;;  %v5418_v19 = vperm.slane %v19943_v16, %v14685_v51  ;;  %v5473_v47 = vsel %vm4055_vm3, %v5472_v23, %v5471_v38  ;;  %v19944_v9 = vld [vmem:[#allocation144_spill] sm:$0xff]  ;;  %v5449_v23 = vperm.slane %v19949_v53, %v14685_v51 }
 0x9f5   : > { %v5416_v10 = vperm.slane %v19944_v9, %v14708_v62  ;;  %v5391_v22 = vperm.slane %v19951_v6, %v14716_v3  ;;  %v5478_v44 = vperm.slane %v5223_v5, %v14708_v62  ;;  %v5363_v16 = vsel %vm19953_vm11, %v5362_v42, %v5361_v24  ;;  %v19958_v42 = vld [vmem:[#allocation84_spill] sm:$0xff]  ;;  %v5235_v6 = vpop.permute.xlu2 %5234 }
 0x9f6   : > { %v5446_v54 = vsel %vm4063_vm5, %v5445_v13, %v5444_v50  ;;  %v5337_v24 = vperm.slane %v19958_v42, %v19895_v59 }
 0x9f7   : > { %v5448_v38 = vsel %vm19947_vm6, %v5447_v40, %v5446_v54  ;;  %v5417_v50 = vsel %vm19950_vm15, %v5416_v10, %v5415_v27  ;;  %v5453_v27 = vperm.slane %v16149_v41, %v14716_v3  ;;  %v5232_v10 = vpop.permute.xlu0 %5231  ;;  %vm19960_vm6 = vcmask 851712  }
 0x9f8   : > { %v5220_v29 = vpop.permute.xlu1 %5219  ;;  %v5419_v39 = vsel %vm4071_vm7, %v5418_v19, %v5417_v50  ;;  %v5450_v13 = vsel %vm4071_vm7, %v5449_v23, %v5448_v38  ;;  %v5390_v19 = vsel %vm4075_vm8, %v5389_v31, %v5388_v34  ;;  %v5422_v31 = vperm.slane %v19959_v32, %v14716_v3  ;;  %v19962_v23 = vld [vmem:[#allocation127_spill] sm:$0xff] }
 0x9f9   : > { %v5476_v57 = vperm.slane %v5220_v29, %v14729_v63  ;;  %v5475_v29 = vsel %vm4059_vm4, %v5474_v30, %v5473_v47  ;;  %v19954_v47 = vld [vmem:[#allocation95_spill] sm:$0xff]  ;;  %v5421_v54 = vsel %vm4075_vm8, %v5420_v0, %v5419_v39  ;;  %v19956_v30 = vld [vmem:[#allocation181_spill] sm:$0xff]  ;;  %v5365_v20 = vsel %vm19960_vm6, %v5364_v56, %v5363_v16 }
 0x9fa   : > { %v5366_v8 = vperm.slane %v19954_v47, %v19899_v17  ;;  %v5424_v41 = vperm.slane %v19956_v30, %v14691_v45  ;;  %vm19961_vm15 = vcmask 720512   ;;  %v5395_v50 = vperm.slane %v19962_v23, %v14740_v52 }
 0x9fb   : > { %v5477_v40 = vsel %vm4063_vm5, %v5476_v57, %v5475_v29  ;;  %v19955_v57 = vld [vmem:[#allocation131_spill] sm:$0xff]  ;;  %v5392_v53 = vsel %vm19961_vm15, %v5391_v22, %v5390_v19  ;;  %vm19963_vm11 = vmmov %vm19961_vm15  ;;  %v5393_v0 = vperm.slane %v19964_v55, %v14691_v45  ;;  %v5455_v39 = vperm.slane %v16100_v26, %v14691_v45  ;;  %v19966_v22 = vld [vmem:[#allocation117_spill] sm:$0xff] }
 0x9fc   : > { %v5451_v9 = vperm.slane %v19955_v57, %v14734_v12  ;;  %v5479_v60 = vsel %vm19957_vm9, %v5478_v44, %v5477_v40  ;;  %vm19965_vm9 = vmmov %vm19963_vm11  ;;  %v5367_v56 = vsel %vm4091_vm12, %v5366_v8, %v5365_v20  ;;  %v5426_v34 = vperm.slane %v19966_v22, %v14740_v52  ;;  %v19970_v8 = vld [vmem:[#allocation99_spill] sm:$0xff] }
 0x9fd   : > { %v5423_v40 = vsel %vm19965_vm9, %v5422_v31, %v5421_v54  ;;  %v5481_v61 = vsel %vm4071_vm7, %v5480_v18, %v5479_v60  ;;  %vm19967_vm6 = vcmask 786112   ;;  %v5484_v16 = vperm.slane %v5232_v10, %v14716_v3  ;;  %v19975_v60 = vld [vmem:[#allocation119_spill] sm:$0xff]  ;;  %v19978_v31 = vld [vmem:[#allocation113_spill] sm:$0xff] }
 0x9fe   : > { %v5452_v38 = vsel %vm4075_vm8, %v5451_v9, %v5450_v13  ;;  %v5425_v44 = vsel %vm19967_vm6, %v5424_v41, %v5423_v40  ;;  %vm19968_vm15 = vmmov %vm19967_vm6  ;;  %v5459_v26 = vperm.slane %v16185_v14, %v19899_v17  ;;  %v5338_v19 = vsel %vm4095_vm13, %v5337_v24, %v16286_v4  ;;  %v19973_v14 = vld [vmem:[#allocation125_spill] sm:$0xff] }
 0x9ff   : > { %v5454_v29 = vsel %vm19963_vm11, %v5453_v27, %v5452_v38  ;;  %v5394_v27 = vsel %vm19968_vm15, %v5393_v0, %v5392_v53  ;;  %vm19969_vm11 = vmmov %vm19967_vm6  ;;  %v5397_v57 = vperm.slane %v19970_v8, %v19899_v17  ;;  %vm19971_vm9 = vcmask 851712   ;;  %v5241_v18 = vpop.permute.xlu0 %5240  ;;  %v19979_v53 = vld [vmem:[#allocation105_spill] sm:$0xff] }
 0xa00   : > { %v5229_v5 = vpop.permute.xlu1 %5228  ;;  %v5456_v47 = vsel %vm19969_vm11, %v5455_v39, %v5454_v29  ;;  %v5396_v9 = vsel %vm19971_vm9, %v5395_v50, %v5394_v27  ;;  %v5369_v10 = vsel %vm4095_vm13, %v5368_v15, %v5367_v56  ;;  %vm19972_vm6 = vmmov %vm19971_vm9  ;;  %v5430_v30 = vperm.slane %v19973_v14, %v19895_v59 }
 0xa01   : > { %v5482_v48 = vperm.slane %v5229_v5, %v14734_v12  ;;  %v5457_v5 = vperm.slane %v16116_v43, %v14740_v52  ;;  %v5427_v54 = vsel %vm19972_vm6, %v5426_v34, %v5425_v44  ;;  %vm19974_vm15 = vcmask 720512   ;;  %vm19976_vm11 = vmmov %vm19972_vm6  ;;  %v5244_v34 = vpop.permute.xlu2 %5243 }
 0xa02   : > { %v5486_v43 = vperm.slane %v5235_v6, %v14691_v45  ;;  %v5370_v15 = vperm.slane %v19977_v46, %v19904_v49  ;;  %v5398_v32 = vsel %vm4091_vm12, %v5397_v57, %v5396_v9  ;;  %v5401_v38 = vperm.slane %v19978_v31, %v19904_v49 }
 0xa03   : > { %v5483_v13 = vsel %vm4075_vm8, %v5482_v48, %v5481_v61  ;;  %v5428_v48 = vperm.slane %v19975_v60, %v19899_v17  ;;  %v5458_v42 = vsel %vm19976_vm11, %v5457_v5, %v5456_v47  ;;  %v5399_v23 = vperm.slane %v19979_v53, %v19895_v59  ;;  %v19981_v61 = vld [vmem:[#allocation142_spill] sm:$0xff]  ;;  %v19988_v60 = vld [vmem:[#allocation157_spill] sm:$0xff] }
 0xa04   : > { %v5485_v4 = vsel %vm19974_vm15, %v5484_v16, %v5483_v13  ;;  %v5460_v20 = vsel %vm4091_vm12, %v5459_v26, %v5458_v42  ;;  %v5461_v50 = vperm.slane %v16147_v33, %v19895_v59  ;;  %vm19980_vm9 = vcmask 786112   ;;  %v19990_v42 = vld [vmem:[#allocation86_spill] sm:$0xff] }
 0xa05   : > { %v5429_v29 = vsel %vm4091_vm12, %v5428_v48, %v5427_v54  ;;  %v5487_v6 = vsel %vm19980_vm9, %v5486_v43, %v5485_v4  ;;  %v5340_v55 = vsel %vm4099_vm14, %v5339_v11, %v5338_v19  ;;  %v5371_v0 = vsel %vm4099_vm14, %v5370_v15, %v5369_v10  ;;  %v19993_v15 = vld [vmem:[#allocation100_spill] sm:$0xff] }
 0xa06   : > { %v5431_v39 = vsel %vm4095_vm13, %v5430_v30, %v5429_v29  ;;  %v5432_v56 = vperm.slane %v19981_v61, %v19904_v49  ;;  %v5400_v33 = vsel %vm4095_vm13, %v5399_v23, %v5398_v32  ;;  %v5490_v22 = vperm.slane %v5241_v18, %v19899_v17  ;;  %v19996_v23 = vld [vmem:[#allocation75_spill] sm:$0xff] }
 0xa07   : > { %v5462_v44 = vsel %vm4095_vm13, %v5461_v50, %v5460_v20  ;;  %vm19982_vm15 = vcmask 1041409   ;;  %v5402_v11 = vsel %vm4099_vm14, %v5401_v38, %v5400_v33  ;;  %v5463_v13 = vperm.slane %v16162_v25, %v19904_v49  ;;  %v19995_v20 = vld [vmem:[#allocation81_spill] sm:$0xff] }
 0xa08   : > { %v5238_v41 = vpop.permute.xlu1 %5237  ;;  %v5496_v1 = vsel %vm19982_vm15, %v16237_v36, %v16229_v21  ;;  %vm19983_vm11 = vcmask 1042434   ;;  %v5433_v16 = vsel %vm4099_vm14, %v5432_v56, %v5431_v39  ;;  %v5492_v26 = vperm.slane %v5244_v34, %v19895_v59 }
 0xa09   : > { %v5488_v24 = vperm.slane %v5238_v41, %v14740_v52  ;;  %v5497_v27 = vsel %vm19983_vm11, %v5340_v55, %v5496_v1  ;;  %v5464_v8 = vsel %vm4099_vm14, %v5463_v13, %v5462_v44  ;;  %vm19984_vm9 = vcmask 1044484   ;;  %v19997_v44 = vld [vmem:[#allocation242_spill] sm:$0xff] }
 0xa0a   : > { %v5498_v57 = vsel %vm4322_vm10, %v5371_v0, %v5497_v27  ;;  %vm19986_vm15 = vcmask 1046534   ;;  %vm19987_vm11 = vcmask 1047559  }
 0xa0b   : > { %v5489_v40 = vsel %vm19972_vm6, %v5488_v24, %v5487_v6  ;;  %v5499_v36 = vsel %vm19984_vm9, %v5402_v11, %v5498_v57  ;;  %vm19985_vm6 = vcmask 1045509   ;;  %v19992_v24 = vld [vmem:[#allocation151_spill] sm:$0xff]  ;;  %v19999_v11 = vld [vmem:[#allocation245_spill] sm:$0xff]  ;;  %vm20107_vm9 = vcmask 523712  }
 0xa0c   : > { %v5491_v47 = vsel %vm4091_vm12, %v5490_v22, %v5489_v40  ;;  %v5500_v25 = vsel %vm19985_vm6, %v5433_v16, %v5499_v36  ;;  %v20001_v16 = vld [vmem:[#allocation108_spill] sm:$0xff]  ;;  %vm20114_vm6 = vcmask 720512  }
 0xa0d   : > { %v5493_v9 = vsel %vm4095_vm13, %v5492_v26, %v5491_v47  ;;  %v5501_v10 = vsel %vm19986_vm15, %v5464_v8, %v5500_v25  ;;  %vm20115_vm15 = vcmask 786112  }
 0xa10   : > { %v5247_v19 = vpop.permute.xlu1 %5246 }
 0xa11   : > { %v5494_v21 = vperm.slane %v5247_v19, %v19904_v49 }
 0xa13   : > { %v5495_v5 = vsel %vm4099_vm14, %v5494_v21, %v5493_v9 }
 0xa14   : > { %v5502_v54 = vsel %vm19987_vm11, %v5495_v5, %v5501_v10  ;;  %v20003_v5 = vld [vmem:[#allocation210_spill] sm:$0xff]  ;;  %vm20116_vm11 = vcmask 851712  }
 0xa15   : > { %5504 = vadd.xlane.f32.xlu0 %v5502_v54  ;;  %v20005_v54 = vld [vmem:[#allocation102_spill] sm:$0xff] }
 0xa88   : > { %v5505_v14 = vpop.xlane.xlu0 %5504 }
 0xa89   : > { %11655 = vrcp.f32 %v5505_v14 }
 0xa8f   : > { %v16482_v30 = vpop.eup %11655 }
 0xa90   : > { %v16485_v4 = vperm.slane %v16482_v30, 0  ;;  %v16488_v41 = vperm.slane %v16482_v30, 1 }
 0xa92   : > { %v16492_v48 = vmul.f32 %v19988_v60, %v16485_v4  ;;  %v16496_v43 = vmul.f32 %v19990_v42, %v16485_v4  ;;  %v16500_v46 = vmul.f32 %v19992_v24, %v16485_v4  ;;  %v16504_v32 = vmul.f32 %v19993_v15, %v16488_v41  ;;  %v20007_v42 = vld [vmem:[#allocation77_spill] sm:$0xff] }
 0xa93   : > { %v16514_v53 = vmul.f32 %v19995_v20, %v16485_v4  ;;  %v16518_v50 = vmul.f32 %v19996_v23, %v16485_v4  ;;  %v16528_v1 = vmul.f32 %v19997_v44, %v16488_v41  ;;  %v16532_v13 = vmul.f32 %v19999_v11, %v16485_v4 }
 0xa94   : > { %19989 = vst [vmem:[#allocation153_spill] sm:$0xff] %v16492_v48  ;;  %v5662_v31 = vpack.c.bf16 %v16492_v48, %v16492_v48  ;;  %v5653_v38 = vpack.c.bf16 %v16496_v43, %v16496_v43  ;;  %v5652_v18 = vpack.c.bf16 %v16500_v46, %v16500_v46  ;;  %v5669_v0 = vpack.c.bf16 %v16504_v32, %v16504_v32 }
 0xa95   : > { %19991 = vst [vmem:[#allocation134_spill] sm:$0xff] %v16496_v43  ;;  %v5655_v56 = vpack.c.bf16 %v16514_v53, %v16514_v53  ;;  %v5654_v33 = vpack.c.bf16 %v16518_v50, %v16518_v50  ;;  %v16536_v47 = vmul.f32 %v20001_v16, %v16485_v4  ;;  %v5672_v8 = vpack.c.bf16 %v16528_v1, %v16528_v1 }
 0xa96   : > { %19994 = vst [vmem:[#allocation155_spill] sm:$0xff] %v16504_v32  ;;  %v5934_v29 = vunpack.c.l.b16 %v5662_v31  ;;  %v5925_v6 = vunpack.c.l.b16 %v5653_v38  ;;  %v5924_v55 = vunpack.c.l.b16 %v5652_v18  ;;  %v6123_v22 = vunpack.c.l.b16 %v5669_v0 }
 0xa97   : > { %v5927_v34 = vunpack.c.l.b16 %v5655_v56  ;;  %19998 = vst [vmem:[#allocation137_spill] sm:$0xff] %v16528_v1  ;;  %v5926_v27 = vunpack.c.l.b16 %v5654_v33  ;;  %v5657_v57 = vpack.c.bf16 %v16532_v13, %v16532_v13  ;;  %v5656_v36 = vpack.c.bf16 %v16536_v47, %v16536_v47  ;;  %v20011_v56 = vld [vmem:[#allocation247_spill] sm:$0xff] }
 0xa98   : > { %v9736_v39 = vunpack.i.l.s16 %v5934_v29  ;;  %v9727_v40 = vunpack.i.l.s16 %v5925_v6  ;;  %v9726_v61 = vunpack.i.l.s16 %v5924_v55  ;;  %20000 = vst [vmem:[#allocation158_spill] sm:$0xff] %v16532_v13  ;;  %v9775_v26 = vunpack.i.l.s16 %v6123_v22  ;;  %v20008_v55 = vld [vmem:[#allocation78_spill] sm:$0xff] }
 0xa99   : > { %20002 = vst [vmem:[#allocation140_spill] sm:$0xff] %v16536_v47  ;;  %v9729_v19 = vunpack.i.l.s16 %v5927_v34  ;;  %v9728_v21 = vunpack.i.l.s16 %v5926_v27  ;;  %v6126_v9 = vunpack.c.l.b16 %v5672_v8  ;;  %v5929_v25 = vunpack.c.l.b16 %v5657_v57  ;;  %v20013_v8 = vld [vmem:[#allocation207_spill] sm:$0xff]  ;;  %v9682_v47 = vld [vmem:[#allocation25 + $0xb0] sm:$0xf0] }
 0xa9a   : > { %5995 = vperm.xlu0 %11394, %v9736_v39   ;;  %5968 = vperm.xlu1 %11396, %v9727_v40   ;;  %v16546_v10 = vmul.f32 %v20003_v5, %v16488_v41  ;;  %v16550_v14 = vmul.f32 %v20005_v54, %v16485_v4  ;;  %v5928_v60 = vunpack.c.l.b16 %v5656_v36  ;;  %v16554_v24 = vmul.f32 %v20007_v42, %v16485_v4  ;;  %v20010_v39 = vld [vmem:[#allocation222_spill] sm:$0xff] }
 0xa9b   : > { %5965 = vperm.xlu2 %11395, %v9726_v61   ;;  %v9778_v15 = vunpack.i.l.s16 %v6126_v9  ;;  %v9731_v31 = vunpack.i.l.s16 %v5929_v25  ;;  %v16564_v0 = vmul.f32 %v20008_v55, %v16488_v41  ;;  %v16568_v40 = vmul.f32 %v20010_v39, %v16485_v4  ;;  %v20016_v25 = vld [vmem:[#allocation216_spill] sm:$0xff]  ;;  %v20020_v55 = vld [vmem:[#allocation162_spill] sm:$0xff] }
 0xa9c   : > { %20004 = vst [vmem:[#allocation170_spill] sm:$0xff] %v16546_v10  ;;  %v5675_v38 = vpack.c.bf16 %v16546_v10, %v16546_v10  ;;  %v5659_v18 = vpack.c.bf16 %v16550_v14, %v16550_v14  ;;  %v9730_v20 = vunpack.i.l.s16 %v5928_v60  ;;  %v5658_v23 = vpack.c.bf16 %v16554_v24, %v16554_v24 }
 0xa9d   : > { %20006 = vst [vmem:[#allocation57_spill] sm:$0xff] %v16550_v14  ;;  %v16572_v33 = vmul.f32 %v20011_v56, %v16485_v4  ;;  %v5678_v44 = vpack.c.bf16 %v16564_v0, %v16564_v0  ;;  %v5661_v11 = vpack.c.bf16 %v16568_v40, %v16568_v40  ;;  %v16582_v57 = vmul.f32 %v20013_v8, %v16488_v41  ;;  %v20022_v56 = vld [vmem:[#allocation233_spill] sm:$0xff]  ;;  %v9474_v14 = vld [vmem:[#allocation22 + $0x10] sm:$0xf0] }
 0xa9e   : > { %v6129_v29 = vunpack.c.l.b16 %v5675_v38  ;;  %v5931_v6 = vunpack.c.l.b16 %v5659_v18  ;;  %20009 = vst [vmem:[#allocation252_spill] sm:$0xff] %v16564_v0  ;;  %v5930_v61 = vunpack.c.l.b16 %v5658_v23  ;;  %v16590_v5 = vmul.f32 %v20016_v25, %v16485_v4 }
 0xa9f   : > { %20012 = vst [vmem:[#allocation71_spill] sm:$0xff] %v16572_v33  ;;  %v5660_v16 = vpack.c.bf16 %v16572_v33, %v16572_v33  ;;  %v16593_v54 = vperm.slane %v16482_v30, 2  ;;  %v16607_v39 = vmul.f32 %v20020_v55, %v16485_v4 }
 0xaa0   : > { %v9781_v22 = vunpack.i.l.s16 %v6129_v29  ;;  %v9733_v34 = vunpack.i.l.s16 %v5931_v6  ;;  %v9732_v27 = vunpack.i.l.s16 %v5930_v61  ;;  %20014 = vst [vmem:[#allocation63_spill] sm:$0xff] %v16582_v57  ;;  %v5663_v18 = vpack.c.bf16 %v16590_v5, %v16590_v5  ;;  %v20018_v29 = vld [vmem:[#allocation209_spill] sm:$0xff] }
 0xaa1   : > { %v5932_v9 = vunpack.c.l.b16 %v5660_v16  ;;  %20017 = vst [vmem:[#allocation253_spill] sm:$0xff] %v16590_v5  ;;  %v16603_v6 = vmul.f32 %v20018_v29, %v16593_v54  ;;  %v10613_v5 = vld [vmem:[%s12678_s21 + $0x18] sm:$0xff] }
 0xaa2   : > { %6166 = vperm.xlu0 %11394, %v9775_v26   ;;  %5974 = vperm.xlu1 %11396, %v9729_v19   ;;  %v6132_v26 = vunpack.c.l.b16 %v5678_v44  ;;  %v5933_v19 = vunpack.c.l.b16 %v5661_v11  ;;  %20021 = vst [vmem:[#allocation218_spill] sm:$0xff] %v16607_v39  ;;  %v5935_v61 = vunpack.c.l.b16 %v5663_v18  ;;  %v20028_v18 = vld [vmem:[#allocation225_spill] sm:$0xff] }
 0xaa3   : > { %5971 = vperm.xlu2 %11395, %v9728_v21   ;;  %v20015_v21 = vld [vmem:[#allocation92_spill] sm:$0xff]  ;;  %v9734_v38 = vunpack.i.l.s16 %v5932_v9  ;;  %20019 = vst [vmem:[#allocation83_spill] sm:$0xff] %v16603_v6  ;;  %v5684_v11 = vpack.c.bf16 %v16603_v6, %v16603_v6 }
 0xaa4   : > { %v16586_v36 = vmul.f32 %v20015_v21, %v16485_v4  ;;  %v9784_v60 = vunpack.i.l.s16 %v6132_v26  ;;  %v9735_v42 = vunpack.i.l.s16 %v5933_v19  ;;  %v9737_v16 = vunpack.i.l.s16 %v5935_v61  ;;  %v20024_v19 = vld [vmem:[#allocation240_spill] sm:$0xff]  ;;  %v9584_v21 = vld [vmem:[#allocation22 + $0xe0] sm:$0xf] }
 0xaa5   : > { %v16621_v8 = vmul.f32 %v20024_v19, %v16593_v54  ;;  %v10544_v9 = vld [vmem:[#allocation22 + $0xec] sm:$0xf0]  ;;  %v6320_v25 = vunpack.c.l.b16 %v5684_v11  ;;  %v9568_v11 = vld [vmem:[#allocation22 + $0xc0] sm:$0xf] }
 0xaa6   : > { %v20031_v19 = vld [vmem:[#allocation208_spill] sm:$0xff] }
 0xaa7   : > { %20025 = vst [vmem:[#allocation238_spill] sm:$0xff] %v16621_v8  ;;  %v9822_v29 = vunpack.i.l.s16 %v6320_v25  ;;  %v9552_v25 = vld [vmem:[#allocation22 + $0xa0] sm:$0xf] }
 0xaaa   : > { %6175 = vperm.xlu0 %11394, %v9778_v15   ;;  %5980 = vperm.xlu1 %11396, %v9731_v31   ;;  %v5681_v15 = vpack.c.bf16 %v16582_v57, %v16582_v57  ;;  %v5664_v31 = vpack.c.bf16 %v16586_v36, %v16586_v36 }
 0xaab   : > { %5977 = vperm.xlu2 %11395, %v9730_v20  }
 0xaac   : > { %v6135_v20 = vunpack.c.l.b16 %v5681_v15  ;;  %v5936_v23 = vunpack.c.l.b16 %v5664_v31  ;;  %v9585_v31 = vor.u32 %v10544_v9, %v9584_v21  ;;  %v16643_v21 = vmul.f32 %v20031_v19, %v16488_v41 }
 0xaae   : > { %v9738_v44 = vunpack.i.l.s16 %v5936_v23  ;;  %1229 = vmatpush.bf16.msra.mxu1 %v9585_v31  ;;  %v5687_v23 = vpack.c.bf16 %v16621_v8, %v16621_v8  ;;  %20032 = vst [vmem:[#allocation180_spill] sm:$0xff] %v16643_v21  ;;  %v20033_v31 = vld [vmem:[#allocation213_spill] sm:$0xff] }
 0xab2   : > { %6184 = vperm.xlu0 %11394, %v9781_v22   ;;  %5986 = vperm.xlu1 %11396, %v9733_v34   ;;  %v16611_v22 = vmul.f32 %v20022_v56, %v16485_v4  ;;  %v9787_v34 = vunpack.i.l.s16 %v6135_v20  ;;  %v16629_v20 = vmul.f32 %v20028_v18, %v16485_v4  ;;  %v10540_v4 = vld [vmem:[#allocation22 + $0xcc] sm:$0xf0] }
 0xab3   : > { %5983 = vperm.xlu2 %11395, %v9732_v27   ;;  %v5666_v27 = vpack.c.bf16 %v16607_v39, %v16607_v39  ;;  %v9569_v9 = vor.u32 %v10540_v4, %v9568_v11  ;;  %v10518_v39 = vld [vmem:[#allocation22 + $0x24] sm:$0xf] }
 0xab4   : > { %20023 = vst [vmem:[#allocation69_spill] sm:$0xff] %v16611_v22  ;;  %v5665_v26 = vpack.c.bf16 %v16611_v22, %v16611_v22  ;;  %v938_v22 = vld [vmem:[#allocation2] sm:$0xff] }
 0xab5   : > { %1230 = vmatpush.bf16.msra.mxu1 %v9569_v9 }
 0xaba   : > { %6193 = vperm.xlu0 %11394, %v9784_v60   ;;  %5992 = vperm.xlu1 %11396, %v9735_v42   ;;  %v5938_v60 = vunpack.c.l.b16 %v5666_v27  ;;  %v20026_v42 = vld [vmem:[#allocation91_spill] sm:$0xff] }
 0xabb   : > { %5989 = vperm.xlu2 %11395, %v9734_v38   ;;  %v16625_v15 = vmul.f32 %v20026_v42, %v16488_v41  ;;  %v5937_v38 = vunpack.c.l.b16 %v5665_v26 }
 0xabc   : > { %v9740_v55 = vunpack.i.l.s16 %v5938_v60  ;;  %v10536_v60 = vld [vmem:[#allocation22 + $0xac] sm:$0xf0] }
 0xabd   : > { %20027 = vst [vmem:[#allocation55_spill] sm:$0xff] %v16625_v15  ;;  %v5668_v61 = vpack.c.bf16 %v16625_v15, %v16625_v15  ;;  %v9739_v56 = vunpack.i.l.s16 %v5937_v38  ;;  %v16647_v38 = vmul.f32 %v20033_v31, %v16488_v41  ;;  %v9553_v18 = vor.u32 %v10536_v60, %v9552_v25  ;;  %v20038_v25 = vld [vmem:[#allocation243_spill] sm:$0xff]  ;;  %v10532_v31 = vld [vmem:[#allocation22 + $0x8c] sm:$0xf0] }
 0xabe   : > { %v16665_v60 = vmul.f32 %v20038_v25, %v16488_v41 }
 0xabf   : > { %v6122_v27 = vunpack.c.l.b16 %v5668_v61  ;;  %v5671_v61 = vpack.c.bf16 %v16643_v21, %v16643_v21  ;;  %v5670_v11 = vpack.c.bf16 %v16647_v38, %v16647_v38  ;;  %1231 = vmatpush.bf16.msra.mxu1 %v9553_v18  ;;  %v10528_v18 = vld [vmem:[#allocation22 + $0x6c] sm:$0xf0] }
 0xac0   : > { %20039 = vst [vmem:[#allocation79_spill] sm:$0xff] %v16665_v60 }
 0xac1   : > { %v6125_v4 = vunpack.c.l.b16 %v5671_v61  ;;  %v6124_v9 = vunpack.c.l.b16 %v5670_v11  ;;  %v5673_v11 = vpack.c.bf16 %v16665_v60, %v16665_v60 }
 0xac2   : > { %6202 = vperm.xlu0 %11394, %v9787_v34   ;;  %6001 = vperm.xlu1 %11396, %v9738_v44   ;;  %v5667_v34 = vpack.c.bf16 %v16629_v20, %v16629_v20  ;;  %v6323_v44 = vunpack.c.l.b16 %v5687_v23 }
 0xac3   : > { %5998 = vperm.xlu2 %11395, %v9737_v16   ;;  %v20029_v16 = vld [vmem:[#allocation176_spill] sm:$0xff]  ;;  %v9777_v61 = vunpack.i.l.s16 %v6125_v4  ;;  %v6127_v8 = vunpack.c.l.b16 %v5673_v11 }
 0xac4   : > { %v16639_v26 = vmul.f32 %v20029_v16, %v16593_v54  ;;  %v5939_v42 = vunpack.c.l.b16 %v5667_v34  ;;  %v9825_v23 = vunpack.i.l.s16 %v6323_v44  ;;  %v20034_v16 = vld [vmem:[#allocation250_spill] sm:$0xff] }
 0xac5   : > { %v16657_v44 = vmul.f32 %v20034_v16, %v16593_v54 }
 0xac6   : > { %20030 = vst [vmem:[#allocation187_spill] sm:$0xff] %v16639_v26 }
 0xac7   : > { %20035 = vst [vmem:[#allocation166_spill] sm:$0xff] %v16657_v44 }
 0xaca   : > { %6361 = vperm.xlu0 %11394, %v9822_v29   ;;  %6007 = vperm.xlu1 %11396, %v9740_v55   ;;  %v9774_v29 = vunpack.i.l.s16 %v6122_v27  ;;  %v5690_v55 = vpack.c.bf16 %v16639_v26, %v16639_v26  ;;  %v20036_v27 = vld [vmem:[#allocation217_spill] sm:$0xff] }
 0xacb   : > { %6004 = vperm.xlu2 %11395, %v9739_v56   ;;  %v9741_v56 = vunpack.i.l.s16 %v5939_v42  ;;  %v16661_v19 = vmul.f32 %v20036_v27, %v16488_v41  ;;  %v9536_v42 = vld [vmem:[#allocation22 + $0x80] sm:$0xf]  ;;  %v9776_v27 = vunpack.i.l.s16 %v6124_v9 }
 0xacc   : > { %v6326_v34 = vunpack.c.l.b16 %v5690_v55  ;;  %v20044_v9 = vld [vmem:[#allocation226_spill] sm:$0xff] }
 0xacd   : > { %20037 = vst [vmem:[#allocation178_spill] sm:$0xff] %v16661_v19  ;;  %v5674_v16 = vpack.c.bf16 %v16661_v19, %v16661_v19  ;;  %v16683_v6 = vmul.f32 %v20044_v9, %v16488_v41 }
 0xace   : > { %v9828_v55 = vunpack.i.l.s16 %v6326_v34 }
 0xacf   : > { %v6128_v4 = vunpack.c.l.b16 %v5674_v16  ;;  %20045 = vst [vmem:[#allocation56_spill] sm:$0xff] %v16683_v6  ;;  %v5676_v11 = vpack.c.bf16 %v16683_v6, %v16683_v6  ;;  %v9592_v6 = vld [vmem:[#allocation22 + $0xe8] sm:$0xf] }
 0xad1   : > { %v9780_v16 = vunpack.i.l.s16 %v6128_v4 }
 0xad2   : > { %6370 = vperm.xlu0 %11394, %v9825_v23   ;;  %6163 = vperm.xlu1 %11396, %v9774_v29   ;;  %v9520_v23 = vld [vmem:[#allocation22 + $0x60] sm:$0xf]  ;;  %v9537_v29 = vor.u32 %v10532_v31, %v9536_v42  ;;  %v20040_v42 = vld [vmem:[#allocation236_spill] sm:$0xff] }
 0xad3   : > { %6010 = vperm.xlu2 %11395, %v9741_v56   ;;  %v5693_v56 = vpack.c.bf16 %v16657_v44, %v16657_v44  ;;  %v9521_v25 = vor.u32 %v10528_v18, %v9520_v23  ;;  %v16675_v31 = vmul.f32 %v20040_v42, %v16593_v54  ;;  %v20042_v44 = vld [vmem:[#allocation230_spill] sm:$0xff]  ;;  %v9779_v42 = vunpack.i.l.s16 %v6127_v8 }
 0xad4   : > { %1232 = vmatpush.bf16.msra.mxu1 %v9537_v29  ;;  %v16679_v26 = vmul.f32 %v20042_v44, %v16488_v41  ;;  %v9504_v23 = vld [vmem:[#allocation22 + $0x40] sm:$0xf]  ;;  %v10524_v29 = vld [vmem:[#allocation22 + $0x4c] sm:$0xf0] }
 0xad5   : > { %20041 = vst [vmem:[#allocation189_spill] sm:$0xff] %v16675_v31  ;;  %v6329_v34 = vunpack.c.l.b16 %v5693_v56  ;;  %v9488_v18 = vld [vmem:[#allocation22 + $0x20] sm:$0xf] }
 0xad6   : > { %20043 = vst [vmem:[#allocation149_spill] sm:$0xff] %v16679_v26  ;;  %v5677_v44 = vpack.c.bf16 %v16679_v26, %v16679_v26  ;;  %v20050_v8 = vld [vmem:[#allocation58_spill] sm:$0xff] }
 0xad7   : > { %v9831_v56 = vunpack.i.l.s16 %v6329_v34  ;;  %v20048_v34 = vld [vmem:[#allocation154_spill] sm:$0xff]  ;;  %v16701_v26 = vmul.f32 %v20050_v8, %v16488_v41 }
 0xad8   : > { %1233 = vmatpush.bf16.msra.mxu1 %v9521_v25  ;;  %v6131_v57 = vunpack.c.l.b16 %v5677_v44  ;;  %v16697_v4 = vmul.f32 %v20048_v34, %v16488_v41 }
 0xad9   : > { %20051 = vst [vmem:[#allocation74_spill] sm:$0xff] %v16701_v26 }
 0xada   : > { %6379 = vperm.xlu0 %11394, %v9828_v55   ;;  %6172 = vperm.xlu1 %11396, %v9777_v61   ;;  %v5696_v55 = vpack.c.bf16 %v16675_v31, %v16675_v31  ;;  %v9505_v61 = vor.u32 %v10524_v29, %v9504_v23  ;;  %v20046_v31 = vld [vmem:[#allocation221_spill] sm:$0xff]  ;;  %20049 = vst [vmem:[#allocation165_spill] sm:$0xff] %v16697_v4  ;;  %v6130_v29 = vunpack.c.l.b16 %v5676_v11  ;;  %v9783_v44 = vunpack.i.l.s16 %v6131_v57  ;;  %v9696_v57 = vld [vmem:[#allocation25 + $0xc0] sm:$0xf] }
 0xadb   : > { %6169 = vperm.xlu2 %11395, %v9776_v27   ;;  %v10520_v27 = vld [vmem:[#allocation22 + $0x2c] sm:$0xf0]  ;;  %v16693_v23 = vmul.f32 %v20046_v31, %v16593_v54  ;;  %v5680_v11 = vpack.c.bf16 %v16697_v4, %v16697_v4  ;;  %v20054_v4 = vld [vmem:[#allocation246_spill] sm:$0xff] }
 0xadc   : > { %1234 = vmatpush.bf16.msra.mxu1 %v9505_v61  ;;  %v9489_v9 = vor.u32 %v10520_v27, %v9488_v18  ;;  %v6332_v25 = vunpack.c.l.b16 %v5696_v55  ;;  %v9472_v18 = vld [vmem:[#allocation22] sm:$0xf]  ;;  %v10516_v61 = vld [vmem:[#allocation22 + $0xc] sm:$0xf0]  ;;  %v16704_v55 = vperm.slane %v16482_v30, 3  ;;  %v9782_v8 = vunpack.i.l.s16 %v6130_v29 }
 0xadd   : > { %20047 = vst [vmem:[#allocation66_spill] sm:$0xff] %v16693_v23  ;;  %v9712_v27 = vld [vmem:[#allocation25 + $0xe0] sm:$0xf]  ;;  %v10576_v31 = vld [vmem:[#allocation25 + $0xec] sm:$0xf0]  ;;  %v6134_v0 = vunpack.c.l.b16 %v5680_v11 }
 0xade   : > { %v9713_v34 = vor.u32 %v10576_v31, %v9712_v27  ;;  %v16718_v27 = vmul.f32 %v20054_v4, %v16488_v41 }
 0xadf   : > { %v9786_v19 = vunpack.i.l.s16 %v6134_v0  ;;  %v20060_v0 = vld [vmem:[#allocation232_spill] sm:$0xff] }
 0xae0   : > { %1235 = vmatpush.bf16.msra.mxu1 %v9489_v9  ;;  %v5679_v9 = vpack.c.bf16 %v16701_v26, %v16701_v26  ;;  %20055 = vst [vmem:[#allocation194_spill] sm:$0xff] %v16718_v27 }
 0xae2   : > { %6388 = vperm.xlu0 %11394, %v9831_v56   ;;  %6181 = vperm.xlu1 %11396, %v9780_v16   ;;  %v9834_v56 = vunpack.i.l.s16 %v6332_v25  ;;  %v9473_v16 = vor.u32 %v10516_v61, %v9472_v18  ;;  %v20052_v25 = vld [vmem:[#allocation211_spill] sm:$0xff]  ;;  %v10572_v61 = vld [vmem:[#allocation25 + $0xcc] sm:$0xf0]  ;;  %v6133_v31 = vunpack.c.l.b16 %v5679_v9 }
 0xae3   : > { %6178 = vperm.xlu2 %11395, %v9779_v42   ;;  %v5699_v42 = vpack.c.bf16 %v16693_v23, %v16693_v23  ;;  %v16714_v18 = vmul.f32 %v20052_v25, %v16704_v55  ;;  %v9697_v29 = vor.u32 %v10572_v61, %v9696_v57  ;;  %v9664_v57 = vld [vmem:[#allocation25 + $0x80] sm:$0xf]  ;;  %v10564_v61 = vld [vmem:[#allocation25 + $0x8c] sm:$0xf0] }
 0xae4   : > { %1236 = vmatpush.bf16.msra.mxu1 %v9473_v16  ;;  %v20056_v16 = vld [vmem:[#allocation239_spill] sm:$0xff]  ;;  %v9785_v4 = vunpack.i.l.s16 %v6133_v31  ;;  %v9665_v31 = vor.u32 %v10564_v61, %v9664_v57  ;;  %v9586_v61 = vld [vmem:[#allocation22 + $0xf0] sm:$0xf0] }
 0xae5   : > { %20053 = vst [vmem:[#allocation59_spill] sm:$0xff] %v16714_v18  ;;  %v6335_v23 = vunpack.c.l.b16 %v5699_v42  ;;  %v5683_v42 = vpack.c.bf16 %v16718_v27, %v16718_v27 }
 0xae7   : > { %v9837_v25 = vunpack.i.l.s16 %v6335_v23 }
 0xae8   : > { %1483 = vmatpush.bf16.msrb.mxu1 %v9713_v34  ;;  %v10568_v34 = vld [vmem:[#allocation25 + $0xac] sm:$0xf0] }
 0xaea   : > { %6397 = vperm.xlu0 %11394, %v9834_v56   ;;  %6190 = vperm.xlu1 %11396, %v9783_v44   ;;  %v16722_v56 = vmul.f32 %v20056_v16, %v16488_v41  ;;  %v5702_v44 = vpack.c.bf16 %v16714_v18, %v16714_v18  ;;  %v20058_v16 = vld [vmem:[#allocation219_spill] sm:$0xff]  ;;  %v16736_v18 = vmul.f32 %v20060_v0, %v16593_v54 }
 0xaeb   : > { %6187 = vperm.xlu2 %11395, %v9782_v8   ;;  %v9680_v8 = vld [vmem:[#allocation25 + $0xa0] sm:$0xf]  ;;  %v16732_v23 = vmul.f32 %v20058_v16, %v16704_v55 }
 0xaec   : > { %20057 = vst [vmem:[#allocation196_spill] sm:$0xff] %v16722_v56  ;;  %1484 = vmatpush.bf16.msrb.mxu1 %v9697_v29  ;;  %v9681_v11 = vor.u32 %v10568_v34, %v9680_v8  ;;  %v5682_v9 = vpack.c.bf16 %v16722_v56, %v16722_v56  ;;  %v6520_v41 = vunpack.c.l.b16 %v5702_v44  ;;  %v6137_v29 = vunpack.c.l.b16 %v5683_v42  ;;  %v10560_v42 = vld [vmem:[#allocation25 + $0x6c] sm:$0xf0] }
 0xaed   : > { %20059 = vst [vmem:[#allocation88_spill] sm:$0xff] %v16732_v23  ;;  %v5705_v16 = vpack.c.bf16 %v16732_v23, %v16732_v23  ;;  %v5686_v0 = vpack.c.bf16 %v16736_v18, %v16736_v18 }
 0xaee   : > { %20061 = vst [vmem:[#allocation183_spill] sm:$0xff] %v16736_v18  ;;  %v6136_v34 = vunpack.c.l.b16 %v5682_v9  ;;  %v9872_v44 = vunpack.i.l.s16 %v6520_v41  ;;  %v9789_v27 = vunpack.i.l.s16 %v6137_v29  ;;  %v20064_v41 = vld [vmem:[#allocation228_spill] sm:$0xff]  ;;  %v20066_v29 = vld [vmem:[#allocation223_spill] sm:$0xff]  ;;  %v9632_v18 = vld [vmem:[#allocation25 + $0x40] sm:$0xf] }
 0xaef   : > { %v16756_v23 = vmul.f32 %v20066_v29, %v16593_v54  ;;  %v10552_v29 = vld [vmem:[#allocation25 + $0x2c] sm:$0xf0] }
 0xaf0   : > { %1485 = vmatpush.bf16.msrb.mxu1 %v9681_v11  ;;  %v9648_v11 = vld [vmem:[#allocation25 + $0x60] sm:$0xf]  ;;  %v9788_v10 = vunpack.i.l.s16 %v6136_v34  ;;  %v6322_v34 = vunpack.c.l.b16 %v5686_v0 }
 0xaf1   : > { %v9649_v57 = vor.u32 %v10560_v42, %v9648_v11  ;;  %20067 = vst [vmem:[#allocation101_spill] sm:$0xff] %v16756_v23  ;;  %v10556_v11 = vld [vmem:[#allocation25 + $0x4c] sm:$0xf0]  ;;  %v6523_v42 = vunpack.c.l.b16 %v5705_v16  ;;  %v9616_v16 = vld [vmem:[#allocation25 + $0x20] sm:$0xf] }
 0xaf2   : > { %6406 = vperm.xlu0 %11394, %v9837_v25   ;;  %6199 = vperm.xlu1 %11396, %v9786_v19   ;;  %v20062_v19 = vld [vmem:[#allocation215_spill] sm:$0xff]  ;;  %v9633_v21 = vor.u32 %v10556_v11, %v9632_v18  ;;  %v10534_v11 = vld [vmem:[#allocation22 + $0xa4] sm:$0xf]  ;;  %v9617_v32 = vor.u32 %v10552_v29, %v9616_v16  ;;  %v16778_v16 = vpack.c.bf16 %v938_v22, %v938_v22 }
 0xaf3   : > { %6196 = vperm.xlu2 %11395, %v9785_v4   ;;  %v16742_v25 = vmul.f32 %v20062_v19, %v16593_v54  ;;  %v10542_v4 = vld [vmem:[#allocation22 + $0xe4] sm:$0xf]  ;;  %v9875_v0 = vunpack.i.l.s16 %v6523_v42  ;;  %v9600_v42 = vld [vmem:[#allocation25] sm:$0xf] }
 0xaf4   : > { %1486 = vmatpush.bf16.msrb.mxu1 %v9665_v31  ;;  %v9589_v19 = vor.u32 %v10542_v4, %v9586_v61  ;;  %v16752_v31 = vmul.f32 %v20064_v41, %v16704_v55  ;;  %v5689_v61 = vpack.c.bf16 %v16756_v23, %v16756_v23  ;;  %v9570_v41 = vld [vmem:[#allocation22 + $0xd0] sm:$0xf0]  ;;  %v10617_v29 = vld [vmem:[%s12678_s21 + $0x38] sm:$0xff] }
 0xaf5   : > { %v16738_v8 = vpop.permute.xlu2 %5965  ;;  %20063 = vst [vmem:[#allocation156_spill] sm:$0xff] %v16742_v25  ;;  %v5685_v9 = vpack.c.bf16 %v16742_v25, %v16742_v25  ;;  %1237 = vmatmul.bf16.vlgmr.msra.gmra.mxu1 %v16778_v16 }
 0xaf6   : > { %20065 = vst [vmem:[#allocation98_spill] sm:$0xff] %v16752_v31  ;;  %1242 = vmatpush.bf16.msra.mxu2 %v9589_v19  ;;  %v5708_v4 = vpack.c.bf16 %v16752_v31, %v16752_v31  ;;  %v9824_v19 = vunpack.i.l.s16 %v6322_v34  ;;  %v6325_v23 = vunpack.c.l.b16 %v5689_v61  ;;  %v10548_v34 = vld [vmem:[#allocation25 + $0xc] sm:$0xf0]  ;;  %v6012_v13 = vperm.slane %v16738_v8, %v14652_v37 }
 0xaf8   : > { %1487 = vmatpush.bf16.msrb.mxu1 %v9649_v57  ;;  %v10538_v57 = vld [vmem:[#allocation22 + $0xc4] sm:$0xf]  ;;  %v6526_v31 = vunpack.c.l.b16 %v5708_v4 }
 0xaf9   : > { %v9573_v18 = vor.u32 %v10538_v57, %v9570_v41  ;;  %v20070_v57 = vld [vmem:[#allocation249_spill] sm:$0xff] }
 0xafa   : > { %6565 = vperm.xlu0 %11394, %v9872_v44   ;;  %6208 = vperm.xlu1 %11396, %v9789_v27   ;;  %v6321_v44 = vunpack.c.l.b16 %v5685_v9  ;;  %v9554_v9 = vld [vmem:[#allocation22 + $0xb0] sm:$0xf0]  ;;  %v16772_v41 = vmul.f32 %v20070_v57, %v16704_v55  ;;  %v9827_v57 = vunpack.i.l.s16 %v6325_v23 }
 0xafb   : > { %6205 = vperm.xlu2 %11395, %v9788_v10   ;;  %v20068_v10 = vld [vmem:[#allocation212_spill] sm:$0xff]  ;;  %1243 = vmatpush.bf16.msra.mxu2 %v9573_v18  ;;  %v9878_v18 = vunpack.i.l.s16 %v6526_v31  ;;  %v10616_v31 = vld [vmem:[%s12678_s21 + $0x30] sm:$0xff] }
 0xafc   : > { %v16762_v27 = vmul.f32 %v20068_v10, %v16593_v54  ;;  %1488 = vmatpush.bf16.msrb.mxu1 %v9633_v21  ;;  %v9823_v15 = vunpack.i.l.s16 %v6321_v44  ;;  %v9557_v21 = vor.u32 %v10534_v11, %v9554_v9  ;;  %20071 = vst [vmem:[#allocation107_spill] sm:$0xff] %v16772_v41  ;;  %v20072_v44 = vld [vmem:[#allocation241_spill] sm:$0xff]  ;;  %v10530_v11 = vld [vmem:[#allocation22 + $0x84] sm:$0xf]  ;;  %v9538_v9 = vld [vmem:[#allocation22 + $0x90] sm:$0xf0] }
 0xafd   : > { %v16758_v1 = vpop.permute.xlu2 %5971  ;;  %v16776_v25 = vmul.f32 %v20072_v44, %v16593_v54  ;;  %v20076_v23 = vld [vmem:[#allocation220_spill] sm:$0xff] }
 0xafe   : > { %20069 = vst [vmem:[#allocation204_spill] sm:$0xff] %v16762_v27  ;;  %v5688_v10 = vpack.c.bf16 %v16762_v27, %v16762_v27 }
 0xaff   : > { %20073 = vst [vmem:[#allocation143_spill] sm:$0xff] %v16776_v25  ;;  %1244 = vmatpush.bf16.msra.mxu2 %v9557_v21  ;;  %v5692_v22 = vpack.c.bf16 %v16776_v25, %v16776_v25  ;;  %v16797_v21 = vmul.f32 %v20076_v23, %v16704_v55  ;;  %v20078_v25 = vld [vmem:[#allocation229_spill] sm:$0xff] }
 0xb00   : > { %1489 = vmatpush.bf16.msrb.mxu1 %v9617_v32  ;;  %v6324_v61 = vunpack.c.l.b16 %v5688_v10  ;;  %v5711_v32 = vpack.c.bf16 %v16772_v41, %v16772_v41  ;;  %v9541_v10 = vor.u32 %v10530_v11, %v9538_v9 }
 0xb01   : > { %20077 = vst [vmem:[#allocation111_spill] sm:$0xff] %v16797_v21  ;;  %v6328_v9 = vunpack.c.l.b16 %v5692_v22 }
 0xb02   : > { %6574 = vperm.xlu0 %11394, %v9875_v0   ;;  %6367 = vperm.xlu1 %11396, %v9824_v19   ;;  %v20074_v0 = vld [vmem:[#allocation235_spill] sm:$0xff]  ;;  %v9826_v44 = vunpack.i.l.s16 %v6324_v61  ;;  %v6529_v61 = vunpack.c.l.b16 %v5711_v32 }
 0xb03   : > { %6364 = vperm.xlu2 %11395, %v9823_v15   ;;  %v9601_v15 = vor.u32 %v10548_v34, %v9600_v42  ;;  %v16784_v19 = vmul.f32 %v20074_v0, %v16593_v54  ;;  %v10526_v42 = vld [vmem:[#allocation22 + $0x64] sm:$0xf]  ;;  %v9522_v34 = vld [vmem:[#allocation22 + $0x70] sm:$0xf0]  ;;  %1245 = vmatpush.bf16.msra.mxu2 %v9541_v10  ;;  %v5714_v10 = vpack.c.bf16 %v16797_v21, %v16797_v21  ;;  %v9830_v22 = vunpack.i.l.s16 %v6328_v9 }
 0xb04   : > { %v9525_v41 = vor.u32 %v10526_v42, %v9522_v34  ;;  %v16816_v42 = vperm.slane %v16482_v30, 4  ;;  %v9881_v32 = vunpack.i.l.s16 %v6529_v61  ;;  %v10615_v34 = vld [vmem:[%s12678_s21 + $0x28] sm:$0xff]  ;;  %v10614_v61 = vld [vmem:[%s12678_s21 + $0x20] sm:$0xff] }
 0xb05   : > { %v16780_v4 = vpop.permute.xlu2 %5977  ;;  %20075 = vst [vmem:[#allocation198_spill] sm:$0xff] %v16784_v19  ;;  %1490 = vmatpush.bf16.msrb.mxu1 %v9601_v15  ;;  %v5691_v0 = vpack.c.bf16 %v16784_v19, %v16784_v19  ;;  %v9506_v19 = vld [vmem:[#allocation22 + $0x50] sm:$0xf0] }
 0xb06   : > { %v9490_v21 = vld [vmem:[#allocation22 + $0x30] sm:$0xf0] }
 0xb07   : > { %1246 = vmatpush.bf16.msra.mxu2 %v9525_v41  ;;  %v6532_v41 = vunpack.c.l.b16 %v5714_v10 }
 0xb09   : > { %6093 = vmatpush.bf16.msra.mxu1 %v10617_v29  ;;  %v16805_v29 = vmul.f32 %v20078_v25, %v16593_v54 }
 0xb0a   : > { %6583 = vperm.xlu0 %11394, %v9878_v18   ;;  %6376 = vperm.xlu1 %11396, %v9827_v57   ;;  %v6327_v57 = vunpack.c.l.b16 %v5691_v0  ;;  %v10522_v0 = vld [vmem:[#allocation22 + $0x44] sm:$0xf] }
 0xb0b   : > { %6373 = vperm.xlu2 %11395, %v9826_v44   ;;  %20079 = vst [vmem:[#allocation118_spill] sm:$0xff] %v16805_v29  ;;  %v20080_v44 = vld [vmem:[#allocation130_spill] sm:$0xff]  ;;  %v5695_v25 = vpack.c.bf16 %v16805_v29, %v16805_v29 }
 0xb0c   : > { %v16799_v15 = vpop.permute.xlu0 %5995  ;;  %v16801_v11 = vpop.permute.xlu1 %5968  ;;  %v16811_v23 = vmul.f32 %v20080_v44, %v16593_v54  ;;  %v9829_v27 = vunpack.i.l.s16 %v6327_v57  ;;  %v9509_v44 = vor.u32 %v10522_v0, %v9506_v19  ;;  %v20082_v57 = vld [vmem:[#allocation145_spill] sm:$0xff]  ;;  %v20084_v19 = vld [vmem:[#allocation116_spill] sm:$0xff] }
 0xb0d   : > { %v16807_v18 = vpop.permute.xlu2 %5983  ;;  %6094 = vmatpush.bf16.msra.mxu1 %v10616_v31  ;;  %v6331_v48 = vunpack.c.l.b16 %v5695_v25  ;;  %v16830_v56 = vmul.f32 %v20082_v57, %v16816_v42  ;;  %v16834_v0 = vmul.f32 %v20084_v19, %v16593_v54  ;;  %v9884_v25 = vunpack.i.l.s16 %v6532_v41  ;;  %v10514_v57 = vld [vmem:[#allocation22 + $0x4] sm:$0xf] }
 0xb0e   : > { %20081 = vst [vmem:[#allocation120_spill] sm:$0xff] %v16811_v23  ;;  %v5694_v31 = vpack.c.bf16 %v16811_v23, %v16811_v23  ;;  %1247 = vmatpush.bf16.msra.mxu2 %v9509_v44  ;;  %v20088_v23 = vld [vmem:[#allocation54_spill] sm:$0xff] }
 0xb0f   : > { %20083 = vst [vmem:[#allocation147_spill] sm:$0xff] %v16830_v56  ;;  %1491 = vmatmul.bf16.vlgmr.msrb.gmra.mxu1 %v20088_v23  ;;  %v9833_v26 = vunpack.i.l.s16 %v6331_v48  ;;  %v5717_v19 = vpack.c.bf16 %v16830_v56, %v16830_v56  ;;  %v9698_v48 = vld [vmem:[#allocation25 + $0xd0] sm:$0xf0] }
 0xb10   : > { %20085 = vst [vmem:[#allocation89_spill] sm:$0xff] %v16834_v0  ;;  %v6330_v10 = vunpack.c.l.b16 %v5694_v31  ;;  %v10574_v31 = vld [vmem:[#allocation25 + $0xe4] sm:$0xf]  ;;  %v20089_v56 = vld [vmem:[#allocation76_spill] sm:$0xff] }
 0xb11   : > { %6095 = vmatpush.bf16.msra.mxu1 %v10615_v34  ;;  %v16852_v33 = vmul.f32 %v20089_v56, %v16816_v42  ;;  %v20093_v56 = vld [vmem:[#allocation244_spill] sm:$0xff] }
 0xb12   : > { %6592 = vperm.xlu0 %11394, %v9881_v32   ;;  %6385 = vperm.xlu1 %11396, %v9830_v22   ;;  %v9493_v32 = vor.u32 %v10518_v39, %v9490_v21  ;;  %v20086_v22 = vld [vmem:[#allocation248_spill] sm:$0xff]  ;;  %v5698_v39 = vpack.c.bf16 %v16834_v0, %v16834_v0  ;;  %v9477_v21 = vor.u32 %v10514_v57, %v9474_v14  ;;  %v9832_v44 = vunpack.i.l.s16 %v6330_v10 }
 0xb13   : > { %6382 = vperm.xlu2 %11395, %v9829_v27   ;;  %v16840_v34 = vmul.f32 %v20086_v22, %v16593_v54  ;;  %v9714_v54 = vld [vmem:[#allocation25 + $0xf0] sm:$0xf0]  ;;  %v10570_v22 = vld [vmem:[#allocation25 + $0xc4] sm:$0xf]  ;;  %20090 = vst [vmem:[#allocation87_spill] sm:$0xff] %v16852_v33  ;;  %v6717_v10 = vunpack.c.l.b16 %v5717_v19 }
 0xb14   : > { %v16824_v9 = vpop.permute.xlu0 %6166  ;;  %v16826_v29 = vpop.permute.xlu1 %5974  ;;  %1248 = vmatpush.bf16.msra.mxu2 %v9493_v32  ;;  %v10612_v32 = vld [vmem:[%s12678_s21 + $0x10] sm:$0xff]  ;;  %v6334_v0 = vunpack.c.l.b16 %v5698_v39  ;;  %v10611_v19 = vld [vmem:[%s12678_s21 + $0x8] sm:$0xff]  ;;  %v10566_v39 = vld [vmem:[#allocation25 + $0xa4] sm:$0xf] }
 0xb15   : > { %v16836_v27 = vpop.permute.xlu2 %5989  ;;  %20087 = vst [vmem:[#allocation160_spill] sm:$0xff] %v16840_v34  ;;  %6096 = vmatpush.bf16.msra.mxu1 %v10614_v61  ;;  %v5697_v41 = vpack.c.bf16 %v16840_v34, %v16840_v34  ;;  %v9717_v61 = vor.u32 %v10574_v31, %v9714_v54  ;;  %v20091_v31 = vld [vmem:[#allocation234_spill] sm:$0xff]  ;;  %v5720_v34 = vpack.c.bf16 %v16852_v33, %v16852_v33 }
 0xb16   : > { %v6017_v8 = vperm.slane %v16826_v29, %v14679_v28 }
 0xb17   : > { %v6333_v54 = vunpack.c.l.b16 %v5697_v41  ;;  %v9836_v41 = vunpack.i.l.s16 %v6334_v0  ;;  %v9666_v0 = vld [vmem:[#allocation25 + $0x90] sm:$0xf0] }
 0xb18   : > { %1249 = vmatpush.bf16.msra.mxu2 %v9477_v21  ;;  %v6013_v21 = vperm.slane %v16801_v11, %v14657_v58  ;;  %v10562_v11 = vld [vmem:[#allocation25 + $0x84] sm:$0xf] }
 0xb19   : > { %6097 = vmatpush.bf16.msra.mxu1 %v10613_v5  ;;  %v9701_v5 = vor.u32 %v10570_v22, %v9698_v48  ;;  %v9835_v22 = vunpack.i.l.s16 %v6333_v54  ;;  %v20097_v54 = vld [vmem:[#allocation224_spill] sm:$0xff] }
 0xb1a   : > { %6601 = vperm.xlu0 %11394, %v9884_v25   ;;  %6394 = vperm.xlu1 %11396, %v9833_v26   ;;  %v16861_v25 = vmul.f32 %v20091_v31, %v16704_v55  ;;  %v9919_v31 = vunpack.i.l.s16 %v6717_v10  ;;  %v6720_v10 = vunpack.c.l.b16 %v5720_v34  ;;  %v16887_v60 = vmul.f32 %v20097_v54, %v16704_v55  ;;  %v10558_v54 = vld [vmem:[#allocation25 + $0x64] sm:$0xf] }
 0xb1b   : > { %6391 = vperm.xlu2 %11395, %v9832_v44   ;;  %v16867_v44 = vmul.f32 %v20093_v56, %v16704_v55  ;;  %1250 = vmatmul.bf16.vlgmr.msra.gmra.mxu2 %v16778_v16  ;;  %v6015_v34 = vperm.slane %v16758_v1, %v14660_v2  ;;  %v9576_v1 = vld [vmem:[#allocation22 + $0xc8] sm:$0xf] }
 0xb1c   : > { %v16855_v14 = vpop.permute.xlu0 %6175  ;;  %v16857_v57 = vpop.permute.xlu1 %5980  ;;  %20092 = vst [vmem:[#allocation200_spill] sm:$0xff] %v16861_v25  ;;  %1496 = vmatpush.bf16.msrb.mxu2 %v9717_v61  ;;  %v5701_v56 = vpack.c.bf16 %v16861_v25, %v16861_v25  ;;  %v10545_v61 = vld [vmem:[#allocation22 + $0xf4] sm:$0xf0]  ;;  %v20095_v25 = vld [vmem:[#allocation214_spill] sm:$0xff]  ;;  %v9922_v29 = vunpack.i.l.s16 %v6720_v10 }
 0xb1d   : > { %v16863_v26 = vpop.permute.xlu2 %5998  ;;  %20094 = vst [vmem:[#allocation128_spill] sm:$0xff] %v16867_v44  ;;  %6098 = vmatpush.bf16.msra.mxu1 %v10612_v32  ;;  %v5700_v48 = vpack.c.bf16 %v16867_v44, %v16867_v44  ;;  %v9685_v32 = vor.u32 %v10566_v39, %v9682_v47  ;;  %v9593_v33 = vor.u32 %v10545_v61, %v9592_v6  ;;  %v10610_v47 = vld [vmem:[%s12678_s21] sm:$0xff]  ;;  %v10537_v10 = vld [vmem:[#allocation22 + $0xb4] sm:$0xf0] }
 0xb1e   : > { %v16883_v43 = vmul.f32 %v20095_v25, %v16816_v42  ;;  %20098 = vst [vmem:[#allocation144_spill] sm:$0xff] %v16887_v60  ;;  %v6014_v6 = vsel %vm4043_vm0, %v6013_v21, %v6012_v13  ;;  %v20099_v61 = vld [vmem:[#allocation231_spill] sm:$0xff]  ;;  %v9669_v13 = vor.u32 %v10562_v11, %v9666_v0  ;;  %v9650_v0 = vld [vmem:[#allocation25 + $0x70] sm:$0xf0] }
 0xb1f   : > { %1255 = vmatpush.bf16.msra.mxu3 %v9593_v33  ;;  %v6016_v21 = vsel %vm4047_vm1, %v6015_v34, %v6014_v6  ;;  %v5704_v33 = vpack.c.bf16 %v16887_v60, %v16887_v60  ;;  %v9560_v6 = vld [vmem:[#allocation22 + $0xa8] sm:$0xf]  ;;  %v6019_v34 = vperm.slane %v16780_v4, %v14673_v35  ;;  %v9653_v60 = vor.u32 %v10558_v54, %v9650_v0  ;;  %v20103_v54 = vld [vmem:[#allocation206_spill] sm:$0xff] }
 0xb20   : > { %1497 = vmatpush.bf16.msrb.mxu2 %v9701_v5  ;;  %20096 = vst [vmem:[#allocation122_spill] sm:$0xff] %v16883_v43 }
 0xb21   : > { %6099 = vmatpush.bf16.msra.mxu1 %v10611_v19  ;;  %v16901_v19 = vmul.f32 %v20099_v61, %v16704_v55  ;;  %v6021_v61 = vperm.slane %v16857_v57, %v14676_v7 }
 0xb22   : > { %6760 = vperm.xlu0 %11394, %v9919_v31   ;;  %6403 = vperm.xlu1 %11396, %v9836_v41   ;;  %v6519_v31 = vunpack.c.l.b16 %v5701_v56  ;;  %v6518_v41 = vunpack.c.l.b16 %v5700_v48  ;;  %v10541_v56 = vld [vmem:[#allocation22 + $0xd4] sm:$0xf0]  ;;  %v6018_v48 = vsel %vm4051_vm2, %v6017_v8, %v6016_v21  ;;  %v10554_v8 = vld [vmem:[#allocation25 + $0x44] sm:$0xf]  ;;  %v9634_v21 = vld [vmem:[#allocation25 + $0x50] sm:$0xf0] }
 0xb23   : > { %6400 = vperm.xlu2 %11395, %v9835_v22   ;;  %20100 = vst [vmem:[#allocation138_spill] sm:$0xff] %v16901_v19  ;;  %v5723_v22 = vpack.c.bf16 %v16883_v43, %v16883_v43  ;;  %v9577_v11 = vor.u32 %v10541_v56, %v9576_v1  ;;  %v6020_v57 = vsel %vm4055_vm3, %v6019_v34, %v6018_v48  ;;  %v6522_v1 = vunpack.c.l.b16 %v5704_v33  ;;  %v20105_v48 = vld [vmem:[#allocation251_spill] sm:$0xff] }
 0xb24   : > { %v16893_v5 = vpop.permute.xlu0 %6184  ;;  %v5987_v39 = vpop.permute.xlu1 %5986  ;;  %1498 = vmatpush.bf16.msrb.mxu2 %v9685_v32  ;;  %v9871_v32 = vunpack.i.l.s16 %v6519_v31  ;;  %v9870_v43 = vunpack.i.l.s16 %v6518_v41  ;;  %v9561_v56 = vor.u32 %v10537_v10, %v9560_v6  ;;  %v6022_v44 = vsel %vm4059_vm4, %v6021_v61, %v6020_v57  ;;  %v9544_v57 = vld [vmem:[#allocation22 + $0x88] sm:$0xf] }
 0xb25   : > { %v16897_v25 = vpop.permute.xlu2 %6004  ;;  %6100 = vmatpush.bf16.msra.mxu1 %v10610_v47  ;;  %v5703_v47 = vpack.c.bf16 %v16901_v19, %v16901_v19  ;;  %v6723_v31 = vunpack.c.l.b16 %v5723_v22  ;;  %1256 = vmatpush.bf16.msra.mxu3 %v9577_v11  ;;  %v6025_v4 = vperm.slane %v5987_v39, %v14708_v62  ;;  %v16934_v39 = vmul.f32 %v20105_v48, %v16704_v55 }
 0xb26   : > { %v9637_v61 = vor.u32 %v10554_v8, %v9634_v21  ;;  %v9874_v6 = vunpack.i.l.s16 %v6522_v1  ;;  %v10529_v1 = vld [vmem:[#allocation22 + $0x74] sm:$0xf0] }
 0xb27   : > { %v6521_v33 = vunpack.c.l.b16 %v5703_v47  ;;  %20106 = vst [vmem:[#allocation93_spill] sm:$0xff] %v16934_v39  ;;  %v9925_v0 = vunpack.i.l.s16 %v6723_v31  ;;  %v5706_v8 = vpack.c.bf16 %v16934_v39, %v16934_v39  ;;  %v9618_v31 = vld [vmem:[#allocation25 + $0x30] sm:$0xf0] }
 0xb28   : > { %1499 = vmatpush.bf16.msrb.mxu2 %v9669_v13  ;;  %v20101_v13 = vld [vmem:[#allocation227_spill] sm:$0xff] }
 0xb29   : > { %1257 = vmatpush.bf16.msra.mxu3 %v9561_v56 }
 0xb2a   : > { %6769 = vperm.xlu0 %11394, %v9922_v29   ;;  %6562 = vperm.xlu1 %11396, %v9871_v32   ;;  %v16922_v29 = vmul.f32 %v20101_v13, %v16816_v42  ;;  %v16926_v32 = vmul.f32 %v20103_v54, %v16704_v55  ;;  %v10533_v13 = vld [vmem:[#allocation22 + $0x94] sm:$0xf0]  ;;  %v10550_v54 = vld [vmem:[#allocation25 + $0x24] sm:$0xf] }
 0xb2b   : > { %6559 = vperm.xlu2 %11395, %v9870_v43   ;;  %v6023_v43 = vperm.slane %v16807_v18, %v14729_v63  ;;  %v9545_v21 = vor.u32 %v10533_v13, %v9544_v57  ;;  %v9621_v56 = vor.u32 %v10550_v54, %v9618_v31  ;;  %v20110_v54 = vld [vmem:[#allocation68_spill] sm:$0xff] }
 0xb2c   : > { %v16918_v41 = vpop.permute.xlu0 %6193  ;;  %v5993_v19 = vpop.permute.xlu1 %5992  ;;  %20102 = vst [vmem:[#allocation112_spill] sm:$0xff] %v16922_v29  ;;  %1500 = vmatpush.bf16.msrb.mxu2 %v9653_v60  ;;  %v5726_v18 = vpack.c.bf16 %v16922_v29, %v16922_v29  ;;  %v5707_v47 = vpack.c.bf16 %v16926_v32, %v16926_v32  ;;  %v6027_v60 = vperm.slane %v16836_v27, %v14685_v51 }
 0xb2d   : > { %20104 = vst [vmem:[#allocation150_spill] sm:$0xff] %v16926_v32  ;;  %v16930_v22 = vpop.permute.xlu2 %6010  ;;  %v6024_v11 = vsel %vm4063_vm5, %v6023_v43, %v6022_v44  ;;  %v6029_v34 = vperm.slane %v5993_v19, %v14734_v12  ;;  %v9873_v44 = vunpack.i.l.s16 %v6521_v33  ;;  %v9528_v19 = vld [vmem:[#allocation22 + $0x68] sm:$0xf]  ;;  %v9602_v43 = vld [vmem:[#allocation25 + $0x10] sm:$0xf0]  ;;  %1258 = vmatpush.bf16.msra.mxu3 %v9545_v21  ;;  %v16957_v31 = vmul.f32 %v20110_v54, %v16704_v55  ;;  %v20112_v21 = vld [vmem:[#allocation141_spill] sm:$0xff] }
 0xb2e   : > { %v6026_v10 = vsel %vm20107_vm9, %v6025_v4, %v6024_v11  ;;  %v10546_v4 = vld [vmem:[#allocation25 + $0x4] sm:$0xf]  ;;  %v20108_v11 = vld [vmem:[#allocation237_spill] sm:$0xff]  ;;  %v9529_v33 = vor.u32 %v10529_v1, %v9528_v19  ;;  %v16965_v19 = vmul.f32 %v20112_v21, %v16704_v55  ;;  %v16968_v1 = vperm.slane %v16482_v30, 5 }
 0xb2f   : > { %v6028_v48 = vsel %vm4071_vm7, %v6027_v60, %v6026_v10  ;;  %v16950_v27 = vmul.f32 %v20108_v11, %v16816_v42  ;;  %20111 = vst [vmem:[#allocation95_spill] sm:$0xff] %v16957_v31  ;;  %v6031_v10 = vperm.slane %v16799_v15, %v14716_v3  ;;  %v10625_v15 = vld [vmem:[%s12678_s21 + $0x78] sm:$0xff] }
 0xb30   : > { %1501 = vmatpush.bf16.msrb.mxu2 %v9637_v61  ;;  %v6030_v61 = vsel %vm4075_vm8, %v6029_v34, %v6028_v48  ;;  %20113 = vst [vmem:[#allocation131_spill] sm:$0xff] %v16965_v19  ;;  %v9605_v34 = vor.u32 %v10546_v4, %v9602_v43  ;;  %v9512_v4 = vld [vmem:[#allocation22 + $0x48] sm:$0xf]  ;;  %v10525_v43 = vld [vmem:[#allocation22 + $0x54] sm:$0xf0] }
 0xb31   : > { %20109 = vst [vmem:[#allocation133_spill] sm:$0xff] %v16950_v27  ;;  %v5729_v48 = vpack.c.bf16 %v16950_v27, %v16950_v27  ;;  %1259 = vmatpush.bf16.msra.mxu3 %v9529_v33  ;;  %v10521_v33 = vld [vmem:[#allocation22 + $0x34] sm:$0xf0] }
 0xb32   : > { %6778 = vperm.xlu0 %11394, %v9925_v0   ;;  %6571 = vperm.xlu1 %11396, %v9874_v6   ;;  %v6726_v0 = vunpack.c.l.b16 %v5726_v18  ;;  %v6525_v6 = vunpack.c.l.b16 %v5707_v47  ;;  %v6032_v18 = vsel %vm20114_vm6, %v6031_v10, %v6030_v61  ;;  %v5709_v61 = vpack.c.bf16 %v16965_v19, %v16965_v19  ;;  %v9496_v10 = vld [vmem:[#allocation22 + $0x28] sm:$0xf] }
 0xb33   : > { %6568 = vperm.xlu2 %11395, %v9873_v44   ;;  %v6524_v44 = vunpack.c.l.b16 %v5706_v8  ;;  %v6033_v8 = vperm.slane %v16863_v26, %v14691_v45 }
 0xb34   : > { %v16953_v57 = vpop.permute.xlu0 %6202  ;;  %v6002_v13 = vpop.permute.xlu1 %6001  ;;  %1502 = vmatpush.bf16.msrb.mxu2 %v9621_v56  ;;  %v9928_v11 = vunpack.i.l.s16 %v6726_v0  ;;  %v9877_v54 = vunpack.i.l.s16 %v6525_v6  ;;  %v5710_v56 = vpack.c.bf16 %v16957_v31, %v16957_v31  ;;  %v20117_v0 = vld [vmem:[#allocation167_spill] sm:$0xff]  ;;  %v10517_v31 = vld [vmem:[#allocation22 + $0x14] sm:$0xf0] }
 0xb35   : > { %v16961_v60 = vpop.permute.xlu2 %6169  ;;  %v6035_v47 = vperm.slane %v6002_v13, %v14740_v52  ;;  %v9876_v21 = vunpack.i.l.s16 %v6524_v44  ;;  %v9513_v13 = vor.u32 %v10525_v43, %v9512_v4  ;;  %v6034_v27 = vsel %vm20115_vm15, %v6033_v8, %v6032_v18  ;;  %v20119_v44 = vld [vmem:[#allocation177_spill] sm:$0xff] }
 0xb36   : > { %v16985_v6 = vmul.f32 %v20117_v0, %v16968_v1  ;;  %v16989_v29 = vmul.f32 %v20119_v44, %v16704_v55  ;;  %v6037_v4 = vperm.slane %v16897_v25, %v19899_v17  ;;  %v6729_v8 = vunpack.c.l.b16 %v5729_v48 }
 0xb37   : > { %v6036_v26 = vsel %vm20116_vm11, %v6035_v47, %v6034_v27  ;;  %v6528_v27 = vunpack.c.l.b16 %v5710_v56  ;;  %1260 = vmatpush.bf16.msra.mxu3 %v9513_v13  ;;  %v9497_v47 = vor.u32 %v10521_v33, %v9496_v10  ;;  %v6041_v25 = vperm.slane %v16930_v22, %v19904_v49  ;;  %v10623_v13 = vld [vmem:[%s12678_s21 + $0x68] sm:$0xff]  ;;  %v9720_v22 = vld [vmem:[#allocation25 + $0xe8] sm:$0xf] }
 0xb38   : > { %1503 = vmatpush.bf16.msrb.mxu2 %v9605_v34  ;;  %20118 = vst [vmem:[#allocation181_spill] sm:$0xff] %v16985_v6  ;;  %v10624_v34 = vld [vmem:[%s12678_s21 + $0x70] sm:$0xff]  ;;  %v6038_v44 = vsel %vm4091_vm12, %v6037_v4, %v6036_v26  ;;  %v5732_v56 = vpack.c.bf16 %v16985_v6, %v16985_v6  ;;  %v9931_v10 = vunpack.i.l.s16 %v6729_v8  ;;  %v9704_v8 = vld [vmem:[#allocation25 + $0xc8] sm:$0xf] }
 0xb39   : > { %20120 = vst [vmem:[#allocation84_spill] sm:$0xff] %v16989_v29  ;;  %v9880_v33 = vunpack.i.l.s16 %v6528_v27  ;;  %v10573_v27 = vld [vmem:[#allocation25 + $0xd4] sm:$0xf0] }
 0xb3a   : > { %6787 = vperm.xlu0 %11394, %v9928_v11   ;;  %6580 = vperm.xlu1 %11396, %v9877_v54  }
 0xb3b   : > { %6577 = vperm.xlu2 %11395, %v9876_v21   ;;  %1504 = vmatmul.bf16.vlgmr.msrb.gmra.mxu2 %v20088_v23  ;;  %v6527_v21 = vunpack.c.l.b16 %v5709_v61 }
 0xb3c   : > { %6291 = vmatpush.bf16.msra.mxu2 %v10625_v15  ;;  %v16994_v43 = vpop.permute.xlu0 %6361  ;;  %v6008_v18 = vpop.permute.xlu1 %6007  ;;  %v20121_v15 = vld [vmem:[#allocation60_spill] sm:$0xff]  ;;  %1261 = vmatpush.bf16.msra.mxu3 %v9497_v47 }
 0xb3d   : > { %v6039_v11 = vperm.slane %v6008_v18, %v19895_v59  ;;  %v16998_v54 = vpop.permute.xlu2 %6178  ;;  %v17002_v0 = vmul.f32 %v20121_v15, %v16704_v55  ;;  %v5713_v18 = vpack.c.bf16 %v16989_v29, %v16989_v29  ;;  %v9480_v15 = vld [vmem:[#allocation22 + $0x8] sm:$0xf]  ;;  %v9879_v32 = vunpack.i.l.s16 %v6527_v21  ;;  %v20123_v21 = vld [vmem:[#allocation62_spill] sm:$0xff] }
 0xb3f   : > { %20122 = vst [vmem:[#allocation136_spill] sm:$0xff] %v17002_v0  ;;  %v6040_v48 = vsel %vm4095_vm13, %v6039_v11, %v6038_v44  ;;  %v5712_v4 = vpack.c.bf16 %v17002_v0, %v17002_v0  ;;  %v9481_v11 = vor.u32 %v10517_v31, %v9480_v15  ;;  %v10577_v44 = vld [vmem:[#allocation25 + $0xf4] sm:$0xf0]  ;;  %v6531_v6 = vunpack.c.l.b16 %v5713_v18  ;;  %v20125_v31 = vld [vmem:[#allocation179_spill] sm:$0xff]  ;;  %v20133_v0 = vld [vmem:[#allocation182_spill] sm:$0xff] }
 0xb40   : > { %6292 = vmatpush.bf16.msra.mxu2 %v10624_v34  ;;  %v6042_v61 = vsel %vm4099_vm14, %v6041_v25, %v6040_v48  ;;  %v9721_v34 = vor.u32 %v10577_v44, %v9720_v22  ;;  %v6914_v48 = vunpack.c.l.b16 %v5732_v56  ;;  %v17024_v15 = vmul.f32 %v20125_v31, %v16816_v42  ;;  %v20127_v22 = vld [vmem:[#allocation169_spill] sm:$0xff]  ;;  %v9688_v31 = vld [vmem:[#allocation25 + $0xa8] sm:$0xf] }
 0xb41   : > { %v6043_v26 = vpack.c.b16 %v6042_v61, %v6042_v61  ;;  %v17020_v61 = vmul.f32 %v20123_v21, %v16968_v1  ;;  %1262 = vmatpush.bf16.msra.mxu3 %v9481_v11  ;;  %v9705_v56 = vor.u32 %v10573_v27, %v9704_v8  ;;  %v9883_v44 = vunpack.i.l.s16 %v6531_v6  ;;  %v10621_v11 = vld [vmem:[%s12678_s21 + $0x58] sm:$0xff] }
 0xb42   : > { %6796 = vperm.xlu0 %11394, %v9931_v10   ;;  %6589 = vperm.xlu1 %11396, %v9880_v33   ;;  %20126 = vst [vmem:[#allocation129_spill] sm:$0xff] %v17024_v15  ;;  %v6530_v33 = vunpack.c.l.b16 %v5712_v4  ;;  %v9966_v18 = vunpack.i.l.s16 %v6914_v48  ;;  %v10569_v4 = vld [vmem:[#allocation25 + $0xb4] sm:$0xf0]  ;;  %v20129_v8 = vld [vmem:[#allocation159_spill] sm:$0xff]  ;;  %v17059_v19 = vmul.f32 %v20133_v0, %v16816_v42 }
 0xb43   : > { %6586 = vperm.xlu2 %11395, %v9879_v32   ;;  %6101 = vmatmul.bf16.vlgmr.msra.gmra.mxu1 %v6043_v26  ;;  %20124 = vst [vmem:[#allocation127_spill] sm:$0xff] %v17020_v61  ;;  %v10622_v32 = vld [vmem:[%s12678_s21 + $0x60] sm:$0xff]  ;;  %v17031_v26 = vmul.f32 %v20127_v22, %v16704_v55  ;;  %v5735_v21 = vpack.c.bf16 %v17020_v61, %v17020_v61  ;;  %v9672_v22 = vld [vmem:[#allocation25 + $0x88] sm:$0xf] }
 0xb44   : > { %v17016_v25 = vpop.permute.xlu0 %6370  ;;  %v6164_v47 = vpop.permute.xlu1 %6163  ;;  %6293 = vmatpush.bf16.msra.mxu2 %v10623_v13  ;;  %1263 = vmatmul.bf16.vlgmr.msra.gmra.mxu3 %v16778_v16  ;;  %v5716_v13 = vpack.c.bf16 %v17024_v15, %v17024_v15  ;;  %v9882_v29 = vunpack.i.l.s16 %v6530_v33  ;;  %v17044_v27 = vmul.f32 %v20129_v8, %v16968_v1  ;;  %v10543_v48 = vld [vmem:[#allocation22 + $0xec] sm:$0xf]  ;;  %20134 = vst [vmem:[#allocation119_spill] sm:$0xff] %v17059_v19 }
 0xb45   : > { %v17027_v10 = vpop.permute.xlu2 %6187  ;;  %20128 = vst [vmem:[#allocation117_spill] sm:$0xff] %v17031_v26  ;;  %1509 = vmatpush.bf16.msrb.mxu3 %v9721_v34  ;;  %v5715_v55 = vpack.c.bf16 %v17031_v26, %v17031_v26  ;;  %v9689_v34 = vor.u32 %v10569_v4, %v9688_v31  ;;  %v6210_v6 = vperm.slane %v6164_v47, %v14652_v37  ;;  %v6917_v15 = vunpack.c.l.b16 %v5735_v21  ;;  %v10620_v47 = vld [vmem:[%s12678_s21 + $0x50] sm:$0xff] }
 0xb46   : > { %20130 = vst [vmem:[#allocation99_spill] sm:$0xff] %v17044_v27  ;;  %v6716_v26 = vunpack.c.l.b16 %v5716_v13  ;;  %v6211_v31 = vperm.slane %v16824_v9, %v14657_v58  ;;  %v6213_v9 = vperm.slane %v16961_v60, %v14660_v2 }
 0xb47   : > { %v6533_v8 = vunpack.c.l.b16 %v5715_v55 }
 0xb48   : > { %6294 = vmatpush.bf16.msra.mxu2 %v10622_v32  ;;  %v9594_v32 = vld [vmem:[#allocation22 + $0xf8] sm:$0xf0]  ;;  %v6212_v13 = vsel %vm4043_vm0, %v6211_v31, %v6210_v6  ;;  %v9918_v55 = vunpack.i.l.s16 %v6716_v26  ;;  %v5718_v6 = vpack.c.bf16 %v17059_v19, %v17059_v19  ;;  %v10561_v31 = vld [vmem:[#allocation25 + $0x74] sm:$0xf0] }
 0xb49   : > { %1510 = vmatpush.bf16.msrb.mxu3 %v9705_v56  ;;  %v20131_v56 = vld [vmem:[#allocation64_spill] sm:$0xff] }
 0xb4a   : > { %6955 = vperm.xlu0 %11394, %v9966_v18   ;;  %6598 = vperm.xlu1 %11396, %v9883_v44   ;;  %v17050_v18 = vmul.f32 %v20131_v56, %v16816_v42  ;;  %v10565_v44 = vld [vmem:[#allocation25 + $0x94] sm:$0xf0]  ;;  %v9969_v56 = vunpack.i.l.s16 %v6917_v15  ;;  %v6217_v15 = vperm.slane %v16855_v14, %v14673_v35 }
 0xb4b   : > { %6595 = vperm.xlu2 %11395, %v9882_v29   ;;  %v9597_v29 = vor.u32 %v10543_v48, %v9594_v32  ;;  %v9673_v21 = vor.u32 %v10565_v44, %v9672_v22  ;;  %v5738_v48 = vpack.c.bf16 %v17044_v27, %v17044_v27  ;;  %v10619_v32 = vld [vmem:[%s12678_s21 + $0x48] sm:$0xff]  ;;  %v9578_v22 = vld [vmem:[#allocation22 + $0xd8] sm:$0xf0]  ;;  %v9885_v44 = vunpack.i.l.s16 %v6533_v8  ;;  %v20135_v8 = vld [vmem:[#allocation171_spill] sm:$0xff] }
 0xb4c   : > { %v17046_v61 = vpop.permute.xlu0 %6379  ;;  %v6173_v33 = vpop.permute.xlu1 %6172  ;;  %20132 = vst [vmem:[#allocation125_spill] sm:$0xff] %v17050_v18  ;;  %6295 = vmatpush.bf16.msra.mxu2 %v10621_v11  ;;  %v5719_v0 = vpack.c.bf16 %v17050_v18, %v17050_v18  ;;  %v6214_v27 = vsel %vm4047_vm1, %v6213_v9, %v6212_v13  ;;  %v17078_v18 = vmul.f32 %v20135_v8, %v16968_v1  ;;  %v20139_v14 = vld [vmem:[#allocation173_spill] sm:$0xff] }
 0xb4d   : > { %v17055_v4 = vpop.permute.xlu2 %6196  ;;  %1511 = vmatpush.bf16.msrb.mxu3 %v9689_v34  ;;  %1268 = vmatpush.bf16.msrb.mxu0 %v9597_v29  ;;  %v6215_v11 = vperm.slane %v6173_v33, %v14679_v28  ;;  %v10539_v34 = vld [vmem:[#allocation22 + $0xcc] sm:$0xf]  ;;  %v9656_v29 = vld [vmem:[#allocation25 + $0x68] sm:$0xf] }
 0xb4e   : > { %v9581_v33 = vor.u32 %v10539_v34, %v9578_v22  ;;  %v9657_v60 = vor.u32 %v10561_v31, %v9656_v29  ;;  %20136 = vst [vmem:[#allocation202_spill] sm:$0xff] %v17078_v18  ;;  %v9562_v34 = vld [vmem:[#allocation22 + $0xb8] sm:$0xf0]  ;;  %v9640_v22 = vld [vmem:[#allocation25 + $0x48] sm:$0xf]  ;;  %v6718_v31 = vunpack.c.l.b16 %v5718_v6 }
 0xb4f   : > { %v6216_v26 = vsel %vm4051_vm2, %v6215_v11, %v6214_v27  ;;  %v17088_v27 = vmul.f32 %v20139_v14, %v16816_v42  ;;  %v10618_v11 = vld [vmem:[%s12678_s21 + $0x40] sm:$0xff]  ;;  %v5741_v14 = vpack.c.bf16 %v17078_v18, %v17078_v18 }
 0xb50   : > { %6296 = vmatpush.bf16.msra.mxu2 %v10620_v47  ;;  %v6920_v47 = vunpack.c.l.b16 %v5738_v48  ;;  %v6218_v19 = vsel %vm4055_vm3, %v6217_v15, %v6216_v26  ;;  %v9546_v15 = vld [vmem:[#allocation22 + $0x98] sm:$0xf0]  ;;  %v9624_v26 = vld [vmem:[#allocation25 + $0x28] sm:$0xf] }
 0xb51   : > { %1512 = vmatpush.bf16.msrb.mxu3 %v9673_v21  ;;  %1269 = vmatpush.bf16.msrb.mxu0 %v9581_v33  ;;  %v10535_v21 = vld [vmem:[#allocation22 + $0xac] sm:$0xf]  ;;  %v5721_v6 = vpack.c.bf16 %v17088_v27, %v17088_v27 }
 0xb52   : > { %6964 = vperm.xlu0 %11394, %v9969_v56   ;;  %6757 = vperm.xlu1 %11396, %v9918_v55   ;;  %v6719_v56 = vunpack.c.l.b16 %v5719_v0  ;;  %v20137_v55 = vld [vmem:[#allocation184_spill] sm:$0xff]  ;;  %v9565_v48 = vor.u32 %v10535_v21, %v9562_v34 }
 0xb53   : > { %6604 = vperm.xlu2 %11395, %v9885_v44   ;;  %v17084_v29 = vmul.f32 %v20137_v55, %v16816_v42  ;;  %v10557_v44 = vld [vmem:[#allocation25 + $0x54] sm:$0xf0]  ;;  %v6219_v55 = vperm.slane %v16998_v54, %v14676_v7 }
 0xb54   : > { %v17080_v13 = vpop.permute.xlu0 %6388  ;;  %v6182_v9 = vpop.permute.xlu1 %6181  ;;  %6297 = vmatpush.bf16.msra.mxu2 %v10619_v32  ;;  %v9641_v8 = vor.u32 %v10557_v44, %v9640_v22  ;;  %v9972_v32 = vunpack.i.l.s16 %v6920_v47  ;;  %v9921_v39 = vunpack.i.l.s16 %v6719_v56  ;;  %v9920_v22 = vunpack.i.l.s16 %v6718_v31  ;;  %v9530_v31 = vld [vmem:[#allocation22 + $0x78] sm:$0xf0] }
 0xb55   : > { %20138 = vst [vmem:[#allocation113_spill] sm:$0xff] %v17084_v29  ;;  %v17091_v33 = vpop.permute.xlu2 %6205  ;;  %1513 = vmatpush.bf16.msrb.mxu3 %v9657_v60  ;;  %v6221_v0 = vperm.slane %v6182_v9, %v14729_v63  ;;  %1270 = vmatpush.bf16.msrb.mxu0 %v9565_v48  ;;  %v5722_v21 = vpack.c.bf16 %v17084_v29, %v17084_v29  ;;  %v10531_v60 = vld [vmem:[#allocation22 + $0x8c] sm:$0xf]  ;;  %v10553_v9 = vld [vmem:[#allocation25 + $0x34] sm:$0xf0]  ;;  %v6923_v44 = vunpack.c.l.b16 %v5741_v14 }
 0xb56   : > { %v6220_v34 = vsel %vm4059_vm4, %v6219_v55, %v6218_v19  ;;  %v9549_v54 = vor.u32 %v10531_v60, %v9546_v15  ;;  %v9625_v47 = vor.u32 %v10553_v9, %v9624_v26  ;;  %v6223_v56 = vperm.slane %v16893_v5, %v14708_v62  ;;  %v10527_v19 = vld [vmem:[#allocation22 + $0x6c] sm:$0xf]  ;;  %v10549_v14 = vld [vmem:[#allocation25 + $0x14] sm:$0xf0] }
 0xb57   : > { %v6222_v48 = vsel %vm4063_vm5, %v6221_v0, %v6220_v34  ;;  %v6722_v0 = vunpack.c.l.b16 %v5722_v21  ;;  %v9533_v5 = vor.u32 %v10527_v19, %v9530_v31  ;;  %v6237_v29 = vperm.slane %v17091_v33, %v19895_v59 }
 0xb58   : > { %6298 = vmatpush.bf16.msra.mxu2 %v10618_v11  ;;  %v20140_v11 = vld [vmem:[#allocation185_spill] sm:$0xff]  ;;  %v6224_v26 = vsel %vm20107_vm9, %v6223_v56, %v6222_v48  ;;  %v9975_v48 = vunpack.i.l.s16 %v6923_v44 }
 0xb59   : > { %1514 = vmatpush.bf16.msrb.mxu3 %v9641_v8  ;;  %v17109_v18 = vmul.f32 %v20140_v11, %v16968_v1  ;;  %1271 = vmatpush.bf16.msrb.mxu0 %v9549_v54  ;;  %v9608_v8 = vld [vmem:[#allocation25 + $0x8] sm:$0xf]  ;;  %v20144_v54 = vld [vmem:[#allocation161_spill] sm:$0xff]  ;;  %v9924_v56 = vunpack.i.l.s16 %v6722_v0  ;;  %v20145_v0 = vld [vmem:[#allocation188_spill] sm:$0xff] }
 0xb5a   : > { %6973 = vperm.xlu0 %11394, %v9972_v32   ;;  %6766 = vperm.xlu1 %11396, %v9921_v39   ;;  %v6721_v32 = vunpack.c.l.b16 %v5721_v6  ;;  %v20142_v39 = vld [vmem:[#allocation175_spill] sm:$0xff]  ;;  %v17123_v9 = vmul.f32 %v20144_v54, %v16816_v42  ;;  %v9609_v21 = vor.u32 %v10549_v14, %v9608_v8  ;;  %v6225_v6 = vperm.slane %v17027_v10, %v14685_v51  ;;  %v9514_v54 = vld [vmem:[#allocation22 + $0x58] sm:$0xf0] }
 0xb5b   : > { %6763 = vperm.xlu2 %11395, %v9920_v22   ;;  %20141 = vst [vmem:[#allocation105_spill] sm:$0xff] %v17109_v18  ;;  %v17115_v15 = vmul.f32 %v20142_v39, %v16816_v42  ;;  %v5744_v11 = vpack.c.bf16 %v17109_v18, %v17109_v18  ;;  %v10523_v39 = vld [vmem:[#allocation22 + $0x4c] sm:$0xf] }
 0xb5c   : > { %v17111_v55 = vpop.permute.xlu0 %6397  ;;  %v6191_v60 = vpop.permute.xlu1 %6190  ;;  %v6226_v19 = vsel %vm4071_vm7, %v6225_v6, %v6224_v26  ;;  %v9923_v8 = vunpack.i.l.s16 %v6721_v32  ;;  %v5724_v10 = vpack.c.bf16 %v17123_v9, %v17123_v9  ;;  %v9517_v14 = vor.u32 %v10523_v39, %v9514_v54  ;;  %v10632_v6 = vld [vmem:[%s12678_s21 + $0xb0] sm:$0xff] }
 0xb5d   : > { %20143 = vst [vmem:[#allocation142_spill] sm:$0xff] %v17115_v15  ;;  %v6227_v34 = vperm.slane %v6191_v60, %v14734_v12  ;;  %v17119_v22 = vpop.permute.xlu2 %6364  ;;  %1515 = vmatpush.bf16.msrb.mxu3 %v9625_v47  ;;  %1272 = vmatpush.bf16.msrb.mxu0 %v9533_v5  ;;  %v5725_v31 = vpack.c.bf16 %v17115_v15, %v17115_v15  ;;  %v10633_v60 = vld [vmem:[%s12678_s21 + $0xb8] sm:$0xff]  ;;  %v6926_v44 = vunpack.c.l.b16 %v5744_v11  ;;  %v9498_v32 = vld [vmem:[#allocation22 + $0x38] sm:$0xf0] }
 0xb5e   : > { %v6229_v5 = vperm.slane %v16918_v41, %v14716_v3  ;;  %v17140_v26 = vmul.f32 %v20145_v0, %v16968_v1  ;;  %v20147_v41 = vld [vmem:[#allocation163_spill] sm:$0xff]  ;;  %v6235_v15 = vperm.slane %v16953_v57, %v19899_v17 }
 0xb5f   : > { %v6228_v47 = vsel %vm4075_vm8, %v6227_v34, %v6226_v19  ;;  %v10519_v34 = vld [vmem:[#allocation22 + $0x2c] sm:$0xf]  ;;  %v6725_v39 = vunpack.c.l.b16 %v5725_v31  ;;  %v9978_v0 = vunpack.i.l.s16 %v6926_v44 }
 0xb60   : > { %20146 = vst [vmem:[#allocation157_spill] sm:$0xff] %v17140_v26  ;;  %v6230_v19 = vsel %vm20114_vm6, %v6229_v5, %v6228_v47  ;;  %v9501_v11 = vor.u32 %v10519_v34, %v9498_v32  ;;  %v6724_v47 = vunpack.c.l.b16 %v5724_v10  ;;  %v17161_v5 = vperm.slane %v16482_v30, 6  ;;  %v10571_v57 = vld [vmem:[#allocation25 + $0xcc] sm:$0xf] }
 0xb61   : > { %1516 = vmatpush.bf16.msrb.mxu3 %v9609_v21  ;;  %1273 = vmatpush.bf16.msrb.mxu0 %v9517_v14  ;;  %v9927_v32 = vunpack.i.l.s16 %v6725_v39  ;;  %v10575_v39 = vld [vmem:[#allocation25 + $0xec] sm:$0xf] }
 0xb62   : > { %6982 = vperm.xlu0 %11394, %v9975_v48   ;;  %6775 = vperm.xlu1 %11396, %v9924_v56   ;;  %v17148_v48 = vmul.f32 %v20147_v41, %v16816_v42  ;;  %v6231_v56 = vperm.slane %v17055_v4, %v14691_v45  ;;  %v5747_v4 = vpack.c.bf16 %v17140_v26, %v17140_v26  ;;  %v10515_v41 = vld [vmem:[#allocation22 + $0xc] sm:$0xf] }
 0xb63   : > { %6772 = vperm.xlu2 %11395, %v9923_v8   ;;  %v20149_v8 = vld [vmem:[#allocation70_spill] sm:$0xff] }
 0xb64   : > { %v17144_v18 = vpop.permute.xlu0 %6406  ;;  %v6200_v21 = vpop.permute.xlu1 %6199  ;;  %20148 = vst [vmem:[#allocation86_spill] sm:$0xff] %v17148_v48  ;;  %1517 = vmatmul.bf16.vlgmr.msrb.gmra.mxu3 %v20088_v23  ;;  %v17158_v31 = vmul.f32 %v20149_v8, %v16816_v42  ;;  %v6232_v14 = vsel %vm20115_vm15, %v6231_v56, %v6230_v19  ;;  %v5728_v10 = vpack.c.bf16 %v17148_v48, %v17148_v48  ;;  %v9482_v8 = vld [vmem:[#allocation22 + $0x18] sm:$0xf0]  ;;  %v9926_v19 = vunpack.i.l.s16 %v6724_v47  ;;  %v10630_v48 = vld [vmem:[%s12678_s21 + $0xa0] sm:$0xff] }
 0xb65   : > { %6489 = vmatpush.bf16.msra.mxu3 %v10633_v60  ;;  %v6233_v60 = vperm.slane %v6200_v21, %v14740_v52  ;;  %v17154_v54 = vpop.permute.xlu2 %6373  ;;  %1274 = vmatpush.bf16.msrb.mxu0 %v9501_v11  ;;  %v10631_v21 = vld [vmem:[%s12678_s21 + $0xa8] sm:$0xff]  ;;  %v9722_v56 = vld [vmem:[#allocation25 + $0xf8] sm:$0xf0] }
 0xb66   : > { %20150 = vst [vmem:[#allocation151_spill] sm:$0xff] %v17158_v31  ;;  %v5727_v44 = vpack.c.bf16 %v17158_v31, %v17158_v31  ;;  %v20151_v11 = vld [vmem:[#allocation72_spill] sm:$0xff]  ;;  %v9706_v47 = vld [vmem:[#allocation25 + $0xd8] sm:$0xf0] }
 0xb67   : > { %v6234_v34 = vsel %vm20116_vm11, %v6233_v60, %v6232_v14  ;;  %v9725_v60 = vor.u32 %v10575_v39, %v9722_v56  ;;  %v17177_v26 = vmul.f32 %v20151_v11, %v17161_v5  ;;  %v20153_v39 = vld [vmem:[#allocation190_spill] sm:$0xff]  ;;  %v9709_v33 = vor.u32 %v10571_v57, %v9706_v47  ;;  %v9674_v47 = vld [vmem:[#allocation25 + $0x98] sm:$0xf0] }
 0xb68   : > { %v6236_v14 = vsel %vm4091_vm12, %v6235_v15, %v6234_v34  ;;  %v17186_v15 = vmul.f32 %v20153_v39, %v16816_v42  ;;  %v20155_v56 = vld [vmem:[#allocation146_spill] sm:$0xff] }
 0xb69   : > { %6490 = vmatpush.bf16.msra.mxu3 %v10632_v6  ;;  %v9485_v6 = vor.u32 %v10515_v41, %v9482_v8  ;;  %20152 = vst [vmem:[#allocation100_spill] sm:$0xff] %v17177_v26  ;;  %v17193_v11 = vmul.f32 %v20155_v56, %v16816_v42  ;;  %v5750_v39 = vpack.c.bf16 %v17177_v26, %v17177_v26  ;;  %v10629_v42 = vld [vmem:[%s12678_s21 + $0x98] sm:$0xff]  ;;  %v10567_v56 = vld [vmem:[#allocation25 + $0xac] sm:$0xf] }
 0xb6a   : > { %6991 = vperm.xlu0 %11394, %v9978_v0   ;;  %6784 = vperm.xlu1 %11396, %v9927_v32   ;;  %v6929_v0 = vunpack.c.l.b16 %v5747_v4  ;;  %v6728_v32 = vunpack.c.l.b16 %v5728_v10  ;;  %20154 = vst [vmem:[#allocation81_spill] sm:$0xff] %v17186_v15  ;;  %v6238_v4 = vsel %vm4095_vm13, %v6237_v29, %v6236_v14 }
 0xb6b   : > { %6781 = vperm.xlu2 %11395, %v9926_v19   ;;  %1275 = vmatpush.bf16.msrb.mxu0 %v9485_v6  ;;  %v6727_v19 = vunpack.c.l.b16 %v5727_v44  ;;  %20156 = vst [vmem:[#allocation75_spill] sm:$0xff] %v17193_v11  ;;  %v5731_v44 = vpack.c.bf16 %v17186_v15, %v17186_v15  ;;  %v5730_v29 = vpack.c.bf16 %v17193_v11, %v17193_v11  ;;  %v9626_v11 = vld [vmem:[#allocation25 + $0x38] sm:$0xf0] }
 0xb6c   : > { %v17182_v41 = vpop.permute.xlu0 %6565  ;;  %v6209_v8 = vpop.permute.xlu1 %6208  ;;  %v9930_v31 = vunpack.i.l.s16 %v6728_v32 }
 0xb6d   : > { %6491 = vmatpush.bf16.msra.mxu3 %v10631_v21  ;;  %v6239_v34 = vperm.slane %v6209_v8, %v19904_v49  ;;  %v17189_v21 = vpop.permute.xlu2 %6382  ;;  %v9981_v8 = vunpack.i.l.s16 %v6929_v0  ;;  %v9929_v57 = vunpack.i.l.s16 %v6727_v19 }
 0xb6e   : > { %1276 = vmatmul.bf16.vlgmr.msrb.gmra.mxu0 %v16778_v16  ;;  %v7114_v16 = vunpack.c.l.b16 %v5750_v39  ;;  %v6730_v39 = vunpack.c.l.b16 %v5730_v29 }
 0xb6f   : > { %1522 = vmatpush.bf16.msra.mxu0 %v9725_v60  ;;  %v6240_v10 = vsel %vm4099_vm14, %v6239_v34, %v6238_v4  ;;  %v9690_v60 = vld [vmem:[#allocation25 + $0xb8] sm:$0xf0]  ;;  %v6731_v34 = vunpack.c.l.b16 %v5731_v44  ;;  %v20157_v4 = vld [vmem:[#allocation191_spill] sm:$0xff] }
 0xb70   : > { %v6241_v6 = vpack.c.b16 %v6240_v10, %v6240_v10  ;;  %v9693_v14 = vor.u32 %v10567_v56, %v9690_v60  ;;  %v17209_v19 = vmul.f32 %v20157_v4, %v17161_v5  ;;  %v20159_v10 = vld [vmem:[#allocation61_spill] sm:$0xff]  ;;  %v6409_v56 = vperm.slane %v17119_v22, %v14657_v58  ;;  %v10559_v4 = vld [vmem:[#allocation25 + $0x6c] sm:$0xf] }
 0xb71   : > { %6492 = vmatpush.bf16.msra.mxu3 %v10630_v48  ;;  %v10563_v48 = vld [vmem:[#allocation25 + $0x8c] sm:$0xf]  ;;  %v17213_v26 = vmul.f32 %v20159_v10, %v16968_v1  ;;  %v9658_v10 = vld [vmem:[#allocation25 + $0x78] sm:$0xf0]  ;;  %v9933_v15 = vunpack.i.l.s16 %v6731_v34 }
 0xb72   : > { %7000 = vperm.xlu0 %11394, %v9981_v8   ;;  %6793 = vperm.xlu1 %11396, %v9930_v31   ;;  %20158 = vst [vmem:[#allocation242_spill] sm:$0xff] %v17209_v19  ;;  %v9677_v44 = vor.u32 %v10563_v48, %v9674_v47  ;;  %v5753_v29 = vpack.c.bf16 %v17209_v19, %v17209_v19  ;;  %v9932_v48 = vunpack.i.l.s16 %v6730_v39  ;;  %v9642_v19 = vld [vmem:[#allocation25 + $0x58] sm:$0xf0] }
 0xb73   : > { %1523 = vmatpush.bf16.msra.mxu0 %v9709_v33  ;;  %6790 = vperm.xlu2 %11395, %v9929_v57   ;;  %20160 = vst [vmem:[#allocation245_spill] sm:$0xff] %v17213_v26  ;;  %v10628_v33 = vld [vmem:[%s12678_s21 + $0x90] sm:$0xff]  ;;  %v10016_v57 = vunpack.i.l.s16 %v7114_v16  ;;  %v9661_v16 = vor.u32 %v10559_v4, %v9658_v10  ;;  %v6413_v39 = vperm.slane %v17016_v25, %v14679_v28 }
 0xb74   : > { %6299 = vmatmul.bf16.vlgmr.msra.gmra.mxu2 %v6241_v6  ;;  %v17205_v0 = vpop.permute.xlu0 %6574  ;;  %v6368_v32 = vpop.permute.xlu1 %6367  ;;  %v20161_v6 = vld [vmem:[#allocation192_spill] sm:$0xff]  ;;  %v7117_v4 = vunpack.c.l.b16 %v5753_v29 }
 0xb75   : > { %6493 = vmatpush.bf16.msra.mxu3 %v10629_v42  ;;  %v17216_v31 = vpop.permute.xlu2 %6391  ;;  %v17220_v8 = vmul.f32 %v20161_v6, %v16968_v1  ;;  %v6411_v60 = vperm.slane %v6368_v32, %v14660_v2  ;;  %v6408_v42 = vperm.slane %v16994_v43, %v14652_v37  ;;  %v5734_v6 = vpack.c.bf16 %v17213_v26, %v17213_v26  ;;  %v20163_v32 = vld [vmem:[#allocation193_spill] sm:$0xff] }
 0xb76   : > { %v17238_v34 = vmul.f32 %v20163_v32, %v17161_v5 }
 0xb77   : > { %20162 = vst [vmem:[#allocation108_spill] sm:$0xff] %v17220_v8  ;;  %1524 = vmatpush.bf16.msra.mxu0 %v9693_v14  ;;  %v10627_v14 = vld [vmem:[%s12678_s21 + $0x88] sm:$0xff]  ;;  %v5733_v22 = vpack.c.bf16 %v17220_v8, %v17220_v8  ;;  %v6410_v47 = vsel %vm4043_vm0, %v6409_v56, %v6408_v42  ;;  %v6916_v10 = vunpack.c.l.b16 %v5734_v6  ;;  %v20165_v56 = vld [vmem:[#allocation174_spill] sm:$0xff]  ;;  %v6415_v6 = vperm.slane %v17154_v54, %v14673_v35 }
 0xb78   : > { %v6412_v43 = vsel %vm4047_vm1, %v6411_v60, %v6410_v47  ;;  %20164 = vst [vmem:[#allocation210_spill] sm:$0xff] %v17238_v34  ;;  %v10626_v60 = vld [vmem:[%s12678_s21 + $0x80] sm:$0xff] }
 0xb79   : > { %6494 = vmatpush.bf16.msra.mxu3 %v10628_v33  ;;  %v10555_v33 = vld [vmem:[#allocation25 + $0x4c] sm:$0xf]  ;;  %v6915_v42 = vunpack.c.l.b16 %v5733_v22  ;;  %v6414_v32 = vsel %vm4051_vm2, %v6413_v39, %v6412_v43  ;;  %v9968_v8 = vunpack.i.l.s16 %v6916_v10  ;;  %v6419_v39 = vperm.slane %v17046_v61, %v14729_v63  ;;  %v17273_v10 = vpop.f32.mrf.mxu1  ;;  %v20173_v61 = vld [vmem:[#allocation82_spill] sm:$0xff] }
 0xb7a   : > { %7159 = vperm.xlu0 %11394, %v10016_v57   ;;  %6802 = vperm.xlu1 %11396, %v9933_v15   ;;  %v17246_v15 = vmul.f32 %v20165_v56, %v16968_v1  ;;  %v9645_v25 = vor.u32 %v10555_v33, %v9642_v19  ;;  %v10019_v56 = vunpack.i.l.s16 %v7117_v4  ;;  %v6416_v19 = vsel %vm4055_vm3, %v6415_v6, %v6414_v32 }
 0xb7b   : > { %1525 = vmatpush.bf16.msra.mxu0 %v9677_v44  ;;  %6799 = vperm.xlu2 %11395, %v9932_v48   ;;  %v20167_v48 = vld [vmem:[#allocation80_spill] sm:$0xff]  ;;  %20170 = vst [vmem:[#allocation78_spill] sm:$0xff] %v17273_v10 }
 0xb7c   : > { %v17242_v26 = vpop.permute.xlu0 %6583  ;;  %v6377_v44 = vpop.permute.xlu1 %6376  ;;  %20166 = vst [vmem:[#allocation102_spill] sm:$0xff] %v17246_v15  ;;  %v17253_v47 = vmul.f32 %v20167_v48, %v16968_v1  ;;  %v5737_v22 = vpack.c.bf16 %v17246_v15, %v17246_v15  ;;  %v10551_v48 = vld [vmem:[#allocation25 + $0x2c] sm:$0xf] }
 0xb7d   : > { %6495 = vmatpush.bf16.msra.mxu3 %v10627_v14  ;;  %v17249_v57 = vpop.permute.xlu2 %6400  ;;  %v6417_v29 = vperm.slane %v6377_v44, %v14676_v7  ;;  %v5756_v14 = vpack.c.bf16 %v17238_v34, %v17238_v34  ;;  %v9629_v33 = vor.u32 %v10551_v48, %v9626_v11  ;;  %v20168_v44 = vld [vmem:[#allocation195_spill] sm:$0xff] }
 0xb7e   : > { %v5736_v43 = vpack.c.bf16 %v17253_v47, %v17253_v47  ;;  %v17271_v4 = vmul.f32 %v20168_v44, %v17161_v5 }
 0xb7f   : > { %1526 = vmatpush.bf16.msra.mxu0 %v9661_v16  ;;  %v9967_v16 = vunpack.i.l.s16 %v6915_v42  ;;  %v6418_v54 = vsel %vm4059_vm4, %v6417_v29, %v6416_v19  ;;  %v9610_v42 = vld [vmem:[#allocation25 + $0x18] sm:$0xf0]  ;;  %v7120_v11 = vunpack.c.l.b16 %v5756_v14  ;;  %v6919_v29 = vunpack.c.l.b16 %v5737_v22 }
 0xb80   : > { %20169 = vst [vmem:[#allocation77_spill] sm:$0xff] %v17271_v4  ;;  %v6420_v48 = vsel %vm4063_vm5, %v6419_v39, %v6418_v54  ;;  %v6918_v44 = vunpack.c.l.b16 %v5736_v43  ;;  %v6421_v14 = vperm.slane %v17189_v21, %v14708_v62  ;;  %v5759_v22 = vpack.c.bf16 %v17271_v4, %v17271_v4  ;;  %v10641_v39 = vld [vmem:[%s12678_s21 + $0xf8] sm:$0xff] }
 0xb81   : > { %6496 = vmatpush.bf16.msra.mxu3 %v10626_v60  ;;  %v10547_v60 = vld [vmem:[#allocation25 + $0xc] sm:$0xf]  ;;  %v9971_v34 = vunpack.i.l.s16 %v6919_v29  ;;  %v6425_v21 = vperm.slane %v17080_v13, %v14734_v12 }
 0xb82   : > { %7168 = vperm.xlu0 %11394, %v10019_v56   ;;  %6961 = vperm.xlu1 %11396, %v9968_v8   ;;  %v20171_v8 = vld [vmem:[#allocation67_spill] sm:$0xff]  ;;  %v17283_v56 = vmul.f32 %v20173_v61, %v16968_v1  ;;  %v9613_v10 = vor.u32 %v10547_v60, %v9610_v42  ;;  %v10022_v61 = vunpack.i.l.s16 %v7120_v11  ;;  %v9970_v43 = vunpack.i.l.s16 %v6918_v44  ;;  %v1240_v42 = vpop.f32.mrf.mxu1  ;;  %v10640_v11 = vld [vmem:[%s12678_s21 + $0xf0] sm:$0xff] }
 0xb83   : > { %1527 = vmatpush.bf16.msra.mxu0 %v9645_v25  ;;  %6958 = vperm.xlu2 %11395, %v9967_v16   ;;  %v17279_v6 = vmul.f32 %v20171_v8, %v16968_v1  ;;  %v6422_v8 = vsel %vm20107_vm9, %v6421_v14, %v6420_v48  ;;  %v7123_v60 = vunpack.c.l.b16 %v5759_v22  ;;  %v20174_v14 = vld [vmem:[#allocation197_spill] sm:$0xff] }
 0xb84   : > { %v17275_v32 = vpop.permute.xlu0 %6592  ;;  %v6386_v25 = vpop.permute.xlu1 %6385 }
 0xb85   : > { %20172 = vst [vmem:[#allocation222_spill] sm:$0xff] %v17279_v6  ;;  %v6423_v19 = vperm.slane %v6386_v25, %v14685_v51  ;;  %v17287_v16 = vpop.permute.xlu2 %6559  ;;  %v5740_v54 = vpack.c.bf16 %v17279_v6, %v17279_v6  ;;  %v10025_v42 = vunpack.i.l.s16 %v7123_v60 }
 0xb87   : > { %1528 = vmatpush.bf16.msra.mxu0 %v9629_v33  ;;  %v6424_v25 = vsel %vm4071_vm7, %v6423_v19, %v6422_v8  ;;  %v5739_v33 = vpack.c.bf16 %v17283_v56, %v17283_v56  ;;  %v6922_v44 = vunpack.c.l.b16 %v5740_v54  ;;  %v17308_v8 = vmul.f32 %v20174_v14, %v17161_v5  ;;  %v20178_v54 = vld [vmem:[#allocation73_spill] sm:$0xff] }
 0xb88   : > { %v6426_v29 = vsel %vm4075_vm8, %v6425_v21, %v6424_v25  ;;  %v17322_v25 = vmul.f32 %v20178_v54, %v16968_v1  ;;  %v10639_v14 = vld [vmem:[%s12678_s21 + $0xe8] sm:$0xff] }
 0xb89   : > { %20175 = vst [vmem:[#allocation247_spill] sm:$0xff] %v17308_v8 }
 0xb8a   : > { %7177 = vperm.xlu0 %11394, %v10022_v61   ;;  %6970 = vperm.xlu1 %11396, %v9971_v34   ;;  %v6427_v34 = vperm.slane %v17216_v31, %v14716_v3  ;;  %v9974_v31 = vunpack.i.l.s16 %v6922_v44 }
 0xb8b   : > { %1529 = vmatpush.bf16.msra.mxu0 %v9613_v10  ;;  %6967 = vperm.xlu2 %11395, %v9970_v43   ;;  %v20176_v10 = vld [vmem:[#allocation152_spill] sm:$0xff]  ;;  %v17325_v43 = vperm.slane %v16482_v30, 7 }
 0xb8c   : > { %v17304_v48 = vpop.permute.xlu0 %6601  ;;  %v6395_v19 = vpop.permute.xlu1 %6394  ;;  %v17312_v13 = vmul.f32 %v20176_v10, %v16968_v1  ;;  %v6428_v21 = vsel %vm20114_vm6, %v6427_v34, %v6426_v29  ;;  %v6431_v10 = vperm.slane %v17111_v55, %v14740_v52  ;;  %v5742_v29 = vpack.c.bf16 %v17322_v25, %v17322_v25 }
 0xb8d   : > { %v6429_v22 = vperm.slane %v6395_v19, %v14691_v45  ;;  %v17318_v61 = vpop.permute.xlu2 %6568  ;;  %v5762_v19 = vpack.c.bf16 %v17308_v8, %v17308_v8  ;;  %v17343_v34 = vpop.f32.mrf.mxu1  ;;  %v6433_v55 = vperm.slane %v17249_v57, %v19899_v17  ;;  %v6437_v57 = vperm.slane %v17144_v18, %v19904_v49 }
 0xb8e   : > { %20177 = vst [vmem:[#allocation207_spill] sm:$0xff] %v17312_v13  ;;  %1530 = vmatmul.bf16.vlgmr.msra.gmra.mxu0 %v20088_v23 }
 0xb8f   : > { %6687 = vmatpush.bf16.msrb.mxu0 %v10641_v39  ;;  %v6921_v39 = vunpack.c.l.b16 %v5739_v33  ;;  %v6430_v23 = vsel %vm20115_vm15, %v6429_v22, %v6428_v21  ;;  %v5743_v33 = vpack.c.bf16 %v17312_v13, %v17312_v13  ;;  %20181 = vst [vmem:[#allocation216_spill] sm:$0xff] %v17343_v34  ;;  %v10638_v22 = vld [vmem:[%s12678_s21 + $0xe0] sm:$0xff]  ;;  %v7126_v21 = vunpack.c.l.b16 %v5762_v19 }
 0xb90   : > { %v6432_v60 = vsel %vm20116_vm11, %v6431_v10, %v6430_v23  ;;  %v20182_v23 = vld [vmem:[#allocation199_spill] sm:$0xff] }
 0xb91   : > { %v9973_v30 = vunpack.i.l.s16 %v6921_v39  ;;  %v6434_v19 = vsel %vm4091_vm12, %v6433_v55, %v6432_v60  ;;  %v10028_v8 = vunpack.i.l.s16 %v7126_v21 }
 0xb92   : > { %7186 = vperm.xlu0 %11394, %v10025_v42   ;;  %6979 = vperm.xlu1 %11396, %v9974_v31   ;;  %v6925_v42 = vunpack.c.l.b16 %v5743_v33  ;;  %v17352_v31 = vmul.f32 %v20182_v23, %v16968_v1 }
 0xb93   : > { %6688 = vmatpush.bf16.msrb.mxu0 %v10640_v11  ;;  %6976 = vperm.xlu2 %11395, %v9973_v30   ;;  %v20179_v11 = vld [vmem:[#allocation186_spill] sm:$0xff] }
 0xb94   : > { %v17341_v44 = vmul.f32 %v20179_v11, %v17325_v43  ;;  %v17348_v39 = vpop.permute.xlu0 %6760  ;;  %v6404_v54 = vpop.permute.xlu1 %6403  ;;  %20183 = vst [vmem:[#allocation209_spill] sm:$0xff] %v17352_v31  ;;  %v20184_v11 = vld [vmem:[#allocation90_spill] sm:$0xff] }
 0xb95   : > { %v6435_v10 = vperm.slane %v6404_v54, %v19895_v59  ;;  %v17355_v30 = vpop.permute.xlu2 %6577  ;;  %v17359_v34 = vmul.f32 %v20184_v11, %v16968_v1  ;;  %v9977_v54 = vunpack.i.l.s16 %v6925_v42  ;;  %v10637_v1 = vld [vmem:[%s12678_s21 + $0xd8] sm:$0xff]  ;;  %v1494_v60 = vpop.f32.mrf.mxu1 }
 0xb96   : > { %20180 = vst [vmem:[#allocation92_spill] sm:$0xff] %v17341_v44  ;;  %v5765_v23 = vpack.c.bf16 %v17341_v44, %v17341_v44 }
 0xb97   : > { %6689 = vmatpush.bf16.msrb.mxu0 %v10639_v14  ;;  %v6924_v14 = vunpack.c.l.b16 %v5742_v29  ;;  %v6436_v33 = vsel %vm4095_vm13, %v6435_v10, %v6434_v19  ;;  %v5746_v29 = vpack.c.bf16 %v17352_v31, %v17352_v31  ;;  %v5745_v18 = vpack.c.bf16 %v17359_v34, %v17359_v34  ;;  %v20185_v10 = vld [vmem:[#allocation94_spill] sm:$0xff] }
 0xb98   : > { %v6438_v4 = vsel %vm4099_vm14, %v6437_v57, %v6436_v33  ;;  %v7311_v21 = vunpack.c.l.b16 %v5765_v23  ;;  %v17377_v57 = vmul.f32 %v20185_v10, %v17325_v43  ;;  %v20189_v33 = vld [vmem:[#allocation96_spill] sm:$0xff] }
 0xb99   : > { %v9976_v11 = vunpack.i.l.s16 %v6924_v14  ;;  %v6439_v13 = vpack.c.b16 %v6438_v4, %v6438_v4  ;;  %v6928_v42 = vunpack.c.l.b16 %v5746_v29  ;;  %v20187_v4 = vld [vmem:[#allocation201_spill] sm:$0xff] }
 0xb9a   : > { %7195 = vperm.xlu0 %11394, %v10028_v8   ;;  %6988 = vperm.xlu1 %11396, %v9977_v54   ;;  %20186 = vst [vmem:[#allocation162_spill] sm:$0xff] %v17377_v57  ;;  %v17381_v14 = vmul.f32 %v20187_v4, %v17161_v5  ;;  %v10636_v8 = vld [vmem:[%s12678_s21 + $0xd0] sm:$0xff]  ;;  %v17388_v54 = vmul.f32 %v20189_v33, %v17161_v5  ;;  %v10063_v29 = vunpack.i.l.s16 %v7311_v21 }
 0xb9b   : > { %6690 = vmatpush.bf16.msrb.mxu0 %v10638_v22  ;;  %6985 = vperm.xlu2 %11395, %v9976_v11   ;;  %v9980_v11 = vunpack.i.l.s16 %v6928_v42  ;;  %v5768_v60 = vpack.c.bf16 %v17377_v57, %v17377_v57  ;;  %v20190_v21 = vld [vmem:[#allocation85_spill] sm:$0xff] }
 0xb9c   : > { %6497 = vmatmul.bf16.vlgmr.msra.gmra.mxu3 %v6439_v13  ;;  %v17373_v22 = vpop.permute.xlu0 %6769  ;;  %v6563_v55 = vpop.permute.xlu1 %6562  ;;  %20188 = vst [vmem:[#allocation233_spill] sm:$0xff] %v17381_v14  ;;  %v6927_v13 = vunpack.c.l.b16 %v5745_v18  ;;  %v5749_v10 = vpack.c.bf16 %v17381_v14, %v17381_v14  ;;  %v6606_v18 = vperm.slane %v17287_v16, %v14652_v37  ;;  %v5748_v33 = vpack.c.bf16 %v17388_v54, %v17388_v54  ;;  %v20192_v14 = vld [vmem:[#allocation148_spill] sm:$0xff] }
 0xb9d   : > { %v17384_v19 = vpop.permute.xlu2 %6586  ;;  %v6607_v23 = vperm.slane %v6563_v55, %v14657_v58  ;;  %v17403_v42 = vmul.f32 %v20190_v21, %v17325_v43  ;;  %v7314_v16 = vunpack.c.l.b16 %v5768_v60  ;;  %v17411_v31 = vmul.f32 %v20192_v14, %v17161_v5 }
 0xb9e   : > { %v9979_v4 = vunpack.i.l.s16 %v6927_v13  ;;  %v7113_v13 = vunpack.c.l.b16 %v5749_v10  ;;  %v6611_v60 = vperm.slane %v17318_v61, %v14679_v28  ;;  %v6615_v61 = vperm.slane %v17205_v0, %v14676_v7  ;;  %v17491_v15 = vpop.f32.mrf.mxu2 }
 0xb9f   : > { %6691 = vmatpush.bf16.msrb.mxu0 %v10637_v1  ;;  %v10635_v1 = vld [vmem:[%s12678_s21 + $0xc8] sm:$0xff]  ;;  %v6608_v55 = vsel %vm4043_vm0, %v6607_v23, %v6606_v18  ;;  %20191 = vst [vmem:[#allocation240_spill] sm:$0xff] %v17403_v42  ;;  %v20194_v18 = vld [vmem:[#allocation203_spill] sm:$0xff]  ;;  %v5771_v14 = vpack.c.bf16 %v17403_v42, %v17403_v42  ;;  %v10066_v10 = vunpack.i.l.s16 %v7314_v16  ;;  %v5752_v6 = vpack.c.bf16 %v17411_v31, %v17411_v31 }
 0xba0   : > { %20193 = vst [vmem:[#allocation91_spill] sm:$0xff] %v17411_v31  ;;  %v6621_v31 = vperm.slane %v17242_v26, %v14685_v51  ;;  %v6623_v26 = vperm.slane %v17384_v19, %v14734_v12 }
 0xba1   : > { %v7116_v42 = vunpack.c.l.b16 %v5752_v6  ;;  %v6617_v6 = vperm.slane %v17355_v30, %v14729_v63  ;;  %v20201_v30 = vld [vmem:[#allocation110_spill] sm:$0xff]  ;;  %20207 = vst [vmem:[#allocation243_spill] sm:$0xff] %v17491_v15 }
 0xba2   : > { %7354 = vperm.xlu0 %11394, %v10063_v29   ;;  %6997 = vperm.xlu1 %11396, %v9980_v11   ;;  %v10634_v29 = vld [vmem:[%s12678_s21 + $0xc0] sm:$0xff]  ;;  %v7112_v11 = vunpack.c.l.b16 %v5748_v33 }
 0xba3   : > { %6692 = vmatpush.bf16.msrb.mxu0 %v10636_v8  ;;  %6994 = vperm.xlu2 %11395, %v9979_v4   ;;  %v6609_v8 = vperm.slane %v17182_v41, %v14660_v2  ;;  %v17418_v4 = vmul.f32 %v20194_v18, %v17161_v5 }
 0xba4   : > { %v17407_v57 = vpop.permute.xlu0 %6778  ;;  %v6572_v44 = vpop.permute.xlu1 %6571  ;;  %v10014_v18 = vunpack.i.l.s16 %v7112_v11  ;;  %v20197_v11 = vld [vmem:[#allocation106_spill] sm:$0xff] }
 0xba5   : > { %v17414_v23 = vpop.permute.xlu2 %6595  ;;  %v6610_v41 = vsel %vm4047_vm1, %v6609_v8, %v6608_v55  ;;  %v6613_v21 = vperm.slane %v6572_v44, %v14673_v35  ;;  %v5751_v55 = vpack.c.bf16 %v17418_v4, %v17418_v4  ;;  %v7317_v8 = vunpack.c.l.b16 %v5771_v14  ;;  %v20199_v14 = vld [vmem:[#allocation205_spill] sm:$0xff] }
 0xba6   : > { %v6612_v33 = vsel %vm4051_vm2, %v6611_v60, %v6610_v41  ;;  %v17442_v60 = vmul.f32 %v20197_v11, %v17161_v5  ;;  %v10018_v11 = vunpack.i.l.s16 %v7116_v42  ;;  %v17466_v42 = vmul.f32 %v20201_v30, %v17325_v43 }
 0xba7   : > { %6693 = vmatpush.bf16.msrb.mxu0 %v10635_v1  ;;  %v10015_v1 = vunpack.i.l.s16 %v7113_v13  ;;  %v6614_v44 = vsel %vm4055_vm3, %v6613_v21, %v6612_v33  ;;  %v7115_v0 = vunpack.c.l.b16 %v5751_v55  ;;  %v17450_v33 = vmul.f32 %v20199_v14, %v17161_v5 }
 0xba8   : > { %20198 = vst [vmem:[#allocation176_spill] sm:$0xff] %v17442_v60  ;;  %v6616_v21 = vsel %vm4059_vm4, %v6615_v61, %v6614_v44  ;;  %v5755_v61 = vpack.c.bf16 %v17442_v60, %v17442_v60 }
 0xba9   : > { %20200 = vst [vmem:[#allocation208_spill] sm:$0xff] %v17450_v33  ;;  %v5754_v14 = vpack.c.bf16 %v17450_v33, %v17450_v33 }
 0xbaa   : > { %7363 = vperm.xlu0 %11394, %v10066_v10   ;;  %7156 = vperm.xlu1 %11396, %v10015_v1   ;;  %20202 = vst [vmem:[#allocation213_spill] sm:$0xff] %v17466_v42 }
 0xbab   : > { %6694 = vmatpush.bf16.msrb.mxu0 %v10634_v29  ;;  %7153 = vperm.xlu2 %11395, %v10014_v18   ;;  %v20195_v29 = vld [vmem:[#allocation104_spill] sm:$0xff]  ;;  %v10069_v18 = vunpack.i.l.s16 %v7317_v8  ;;  %v10649_v8 = vld [vmem:[%s12678_s21 + $0x138] sm:$0xff] }
 0xbac   : > { %v17434_v16 = vpop.permute.xlu0 %6787  ;;  %v6581_v13 = vpop.permute.xlu1 %6580  ;;  %v17438_v41 = vmul.f32 %v20195_v29, %v17325_v43  ;;  %v6618_v29 = vsel %vm4063_vm5, %v6617_v6, %v6616_v21  ;;  %6885 = vmatpush.bf16.msrb.mxu1 %v10649_v8 }
 0xbad   : > { %v6619_v10 = vperm.slane %v6581_v13, %v14708_v62  ;;  %v17446_v1 = vpop.permute.xlu2 %6604  ;;  %v10017_v13 = vunpack.i.l.s16 %v7115_v0 }
 0xbae   : > { %20196 = vst [vmem:[#allocation225_spill] sm:$0xff] %v17438_v41  ;;  %v5774_v44 = vpack.c.bf16 %v17438_v41, %v17438_v41  ;;  %v20203_v41 = vld [vmem:[#allocation97_spill] sm:$0xff] }
 0xbaf   : > { %v6620_v55 = vsel %vm20107_vm9, %v6619_v10, %v6618_v29  ;;  %v7119_v29 = vunpack.c.l.b16 %v5755_v61  ;;  %v17474_v60 = vmul.f32 %v20203_v41, %v17161_v5  ;;  %v5777_v41 = vpack.c.bf16 %v17466_v42, %v17466_v42 }
 0xbb0   : > { %v6622_v21 = vsel %vm4071_vm7, %v6621_v31, %v6620_v55  ;;  %v7320_v0 = vunpack.c.l.b16 %v5774_v44  ;;  %v20205_v31 = vld [vmem:[#allocation123_spill] sm:$0xff] }
 0xbb1   : > { %20204 = vst [vmem:[#allocation250_spill] sm:$0xff] %v17474_v60  ;;  %v17483_v55 = vmul.f32 %v20205_v31, %v17161_v5  ;;  %v6624_v44 = vsel %vm4075_vm8, %v6623_v26, %v6622_v21  ;;  %v10021_v19 = vunpack.i.l.s16 %v7119_v29  ;;  %v6627_v31 = vperm.slane %v17275_v32, %v14691_v45  ;;  %v20208_v32 = vld [vmem:[#allocation126_spill] sm:$0xff] }
 0xbb2   : > { %7372 = vperm.xlu0 %11394, %v10069_v18   ;;  %7165 = vperm.xlu1 %11396, %v10018_v11   ;;  %v10072_v30 = vunpack.i.l.s16 %v7320_v0  ;;  %v10647_v0 = vld [vmem:[%s12678_s21 + $0x128] sm:$0xff]  ;;  %v6629_v29 = vperm.slane %v17414_v23, %v14740_v52  ;;  %v7323_v15 = vunpack.c.l.b16 %v5777_v41  ;;  %v6633_v23 = vperm.slane %v17304_v48, %v19895_v59  ;;  %v10646_v48 = vld [vmem:[%s12678_s21 + $0x120] sm:$0xff] }
 0xbb3   : > { %7162 = vperm.xlu2 %11395, %v10017_v13   ;;  %v7118_v13 = vunpack.c.l.b16 %v5754_v14  ;;  %20206 = vst [vmem:[#allocation217_spill] sm:$0xff] %v17483_v55  ;;  %v10648_v14 = vld [vmem:[%s12678_s21 + $0x130] sm:$0xff]  ;;  %v5757_v21 = vpack.c.bf16 %v17483_v55, %v17483_v55  ;;  %v1253_v55 = vpop.f32.mrf.mxu2 }
 0xbb4   : > { %v17470_v6 = vpop.permute.xlu0 %6796  ;;  %v6590_v10 = vpop.permute.xlu1 %6589  ;;  %6886 = vmatpush.bf16.msrb.mxu1 %v10648_v14  ;;  %v20210_v14 = vld [vmem:[#allocation114_spill] sm:$0xff]  ;;  %v20211_v55 = vld [vmem:[#allocation103_spill] sm:$0xff] }
 0xbb5   : > { %v6625_v18 = vperm.slane %v6590_v10, %v14716_v3  ;;  %v17479_v11 = vpop.permute.xlu2 %6763  ;;  %v5758_v10 = vpack.c.bf16 %v17474_v60, %v17474_v60  ;;  %v10020_v8 = vunpack.i.l.s16 %v7118_v13  ;;  %v17506_v13 = vmul.f32 %v20208_v32, %v17161_v5 }
 0xbb7   : > { %v6626_v61 = vsel %vm20114_vm6, %v6625_v18, %v6624_v44  ;;  %v7122_v42 = vunpack.c.l.b16 %v5758_v10  ;;  %20209 = vst [vmem:[#allocation236_spill] sm:$0xff] %v17506_v13  ;;  %v6635_v10 = vperm.slane %v17446_v1, %v19904_v49 }
 0xbb8   : > { %v6628_v26 = vsel %vm20115_vm15, %v6627_v31, %v6626_v61  ;;  %v7121_v61 = vunpack.c.l.b16 %v5757_v21  ;;  %v17513_v31 = vmul.f32 %v20210_v14, %v17161_v5  ;;  %6887 = vmatpush.bf16.msrb.mxu1 %v10647_v0  ;;  %v10075_v21 = vunpack.i.l.s16 %v7323_v15 }
 0xbb9   : > { %v6630_v41 = vsel %vm20116_vm11, %v6629_v29, %v6628_v26  ;;  %v10024_v60 = vunpack.i.l.s16 %v7122_v42  ;;  %v5761_v14 = vpack.c.bf16 %v17506_v13, %v17506_v13  ;;  %v10645_v29 = vld [vmem:[%s12678_s21 + $0x118] sm:$0xff] }
 0xbba   : > { %7381 = vperm.xlu0 %11394, %v10072_v30   ;;  %7174 = vperm.xlu1 %11396, %v10021_v19   ;;  %v10023_v33 = vunpack.i.l.s16 %v7121_v61  ;;  %v5760_v1 = vpack.c.bf16 %v17513_v31, %v17513_v31  ;;  %v17535_v61 = vmul.f32 %v20211_v55, %v17325_v43  ;;  %v20215_v55 = vld [vmem:[#allocation135_spill] sm:$0xff] }
 0xbbb   : > { %7171 = vperm.xlu2 %11395, %v10020_v8  }
 0xbbc   : > { %v17502_v18 = vpop.permute.xlu0 %6955  ;;  %v6599_v44 = vpop.permute.xlu1 %6598  ;;  %6888 = vmatpush.bf16.msrb.mxu1 %v10646_v48  ;;  %20212 = vst [vmem:[#allocation230_spill] sm:$0xff] %v17535_v61 }
 0xbbd   : > { %v6631_v30 = vperm.slane %v6599_v44, %v19899_v17  ;;  %v17509_v19 = vpop.permute.xlu2 %6772 }
 0xbbf   : > { %v6632_v8 = vsel %vm4091_vm12, %v6631_v30, %v6630_v41  ;;  %v7125_v30 = vunpack.c.l.b16 %v5761_v14  ;;  %v7124_v41 = vunpack.c.l.b16 %v5760_v1  ;;  %v10644_v14 = vld [vmem:[%s12678_s21 + $0x110] sm:$0xff] }
 0xbc0   : > { %v6634_v44 = vsel %vm4095_vm13, %v6633_v23, %v6632_v8  ;;  %v17522_v32 = vpop.f32.mrf.mxu1  ;;  %6889 = vmatpush.bf16.msrb.mxu1 %v10645_v29 }
 0xbc1   : > { %v6636_v26 = vsel %vm4099_vm14, %v6635_v10, %v6634_v44  ;;  %v10027_v8 = vunpack.i.l.s16 %v7125_v30  ;;  %v5764_v44 = vpack.c.bf16 %v17535_v61, %v17535_v61  ;;  %v10026_v48 = vunpack.i.l.s16 %v7124_v41  ;;  %v10642_v61 = vld [vmem:[%s12678_s21 + $0x100] sm:$0xff] }
 0xbc2   : > { %7390 = vperm.xlu0 %11394, %v10075_v21   ;;  %7183 = vperm.xlu1 %11396, %v10024_v60   ;;  %v6637_v0 = vpack.c.b16 %v6636_v26, %v6636_v26  ;;  %v20213_v60 = vld [vmem:[#allocation132_spill] sm:$0xff]  ;;  %v17545_v21 = vpop.f32.mrf.mxu2  ;;  %v6805_v41 = vperm.slane %v17348_v39, %v14657_v58 }
 0xbc3   : > { %7180 = vperm.xlu2 %11395, %v10023_v33   ;;  %v17541_v10 = vmul.f32 %v20213_v60, %v17161_v5  ;;  %20214 = vst [vmem:[#allocation226_spill] sm:$0xff] %v17545_v21  ;;  %v10643_v5 = vld [vmem:[%s12678_s21 + $0x108] sm:$0xff]  ;;  %v7310_v30 = vunpack.c.l.b16 %v5764_v44  ;;  %v17557_v60 = vmul.f32 %v20215_v55, %v17325_v43  ;;  %v6807_v44 = vperm.slane %v17479_v11, %v14660_v2 }
 0xbc4   : > { %v17531_v15 = vpop.permute.xlu0 %6964  ;;  %v6758_v42 = vpop.permute.xlu1 %6757  ;;  %6695 = vmatmul.bf16.vlgmr.msrb.gmra.mxu0 %v6637_v0  ;;  %6890 = vmatpush.bf16.msrb.mxu1 %v10644_v14  ;;  %v6811_v11 = vperm.slane %v17373_v22, %v14673_v35  ;;  %v6813_v22 = vperm.slane %v17509_v19, %v14676_v7 }
 0xbc5   : > { %v17537_v23 = vpop.permute.xlu2 %6781  ;;  %v5763_v26 = vpack.c.bf16 %v17541_v10, %v17541_v10  ;;  %v6804_v1 = vperm.slane %v6758_v42, %v14652_v37  ;;  %v20216_v42 = vld [vmem:[#allocation121_spill] sm:$0xff]  ;;  %v10062_v55 = vunpack.i.l.s16 %v7310_v30  ;;  %v5767_v21 = vpack.c.bf16 %v17557_v60, %v17557_v60 }
 0xbc7   : > { %v6806_v14 = vsel %vm4043_vm0, %v6805_v41, %v6804_v1  ;;  %v7313_v30 = vunpack.c.l.b16 %v5767_v21  ;;  %v20217_v41 = vld [vmem:[#allocation124_spill] sm:$0xff] }
 0xbc8   : > { %v6104_v33 = vpop.f32.mrf.mxu1  ;;  %6891 = vmatpush.bf16.msrb.mxu1 %v10643_v5 }
 0xbca   : > { %7192 = vperm.xlu1 %11396, %v10027_v8   ;;  %8407 = vperm.xlu0 %11394, %v16500_v46   ;;  %v7127_v46 = vunpack.c.l.b16 %v5763_v26  ;;  %v17565_v8 = vmul.f32 %v20216_v42, %v17325_v43  ;;  %v1507_v39 = vpop.f32.mrf.mxu2  ;;  %v6808_v42 = vsel %vm4047_vm1, %v6807_v44, %v6806_v14 }
 0xbcb   : > { %7189 = vperm.xlu2 %11395, %v10026_v48  }
 0xbcc   : > { %v17553_v0 = vpop.permute.xlu0 %6973  ;;  %v6767_v29 = vpop.permute.xlu1 %6766  ;;  %v10029_v13 = vunpack.i.l.s16 %v7127_v46  ;;  %v5766_v26 = vpack.c.bf16 %v17565_v8, %v17565_v8  ;;  %6892 = vmatpush.bf16.msrb.mxu1 %v10642_v61  ;;  %v17585_v46 = vmul.f32 %v20217_v41, %v17325_v43 }
 0xbcd   : > { %v17561_v33 = vpop.permute.xlu2 %6790  ;;  %v6809_v48 = vperm.slane %v6767_v29, %v14679_v28 }
 0xbce   : > { %20218 = vst [vmem:[#allocation221_spill] sm:$0xff] %v17585_v46  ;;  %v7312_v14 = vunpack.c.l.b16 %v5766_v26  ;;  %v5770_v21 = vpack.c.bf16 %v17585_v46, %v17585_v46 }
 0xbcf   : > { %v6810_v1 = vsel %vm4051_vm2, %v6809_v48, %v6808_v42  ;;  %v10065_v48 = vunpack.i.l.s16 %v7313_v30  ;;  %v20220_v30 = vld [vmem:[#allocation164_spill] sm:$0xff] }
 0xbd0   : > { %v10064_v42 = vunpack.i.l.s16 %v7312_v14  ;;  %v17610_v14 = vmul.f32 %v20220_v30, %v17325_v43 }
 0xbd2   : > { %7351 = vperm.xlu1 %11396, %v10062_v55   ;;  %8416 = vperm.xlu0 %11394, %v16514_v53   ;;  %v20219_v53 = vld [vmem:[#allocation109_spill] sm:$0xff]  ;;  %20221 = vst [vmem:[#allocation154_spill] sm:$0xff] %v17610_v14 }
 0xbd3   : > { %7198 = vperm.xlu2 %11395, %v10029_v13   ;;  %v17591_v44 = vmul.f32 %v20219_v53, %v17325_v43  ;;  %v6812_v13 = vsel %vm4055_vm3, %v6811_v11, %v6810_v1  ;;  %v6817_v1 = vperm.slane %v17407_v57, %v14708_v62 }
 0xbd4   : > { %v17581_v5 = vpop.permute.xlu0 %6982  ;;  %v6776_v29 = vpop.permute.xlu1 %6775  ;;  %v6814_v55 = vsel %vm4059_vm4, %v6813_v22, %v6812_v13  ;;  %v20222_v22 = vld [vmem:[#allocation168_spill] sm:$0xff] }
 0xbd5   : > { %v17587_v39 = vpop.permute.xlu2 %6799  ;;  %v6815_v61 = vperm.slane %v6776_v29, %v14729_v63  ;;  %v5769_v26 = vpack.c.bf16 %v17591_v44, %v17591_v44  ;;  %v7316_v29 = vunpack.c.l.b16 %v5770_v21  ;;  %v17618_v57 = vmul.f32 %v20222_v22, %v17325_v43 }
 0xbd6   : > { %v6823_v22 = vperm.slane %v17434_v16, %v14716_v3  ;;  %v6825_v16 = vperm.slane %v17561_v33, %v14691_v45  ;;  %v10655_v33 = vld [vmem:[%s12678_s21 + $0x168] sm:$0xff] }
 0xbd7   : > { %v6816_v41 = vsel %vm4063_vm5, %v6815_v61, %v6814_v55  ;;  %v10068_v55 = vunpack.i.l.s16 %v7316_v29  ;;  %v5772_v30 = vpack.c.bf16 %v17618_v57, %v17618_v57 }
 0xbd8   : > { %v6818_v53 = vsel %vm20107_vm9, %v6817_v1, %v6816_v41  ;;  %v10657_v41 = vld [vmem:[%s12678_s21 + $0x178] sm:$0xff]  ;;  %v17626_v1 = vpop.f32.mrf.mxu3  ;;  %vm20230_vm9 = vcmask 1041409  }
 0xbd9   : > { %20223 = vst [vmem:[#allocation58_spill] sm:$0xff] %v17626_v1  ;;  %7083 = vmatpush.bf16.msrb.mxu2 %v10657_v41  ;;  %v7318_v41 = vunpack.c.l.b16 %v5772_v30 }
 0xbda   : > { %7360 = vperm.xlu1 %11396, %v10065_v48   ;;  %8425 = vperm.xlu0 %11394, %v16554_v24   ;;  %v7315_v24 = vunpack.c.l.b16 %v5769_v26  ;;  %v6819_v48 = vperm.slane %v17537_v23, %v14685_v51  ;;  %v10656_v23 = vld [vmem:[%s12678_s21 + $0x170] sm:$0xff] }
 0xbdb   : > { %7357 = vperm.xlu2 %11395, %v10064_v42   ;;  %v5773_v42 = vpack.c.bf16 %v17610_v14, %v17610_v14  ;;  %v10070_v30 = vunpack.i.l.s16 %v7318_v41 }
 0xbdc   : > { %v17606_v19 = vpop.permute.xlu0 %6991  ;;  %v6785_v11 = vpop.permute.xlu1 %6784  ;;  %v6820_v21 = vsel %vm4071_vm7, %v6819_v48, %v6818_v53  ;;  %v10067_v26 = vunpack.i.l.s16 %v7315_v24  ;;  %v20224_v24 = vld [vmem:[#allocation115_spill] sm:$0xff] }
 0xbdd   : > { %v6821_v13 = vperm.slane %v6785_v11, %v14734_v12  ;;  %v17614_v61 = vpop.permute.xlu2 %6958  ;;  %7084 = vmatpush.bf16.msrb.mxu2 %v10656_v23 }
 0xbdf   : > { %v6822_v11 = vsel %vm4075_vm8, %v6821_v13, %v6820_v21  ;;  %v7319_v13 = vunpack.c.l.b16 %v5773_v42  ;;  %v17640_v21 = vmul.f32 %v20224_v24, %v17325_v43 }
 0xbe0   : > { %v6824_v29 = vsel %vm20114_vm6, %v6823_v22, %v6822_v11  ;;  %v1266_v14 = vpop.f32.mrf.mxu3  ;;  %vm20233_vm6 = vcmask 523712  }
 0xbe1   : > { %20225 = vst [vmem:[#allocation211_spill] sm:$0xff] %v17640_v21  ;;  %v6826_v11 = vsel %vm20115_vm15, %v6825_v16, %v6824_v29  ;;  %v10071_v22 = vunpack.i.l.s16 %v7319_v13  ;;  %v5776_v24 = vpack.c.bf16 %v17640_v21, %v17640_v21  ;;  %7085 = vmatpush.bf16.msrb.mxu2 %v10655_v33  ;;  %v10654_v29 = vld [vmem:[%s12678_s21 + $0x160] sm:$0xff]  ;;  %v6831_v13 = vperm.slane %v17587_v39, %v19895_v59  ;;  %v10653_v21 = vld [vmem:[%s12678_s21 + $0x158] sm:$0xff] }
 0xbe2   : > { %7369 = vperm.xlu1 %11396, %v10068_v55   ;;  %8434 = vperm.xlu0 %11394, %v16568_v40   ;;  %vm20237_vm15 = vcmask 720512  }
 0xbe3   : > { %7366 = vperm.xlu2 %11395, %v10067_v26   ;;  %v20226_v26 = vld [vmem:[#allocation172_spill] sm:$0xff] }
 0xbe4   : > { %v17636_v53 = vpop.permute.xlu0 %7000  ;;  %v6794_v48 = vpop.permute.xlu1 %6793  ;;  %v17649_v1 = vmul.f32 %v20226_v26, %v17325_v43 }
 0xbe5   : > { %v6827_v55 = vperm.slane %v6794_v48, %v14740_v52  ;;  %v17645_v40 = vpop.permute.xlu2 %6967  ;;  %v6829_v48 = vperm.slane %v17470_v6, %v19899_v17  ;;  %v7322_v6 = vunpack.c.l.b16 %v5776_v24  ;;  %7086 = vmatpush.bf16.msrb.mxu2 %v10654_v29 }
 0xbe6   : > { %v5775_v26 = vpack.c.bf16 %v17649_v1, %v17649_v1 }
 0xbe7   : > { %v6828_v42 = vsel %vm20116_vm11, %v6827_v55, %v6826_v11  ;;  %v20227_v55 = vld [vmem:[#allocation65_spill] sm:$0xff]  ;;  %vm20238_vm11 = vcmask 786112  }
 0xbe8   : > { %v6830_v23 = vsel %vm4091_vm12, %v6829_v48, %v6828_v42  ;;  %v17669_v41 = vmul.f32 %v20227_v55, %v17325_v43  ;;  %v7321_v42 = vunpack.c.l.b16 %v5775_v26 }
 0xbe9   : > { %v6832_v48 = vsel %vm4095_vm13, %v6831_v13, %v6830_v23  ;;  %7087 = vmatpush.bf16.msrb.mxu2 %v10653_v21  ;;  %v10652_v13 = vld [vmem:[%s12678_s21 + $0x150] sm:$0xff]  ;;  %v10651_v21 = vld [vmem:[%s12678_s21 + $0x148] sm:$0xff] }
 0xbea   : > { %7378 = vperm.xlu1 %11396, %v10071_v22   ;;  %8443 = vperm.xlu0 %11394, %v16586_v36   ;;  %v20228_v22 = vld [vmem:[#allocation139_spill] sm:$0xff]  ;;  %v5779_v55 = vpack.c.bf16 %v17669_v41, %v17669_v41  ;;  %v10073_v46 = vunpack.i.l.s16 %v7321_v42  ;;  %v7003_v42 = vperm.slane %v17614_v61, %v14657_v58 }
 0xbeb   : > { %7375 = vperm.xlu2 %11395, %v10070_v30   ;;  %v17676_v33 = vmul.f32 %v20228_v22, %v17325_v43  ;;  %v10074_v30 = vunpack.i.l.s16 %v7322_v6 }
 0xbec   : > { %v17665_v14 = vpop.permute.xlu0 %7159  ;;  %v6803_v16 = vpop.permute.xlu1 %6802  ;;  %v7325_v29 = vunpack.c.l.b16 %v5779_v55 }
 0xbed   : > { %v6833_v11 = vperm.slane %v6803_v16, %v19904_v49  ;;  %v17672_v36 = vpop.permute.xlu2 %6976  ;;  %v17683_v16 = vpop.f32.mrf.mxu3  ;;  %v5778_v26 = vpack.c.bf16 %v17676_v33, %v17676_v33  ;;  %7088 = vmatpush.bf16.msrb.mxu2 %v10652_v13 }
 0xbee   : > { %20229 = vst [vmem:[#allocation246_spill] sm:$0xff] %v17683_v16 }
 0xbef   : > { %v6834_v39 = vsel %vm4099_vm14, %v6833_v11, %v6832_v48  ;;  %v7324_v11 = vunpack.c.l.b16 %v5778_v26  ;;  %v7492_v48 = vpack.c.bf16 %v17522_v32, %v17522_v32 }
 0xbf0   : > { %v6835_v24 = vpack.c.b16 %v6834_v39, %v6834_v39  ;;  %v7002_v39 = vperm.slane %v17502_v18, %v14652_v37  ;;  %v7007_v18 = vperm.slane %v17531_v15, %v14679_v28 }
 0xbf1   : > { %v10076_v26 = vunpack.i.l.s16 %v7324_v11  ;;  %v7540_v61 = vunpack.c.l.b16 %v7492_v48  ;;  %7089 = vmatpush.bf16.msrb.mxu2 %v10651_v21  ;;  %v20232_v21 = vld [vmem:[#allocation134_spill] sm:$0xff] }
 0xbf2   : > { %7387 = vperm.xlu1 %11396, %v10074_v30   ;;  %8452 = vperm.xlu0 %11394, %v16629_v20   ;;  %v7004_v16 = vsel %vm4043_vm0, %v7003_v42, %v7002_v39  ;;  %v20231_v39 = vld [vmem:[#allocation79_spill] sm:$0xff] }
 0xbf3   : > { %7384 = vperm.xlu2 %11395, %v10073_v46   ;;  %6893 = vmatmul.bf16.vlgmr.msrb.gmra.mxu1 %v6835_v24  ;;  %v10077_v24 = vunpack.i.l.s16 %v7325_v29 }
 0xbf4   : > { %v17688_v43 = vpop.permute.xlu0 %7168  ;;  %v6962_v23 = vpop.permute.xlu1 %6961 }
 0xbf5   : > { %v17691_v6 = vpop.permute.xlu2 %6985  ;;  %v7005_v20 = vperm.slane %v6962_v23, %v14660_v2  ;;  %v1520_v30 = vpop.f32.mrf.mxu3 }
 0xbf7   : > { %v6300_v22 = vpop.f32.mrf.mxu2  ;;  %v7006_v32 = vsel %vm4047_vm1, %v7005_v20, %v7004_v16  ;;  %v7009_v16 = vperm.slane %v17645_v40, %v14673_v35 }
 0xbf8   : > { %v7493_v46 = vpack.c.bf16 %v6300_v22, %v6300_v22  ;;  %v10650_v22 = vld [vmem:[%s12678_s21 + $0x140] sm:$0xff] }
 0xbf9   : > { %7090 = vmatpush.bf16.msrb.mxu2 %v10650_v22  ;;  %v20234_v22 = vld [vmem:[#allocation158_spill] sm:$0xff] }
 0xbfa   : > { %v7541_v55 = vunpack.c.l.b16 %v7493_v46  ;;  %7396 = vperm.xlu1 %11396, %v10077_v24   ;;  %8461 = vperm.xlu0 %11394, %v16647_v38   ;;  %v7008_v46 = vsel %vm4051_vm2, %v7007_v18, %v7006_v32  ;;  %v7013_v24 = vperm.slane %v17553_v0, %v14729_v63  ;;  %v17729_v32 = vpop.f32.mrf.mxu0  ;;  %v10665_v0 = vld [vmem:[%s12678_s21 + $0x1b8] sm:$0xff] }
 0xbfb   : > { %7393 = vperm.xlu2 %11395, %v10076_v26   ;;  %v7010_v15 = vsel %vm4055_vm3, %v7009_v16, %v7008_v46  ;;  %v20235_v46 = vld [vmem:[#allocation56_spill] sm:$0xff]  ;;  %7281 = vmatpush.bf16.msrb.mxu3 %v10665_v0  ;;  %v20242_v0 = vld [vmem:[#allocation57_spill] sm:$0xff] }
 0xbfc   : > { %v7548_v23 = vrot.slane %v7541_v55, 7  ;;  %v17706_v29 = vpop.permute.xlu0 %7177  ;;  %v6971_v13 = vpop.permute.xlu1 %6970 }
 0xbfd   : > { %v6995_v42 = vpop.permute.xlu2 %6994  ;;  %v7011_v38 = vperm.slane %v6971_v13, %v14676_v7  ;;  %v7019_v13 = vperm.slane %v17581_v5, %v14734_v12 }
 0xbfe   : > { %v17710_v11 = vsel %vm20230_vm9, %v7548_v23, %v7540_v61  ;;  %vm20241_vm9 = vcmask 851712  }
 0xbff   : > { %v6302_v48 = vpop.f32.mrf.mxu2  ;;  %v7012_v20 = vsel %vm4059_vm4, %v7011_v38, %v7010_v15  ;;  %v20236_v38 = vld [vmem:[#allocation140_spill] sm:$0xff] }
 0xc00   : > { %v7014_v40 = vsel %vm4063_vm5, %v7013_v24, %v7012_v20  ;;  %v10664_v48 = vld [vmem:[%s12678_s21 + $0x1b0] sm:$0xff]  ;;  %v7021_v20 = vperm.slane %v17691_v6, %v14716_v3 }
 0xc01   : > { %7282 = vmatpush.bf16.msrb.mxu3 %v10664_v48 }
 0xc02   : > { %8413 = vperm.xlu1 %11396, %v16518_v50   ;;  %8470 = vperm.xlu0 %11394, %v20231_v39   ;;  %v7015_v50 = vperm.slane %v17672_v36, %v14708_v62  ;;  %v1279_v24 = vpop.f32.mrf.mxu0 }
 0xc03   : > { %8410 = vperm.xlu2 %11395, %v20232_v21  }
 0xc04   : > { %v17723_v30 = vpop.permute.xlu0 %7186  ;;  %v6980_v55 = vpop.permute.xlu1 %6979  ;;  %v7016_v23 = vsel %vm20233_vm6, %v7015_v50, %v7014_v40  ;;  %v10663_v40 = vld [vmem:[%s12678_s21 + $0x1a8] sm:$0xff]  ;;  %v20239_v50 = vld [vmem:[#allocation71_spill] sm:$0xff]  ;;  %vm20249_vm6 = vcmask 1042434  }
 0xc05   : > { %v7017_v26 = vperm.slane %v6980_v55, %v14685_v51  ;;  %v17727_v61 = vpop.permute.xlu2 %7153  ;;  %7283 = vmatpush.bf16.msrb.mxu3 %v10663_v40  ;;  %v20245_v40 = vld [vmem:[#allocation153_spill] sm:$0xff] }
 0xc07   : > { %v7018_v18 = vsel %vm4071_vm7, %v7017_v26, %v7016_v23  ;;  %v7025_v26 = vperm.slane %v17606_v19, %v14740_v52  ;;  %v20240_v23 = vld [vmem:[#allocation74_spill] sm:$0xff] }
 0xc08   : > { %v7020_v16 = vsel %vm4075_vm8, %v7019_v13, %v7018_v18  ;;  %v10662_v18 = vld [vmem:[%s12678_s21 + $0x1a0] sm:$0xff]  ;;  %v7027_v13 = vperm.slane %v6995_v42, %v19899_v17  ;;  %v10661_v42 = vld [vmem:[%s12678_s21 + $0x198] sm:$0xff] }
 0xc09   : > { %v7022_v21 = vsel %vm20237_vm15, %v7021_v20, %v7020_v16  ;;  %v7031_v16 = vperm.slane %v17636_v53, %v19904_v49  ;;  %7284 = vmatpush.bf16.msrb.mxu3 %v10662_v18  ;;  %vm20253_vm15 = vcmask 523712  }
 0xc0a   : > { %8422 = vperm.xlu1 %11396, %v20234_v22   ;;  %8479 = vperm.xlu0 %11394, %v20235_v46  }
 0xc0b   : > { %8419 = vperm.xlu2 %11395, %v20236_v38   ;;  %v17762_v19 = vpop.f32.mrf.mxu0 }
 0xc0c   : > { %v17743_v36 = vpop.permute.xlu0 %7195  ;;  %v6989_v15 = vpop.permute.xlu1 %6988 }
 0xc0d   : > { %v7023_v5 = vperm.slane %v6989_v15, %v14691_v45  ;;  %v7163_v39 = vpop.permute.xlu2 %7162  ;;  %7285 = vmatpush.bf16.msrb.mxu3 %v10661_v42 }
 0xc0f   : > { %v7024_v55 = vsel %vm20238_vm11, %v7023_v5, %v7022_v21  ;;  %v20243_v21 = vld [vmem:[#allocation253_spill] sm:$0xff]  ;;  %vm20257_vm11 = vcmask 720512  }
 0xc10   : > { %v7026_v6 = vsel %vm20241_vm9, %v7025_v26, %v7024_v55  ;;  %v20244_v55 = vld [vmem:[#allocation196_spill] sm:$0xff]  ;;  %vm20260_vm9 = vcmask 786112  }
 0xc11   : > { %v7028_v15 = vsel %vm4091_vm12, %v7027_v13, %v7026_v6 }
 0xc12   : > { %8431 = vperm.xlu1 %11396, %v20239_v50   ;;  %8488 = vperm.xlu0 %11394, %v20240_v23   ;;  %v10660_v50 = vld [vmem:[%s12678_s21 + $0x190] sm:$0xff] }
 0xc13   : > { %8428 = vperm.xlu2 %11395, %v20242_v0   ;;  %v1533_v6 = vpop.f32.mrf.mxu0  ;;  %7286 = vmatpush.bf16.msrb.mxu3 %v10660_v50 }
 0xc14   : > { %v17759_v22 = vpop.permute.xlu0 %7354  ;;  %v6998_v46 = vpop.permute.xlu1 %6997 }
 0xc15   : > { %v7029_v38 = vperm.slane %v6998_v46, %v19895_v59  ;;  %v7172_v48 = vpop.permute.xlu2 %7171  ;;  %v10659_v46 = vld [vmem:[%s12678_s21 + $0x188] sm:$0xff] }
 0xc17   : > { %v7030_v20 = vsel %vm4095_vm13, %v7029_v38, %v7028_v15  ;;  %v7200_v38 = vperm.slane %v17727_v61, %v14652_v37  ;;  %v20246_v15 = vld [vmem:[#allocation218_spill] sm:$0xff]  ;;  %7287 = vmatpush.bf16.msrb.mxu3 %v10659_v46  ;;  %v20251_v46 = vld [vmem:[#allocation204_spill] sm:$0xff] }
 0xc18   : > { %v7032_v5 = vsel %vm4099_vm14, %v7031_v16, %v7030_v20  ;;  %v20247_v20 = vld [vmem:[#allocation156_spill] sm:$0xff] }
 0xc19   : > { %v7033_v24 = vpack.c.b16 %v7032_v5, %v7032_v5 }
 0xc1a   : > { %8440 = vperm.xlu1 %11396, %v20243_v21   ;;  %8497 = vperm.xlu0 %11394, %v20244_v55   ;;  %v7203_v21 = vperm.slane %v17665_v14, %v14660_v2 }
 0xc1b   : > { %8437 = vperm.xlu2 %11395, %v20245_v40   ;;  %7091 = vmatmul.bf16.vlgmr.msrb.gmra.mxu2 %v7033_v24  ;;  %v20248_v24 = vld [vmem:[#allocation69_spill] sm:$0xff] }
 0xc1c   : > { %v17773_v26 = vpop.permute.xlu0 %7363  ;;  %v7157_v53 = vpop.permute.xlu1 %7156 }
 0xc1d   : > { %v7181_v23 = vpop.permute.xlu2 %7180  ;;  %v7201_v18 = vperm.slane %v7157_v53, %v14657_v58 }
 0xc1f   : > { %v6498_v0 = vpop.f32.mrf.mxu3  ;;  %v7202_v5 = vsel %vm4043_vm0, %v7201_v18, %v7200_v38  ;;  %v7205_v18 = vperm.slane %v7163_v39, %v14679_v28 }
 0xc20   : > { %v7494_v13 = vpack.c.bf16 %v6498_v0, %v6498_v0  ;;  %v7204_v50 = vsel %vm4047_vm1, %v7203_v21, %v7202_v5  ;;  %v7211_v21 = vperm.slane %v7172_v48, %v14729_v63 }
 0xc21   : > { %v7206_v38 = vsel %vm4051_vm2, %v7205_v18, %v7204_v50  ;;  %v20256_v18 = vld [vmem:[#allocation180_spill] sm:$0xff] }
 0xc22   : > { %v7542_v16 = vunpack.c.l.b16 %v7494_v13  ;;  %8449 = vperm.xlu1 %11396, %v20246_v15   ;;  %8506 = vperm.xlu0 %11394, %v20247_v20   ;;  %v10658_v13 = vld [vmem:[%s12678_s21 + $0x180] sm:$0xff] }
 0xc23   : > { %8446 = vperm.xlu2 %11395, %v20248_v24   ;;  %v20252_v15 = vld [vmem:[#allocation55_spill] sm:$0xff]  ;;  %7288 = vmatpush.bf16.msrb.mxu3 %v10658_v13 }
 0xc24   : > { %v7550_v42 = vrot.slane %v7542_v16, 6  ;;  %v17786_v55 = vpop.permute.xlu0 %7372  ;;  %v7166_v40 = vpop.permute.xlu1 %7165  ;;  %v20250_v16 = vld [vmem:[#allocation155_spill] sm:$0xff] }
 0xc25   : > { %v7190_v53 = vpop.permute.xlu2 %7189  ;;  %v7207_v6 = vperm.slane %v7166_v40, %v14673_v35  ;;  %v10673_v13 = vld [vmem:[%s12678_s21 + $0x1f8] sm:$0xff] }
 0xc26   : > { %v17790_v61 = vsel %vm20249_vm6, %v7550_v42, %v17710_v11  ;;  %v7209_v11 = vperm.slane %v17688_v43, %v14676_v7  ;;  %v7215_v43 = vperm.slane %v17706_v29, %v14685_v51  ;;  %7479 = vmatpush.bf16.msra.mxu0 %v10673_v13  ;;  %vm20262_vm6 = vcmask 851712  }
 0xc27   : > { %v6500_v0 = vpop.f32.mrf.mxu3  ;;  %v7208_v14 = vsel %vm4055_vm3, %v7207_v6, %v7206_v38  ;;  %v20254_v6 = vld [vmem:[#allocation137_spill] sm:$0xff] }
 0xc28   : > { %v7210_v39 = vsel %vm4059_vm4, %v7209_v11, %v7208_v14  ;;  %v20255_v0 = vld [vmem:[#allocation198_spill] sm:$0xff] }
 0xc29   : > { %v7212_v40 = vsel %vm4063_vm5, %v7211_v21, %v7210_v39  ;;  %v7221_v39 = vperm.slane %v17723_v30, %v14691_v45  ;;  %v20259_v21 = vld [vmem:[#allocation120_spill] sm:$0xff]  ;;  %v7227_v30 = vperm.slane %v17743_v36, %v19895_v59 }
 0xc2a   : > { %8458 = vperm.xlu1 %11396, %v20250_v16   ;;  %8515 = vperm.xlu0 %11394, %v20251_v46   ;;  %v7217_v16 = vperm.slane %v7181_v23, %v14734_v12  ;;  %v20261_v23 = vld [vmem:[#allocation178_spill] sm:$0xff] }
 0xc2b   : > { %8455 = vperm.xlu2 %11395, %v20252_v15  }
 0xc2c   : > { %v17803_v20 = vpop.permute.xlu0 %7381  ;;  %v7175_v5 = vpop.permute.xlu1 %7174 }
 0xc2d   : > { %v7213_v42 = vperm.slane %v7175_v5, %v14708_v62  ;;  %v7199_v24 = vpop.permute.xlu2 %7198  ;;  %v10672_v5 = vld [vmem:[%s12678_s21 + $0x1f0] sm:$0xff] }
 0xc2e   : > { %7480 = vmatpush.bf16.msra.mxu0 %v10672_v5 }
 0xc2f   : > { %v7214_v50 = vsel %vm20253_vm15, %v7213_v42, %v7212_v40  ;;  %v20258_v42 = vld [vmem:[#allocation170_spill] sm:$0xff] }
 0xc30   : > { %v7216_v38 = vsel %vm4071_vm7, %v7215_v43, %v7214_v50  ;;  %v10671_v50 = vld [vmem:[%s12678_s21 + $0x1e8] sm:$0xff]  ;;  %v7223_v43 = vperm.slane %v7190_v53, %v14740_v52  ;;  %v10670_v53 = vld [vmem:[%s12678_s21 + $0x1e0] sm:$0xff] }
 0xc31   : > { %v7218_v29 = vsel %vm4075_vm8, %v7217_v16, %v7216_v38 }
 0xc32   : > { %8467 = vperm.xlu1 %11396, %v20254_v6   ;;  %8524 = vperm.xlu0 %11394, %v20255_v0  }
 0xc33   : > { %8464 = vperm.xlu2 %11395, %v20256_v18   ;;  %7481 = vmatpush.bf16.msra.mxu0 %v10671_v50 }
 0xc34   : > { %v17817_v14 = vpop.permute.xlu0 %7390  ;;  %v7184_v48 = vpop.permute.xlu1 %7183 }
 0xc35   : > { %v7219_v46 = vperm.slane %v7184_v48, %v14716_v3  ;;  %v7358_v11 = vpop.permute.xlu2 %7357  ;;  %v7229_v48 = vperm.slane %v7199_v24, %v19904_v49  ;;  %v10669_v24 = vld [vmem:[%s12678_s21 + $0x1d8] sm:$0xff] }
 0xc37   : > { %v7220_v15 = vsel %vm20257_vm11, %v7219_v46, %v7218_v29  ;;  %7482 = vmatpush.bf16.msra.mxu0 %v10670_v53  ;;  %v20268_v53 = vld [vmem:[#allocation165_spill] sm:$0xff] }
 0xc38   : > { %v7222_v40 = vsel %vm20260_vm9, %v7221_v39, %v7220_v15  ;;  %v20263_v39 = vld [vmem:[#allocation252_spill] sm:$0xff] }
 0xc39   : > { %v7224_v38 = vsel %vm20262_vm6, %v7223_v43, %v7222_v40 }
 0xc3a   : > { %8476 = vperm.xlu1 %11396, %v20258_v42   ;;  %8533 = vperm.xlu0 %11394, %v20259_v21   ;;  %v20264_v42 = vld [vmem:[#allocation160_spill] sm:$0xff]  ;;  %v20265_v21 = vld [vmem:[#allocation149_spill] sm:$0xff] }
 0xc3b   : > { %8473 = vperm.xlu2 %11395, %v20261_v23   ;;  %7483 = vmatpush.bf16.msra.mxu0 %v10669_v24 }
 0xc3c   : > { %v7193_v6 = vpop.permute.xlu1 %7192  ;;  %v17832_v0 = vpop.permute.xlu0 %8407 }
 0xc3d   : > { %v7225_v18 = vperm.slane %v7193_v6, %v19899_v17  ;;  %v7367_v13 = vpop.permute.xlu2 %7366 }
 0xc3f   : > { %v7226_v16 = vsel %vm4091_vm12, %v7225_v18, %v7224_v38 }
 0xc40   : > { %v7228_v46 = vsel %vm4095_vm13, %v7227_v30, %v7226_v16  ;;  %v10668_v30 = vld [vmem:[%s12678_s21 + $0x1d0] sm:$0xff]  ;;  %v20267_v16 = vld [vmem:[#allocation128_spill] sm:$0xff] }
 0xc41   : > { %v6696_v29 = vpop.f32.mrf.mxu0  ;;  %v7230_v15 = vsel %vm4099_vm14, %v7229_v48, %v7228_v46  ;;  %v20266_v48 = vld [vmem:[#allocation63_spill] sm:$0xff]  ;;  %7484 = vmatpush.bf16.msra.mxu0 %v10668_v30  ;;  %v20271_v30 = vld [vmem:[#allocation194_spill] sm:$0xff] }
 0xc42   : > { %v7495_v5 = vpack.c.bf16 %v6696_v29, %v6696_v29  ;;  %8485 = vperm.xlu1 %11396, %v20263_v39   ;;  %8542 = vperm.xlu0 %11394, %v20264_v42   ;;  %v7231_v36 = vpack.c.b16 %v7230_v15, %v7230_v15  ;;  %v10667_v29 = vld [vmem:[%s12678_s21 + $0x1c8] sm:$0xff]  ;;  %v7399_v39 = vperm.slane %v17759_v22, %v14657_v58 }
 0xc43   : > { %8482 = vperm.xlu2 %11395, %v20265_v21   ;;  %v7401_v21 = vperm.slane %v7358_v11, %v14660_v2  ;;  %v7405_v22 = vperm.slane %v17773_v26, %v14673_v35  ;;  %v7411_v26 = vperm.slane %v17786_v55, %v14708_v62 }
 0xc44   : > { %v7543_v40 = vunpack.c.l.b16 %v7495_v5  ;;  %v7352_v23 = vpop.permute.xlu1 %7351  ;;  %v17847_v50 = vpop.permute.xlu0 %8416  ;;  %7289 = vmatmul.bf16.vlgmr.msrb.gmra.mxu3 %v7231_v36 }
 0xc45   : > { %v7376_v43 = vpop.permute.xlu2 %7375  ;;  %v7398_v46 = vperm.slane %v7352_v23, %v14652_v37  ;;  %7485 = vmatpush.bf16.msra.mxu0 %v10667_v29  ;;  %v20270_v23 = vld [vmem:[#allocation138_spill] sm:$0xff]  ;;  %v10666_v29 = vld [vmem:[%s12678_s21 + $0x1c0] sm:$0xff] }
 0xc46   : > { %v7552_v6 = vrot.slane %v7543_v40, 5  ;;  %v20269_v40 = vld [vmem:[#allocation83_spill] sm:$0xff] }
 0xc47   : > { %v7400_v42 = vsel %vm4043_vm0, %v7399_v39, %v7398_v46 }
 0xc48   : > { %v17851_v18 = vsel %vm4322_vm10, %v7552_v6, %v17790_v61  ;;  %v7402_v24 = vsel %vm4047_vm1, %v7401_v21, %v7400_v42  ;;  %v20272_v42 = vld [vmem:[#allocation238_spill] sm:$0xff]  ;;  %v20274_v21 = vld [vmem:[#allocation183_spill] sm:$0xff] }
 0xc49   : > { %v6698_v38 = vpop.f32.mrf.mxu0  ;;  %7486 = vmatpush.bf16.msra.mxu0 %v10666_v29  ;;  %v20275_v29 = vld [vmem:[#allocation187_spill] sm:$0xff] }
 0xc4a   : > { %8494 = vperm.xlu1 %11396, %v20266_v48   ;;  %8551 = vperm.xlu0 %11394, %v20267_v16  }
 0xc4b   : > { %8491 = vperm.xlu2 %11395, %v20268_v53   ;;  %v7407_v53 = vperm.slane %v7367_v13, %v14676_v7 }
 0xc4c   : > { %v7361_v15 = vpop.permute.xlu1 %7360  ;;  %v17859_v5 = vpop.permute.xlu0 %8425 }
 0xc4d   : > { %v7385_v61 = vpop.permute.xlu2 %7384  ;;  %v7403_v36 = vperm.slane %v7361_v15, %v14679_v28 }
 0xc4f   : > { %v7404_v6 = vsel %vm4051_vm2, %v7403_v36, %v7402_v24  ;;  %v20273_v36 = vld [vmem:[#allocation93_spill] sm:$0xff] }
 0xc50   : > { %v7406_v46 = vsel %vm4055_vm3, %v7405_v22, %v7404_v6  ;;  %v7413_v22 = vperm.slane %v7376_v43, %v14685_v51 }
 0xc51   : > { %v7408_v15 = vsel %vm4059_vm4, %v7407_v53, %v7406_v46  ;;  %v7417_v53 = vperm.slane %v17803_v20, %v14716_v3 }
 0xc52   : > { %8503 = vperm.xlu1 %11396, %v20269_v40   ;;  %8560 = vperm.xlu0 %11394, %v20270_v23  }
 0xc53   : > { %8500 = vperm.xlu2 %11395, %v20271_v30   ;;  %v8790_v30 = vperm.slane %v17832_v0, %v14652_v37 }
 0xc54   : > { %v7370_v38 = vpop.permute.xlu1 %7369  ;;  %v17873_v48 = vpop.permute.xlu0 %8434 }
 0xc55   : > { %v7394_v16 = vpop.permute.xlu2 %7393  ;;  %v7409_v11 = vperm.slane %v7370_v38, %v14729_v63 }
 0xc57   : > { %v7410_v39 = vsel %vm4063_vm5, %v7409_v11, %v7408_v15  ;;  %v20276_v15 = vld [vmem:[#allocation131_spill] sm:$0xff] }
 0xc58   : > { %v7412_v13 = vsel %vm20253_vm15, %v7411_v26, %v7410_v39  ;;  %v20277_v39 = vld [vmem:[#allocation101_spill] sm:$0xff]  ;;  %vm20284_vm15 = vcmask 1044484  }
 0xc59   : > { %v7414_v46 = vsel %vm4071_vm7, %v7413_v22, %v7412_v13  ;;  %v7423_v13 = vperm.slane %v17817_v14, %v19899_v17  ;;  %v20280_v22 = vld [vmem:[#allocation143_spill] sm:$0xff] }
 0xc5a   : > { %8512 = vperm.xlu1 %11396, %v20272_v42   ;;  %8569 = vperm.xlu0 %11394, %v20273_v36   ;;  %v7419_v36 = vperm.slane %v7385_v61, %v14691_v45  ;;  %v7425_v61 = vperm.slane %v7394_v16, %v19895_v59 }
 0xc5b   : > { %8509 = vperm.xlu2 %11395, %v20274_v21  }
 0xc5c   : > { %v7379_v24 = vpop.permute.xlu1 %7378  ;;  %v17886_v40 = vpop.permute.xlu0 %8443 }
 0xc5d   : > { %v7415_v23 = vperm.slane %v7379_v24, %v14734_v12  ;;  %v8411_v6 = vpop.permute.xlu2 %8410 }
 0xc5e   : > { %v8791_v38 = vperm.slane %v8411_v6, %v14657_v58  ;;  %v20279_v6 = vld [vmem:[#allocation136_spill] sm:$0xff] }
 0xc5f   : > { %v7416_v11 = vsel %vm4075_vm8, %v7415_v23, %v7414_v46  ;;  %v20278_v23 = vld [vmem:[#allocation166_spill] sm:$0xff] }
 0xc60   : > { %v8792_v55 = vsel %vm4043_vm0, %v8791_v38, %v8790_v30  ;;  %v7418_v0 = vsel %vm20257_vm11, %v7417_v53, %v7416_v11  ;;  %vm20288_vm11 = vcmask 523712  }
 0xc61   : > { %v7420_v24 = vsel %vm20260_vm9, %v7419_v36, %v7418_v0  ;;  %v20282_v36 = vld [vmem:[#allocation117_spill] sm:$0xff]  ;;  %vm20291_vm9 = vcmask 720512  }
 0xc62   : > { %8521 = vperm.xlu1 %11396, %v20275_v29   ;;  %8578 = vperm.xlu0 %11394, %v20276_v15  }
 0xc63   : > { %8518 = vperm.xlu2 %11395, %v20277_v39  }
 0xc64   : > { %v7388_v43 = vpop.permute.xlu1 %7387  ;;  %v17903_v42 = vpop.permute.xlu0 %8452 }
 0xc65   : > { %v7421_v26 = vperm.slane %v7388_v43, %v14740_v52  ;;  %v8420_v21 = vpop.permute.xlu2 %8419  ;;  %v20281_v43 = vld [vmem:[#allocation189_spill] sm:$0xff] }
 0xc67   : > { %v7422_v20 = vsel %vm20262_vm6, %v7421_v26, %v7420_v24  ;;  %v20283_v24 = vld [vmem:[#allocation118_spill] sm:$0xff]  ;;  %vm20294_vm6 = vcmask 786112  }
 0xc68   : > { %v7424_v30 = vsel %vm4091_vm12, %v7423_v13, %v7422_v20 }
 0xc69   : > { %v7426_v29 = vsel %vm4095_vm13, %v7425_v61, %v7424_v30  ;;  %v8795_v30 = vperm.slane %v17847_v50, %v14679_v28 }
 0xc6a   : > { %8530 = vperm.xlu1 %11396, %v20278_v23   ;;  %8587 = vperm.xlu0 %11394, %v20279_v6  }
 0xc6b   : > { %8527 = vperm.xlu2 %11395, %v20280_v22   ;;  %v8797_v22 = vperm.slane %v8420_v21, %v14673_v35 }
 0xc6c   : > { %v7397_v38 = vpop.permute.xlu1 %7396  ;;  %v17916_v46 = vpop.permute.xlu0 %8461 }
 0xc6d   : > { %v7427_v11 = vperm.slane %v7397_v38, %v19904_v49  ;;  %v8429_v53 = vpop.permute.xlu2 %8428 }
 0xc6f   : > { %v7428_v14 = vsel %vm4099_vm14, %v7427_v11, %v7426_v29 }
 0xc70   : > { %v7429_v15 = vpack.c.b16 %v7428_v14, %v7428_v14  ;;  %v6894_v39 = vpop.f32.mrf.mxu1 }
 0xc71   : > { %v7496_v0 = vpack.c.bf16 %v6894_v39, %v6894_v39  ;;  %v20286_v39 = vld [vmem:[#allocation119_spill] sm:$0xff] }
 0xc72   : > { %8539 = vperm.xlu1 %11396, %v20281_v43   ;;  %8596 = vperm.xlu0 %11394, %v20282_v36   ;;  %v8803_v36 = vperm.slane %v8429_v53, %v14708_v62  ;;  %v8807_v53 = vperm.slane %v17873_v48, %v14734_v12 }
 0xc73   : > { %v7544_v26 = vunpack.c.l.b16 %v7496_v0  ;;  %8536 = vperm.xlu2 %11395, %v20283_v24   ;;  %7487 = vmatmul.bf16.vlgmr.msra.gmra.mxu0 %v7429_v15  ;;  %v20285_v15 = vld [vmem:[#allocation66_spill] sm:$0xff]  ;;  %v20287_v0 = vld [vmem:[#allocation89_spill] sm:$0xff] }
 0xc74   : > { %v8414_v16 = vpop.permute.xlu1 %8413  ;;  %v17924_v20 = vpop.permute.xlu0 %8470 }
 0xc75   : > { %v7554_v13 = vrot.slane %v7544_v26, 4  ;;  %v8793_v23 = vperm.slane %v8414_v16, %v14660_v2  ;;  %v8438_v6 = vpop.permute.xlu2 %8437 }
 0xc77   : > { %v17932_v61 = vsel %vm20284_vm15, %v7554_v13, %v17851_v18  ;;  %v8794_v38 = vsel %vm4047_vm1, %v8793_v23, %v8792_v55  ;;  %v8801_v55 = vperm.slane %v17859_v5, %v14729_v63  ;;  %v20289_v13 = vld [vmem:[#allocation59_spill] sm:$0xff]  ;;  %v20290_v23 = vld [vmem:[#allocation200_spill] sm:$0xff]  ;;  %vm20295_vm15 = vcmask 851712  }
 0xc78   : > { %v8796_v11 = vsel %vm4051_vm2, %v8795_v30, %v8794_v38  ;;  %v6896_v29 = vpop.f32.mrf.mxu1 }
 0xc79   : > { %v8798_v14 = vsel %vm4055_vm3, %v8797_v22, %v8796_v11  ;;  %v8809_v11 = vperm.slane %v8438_v6, %v14716_v3  ;;  %v8813_v6 = vperm.slane %v17886_v40, %v14740_v52 }
 0xc7a   : > { %8548 = vperm.xlu1 %11396, %v20285_v15   ;;  %8605 = vperm.xlu0 %11394, %v20286_v39   ;;  %v20293_v39 = vld [vmem:[#allocation144_spill] sm:$0xff] }
 0xc7b   : > { %8545 = vperm.xlu2 %11395, %v20287_v0  }
 0xc7c   : > { %v8423_v50 = vpop.permute.xlu1 %8422  ;;  %v17940_v43 = vpop.permute.xlu0 %8479 }
 0xc7d   : > { %v8799_v21 = vperm.slane %v8423_v50, %v14676_v7  ;;  %v8447_v18 = vpop.permute.xlu2 %8446 }
 0xc7f   : > { %v8800_v26 = vsel %vm4059_vm4, %v8799_v21, %v8798_v14 }
 0xc80   : > { %v8802_v24 = vsel %vm4063_vm5, %v8801_v55, %v8800_v26  ;;  %v8815_v55 = vperm.slane %v8447_v18, %v19899_v17  ;;  %v8819_v18 = vperm.slane %v17903_v42, %v19904_v49  ;;  %v8824_v42 = vperm.slane %v17916_v46, %v14660_v2 }
 0xc81   : > { %v8804_v16 = vsel %vm20288_vm11, %v8803_v36, %v8802_v24  ;;  %vm20305_vm11 = vcmask 1045509  }
 0xc82   : > { %8557 = vperm.xlu1 %11396, %v20289_v13   ;;  %8614 = vperm.xlu0 %11394, %v17088_v27   ;;  %v20292_v27 = vld [vmem:[#allocation88_spill] sm:$0xff]  ;;  %v20298_v13 = vld [vmem:[#allocation150_spill] sm:$0xff] }
 0xc83   : > { %8554 = vperm.xlu2 %11395, %v20290_v23  }
 0xc84   : > { %v8432_v30 = vpop.permute.xlu1 %8431  ;;  %v17952_v22 = vpop.permute.xlu0 %8488 }
 0xc85   : > { %v8805_v38 = vperm.slane %v8432_v30, %v14685_v51  ;;  %v8456_v5 = vpop.permute.xlu2 %8455 }
 0xc87   : > { %v8806_v29 = vsel %vm4071_vm7, %v8805_v38, %v8804_v16  ;;  %v20297_v16 = vld [vmem:[#allocation151_spill] sm:$0xff] }
 0xc88   : > { %v8808_v14 = vsel %vm4075_vm8, %v8807_v53, %v8806_v29  ;;  %v20299_v29 = vld [vmem:[#allocation107_spill] sm:$0xff] }
 0xc89   : > { %v8810_v15 = vsel %vm20291_vm9, %v8809_v11, %v8808_v14  ;;  %v20300_v14 = vld [vmem:[#allocation75_spill] sm:$0xff]  ;;  %vm20308_vm9 = vcmask 523712  }
 0xc8a   : > { %8566 = vperm.xlu1 %11396, %v20292_v27   ;;  %8623 = vperm.xlu0 %11394, %v17123_v9   ;;  %v20296_v9 = vld [vmem:[#allocation98_spill] sm:$0xff] }
 0xc8b   : > { %8563 = vperm.xlu2 %11395, %v20293_v39  }
 0xc8c   : > { %v8441_v0 = vpop.permute.xlu1 %8440  ;;  %v17964_v50 = vpop.permute.xlu0 %8497 }
 0xc8d   : > { %v8811_v21 = vperm.slane %v8441_v0, %v14691_v45  ;;  %v8465_v48 = vpop.permute.xlu2 %8464  ;;  %v8821_v0 = vperm.slane %v8456_v5, %v14652_v37  ;;  %v20303_v5 = vld [vmem:[#allocation108_spill] sm:$0xff] }
 0xc8f   : > { %v8812_v36 = vsel %vm20294_vm6, %v8811_v21, %v8810_v15  ;;  %v20301_v15 = vld [vmem:[#allocation95_spill] sm:$0xff]  ;;  %vm20311_vm6 = vcmask 720512  }
 0xc90   : > { %v8814_v26 = vsel %vm20295_vm15, %v8813_v6, %v8812_v36  ;;  %v8826_v36 = vperm.slane %v8465_v48, %v14679_v28  ;;  %vm20312_vm15 = vcmask 786112  }
 0xc91   : > { %v8816_v24 = vsel %vm4091_vm12, %v8815_v55, %v8814_v26 }
 0xc92   : > { %8575 = vperm.xlu1 %11396, %v20296_v9   ;;  %8632 = vperm.xlu0 %11394, %v20297_v16  }
 0xc93   : > { %8572 = vperm.xlu2 %11395, %v20298_v13  }
 0xc94   : > { %v8450_v23 = vpop.permute.xlu1 %8449  ;;  %v17976_v30 = vpop.permute.xlu0 %8506 }
 0xc95   : > { %v8817_v38 = vperm.slane %v8450_v23, %v19895_v59  ;;  %v8474_v40 = vpop.permute.xlu2 %8473  ;;  %v20302_v23 = vld [vmem:[#allocation111_spill] sm:$0xff] }
 0xc97   : > { %v8818_v53 = vsel %vm4095_vm13, %v8817_v38, %v8816_v24 }
 0xc98   : > { %v17983_v11 = vsel %vm4099_vm14, %v8819_v18, %v8818_v53  ;;  %v20304_v18 = vld [vmem:[#allocation84_spill] sm:$0xff] }
 0xc9a   : > { %8584 = vperm.xlu1 %11396, %v20299_v29   ;;  %8641 = vperm.xlu0 %11394, %v20300_v14  }
 0xc9b   : > { %8581 = vperm.xlu2 %11395, %v20301_v15   ;;  %v8830_v15 = vperm.slane %v17924_v20, %v14676_v7 }
 0xc9c   : > { %v8459_v27 = vpop.permute.xlu1 %8458  ;;  %v17988_v39 = vpop.permute.xlu0 %8515 }
 0xc9d   : > { %v8822_v21 = vperm.slane %v8459_v27, %v14657_v58  ;;  %v8483_v6 = vpop.permute.xlu2 %8482 }
 0xc9e   : > { %v7092_v55 = vpop.f32.mrf.mxu2 }
 0xc9f   : > { %v8823_v26 = vsel %vm4043_vm0, %v8822_v21, %v8821_v0  ;;  %v7497_v24 = vpack.c.bf16 %v7092_v55, %v7092_v55  ;;  %v8832_v0 = vperm.slane %v8474_v40, %v14729_v63  ;;  %v8836_v40 = vperm.slane %v17940_v43, %v14685_v51 }
 0xca0   : > { %v8825_v9 = vsel %vm4047_vm1, %v8824_v42, %v8823_v26 }
 0xca1   : > { %v7545_v16 = vunpack.c.l.b16 %v7497_v24  ;;  %v8827_v13 = vsel %vm4051_vm2, %v8826_v36, %v8825_v9  ;;  %v20306_v36 = vld [vmem:[#allocation147_spill] sm:$0xff] }
 0xca2   : > { %8593 = vperm.xlu1 %11396, %v20302_v23   ;;  %8650 = vperm.xlu0 %11394, %v20303_v5   ;;  %v10224_v5 = vld [vmem:[#allocation21 + $0xe0] sm:$0xf] }
 0xca3   : > { %v7556_v38 = vrot.slane %v7545_v16, 3  ;;  %8590 = vperm.xlu2 %11395, %v20304_v18   ;;  %v8838_v16 = vperm.slane %v8483_v6, %v14734_v12  ;;  %v10703_v6 = vld [vmem:[#allocation21 + $0xec] sm:$0xf] }
 0xca4   : > { %v8468_v53 = vpop.permute.xlu1 %8467  ;;  %v18001_v46 = vpop.permute.xlu0 %8524 }
 0xca5   : > { %v18005_v48 = vsel %vm20305_vm11, %v7556_v38, %v17932_v61  ;;  %v8828_v29 = vperm.slane %v8468_v53, %v14673_v35  ;;  %v18008_v14 = vpop.permute.xlu2 %8491  ;;  %v20307_v61 = vld [vmem:[#allocation129_spill] sm:$0xff]  ;;  %v10702_v38 = vld [vmem:[#allocation21 + $0xe4] sm:$0xf]  ;;  %vm20313_vm11 = vcmask 851712  }
 0xca6   : > { %v7094_v27 = vpop.f32.mrf.mxu2 }
 0xca7   : > { %v8829_v21 = vsel %vm4055_vm3, %v8828_v29, %v8827_v13  ;;  %v10226_v29 = vld [vmem:[#allocation21 + $0xf0] sm:$0xf0]  ;;  %v10705_v27 = vld [vmem:[#allocation21 + $0xf4] sm:$0xf0] }
 0xca8   : > { %v8831_v42 = vsel %vm4059_vm4, %v8830_v15, %v8829_v21  ;;  %v10232_v15 = vld [vmem:[#allocation21 + $0xe8] sm:$0xf]  ;;  %v10229_v43 = vor.u32 %v10702_v38, %v10226_v29  ;;  %v10699_v38 = vld [vmem:[#allocation21 + $0xcc] sm:$0xf] }
 0xca9   : > { %v8833_v55 = vsel %vm4063_vm5, %v8832_v0, %v8831_v42  ;;  %v20309_v0 = vld [vmem:[#allocation87_spill] sm:$0xff]  ;;  %v10233_v21 = vor.u32 %v10705_v27, %v10232_v15  ;;  %v10234_v42 = vld [vmem:[#allocation21 + $0xf8] sm:$0xf0] }
 0xcaa   : > { %8602 = vperm.xlu1 %11396, %v20306_v36   ;;  %8659 = vperm.xlu0 %11394, %v17253_v47   ;;  %v10704_v47 = vld [vmem:[#allocation21 + $0xec] sm:$0xf0]  ;;  %v20310_v36 = vld [vmem:[#allocation125_spill] sm:$0xff] }
 0xcab   : > { %8599 = vperm.xlu2 %11395, %v20307_v61   ;;  %v10225_v53 = vor.u32 %v10704_v47, %v10224_v5  ;;  %v10237_v61 = vor.u32 %v10703_v6, %v10234_v42  ;;  %7737 = vmatpush.bf16.msra.mxu2 %v10229_v43  ;;  %v10701_v47 = vld [vmem:[#allocation21 + $0xd4] sm:$0xf0]  ;;  %v10218_v27 = vld [vmem:[#allocation21 + $0xd8] sm:$0xf0]  ;;  %v8844_v43 = vperm.slane %v18008_v14, %v14740_v52 }
 0xcac   : > { %v8477_v26 = vpop.permute.xlu1 %8476  ;;  %v18019_v24 = vpop.permute.xlu0 %8533  ;;  %7750 = vmatpush.bf16.msra.mxu3 %v10233_v21  ;;  %v10221_v6 = vor.u32 %v10699_v38, %v10218_v27  ;;  %v20315_v38 = vld [vmem:[#allocation113_spill] sm:$0xff]  ;;  %v10690_v27 = vld [vmem:[#allocation21 + $0x84] sm:$0xf] }
 0xcad   : > { %v8834_v20 = vperm.slane %v8477_v26, %v14708_v62  ;;  %v18022_v9 = vpop.permute.xlu2 %8500  ;;  %7724 = vmatpush.bf16.msra.mxu1 %v10225_v53  ;;  %v10700_v26 = vld [vmem:[#allocation21 + $0xcc] sm:$0xf0]  ;;  %7763 = vmatpush.bf16.msrb.mxu0 %v10237_v61 }
 0xcaf   : > { %v8835_v13 = vsel %vm20308_vm9, %v8834_v20, %v8833_v55  ;;  %v10208_v55 = vld [vmem:[#allocation21 + $0xc0] sm:$0xf]  ;;  %v10698_v20 = vld [vmem:[#allocation21 + $0xc4] sm:$0xf]  ;;  %vm20320_vm9 = vcmask 1041409  }
 0xcb0   : > { %v8837_v23 = vsel %vm4071_vm7, %v8836_v40, %v8835_v13  ;;  %v10210_v40 = vld [vmem:[#allocation21 + $0xd0] sm:$0xf0] }
 0xcb1   : > { %v8839_v18 = vsel %vm4075_vm8, %v8838_v16, %v8837_v23  ;;  %v10209_v23 = vor.u32 %v10700_v26, %v10208_v55  ;;  %v10213_v5 = vor.u32 %v10698_v20, %v10210_v40  ;;  %v10192_v55 = vld [vmem:[#allocation21 + $0xa0] sm:$0xf]  ;;  %v10694_v26 = vld [vmem:[#allocation21 + $0xa4] sm:$0xf]  ;;  %7764 = vmatpush.bf16.msrb.mxu0 %v10221_v6  ;;  %v10194_v40 = vld [vmem:[#allocation21 + $0xb0] sm:$0xf0] }
 0xcb2   : > { %8611 = vperm.xlu1 %11396, %v20309_v0   ;;  %8668 = vperm.xlu0 %11394, %v17283_v56   ;;  %v10216_v56 = vld [vmem:[#allocation21 + $0xc8] sm:$0xf]  ;;  %v8842_v0 = vperm.slane %v17952_v22, %v14691_v45  ;;  %v10197_v14 = vor.u32 %v10694_v26, %v10194_v40 }
 0xcb3   : > { %8608 = vperm.xlu2 %11395, %v20310_v36   ;;  %v10217_v53 = vor.u32 %v10701_v47, %v10216_v56  ;;  %7725 = vmatpush.bf16.msra.mxu1 %v10209_v23  ;;  %v10696_v36 = vld [vmem:[#allocation21 + $0xac] sm:$0xf0]  ;;  %v10200_v22 = vld [vmem:[#allocation21 + $0xa8] sm:$0xf]  ;;  %v20314_v56 = vld [vmem:[#allocation122_spill] sm:$0xff] }
 0xcb4   : > { %v8486_v16 = vpop.permute.xlu1 %8485  ;;  %v18033_v13 = vpop.permute.xlu0 %8542  ;;  %7738 = vmatpush.bf16.msra.mxu2 %v10213_v5  ;;  %v10193_v20 = vor.u32 %v10696_v36, %v10192_v55  ;;  %v10695_v23 = vld [vmem:[#allocation21 + $0xac] sm:$0xf]  ;;  %v10202_v47 = vld [vmem:[#allocation21 + $0xb8] sm:$0xf0]  ;;  %v10176_v5 = vld [vmem:[#allocation21 + $0x80] sm:$0xf] }
 0xcb5   : > { %v8840_v29 = vperm.slane %v8486_v16, %v14716_v3  ;;  %v18036_v15 = vpop.permute.xlu2 %8509  ;;  %7751 = vmatpush.bf16.msra.mxu3 %v10217_v53  ;;  %v10697_v16 = vld [vmem:[#allocation21 + $0xb4] sm:$0xf0]  ;;  %v10692_v53 = vld [vmem:[#allocation21 + $0x8c] sm:$0xf0] }
 0xcb6   : > { %v10693_v55 = vld [vmem:[#allocation21 + $0x94] sm:$0xf0] }
 0xcb7   : > { %v8841_v21 = vsel %vm20311_vm6, %v8840_v29, %v8839_v18  ;;  %v10201_v18 = vor.u32 %v10697_v16, %v10200_v22  ;;  %7726 = vmatpush.bf16.msra.mxu1 %v10193_v20  ;;  %v10205_v29 = vor.u32 %v10695_v23, %v10202_v47  ;;  %v10186_v22 = vld [vmem:[#allocation21 + $0x98] sm:$0xf0]  ;;  %v8848_v16 = vperm.slane %v17964_v50, %v19895_v59  ;;  %v10160_v47 = vld [vmem:[#allocation21 + $0x60] sm:$0xf]  ;;  %v10162_v50 = vld [vmem:[#allocation21 + $0x70] sm:$0xf0] }
 0xcb8   : > { %v8843_v42 = vsel %vm20312_vm15, %v8842_v0, %v8841_v21  ;;  %v10178_v0 = vld [vmem:[#allocation21 + $0x90] sm:$0xf0]  ;;  %7739 = vmatpush.bf16.msra.mxu2 %v10197_v14  ;;  %v8850_v14 = vperm.slane %v18022_v9, %v19904_v49  ;;  %vm20323_vm6 = vcmask 523712   ;;  %vm20327_vm15 = vcmask 720512  }
 0xcb9   : > { %v8845_v61 = vsel %vm20313_vm11, %v8844_v43, %v8843_v42  ;;  %7752 = vmatpush.bf16.msra.mxu3 %v10201_v18  ;;  %v10177_v43 = vor.u32 %v10692_v53, %v10176_v5  ;;  %v10181_v21 = vor.u32 %v10690_v27, %v10178_v0  ;;  %v10184_v42 = vld [vmem:[#allocation21 + $0x88] sm:$0xf]  ;;  %7765 = vmatpush.bf16.msrb.mxu0 %v10205_v29  ;;  %v10688_v5 = vld [vmem:[#allocation21 + $0x6c] sm:$0xf0]  ;;  %v10689_v0 = vld [vmem:[#allocation21 + $0x74] sm:$0xf0] }
 0xcba   : > { %8620 = vperm.xlu1 %11396, %v20314_v56   ;;  %8677 = vperm.xlu0 %11394, %v17322_v25   ;;  %v10691_v25 = vld [vmem:[#allocation21 + $0x8c] sm:$0xf]  ;;  %v10185_v20 = vor.u32 %v10693_v55, %v10184_v42  ;;  %v10161_v53 = vor.u32 %v10688_v5, %v10160_v47  ;;  %v10168_v27 = vld [vmem:[#allocation21 + $0x68] sm:$0xf]  ;;  %v10144_v42 = vld [vmem:[#allocation21 + $0x40] sm:$0xf]  ;;  %v8853_v47 = vperm.slane %v17976_v30, %v14657_v58 }
 0xcbb   : > { %8617 = vperm.xlu2 %11395, %v20315_v38   ;;  %v10189_v56 = vor.u32 %v10691_v25, %v10186_v22  ;;  %7727 = vmatpush.bf16.msra.mxu1 %v10177_v43  ;;  %v10686_v38 = vld [vmem:[#allocation21 + $0x64] sm:$0xf]  ;;  %v10687_v43 = vld [vmem:[#allocation21 + $0x6c] sm:$0xf]  ;;  %v10146_v22 = vld [vmem:[#allocation21 + $0x50] sm:$0xf0] }
 0xcbc   : > { %v8495_v6 = vpop.permute.xlu1 %8494  ;;  %v18049_v26 = vpop.permute.xlu0 %8551  ;;  %7740 = vmatpush.bf16.msra.mxu2 %v10181_v21  ;;  %v10165_v9 = vor.u32 %v10686_v38, %v10162_v50  ;;  %v10170_v21 = vld [vmem:[#allocation21 + $0x78] sm:$0xf0]  ;;  %v20317_v55 = vld [vmem:[#allocation142_spill] sm:$0xff]  ;;  %vm20328_vm11 = vcmask 786112  }
 0xcbd   : > { %v8846_v36 = vperm.slane %v8495_v6, %v19899_v17  ;;  %v18051_v40 = vpop.permute.xlu2 %8518  ;;  %7753 = vmatpush.bf16.msra.mxu3 %v10185_v20  ;;  %7766 = vmatpush.bf16.msrb.mxu0 %v10189_v56  ;;  %v20316_v6 = vld [vmem:[#allocation112_spill] sm:$0xff]  ;;  %v10173_v25 = vor.u32 %v10687_v43, %v10170_v21  ;;  %v10682_v20 = vld [vmem:[#allocation21 + $0x44] sm:$0xf]  ;;  %v10154_v50 = vld [vmem:[#allocation21 + $0x58] sm:$0xf0] }
 0xcbe   : > { %v10128_v43 = vld [vmem:[#allocation21 + $0x20] sm:$0xf]  ;;  %v10680_v21 = vld [vmem:[#allocation21 + $0x2c] sm:$0xf0] }
 0xcbf   : > { %v8847_v18 = vsel %vm4091_vm12, %v8846_v36, %v8845_v61  ;;  %v10169_v61 = vor.u32 %v10689_v0, %v10168_v27  ;;  %7728 = vmatpush.bf16.msra.mxu1 %v10161_v53  ;;  %v10684_v36 = vld [vmem:[#allocation21 + $0x4c] sm:$0xf0]  ;;  %v8855_v27 = vperm.slane %v18036_v15, %v14660_v2  ;;  %v10681_v15 = vld [vmem:[#allocation21 + $0x34] sm:$0xf0] }
 0xcc0   : > { %v8849_v23 = vsel %vm4095_vm13, %v8848_v16, %v8847_v18  ;;  %7741 = vmatpush.bf16.msra.mxu2 %v10165_v9  ;;  %v10145_v56 = vor.u32 %v10684_v36, %v10144_v42  ;;  %v10152_v18 = vld [vmem:[#allocation21 + $0x48] sm:$0xf]  ;;  %v10678_v42 = vld [vmem:[#allocation21 + $0x24] sm:$0xf] }
 0xcc1   : > { %v18060_v29 = vsel %vm4099_vm14, %v8850_v14, %v8849_v23  ;;  %7754 = vmatpush.bf16.msra.mxu3 %v10169_v61  ;;  %v10149_v14 = vor.u32 %v10682_v20, %v10146_v22  ;;  %v10685_v23 = vld [vmem:[#allocation21 + $0x54] sm:$0xf0]  ;;  %7767 = vmatpush.bf16.msrb.mxu0 %v10173_v25  ;;  %v10130_v25 = vld [vmem:[#allocation21 + $0x30] sm:$0xf0]  ;;  %v10136_v36 = vld [vmem:[#allocation21 + $0x28] sm:$0xf] }
 0xcc2   : > { %8629 = vperm.xlu1 %11396, %v20316_v6   ;;  %8686 = vperm.xlu0 %11394, %v17359_v34   ;;  %v10683_v34 = vld [vmem:[#allocation21 + $0x4c] sm:$0xf]  ;;  %v10153_v53 = vor.u32 %v10685_v23, %v10152_v18  ;;  %v20318_v20 = vld [vmem:[#allocation133_spill] sm:$0xff]  ;;  %v10133_v22 = vor.u32 %v10678_v42, %v10130_v25  ;;  %v10112_v23 = vld [vmem:[#allocation21] sm:$0xf] }
 0xcc3   : > { %8626 = vperm.xlu2 %11395, %v20317_v55   ;;  %v10157_v0 = vor.u32 %v10683_v34, %v10154_v50  ;;  %7729 = vmatpush.bf16.msra.mxu1 %v10145_v56  ;;  %v10129_v55 = vor.u32 %v10680_v21, %v10128_v43  ;;  %v10679_v18 = vld [vmem:[#allocation21 + $0x2c] sm:$0xf]  ;;  %v10138_v56 = vld [vmem:[#allocation21 + $0x38] sm:$0xf0]  ;;  %v20319_v34 = vld [vmem:[#allocation86_spill] sm:$0xff] }
 0xcc4   : > { %v8504_v16 = vpop.permute.xlu1 %8503  ;;  %v18073_v9 = vpop.permute.xlu0 %8560  ;;  %7742 = vmatpush.bf16.msra.mxu2 %v10149_v14  ;;  %v10141_v14 = vor.u32 %v10679_v18, %v10138_v56  ;;  %v10677_v43 = vld [vmem:[#allocation21 + $0x14] sm:$0xf0]  ;;  %v10675_v25 = vld [vmem:[#allocation21 + $0xc] sm:$0xf]  ;;  %v10606_v18 = vld [vmem:[#allocation19 + $0xe4] sm:$0xf] }
 0xcc5   : > { %v8852_v5 = vperm.slane %v8504_v16, %v14652_v37  ;;  %v18068_v38 = vpop.permute.xlu2 %8527  ;;  %7755 = vmatpush.bf16.msra.mxu3 %v10153_v53  ;;  %7768 = vmatpush.bf16.msrb.mxu0 %v10157_v0  ;;  %v10137_v16 = vor.u32 %v10681_v15, %v10136_v36  ;;  %v10114_v53 = vld [vmem:[#allocation21 + $0x10] sm:$0xf0]  ;;  %v10122_v36 = vld [vmem:[#allocation21 + $0x18] sm:$0xf0]  ;;  %v8859_v15 = vperm.slane %v17988_v39, %v14673_v35 }
 0xcc6   : > { %v10354_v56 = vld [vmem:[#allocation19 + $0xf0] sm:$0xf0]  ;;  %v18092_v39 = vsel %vm20320_vm9, %v18060_v29, %v17983_v11  ;;  %v10344_v11 = vld [vmem:[#allocation19 + $0xc8] sm:$0xf]  ;;  %v20321_v29 = vld [vmem:[#allocation181_spill] sm:$0xff]  ;;  %vm20332_vm9 = vcmask 851712  }
 0xcc7   : > { %v8854_v6 = vsel %vm4043_vm0, %v8853_v47, %v8852_v5  ;;  %v18075_v61 = vpop.f32.mrf.mxu3  ;;  %7730 = vmatpush.bf16.msra.mxu1 %v10129_v55  ;;  %v10676_v47 = vld [vmem:[#allocation21 + $0xc] sm:$0xf0]  ;;  %v10674_v5 = vld [vmem:[#allocation21 + $0x4] sm:$0xf]  ;;  %v10352_v55 = vld [vmem:[#allocation19 + $0xe0] sm:$0xf] }
 0xcc8   : > { %v8856_v30 = vsel %vm4047_vm1, %v8855_v27, %v8854_v6  ;;  %7743 = vmatpush.bf16.msra.mxu2 %v10133_v22  ;;  %v10113_v27 = vor.u32 %v10676_v47, %v10112_v23  ;;  %v10117_v0 = vor.u32 %v10674_v5, %v10114_v53  ;;  %v10120_v6 = vld [vmem:[#allocation21 + $0x8] sm:$0xf]  ;;  %v10125_v22 = vor.u32 %v10675_v25, %v10122_v36  ;;  %v10609_v53 = vld [vmem:[#allocation19 + $0xf4] sm:$0xf0]  ;;  %v10336_v25 = vld [vmem:[#allocation19 + $0xc0] sm:$0xf] }
 0xcc9   : > { %7756 = vmatpush.bf16.msra.mxu3 %v10137_v16  ;;  %7769 = vmatpush.bf16.msrb.mxu0 %v10141_v14  ;;  %v10121_v42 = vor.u32 %v10677_v43, %v10120_v6  ;;  %v10608_v16 = vld [vmem:[#allocation19 + $0xec] sm:$0xf0]  ;;  %v10357_v14 = vor.u32 %v10606_v18, %v10354_v56  ;;  %v10360_v5 = vld [vmem:[#allocation19 + $0xe8] sm:$0xf]  ;;  %v10362_v43 = vld [vmem:[#allocation19 + $0xf8] sm:$0xf0] }
 0xcca   : > { %8638 = vperm.xlu1 %11396, %v20318_v20   ;;  %8695 = vperm.xlu0 %11394, %v17388_v54   ;;  %v8861_v20 = vperm.slane %v18051_v40, %v14676_v7  ;;  %v10353_v47 = vor.u32 %v10608_v16, %v10352_v55  ;;  %v10361_v6 = vor.u32 %v10609_v53, %v10360_v5  ;;  %v10602_v16 = vld [vmem:[#allocation19 + $0xc4] sm:$0xf]  ;;  %v10338_v18 = vld [vmem:[#allocation19 + $0xd0] sm:$0xf0]  ;;  %v20322_v56 = vld [vmem:[#allocation81_spill] sm:$0xff] }
 0xccb   : > { %8635 = vperm.xlu2 %11395, %v20319_v34   ;;  %7731 = vmatpush.bf16.msra.mxu1 %v10113_v27  ;;  %v8867_v53 = vperm.slane %v18068_v38, %v14685_v51 }
 0xccc   : > { %v8513_v50 = vpop.permute.xlu1 %8512  ;;  %7744 = vmatpush.bf16.msra.mxu2 %v10117_v0  ;;  %v10605_v0 = vld [vmem:[#allocation19 + $0xd4] sm:$0xf0] }
 0xccd   : > { %v8857_v54 = vperm.slane %v8513_v50, %v14679_v28  ;;  %v18082_v21 = vpop.permute.xlu2 %8536  ;;  %v10607_v50 = vld [vmem:[#allocation19 + $0xec] sm:$0xf]  ;;  %7757 = vmatpush.bf16.msra.mxu3 %v10121_v42  ;;  %7770 = vmatpush.bf16.msrb.mxu0 %v10125_v22 }
 0xcce   : > { %v10365_v36 = vor.u32 %v10607_v50, %v10362_v43  ;;  %v10603_v42 = vld [vmem:[#allocation19 + $0xcc] sm:$0xf]  ;;  %v10598_v43 = vld [vmem:[#allocation19 + $0xa4] sm:$0xf] }
 0xccf   : > { %v8858_v23 = vsel %vm4051_vm2, %v8857_v54, %v8856_v30  ;;  %v7292_v34 = vpop.f32.mrf.mxu3  ;;  %v10604_v30 = vld [vmem:[#allocation19 + $0xcc] sm:$0xf0]  ;;  %v18095_v54 = vpop.permute.xlu0 %8569  ;;  %7936 = vmatpush.bf16.msrb.mxu1 %v10353_v47 }
 0xcd0   : > { %v8860_v40 = vsel %vm4055_vm3, %v8859_v15, %v8858_v23  ;;  %v10337_v55 = vor.u32 %v10604_v30, %v10336_v25  ;;  %v10346_v15 = vld [vmem:[#allocation19 + $0xd8] sm:$0xf0]  ;;  %7949 = vmatpush.bf16.msrb.mxu2 %v10357_v14  ;;  %v10341_v23 = vor.u32 %v10602_v16, %v10338_v18  ;;  %v10601_v16 = vld [vmem:[#allocation19 + $0xb4] sm:$0xf0]  ;;  %v20325_v18 = vld [vmem:[#allocation208_spill] sm:$0xff] }
 0xcd1   : > { %v8862_v27 = vsel %vm4059_vm4, %v8861_v20, %v8860_v40  ;;  %7962 = vmatpush.bf16.msrb.mxu3 %v10361_v6  ;;  %7975 = vmatpush.bf16.msra.mxu0 %v10365_v36  ;;  %v10345_v20 = vor.u32 %v10605_v0, %v10344_v11  ;;  %v10349_v22 = vor.u32 %v10603_v42, %v10346_v15  ;;  %v10320_v40 = vld [vmem:[#allocation19 + $0xa0] sm:$0xf]  ;;  %v10600_v6 = vld [vmem:[#allocation19 + $0xac] sm:$0xf0]  ;;  %v10322_v36 = vld [vmem:[#allocation19 + $0xb0] sm:$0xf0] }
 0xcd2   : > { %8647 = vperm.xlu1 %11396, %v20321_v29   ;;  %8704 = vperm.xlu0 %11394, %v17418_v4   ;;  %v8865_v4 = vperm.slane %v18001_v46, %v14708_v62  ;;  %v10321_v30 = vor.u32 %v10600_v6, %v10320_v40  ;;  %v20324_v46 = vld [vmem:[#allocation127_spill] sm:$0xff]  ;;  %v10325_v38 = vor.u32 %v10598_v43, %v10322_v36  ;;  %v10330_v29 = vld [vmem:[#allocation19 + $0xb8] sm:$0xf0]  ;;  %v10304_v0 = vld [vmem:[#allocation19 + $0x80] sm:$0xf] }
 0xcd3   : > { %8644 = vperm.xlu2 %11395, %v20322_v56   ;;  %7937 = vmatpush.bf16.msrb.mxu1 %v10337_v55  ;;  %v10328_v55 = vld [vmem:[#allocation19 + $0xa8] sm:$0xf]  ;;  %v10599_v11 = vld [vmem:[#allocation19 + $0xac] sm:$0xf]  ;;  %v20326_v15 = vld [vmem:[#allocation245_spill] sm:$0xff] }
 0xcd4   : > { %v8522_v34 = vpop.permute.xlu1 %8521  ;;  %7950 = vmatpush.bf16.msrb.mxu2 %v10341_v23  ;;  %v10333_v56 = vor.u32 %v10599_v11, %v10330_v29  ;;  %v10596_v23 = vld [vmem:[#allocation19 + $0x8c] sm:$0xf0]  ;;  %v10314_v36 = vld [vmem:[#allocation19 + $0x98] sm:$0xf0]  ;;  %v10290_v11 = vld [vmem:[#allocation19 + $0x70] sm:$0xf0] }
 0xcd5   : > { %v8863_v47 = vperm.slane %v8522_v34, %v14729_v63  ;;  %v18102_v5 = vpop.permute.xlu2 %8545  ;;  %7963 = vmatpush.bf16.msrb.mxu3 %v10345_v20  ;;  %7976 = vmatpush.bf16.msra.mxu0 %v10349_v22  ;;  %v10594_v34 = vld [vmem:[#allocation19 + $0x84] sm:$0xf]  ;;  %v10306_v20 = vld [vmem:[#allocation19 + $0x90] sm:$0xf0]  ;;  %v10296_v29 = vld [vmem:[#allocation19 + $0x68] sm:$0xf] }
 0xcd7   : > { %v8864_v50 = vsel %vm4063_vm5, %v8863_v47, %v8862_v27  ;;  %v10329_v27 = vor.u32 %v10601_v16, %v10328_v55  ;;  %v18113_v42 = vpop.permute.xlu0 %8578  ;;  %7938 = vmatpush.bf16.msrb.mxu1 %v10321_v30  ;;  %v10305_v47 = vor.u32 %v10596_v23, %v10304_v0  ;;  %v10288_v55 = vld [vmem:[#allocation19 + $0x60] sm:$0xf]  ;;  %v10592_v30 = vld [vmem:[#allocation19 + $0x6c] sm:$0xf0]  ;;  %v8871_v16 = vperm.slane %v18019_v24, %v14716_v3  ;;  %v10298_v24 = vld [vmem:[#allocation19 + $0x78] sm:$0xf0] }
 0xcd8   : > { %v8866_v14 = vsel %vm20323_vm6, %v8865_v4, %v8864_v50  ;;  %7951 = vmatpush.bf16.msrb.mxu2 %v10325_v38  ;;  %v10309_v4 = vor.u32 %v10594_v34, %v10306_v20  ;;  %v10597_v50 = vld [vmem:[#allocation19 + $0x94] sm:$0xf0]  ;;  %v8873_v0 = vperm.slane %v18082_v21, %v14691_v45  ;;  %v10591_v20 = vld [vmem:[#allocation19 + $0x6c] sm:$0xf]  ;;  %vm20335_vm6 = vcmask 1042434  }
 0xcd9   : > { %v8868_v25 = vsel %vm4071_vm7, %v8867_v53, %v8866_v14  ;;  %7964 = vmatpush.bf16.msrb.mxu3 %v10329_v27  ;;  %v10312_v53 = vld [vmem:[#allocation19 + $0x88] sm:$0xf]  ;;  %v10595_v14 = vld [vmem:[#allocation19 + $0x8c] sm:$0xf]  ;;  %7977 = vmatpush.bf16.msra.mxu0 %v10333_v56  ;;  %v10590_v27 = vld [vmem:[#allocation19 + $0x64] sm:$0xf]  ;;  %v10289_v56 = vor.u32 %v10592_v30, %v10288_v55 }
 0xcda   : > { %8656 = vperm.xlu1 %11396, %v20324_v46   ;;  %8713 = vperm.xlu0 %11394, %v20325_v18   ;;  %v10313_v43 = vor.u32 %v10597_v50, %v10312_v53  ;;  %v8883_v46 = vperm.slane %v18049_v26, %v14652_v37  ;;  %v10317_v38 = vor.u32 %v10595_v14, %v10314_v36  ;;  %v10593_v34 = vld [vmem:[#allocation19 + $0x74] sm:$0xf0]  ;;  %v10272_v50 = vld [vmem:[#allocation19 + $0x40] sm:$0xf]  ;;  %v10588_v14 = vld [vmem:[#allocation19 + $0x4c] sm:$0xf0] }
 0xcdb   : > { %8653 = vperm.xlu2 %11395, %v20326_v15   ;;  %7939 = vmatpush.bf16.msrb.mxu1 %v10305_v47  ;;  %v10293_v23 = vor.u32 %v10590_v27, %v10290_v11  ;;  %v10297_v53 = vor.u32 %v10593_v34, %v10296_v29  ;;  %v10274_v47 = vld [vmem:[#allocation19 + $0x50] sm:$0xf0]  ;;  %v10589_v36 = vld [vmem:[#allocation19 + $0x54] sm:$0xf0]  ;;  %v20329_v55 = vld [vmem:[#allocation99_spill] sm:$0xff] }
 0xcdc   : > { %v8531_v22 = vpop.permute.xlu1 %8530  ;;  %7952 = vmatpush.bf16.msrb.mxu2 %v10309_v4  ;;  %v20330_v30 = vld [vmem:[#allocation217_spill] sm:$0xff]  ;;  %v10273_v4 = vor.u32 %v10588_v14, %v10272_v50  ;;  %v10256_v34 = vld [vmem:[#allocation19 + $0x20] sm:$0xf]  ;;  %v10264_v50 = vld [vmem:[#allocation19 + $0x28] sm:$0xf] }
 0xcdd   : > { %v8869_v40 = vperm.slane %v8531_v22, %v14734_v12  ;;  %v8555_v6 = vpop.permute.xlu2 %8554  ;;  %7965 = vmatpush.bf16.msrb.mxu3 %v10313_v43  ;;  %7978 = vmatpush.bf16.msra.mxu0 %v10317_v38 }
 0xcde   : > { %v8884_v18 = vperm.slane %v8555_v6, %v14657_v58  ;;  %v10586_v6 = vld [vmem:[#allocation19 + $0x44] sm:$0xf] }
 0xcdf   : > { %v8870_v15 = vsel %vm4075_vm8, %v8869_v40, %v8868_v25  ;;  %v10301_v25 = vor.u32 %v10591_v20, %v10298_v24  ;;  %v10280_v40 = vld [vmem:[#allocation19 + $0x48] sm:$0xf]  ;;  %7940 = vmatpush.bf16.msrb.mxu1 %v10289_v56  ;;  %v10277_v27 = vor.u32 %v10586_v6, %v10274_v47  ;;  %v18133_v38 = vpop.permute.xlu0 %8587  ;;  %v10584_v20 = vld [vmem:[#allocation19 + $0x2c] sm:$0xf0]  ;;  %v10582_v24 = vld [vmem:[#allocation19 + $0x24] sm:$0xf]  ;;  %v8877_v56 = vperm.slane %v18033_v13, %v19899_v17 }
 0xce0   : > { %v8872_v22 = vsel %vm20327_vm15, %v8871_v16, %v8870_v15  ;;  %v18127_v26 = vsel %vm4043_vm0, %v8884_v18, %v8883_v46  ;;  %v10587_v16 = vld [vmem:[#allocation19 + $0x4c] sm:$0xf]  ;;  %v10282_v46 = vld [vmem:[#allocation19 + $0x58] sm:$0xf0]  ;;  %v20331_v18 = vld [vmem:[#allocation102_spill] sm:$0xff]  ;;  %7953 = vmatpush.bf16.msrb.mxu2 %v10293_v23  ;;  %v10281_v11 = vor.u32 %v10589_v36, %v10280_v40  ;;  %v10257_v6 = vor.u32 %v10584_v20, %v10256_v34 }
 0xce1   : > { %v8874_v21 = vsel %vm20328_vm11, %v8873_v0, %v8872_v22  ;;  %7966 = vmatpush.bf16.msrb.mxu3 %v10297_v53  ;;  %7979 = vmatpush.bf16.msra.mxu0 %v10301_v25  ;;  %v10285_v15 = vor.u32 %v10587_v16, %v10282_v46  ;;  %v10258_v22 = vld [vmem:[#allocation19 + $0x30] sm:$0xf0]  ;;  %v10585_v23 = vld [vmem:[#allocation19 + $0x34] sm:$0xf0]  ;;  %v8879_v53 = vperm.slane %v18102_v5, %v19895_v59  ;;  %v10583_v47 = vld [vmem:[#allocation19 + $0x2c] sm:$0xf] }
 0xce2   : > { %8665 = vperm.xlu1 %11396, %v20329_v55   ;;  %8722 = vperm.xlu0 %11394, %v20330_v30   ;;  %v10266_v40 = vld [vmem:[#allocation19 + $0x38] sm:$0xf0]  ;;  %v10261_v36 = vor.u32 %v10582_v24, %v10258_v22  ;;  %v10265_v55 = vor.u32 %v10585_v23, %v10264_v50  ;;  %v10240_v30 = vld [vmem:[#allocation19] sm:$0xf]  ;;  %v10580_v13 = vld [vmem:[#allocation19 + $0xc] sm:$0xf0] }
 0xce3   : > { %8662 = vperm.xlu2 %11395, %v20331_v18   ;;  %7941 = vmatpush.bf16.msrb.mxu1 %v10273_v4  ;;  %v10578_v16 = vld [vmem:[#allocation19 + $0x4] sm:$0xf]  ;;  %v10269_v18 = vor.u32 %v10583_v47, %v10266_v40  ;;  %v10242_v5 = vld [vmem:[#allocation19 + $0x10] sm:$0xf0]  ;;  %v7498_v4 = vpack.c.bf16 %v18075_v61, %v18075_v61  ;;  %v10241_v20 = vor.u32 %v10580_v13, %v10240_v30  ;;  %vm20338_vm15 = vcmask 1046534  }
 0xce4   : > { %v8540_v43 = vpop.permute.xlu1 %8539  ;;  %7954 = vmatpush.bf16.msrb.mxu2 %v10277_v27  ;;  %v10579_v27 = vld [vmem:[#allocation19 + $0xc] sm:$0xf]  ;;  %v20334_v34 = vld [vmem:[#allocation222_spill] sm:$0xff]  ;;  %vm20339_vm11 = vcmask 1047559  }
 0xce5   : > { %v8875_v29 = vperm.slane %v8540_v43, %v14740_v52  ;;  %v18136_v0 = vpop.permute.xlu2 %8563  ;;  %7967 = vmatpush.bf16.msrb.mxu3 %v10281_v11  ;;  %7980 = vmatpush.bf16.msra.mxu0 %v10285_v15  ;;  %v10248_v43 = vld [vmem:[#allocation19 + $0x8] sm:$0xf]  ;;  %v10250_v11 = vld [vmem:[#allocation19 + $0x18] sm:$0xf0]  ;;  %v10245_v15 = vor.u32 %v10578_v16, %v10242_v5  ;;  %v7546_v23 = vunpack.c.l.b16 %v7498_v4 }
 0xce6   : > { %v10253_v61 = vor.u32 %v10579_v27, %v10250_v11  ;;  %v8890_v5 = vperm.slane %v18136_v0, %v14673_v35  ;;  %v20341_v0 = vld [vmem:[#allocation209_spill] sm:$0xff] }
 0xce7   : > { %v8876_v14 = vsel %vm20332_vm9, %v8875_v29, %v8874_v21  ;;  %v10581_v21 = vld [vmem:[#allocation19 + $0x14] sm:$0xf0]  ;;  %v20333_v29 = vld [vmem:[#allocation202_spill] sm:$0xff]  ;;  %7942 = vmatpush.bf16.msrb.mxu1 %v10257_v6  ;;  %v7558_v40 = vrot.slane %v7546_v23, 2  ;;  %vm20342_vm9 = vcmask 523712  }
 0xce8   : > { %v8878_v25 = vsel %vm4091_vm12, %v8877_v56, %v8876_v14  ;;  %7955 = vmatpush.bf16.msrb.mxu2 %v10261_v36  ;;  %v10249_v56 = vor.u32 %v10581_v21, %v10248_v43 }
 0xce9   : > { %v8880_v46 = vsel %vm4095_vm13, %v8879_v53, %v8878_v25  ;;  %7968 = vmatpush.bf16.msrb.mxu3 %v10265_v55  ;;  %7981 = vmatpush.bf16.msra.mxu0 %v10269_v18  ;;  %v18151_v53 = vpop.permute.xlu0 %8596  ;;  %v20336_v25 = vld [vmem:[#allocation105_spill] sm:$0xff]  ;;  %v20337_v55 = vld [vmem:[#allocation207_spill] sm:$0xff]  ;;  %v7559_v18 = vsel %vm20338_vm15, %v7558_v40, %v18005_v48  ;;  %vm20348_vm15 = vcmask 786112  }
 0xcea   : > { %8674 = vperm.xlu1 %11396, %v20333_v29   ;;  %8731 = vperm.xlu0 %11394, %v17513_v31   ;;  %v20340_v48 = vld [vmem:[#allocation157_spill] sm:$0xff] }
 0xceb   : > { %8671 = vperm.xlu2 %11395, %v20334_v34   ;;  %7943 = vmatpush.bf16.msrb.mxu1 %v10241_v20  ;;  %v8894_v20 = vperm.slane %v18095_v54, %v14729_v63 }
 0xcec   : > { %v8549_v24 = vpop.permute.xlu1 %8548  ;;  %7956 = vmatpush.bf16.msrb.mxu2 %v10245_v15 }
 0xced   : > { %v8881_v22 = vperm.slane %v8549_v24, %v19904_v49  ;;  %v8573_v50 = vpop.permute.xlu2 %8572  ;;  %7969 = vmatpush.bf16.msrb.mxu3 %v10249_v56  ;;  %7982 = vmatpush.bf16.msra.mxu0 %v10253_v61 }
 0xcee   : > { %v8896_v24 = vperm.slane %v8573_v50, %v14708_v62  ;;  %v8900_v50 = vperm.slane %v18113_v42, %v14734_v12  ;;  %v20347_v42 = vld [vmem:[#allocation91_spill] sm:$0xff] }
 0xcef   : > { %v8882_v31 = vsel %vm4099_vm14, %v8881_v22, %v8880_v46 }
 0xcf0   : > { %v18156_v14 = vsel %vm20335_vm6, %v8882_v31, %v18092_v39  ;;  %v7488_v6 = vpop.f32.mrf.mxu0  ;;  %v8888_v39 = vperm.slane %v18073_v9, %v14679_v28  ;;  %v20344_v31 = vld [vmem:[#allocation233_spill] sm:$0xff]  ;;  %vm20345_vm6 = vcmask 720512  }
 0xcf1   : > { %v7499_v47 = vpack.c.bf16 %v7488_v6, %v7488_v6  ;;  %v18172_v27 = vpop.permute.xlu0 %8605 }
 0xcf2   : > { %8683 = vperm.xlu1 %11396, %v20336_v25   ;;  %8740 = vperm.xlu0 %11394, %v17541_v10   ;;  %v1535_v25 = vld [vmem:[%s12670_s9] sm:$0xf]  ;;  %s10496_s9 = sshll.u32 %s20375_s12, 1 }
 0xcf3   : > { %v7547_v36 = vunpack.c.l.b16 %v7499_v47  ;;  %8680 = vperm.xlu2 %11395, %v20337_v55   ;;  %s18396_s7 = sadd.s32 %s20378_s14, %s10496_s9 }
 0xcf4   : > { %v8558_v30 = vpop.permute.xlu1 %8557  ;;  %s10497_s15 = sshll.u32 %s18396_s7, 3 }
 0xcf5   : > { %v7560_v13 = vrot.slane %v7547_v36, 1  ;;  %v8886_v16 = vperm.slane %v8558_v30, %v14660_v2  ;;  %v8582_v46 = vpop.permute.xlu2 %8581  ;;  %s9081_s25 = scalar_lea.hbm %s20387_s11, %s10497_s15 }
 0xcf6   : > { %v8902_v47 = vperm.slane %v8582_v46, %v14716_v3  ;;  %s9085_s3 = sshll.u32 %s9081_s25, 4  ;;  %s9086_s3 = int_to_ptr.hbm [resolvable:$true] %s9085_s3 }
 0xcf7   : > { %v7561_v43 = vsel %vm20339_vm11, %v7560_v13, %v7559_v18  ;;  %v8887_v10 = vsel %vm4047_vm1, %v8886_v16, %v18127_v26  ;;  %vm20349_vm11 = vcmask 851712   ;;  %s12112_s18 = sshra.s32 %s9086_s3, 4  ;;  %s12113_s18 = int_to_ptr.hbm [resolvable:$true] %s12112_s18 }
 0xcf8   : > { %v7562_v21 = vpack.c.b16 %v7561_v43, %v7561_v43  ;;  %v8889_v4 = vsel %vm4051_vm2, %v8888_v39, %v8887_v10  ;;  %v7490_v29 = vpop.f32.mrf.mxu0  ;;  %v8906_v39 = vperm.slane %v18133_v38, %v14740_v52  ;;  %v8912_v38 = vperm.slane %v18151_v53, %v19904_v49  ;;  %s12114_s23 = scalar_lea.hbm %s12113_s18, 8  ;;  %p12119_p0 = scmp.lt.s32.totalorder %s12113_s18, %s20387_s11 }
 0xcf9   : > { %v8891_v11 = vsel %vm4055_vm3, %v8890_v5, %v8889_v4  ;;  %v18185_v61 = vpop.permute.xlu0 %8614  ;;  %v20351_v4 = vld [vmem:[#allocation176_spill] sm:$0xff]  ;;  %p12115_p9 = scmp.ne.s32.totalorder %s12113_s18, %s12114_s23  ;;  %p12120_p2 = scmp.lt.s32.totalorder %s12118_s20, %s12114_s23 }
 0xcfa   : > { %7732 = vmatmul.bf16.vlgmr.msra.gmra.mxu1 %v7562_v21  ;;  %7745 = vmatmul.bf16.vlgmr.msra.gmra.mxu2 %v7562_v21 }
 0xcfb   : > { %7758 = vmatmul.bf16.vlgmr.msra.gmra.mxu3 %v7562_v21  ;;  %7771 = vmatmul.bf16.vlgmr.msrb.gmra.mxu0 %v7562_v21  ;;  %v20350_v21 = vld [vmem:[#allocation210_spill] sm:$0xff]  ;;  %p12116_p3 = pnand %p12115_p9, %p12608_p13  ;;  %p12121_p4 = por %p12120_p2, %p12119_p0 }
 0xcfc   : > { %8692 = vperm.xlu1 %11396, %v20340_v48   ;;  %8749 = vperm.xlu0 %11394, %v17565_v8   ;;  %v8567_v9 = vpop.permute.xlu1 %8566  ;;  %v20343_v8 = vld [vmem:[#allocation100_spill] sm:$0xff] }
 0xcfd   : > { %8689 = vperm.xlu2 %11395, %v20341_v0   ;;  %v8892_v26 = vperm.slane %v8567_v9, %v14676_v7  ;;  %v8591_v34 = vpop.permute.xlu2 %8590  ;;  %p12117_p12 = pneg %p12116_p3 }
 0xcfe   : > { %v8908_v18 = vperm.slane %v8591_v34, %v19899_v17  ;;  %v20352_v34 = vld [vmem:[#allocation77_spill] sm:$0xff] }
 0xcff   : > { %v8893_v15 = vsel %vm4059_vm4, %v8892_v26, %v8891_v11  ;;  %p12122_p5 = pnand %p12121_p4, %p12117_p12 }
 0xd00   : > { %v8895_v56 = vsel %vm4063_vm5, %v8894_v20, %v8893_v15 }
 0xd01   : > { %v8897_v22 = vsel %vm20342_vm9, %v8896_v24, %v8895_v56  ;;  %v8624_v13 = vpop.permute.xlu0 %8623  ;;  %v20353_v24 = vld [vmem:[#allocation250_spill] sm:$0xff]  ;;  %v8917_v56 = vperm.slane %v18172_v27, %v14660_v2  ;;  %v8923_v27 = vperm.slane %v18185_v61, %v14676_v7 }
 0xd04   : > { %8701 = vperm.xlu1 %11396, %v20343_v8   ;;  %8758 = vperm.xlu0 %11394, %v17591_v44   ;;  %v8576_v23 = vpop.permute.xlu1 %8575  ;;  %v20346_v44 = vld [vmem:[#allocation242_spill] sm:$0xff] }
 0xd05   : > { %8698 = vperm.xlu2 %11395, %v20344_v31   ;;  %v8898_v6 = vperm.slane %v8576_v23, %v14685_v51  ;;  %v8600_v54 = vpop.permute.xlu2 %8599  ;;  %v20354_v31 = vld [vmem:[#allocation247_spill] sm:$0xff] }
 0xd06   : > { %v8914_v20 = vperm.slane %v8600_v54, %v14652_v37  ;;  %v20355_v54 = vld [vmem:[#allocation236_spill] sm:$0xff] }
 0xd07   : > { %v8899_v40 = vsel %vm4071_vm7, %v8898_v6, %v8897_v22 }
 0xd08   : > { %v8901_v36 = vsel %vm4075_vm8, %v8900_v50, %v8899_v40 }
 0xd09   : > { %v8903_v55 = vsel %vm20345_vm6, %v8902_v47, %v8901_v36  ;;  %v8633_v48 = vpop.permute.xlu0 %8632 }
 0xd0a   : > { %7944 = vmatmul.bf16.vlgmr.msrb.gmra.mxu1 %v1535_v25  ;;  %7957 = vmatmul.bf16.vlgmr.msrb.gmra.mxu2 %v1535_v25 }
 0xd0b   : > { %7970 = vmatmul.bf16.vlgmr.msrb.gmra.mxu3 %v1535_v25  ;;  %7983 = vmatmul.bf16.vlgmr.msra.gmra.mxu0 %v1535_v25 }
 0xd0c   : > { %8710 = vperm.xlu1 %11396, %v20346_v44   ;;  %8767 = vperm.xlu0 %11394, %v17618_v57   ;;  %v8585_v30 = vpop.permute.xlu1 %8584 }
 0xd0d   : > { %8707 = vperm.xlu2 %11395, %v20347_v42   ;;  %v8904_v16 = vperm.slane %v8585_v30, %v14691_v45  ;;  %v8609_v46 = vpop.permute.xlu2 %8608  ;;  %v20356_v30 = vld [vmem:[#allocation92_spill] sm:$0xff] }
 0xd0e   : > { %v8919_v22 = vperm.slane %v8609_v46, %v14679_v28 }
 0xd0f   : > { %v8905_v5 = vsel %vm20348_vm15, %v8904_v16, %v8903_v55  ;;  %v20357_v16 = vld [vmem:[#allocation230_spill] sm:$0xff] }
 0xd10   : > { %v8907_v43 = vsel %vm20349_vm11, %v8906_v39, %v8905_v5 }
 0xd11   : > { %v8909_v10 = vsel %vm4091_vm12, %v8908_v18, %v8907_v43  ;;  %v8642_v23 = vpop.permute.xlu0 %8641  ;;  %v8929_v18 = vperm.slane %v8624_v13, %v14685_v51 }
 0xd14   : > { %8719 = vperm.xlu1 %11396, %v20350_v21   ;;  %8776 = vperm.xlu0 %11394, %v17649_v1   ;;  %v8594_v57 = vpop.permute.xlu1 %8593  ;;  %v20359_v21 = vld [vmem:[#allocation162_spill] sm:$0xff] }
 0xd15   : > { %8716 = vperm.xlu2 %11395, %v20351_v4   ;;  %v8910_v29 = vperm.slane %v8594_v57, %v19895_v59  ;;  %v8618_v11 = vpop.permute.xlu2 %8617 }
 0xd16   : > { %v8925_v40 = vperm.slane %v8618_v11, %v14729_v63 }
 0xd17   : > { %v8911_v9 = vsel %vm4095_vm13, %v8910_v29, %v8909_v10 }
 0xd18   : > { %v8913_v0 = vsel %vm4099_vm14, %v8912_v38, %v8911_v9  ;;  %v8935_v38 = vperm.slane %v8633_v48, %v14691_v45 }
 0xd19   : > { %v18218_v26 = vsel %vm4322_vm10, %v8913_v0, %v18156_v14  ;;  %v8651_v44 = vpop.permute.xlu0 %8650  ;;  %vm20358_vm10 = vmmov %vm20342_vm9 }
 0xd1a   : > { %vm20360_vm9 = vmmov %vm20345_vm6 }
 0xd1b   : > { %vm20361_vm6 = vmmov %vm20348_vm15 }
 0xd1c   : > { %8728 = vperm.xlu1 %11396, %v20352_v34   ;;  %8785 = vperm.xlu0 %11394, %v17676_v33   ;;  %v8603_v1 = vpop.permute.xlu1 %8602  ;;  %vm20362_vm15 = vmmov %vm20349_vm11  ;;  %vm20369_vm11 = vcmask 1044484  }
 0xd1d   : > { %8725 = vperm.xlu2 %11395, %v20353_v24   ;;  %v8915_v53 = vperm.slane %v8603_v1, %v14657_v58  ;;  %v8627_v15 = vpop.permute.xlu2 %8626  ;;  %v20363_v1 = vld [vmem:[#allocation240_spill] sm:$0xff]  ;;  %v20364_v24 = vld [vmem:[#allocation221_spill] sm:$0xff] }
 0xd1e   : > { %v8931_v61 = vperm.slane %v8627_v15, %v14734_v12  ;;  %v8941_v15 = vperm.slane %v8642_v23, %v19895_v59 }
 0xd1f   : > { %v8916_v14 = vsel %vm4043_vm0, %v8915_v53, %v8914_v20 }
 0xd20   : > { %v8918_v8 = vsel %vm4047_vm1, %v8917_v56, %v8916_v14 }
 0xd21   : > { %v8920_v33 = vsel %vm4051_vm2, %v8919_v22, %v8918_v8  ;;  %v8660_v4 = vpop.permute.xlu0 %8659 }
 0xd24   : > { %8737 = vperm.xlu1 %11396, %v20354_v31   ;;  %v8612_v6 = vpop.permute.xlu1 %8611 }
 0xd25   : > { %8734 = vperm.xlu2 %11395, %v20355_v54   ;;  %v8921_v50 = vperm.slane %v8612_v6, %v14673_v35  ;;  %v8636_v47 = vpop.permute.xlu2 %8635  ;;  %v8946_v6 = vperm.slane %v8651_v44, %v14657_v58  ;;  %v20366_v54 = vld [vmem:[#allocation154_spill] sm:$0xff] }
 0xd26   : > { %v8937_v13 = vperm.slane %v8636_v47, %v14740_v52 }
 0xd27   : > { %v8922_v25 = vsel %vm4055_vm3, %v8921_v50, %v8920_v33  ;;  %v20365_v33 = vld [vmem:[#allocation225_spill] sm:$0xff] }
 0xd28   : > { %v8924_v36 = vsel %vm4059_vm4, %v8923_v27, %v8922_v25 }
 0xd29   : > { %v8926_v55 = vsel %vm4063_vm5, %v8925_v40, %v8924_v36  ;;  %v8669_v56 = vpop.permute.xlu0 %8668  ;;  %v20367_v36 = vld [vmem:[#allocation213_spill] sm:$0xff] }
 0xd2c   : > { %8746 = vperm.xlu1 %11396, %v20356_v30   ;;  %v8621_v42 = vpop.permute.xlu1 %8620  ;;  %v20368_v30 = vld [vmem:[#allocation211_spill] sm:$0xff] }
 0xd2d   : > { %8743 = vperm.xlu2 %11395, %v20357_v16   ;;  %v8927_v46 = vperm.slane %v8621_v42, %v14708_v62  ;;  %v8645_v39 = vpop.permute.xlu2 %8644  ;;  %v8952_v16 = vperm.slane %v8660_v4, %v14673_v35 }
 0xd2e   : > { %v8943_v48 = vperm.slane %v8645_v39, %v19904_v49 }
 0xd2f   : > { %v8928_v5 = vsel %vm20358_vm10, %v8927_v46, %v8926_v55 }
 0xd30   : > { %v8930_v43 = vsel %vm4071_vm7, %v8929_v18, %v8928_v5 }
 0xd31   : > { %v8932_v10 = vsel %vm4075_vm8, %v8931_v61, %v8930_v43  ;;  %v8678_v25 = vpop.permute.xlu0 %8677 }
 0xd34   : > { %8755 = vperm.xlu1 %11396, %v20359_v21   ;;  %v8630_v57 = vpop.permute.xlu1 %8629 }
 0xd35   : > { %8752 = vperm.xlu2 %11395, %v17557_v60   ;;  %v8933_v29 = vperm.slane %v8630_v57, %v14716_v3  ;;  %v8654_v11 = vpop.permute.xlu2 %8653  ;;  %v8958_v57 = vperm.slane %v8669_v56, %v14708_v62 }
 0xd36   : > { %v8948_v23 = vperm.slane %v8654_v11, %v14660_v2 }
 0xd37   : > { %v8934_v9 = vsel %vm20360_vm9, %v8933_v29, %v8932_v10 }
 0xd38   : > { %v8936_v0 = vsel %vm20361_vm6, %v8935_v38, %v8934_v9 }
 0xd39   : > { %v8938_v34 = vsel %vm20362_vm15, %v8937_v13, %v8936_v0  ;;  %v8687_v43 = vpop.permute.xlu0 %8686 }
 0xd3c   : > { %8764 = vperm.xlu1 %11396, %v20363_v1   ;;  %v8639_v20 = vpop.permute.xlu1 %8638 }
 0xd3d   : > { %8761 = vperm.xlu2 %11395, %v20364_v24   ;;  %v8939_v60 = vperm.slane %v8639_v20, %v19899_v17  ;;  %v8663_v53 = vpop.permute.xlu2 %8662 }
 0xd3e   : > { %v8954_v46 = vperm.slane %v8663_v53, %v14676_v7 }
 0xd3f   : > { %v8940_v22 = vsel %vm4091_vm12, %v8939_v60, %v8938_v34  ;;  %v8964_v34 = vperm.slane %v8678_v25, %v14716_v3 }
 0xd40   : > { %v8942_v14 = vsel %vm4095_vm13, %v8941_v15, %v8940_v22 }
 0xd41   : > { %v8944_v8 = vsel %vm4099_vm14, %v8943_v48, %v8942_v14  ;;  %v8696_v0 = vpop.permute.xlu0 %8695  ;;  %v8970_v14 = vperm.slane %v8687_v43, %v19899_v17 }
 0xd42   : > { %v9041_v5 = vsel %vm20369_vm11, %v8944_v8, %v18218_v26  ;;  %v8976_v24 = vperm.slane %v8696_v0, %v14652_v37  ;;  %vm20370_vm11 = vcmask 1045509  }
 0xd44   : > { %8773 = vperm.xlu1 %11396, %v20365_v33   ;;  %v8648_v31 = vpop.permute.xlu1 %8647 }
 0xd45   : > { %8770 = vperm.xlu2 %11395, %v20366_v54   ;;  %v8945_v50 = vperm.slane %v8648_v31, %v14652_v37  ;;  %v8672_v47 = vpop.permute.xlu2 %8671 }
 0xd46   : > { %v8960_v4 = vperm.slane %v8672_v47, %v14685_v51 }
 0xd47   : > { %v8947_v27 = vsel %vm4043_vm0, %v8946_v6, %v8945_v50 }
 0xd48   : > { %v8949_v40 = vsel %vm4047_vm1, %v8948_v23, %v8947_v27 }
 0xd4c   : > { %8782 = vperm.xlu1 %11396, %v20367_v36   ;;  %v8657_v55 = vpop.permute.xlu1 %8656  ;;  %v18317_v36 = vld [vmem:[%s20371_s5] sm:$0xf] }
 0xd4d   : > { %8779 = vperm.xlu2 %11395, %v20368_v30   ;;  %v8950_v42 = vperm.slane %v8657_v55, %v14679_v28  ;;  %v8681_v44 = vpop.permute.xlu2 %8680 }
 0xd4f   : > { %v8951_v39 = vsel %vm4051_vm2, %v8950_v42, %v8949_v40 }
 0xd50   : > { %v8953_v18 = vsel %vm4055_vm3, %v8952_v16, %v8951_v39  ;;  %v1062_v16 = vperm.slane %v18317_v36, 1  ;;  %v1064_v39 = vperm.slane %v18317_v36, 3 }
 0xd51   : > { %v8955_v61 = vsel %vm4059_vm4, %v8954_v46, %v8953_v18  ;;  %v1063_v46 = vperm.slane %v18317_v36, 2  ;;  %v10480_v18 = vld [vmem:[#allocation24 + $0xe0] sm:$0xf] }
 0xd54   : > { %v8666_v10 = vpop.permute.xlu1 %8665 }
 0xd55   : > { %8788 = vperm.xlu2 %11395, %v17669_v41   ;;  %v8956_v21 = vperm.slane %v8666_v10, %v14729_v63  ;;  %v8966_v41 = vperm.slane %v8681_v44, %v14691_v45  ;;  %v1061_v44 = vperm.slane %v18317_v36, 0  ;;  %v10482_v10 = vld [vmem:[#allocation24 + $0xf0] sm:$0xf0] }
 0xd57   : > { %v8957_v29 = vsel %vm4063_vm5, %v8956_v21, %v8955_v61  ;;  %v8690_v11 = vpop.permute.xlu2 %8689  ;;  %v10736_v61 = vld [vmem:[#allocation24 + $0xec] sm:$0xf0]  ;;  %v10488_v21 = vld [vmem:[#allocation24 + $0xe8] sm:$0xf] }
 0xd58   : > { %v8959_v38 = vsel %vm20358_vm10, %v8958_v57, %v8957_v29  ;;  %v8972_v8 = vperm.slane %v8690_v11, %v19895_v59  ;;  %v10481_v43 = vor.u32 %v10736_v61, %v10480_v18  ;;  %v10737_v57 = vld [vmem:[#allocation24 + $0xf4] sm:$0xf0]  ;;  %v10456_v18 = vld [vmem:[#allocation24 + $0xa8] sm:$0xf] }
 0xd59   : > { %v8961_v13 = vsel %vm4071_vm7, %v8960_v4, %v8959_v38  ;;  %v10489_v11 = vor.u32 %v10737_v57, %v10488_v21  ;;  %v10735_v38 = vld [vmem:[#allocation24 + $0xec] sm:$0xf] }
 0xd5a   : > { %8205 = vmatpush.bf16.msra.mxu1 %v10481_v43  ;;  %v10727_v43 = vld [vmem:[#allocation24 + $0xac] sm:$0xf] }
 0xd5b   : > { %8231 = vmatpush.bf16.msra.mxu3 %v10489_v11  ;;  %v10722_v11 = vld [vmem:[#allocation24 + $0x84] sm:$0xf] }
 0xd5c   : > { %v8675_v9 = vpop.permute.xlu1 %8674 }
 0xd5d   : > { %v8962_v26 = vperm.slane %v8675_v9, %v14734_v12  ;;  %v10464_v9 = vld [vmem:[#allocation24 + $0xc0] sm:$0xf] }
 0xd5f   : > { %v8963_v1 = vsel %vm4075_vm8, %v8962_v26, %v8961_v13  ;;  %v8699_v20 = vpop.permute.xlu2 %8698  ;;  %v10490_v13 = vld [vmem:[#allocation24 + $0xf8] sm:$0xf0]  ;;  %v10732_v26 = vld [vmem:[#allocation24 + $0xcc] sm:$0xf0] }
 0xd60   : > { %v8965_v60 = vsel %vm20360_vm9, %v8964_v34, %v8963_v1  ;;  %v8977_v53 = vperm.slane %v8699_v20, %v14657_v58  ;;  %v10493_v0 = vor.u32 %v10735_v38, %v10490_v13  ;;  %v10730_v34 = vld [vmem:[#allocation24 + $0xc4] sm:$0xf]  ;;  %v10465_v20 = vor.u32 %v10732_v26, %v10464_v9  ;;  %v10440_v13 = vld [vmem:[#allocation24 + $0x88] sm:$0xf]  ;;  %v10725_v9 = vld [vmem:[#allocation24 + $0x94] sm:$0xf0] }
 0xd61   : > { %v8967_v15 = vsel %vm20361_vm6, %v8966_v41, %v8965_v60  ;;  %v10466_v41 = vld [vmem:[#allocation24 + $0xd0] sm:$0xf0]  ;;  %v10733_v60 = vld [vmem:[#allocation24 + $0xd4] sm:$0xf0] }
 0xd62   : > { %v18297_v56 = vsel %vm4043_vm0, %v8977_v53, %v8976_v24  ;;  %v10472_v24 = vld [vmem:[#allocation24 + $0xc8] sm:$0xf]  ;;  %v10731_v53 = vld [vmem:[#allocation24 + $0xcc] sm:$0xf]  ;;  %8244 = vmatpush.bf16.msrb.mxu0 %v10493_v0  ;;  %8206 = vmatpush.bf16.msra.mxu1 %v10465_v20 }
 0xd64   : > { %v8684_v48 = vpop.permute.xlu1 %8683 }
 0xd65   : > { %v8968_v22 = vperm.slane %v8684_v48, %v14740_v52 }
 0xd67   : > { %v8969_v33 = vsel %vm20362_vm15, %v8968_v22, %v8967_v15  ;;  %v10469_v22 = vor.u32 %v10730_v34, %v10466_v41  ;;  %v10723_v34 = vld [vmem:[#allocation24 + $0x8c] sm:$0xf]  ;;  %v10442_v41 = vld [vmem:[#allocation24 + $0x98] sm:$0xf0] }
 0xd68   : > { %v8971_v31 = vsel %vm4091_vm12, %v8970_v14, %v8969_v33  ;;  %v10473_v14 = vor.u32 %v10733_v60, %v10472_v24  ;;  %v10448_v33 = vld [vmem:[#allocation24 + $0xa0] sm:$0xf] }
 0xd69   : > { %v8973_v6 = vsel %vm4095_vm13, %v8972_v8, %v8971_v31  ;;  %v10474_v8 = vld [vmem:[#allocation24 + $0xd8] sm:$0xf0]  ;;  %v10728_v31 = vld [vmem:[#allocation24 + $0xac] sm:$0xf0] }
 0xd6a   : > { %v10449_v61 = vor.u32 %v10728_v31, %v10448_v33  ;;  %8232 = vmatpush.bf16.msra.mxu3 %v10473_v14  ;;  %v10441_v33 = vor.u32 %v10725_v9, %v10440_v13  ;;  %v10416_v31 = vld [vmem:[#allocation24 + $0x60] sm:$0xf]  ;;  %v10715_v13 = vld [vmem:[#allocation24 + $0x4c] sm:$0xf]  ;;  %v10410_v9 = vld [vmem:[#allocation24 + $0x58] sm:$0xf0] }
 0xd6c   : > { %8207 = vmatpush.bf16.msra.mxu1 %v10449_v61  ;;  %v10426_v61 = vld [vmem:[#allocation24 + $0x78] sm:$0xf0] }
 0xd6e   : > { %v8693_v54 = vpop.permute.xlu1 %8692 }
 0xd6f   : > { %v8974_v50 = vperm.slane %v8693_v54, %v19904_v49 }
 0xd71   : > { %v8975_v47 = vsel %vm4099_vm14, %v8974_v50, %v8973_v6  ;;  %v20372_v6 = vld [vmem:[#allocation78_spill] sm:$0xff] }
 0xd72   : > { %v18308_v23 = vsel %vm20370_vm11, %v8975_v47, %v9041_v5  ;;  %v10734_v5 = vld [vmem:[#allocation24 + $0xe4] sm:$0xf]  ;;  %v1239_v54 = vadd.f32 %v20372_v6, %v1061_v44  ;;  %v10477_v47 = vor.u32 %v10731_v53, %v10474_v8  ;;  %v10720_v6 = vld [vmem:[#allocation24 + $0x6c] sm:$0xf0] }
 0xd73   : > { %v10485_v29 = vor.u32 %v10734_v5, %v10482_v10  ;;  %v10729_v5 = vld [vmem:[#allocation24 + $0xb4] sm:$0xf0]  ;;  %v10458_v10 = vld [vmem:[#allocation24 + $0xb8] sm:$0xf0] }
 0xd74   : > { %8245 = vmatpush.bf16.msrb.mxu0 %v10477_v47  ;;  %v10457_v38 = vor.u32 %v10729_v5, %v10456_v18  ;;  %v10461_v44 = vor.u32 %v10727_v43, %v10458_v10  ;;  %v10418_v47 = vld [vmem:[#allocation24 + $0x70] sm:$0xf0]  ;;  %v10719_v18 = vld [vmem:[#allocation24 + $0x6c] sm:$0xf] }
 0xd75   : > { %8218 = vmatpush.bf16.msra.mxu2 %v10485_v29  ;;  %v10724_v29 = vld [vmem:[#allocation24 + $0x8c] sm:$0xf0] }
 0xd76   : > { %8233 = vmatpush.bf16.msra.mxu3 %v10457_v38  ;;  %v10717_v38 = vld [vmem:[#allocation24 + $0x54] sm:$0xf0] }
 0xd77   : > { %v7733_v27 = vpop.f32.mrf.mxu1 }
 0xd78   : > { %v18310_v40 = vpop.f32.mrf.mxu0  ;;  %8246 = vmatpush.bf16.msrb.mxu0 %v10461_v44 }
 0xd79   : > { %8219 = vmatpush.bf16.msra.mxu2 %v10469_v22 }
 0xd7a   : > { %8234 = vmatpush.bf16.msra.mxu3 %v10441_v33  ;;  %v10713_v33 = vld [vmem:[#allocation24 + $0x34] sm:$0xf0] }
 0xd7d   : > { %v18312_v25 = vpop.f32.mrf.mxu2 }
 0xd7e   : > { %v18319_v55 = vpop.f32.mrf.mxu3 }
 0xd7f   : > { %v7735_v30 = vpop.f32.mrf.mxu1 }
 0xd80   : > { %v7774_v42 = vpop.f32.mrf.mxu0  ;;  %v10726_v30 = vld [vmem:[#allocation24 + $0xa4] sm:$0xf] }
 0xd81   : > { %v10450_v42 = vld [vmem:[#allocation24 + $0xb0] sm:$0xf0] }
 0xd82   : > { %v10453_v57 = vor.u32 %v10726_v30, %v10450_v42  ;;  %v10424_v30 = vld [vmem:[#allocation24 + $0x68] sm:$0xf]  ;;  %v10721_v42 = vld [vmem:[#allocation24 + $0x74] sm:$0xf0] }
 0xd83   : > { %v10425_v36 = vor.u32 %v10721_v42, %v10424_v30  ;;  %v10708_v30 = vld [vmem:[#allocation24 + $0xc] sm:$0xf0]  ;;  %v10706_v42 = vld [vmem:[#allocation24 + $0x4] sm:$0xf] }
 0xd84   : > { %8220 = vmatpush.bf16.msra.mxu2 %v10453_v57  ;;  %v10714_v57 = vld [vmem:[#allocation24 + $0x44] sm:$0xf] }
 0xd85   : > { %v7748_v4 = vpop.f32.mrf.mxu2  ;;  %8235 = vmatpush.bf16.msra.mxu3 %v10425_v36  ;;  %v10378_v36 = vld [vmem:[#allocation24 + $0x18] sm:$0xf0] }
 0xd86   : > { %v7761_v1 = vpop.f32.mrf.mxu3  ;;  %v10432_v4 = vld [vmem:[#allocation24 + $0x80] sm:$0xf] }
 0xd87   : > { %v7945_v15 = vpop.f32.mrf.mxu1  ;;  %v20373_v1 = vld [vmem:[#allocation243_spill] sm:$0xff]  ;;  %v10433_v53 = vor.u32 %v10724_v29, %v10432_v4  ;;  %v10429_v4 = vor.u32 %v10719_v18, %v10426_v61  ;;  %v10402_v29 = vld [vmem:[#allocation24 + $0x50] sm:$0xf0] }
 0xd88   : > { %v7984_v48 = vpop.f32.mrf.mxu0  ;;  %v7946_v50 = vadd.f32 %v7945_v15, %v7733_v27  ;;  %v10434_v27 = vld [vmem:[#allocation24 + $0x90] sm:$0xf0]  ;;  %v1252_v20 = vadd.f32 %v20373_v1, %v1062_v16  ;;  %v20374_v15 = vld [vmem:[#allocation58_spill] sm:$0xff] }
 0xd89   : > { %v7985_v24 = vadd.f32 %v7984_v48, %v18310_v40  ;;  %v1265_v22 = vadd.f32 %v20374_v15, %v1063_v46  ;;  %v10437_v8 = vor.u32 %v10722_v11, %v10434_v27  ;;  %v1278_v40 = vadd.f32 %v17729_v32, %v1064_v39  ;;  %8208 = vmatpush.bf16.msra.mxu1 %v10433_v53  ;;  %v10400_v39 = vld [vmem:[#allocation24 + $0x40] sm:$0xf]  ;;  %v10408_v11 = vld [vmem:[#allocation24 + $0x48] sm:$0xf]  ;;  %v10710_v53 = vld [vmem:[#allocation24 + $0x24] sm:$0xf] }
 0xd8a   : > { %v7988_v21 = vadd.f32 %v7946_v50, %v1239_v54  ;;  %v10718_v54 = vld [vmem:[#allocation24 + $0x64] sm:$0xf]  ;;  %v10445_v46 = vor.u32 %v10723_v34, %v10442_v41  ;;  %v10384_v41 = vld [vmem:[#allocation24 + $0x20] sm:$0xf]  ;;  %v10386_v15 = vld [vmem:[#allocation24 + $0x30] sm:$0xf0] }
 0xd8b   : > { %v7991_v5 = vadd.f32 %v7985_v24, %v1278_v40  ;;  %8221 = vmatpush.bf16.msra.mxu2 %v10437_v8  ;;  %v10421_v32 = vor.u32 %v10718_v54, %v10418_v47  ;;  %v10409_v24 = vor.u32 %v10717_v38, %v10408_v11  ;;  %v10392_v8 = vld [vmem:[#allocation24 + $0x28] sm:$0xf] }
 0xd8c   : > { %v7992_v0 = vmul.f32 0.5, %v7988_v21  ;;  %v10417_v21 = vor.u32 %v10720_v6, %v10416_v31  ;;  %8247 = vmatpush.bf16.msrb.mxu0 %v10445_v46  ;;  %v10711_v31 = vld [vmem:[#allocation24 + $0x2c] sm:$0xf]  ;;  %v10394_v6 = vld [vmem:[#allocation24 + $0x38] sm:$0xf0]  ;;  %v10389_v46 = vor.u32 %v10710_v53, %v10386_v15  ;;  %v10393_v47 = vor.u32 %v10713_v33, %v10392_v8 }
 0xd8d   : > { %v7958_v26 = vpop.f32.mrf.mxu2  ;;  %8236 = vmatpush.bf16.msra.mxu3 %v10409_v24  ;;  %v10397_v61 = vor.u32 %v10711_v31, %v10394_v6 }
 0xd8e   : > { %v7959_v60 = vadd.f32 %v7958_v26, %v18312_v25  ;;  %11657 = vtanh.f32 %v7992_v0  ;;  %v7971_v14 = vpop.f32.mrf.mxu3  ;;  %v8001_v26 = vmul.f32 0.5, %v7991_v5  ;;  %8209 = vmatpush.bf16.msra.mxu1 %v10417_v21  ;;  %v10370_v5 = vld [vmem:[#allocation24 + $0x10] sm:$0xf0] }
 0xd8f   : > { %v7972_v16 = vadd.f32 %v7971_v14, %v18319_v55  ;;  %v7947_v48 = vpop.f32.mrf.mxu1  ;;  %v10716_v55 = vld [vmem:[#allocation24 + $0x4c] sm:$0xf0]  ;;  %8222 = vmatpush.bf16.msra.mxu2 %v10421_v32  ;;  %v10413_v14 = vor.u32 %v10715_v13, %v10410_v9  ;;  %v10707_v32 = vld [vmem:[#allocation24 + $0xc] sm:$0xf] }
 0xd90   : > { %v7989_v25 = vadd.f32 %v7959_v60, %v1252_v20  ;;  %v7986_v50 = vpop.f32.mrf.mxu0  ;;  %v10401_v34 = vor.u32 %v10716_v55, %v10400_v39  ;;  %v10405_v20 = vor.u32 %v10714_v57, %v10402_v29  ;;  %v10712_v60 = vld [vmem:[#allocation24 + $0x2c] sm:$0xf0]  ;;  %8248 = vmatpush.bf16.msrb.mxu0 %v10429_v4  ;;  %v941_v48 = vld [vmem:[#allocation3 + $0x8] sm:$0xff]  ;;  %v10373_v57 = vor.u32 %v10706_v42, %v10370_v5 }
 0xd91   : > { %v7990_v10 = vadd.f32 %v7972_v16, %v1265_v22  ;;  %v10385_v40 = vor.u32 %v10712_v60, %v10384_v41  ;;  %8237 = vmatpush.bf16.msra.mxu3 %v10393_v47  ;;  %v10381_v29 = vor.u32 %v10707_v32, %v10378_v36  ;;  %v8708_v41 = vpop.permute.xlu2 %8707 }
 0xd92   : > { %v7996_v43 = vmul.f32 0.5, %v7989_v25  ;;  %8210 = vmatpush.bf16.msra.mxu1 %v10401_v34  ;;  %v10368_v25 = vld [vmem:[#allocation24] sm:$0xf]  ;;  %v8705_v34 = vpop.permute.xlu0 %8704 }
 0xd93   : > { %8223 = vmatpush.bf16.msra.mxu2 %v10405_v20  ;;  %v10369_v39 = vor.u32 %v10708_v30, %v10368_v25 }
 0xd94   : > { %11659 = vtanh.f32 %v7996_v43  ;;  %v11658_v44 = vpop.eup %11657  ;;  %8249 = vmatpush.bf16.msrb.mxu0 %v10413_v14  ;;  %v10376_v43 = vld [vmem:[#allocation24 + $0x8] sm:$0xf] }
 0xd95   : > { %11661 = vtanh.f32 %v7990_v10  ;;  %v7960_v27 = vpop.f32.mrf.mxu2  ;;  %v7994_v0 = vadd.f32 1.0, %v11658_v44  ;;  %v10709_v10 = vld [vmem:[#allocation24 + $0x14] sm:$0xf0] }
 0xd96   : > { %v7973_v1 = vpop.f32.mrf.mxu3  ;;  %11663 = vtanh.f32 %v8001_v26  ;;  %8211 = vmatpush.bf16.msra.mxu1 %v10385_v40  ;;  %v10377_v4 = vor.u32 %v10709_v10, %v10376_v43  ;;  %v8702_v26 = vpop.permute.xlu1 %8701 }
 0xd97   : > { %v7995_v22 = vmul.f32 0.5, %v7994_v0  ;;  %8224 = vmatpush.bf16.msra.mxu2 %v10389_v46 }
 0xd98   : > { %8250 = vmatpush.bf16.msrb.mxu0 %v10397_v61  ;;  %8238 = vmatpush.bf16.msra.mxu3 %v10377_v4  ;;  %v8981_v61 = vperm.slane %v8705_v34, %v14679_v28 }
 0xd99   : > { %v8717_v24 = vpop.permute.xlu2 %8716 }
 0xd9a   : > { %v11660_v54 = vpop.eup %11659  ;;  %8212 = vmatpush.bf16.msra.mxu1 %v10369_v39  ;;  %v8714_v20 = vpop.permute.xlu0 %8713 }
 0xd9b   : > { %v11662_v16 = vpop.eup %11661  ;;  %v7998_v50 = vadd.f32 1.0, %v11660_v54  ;;  %8225 = vmatpush.bf16.msra.mxu2 %v10373_v57  ;;  %v8987_v4 = vperm.slane %v8714_v20, %v14729_v63 }
 0xd9c   : > { %v8006_v18 = vmul.f32 %v11662_v16, %v7995_v22  ;;  %v11664_v11 = vpop.eup %11663  ;;  %8251 = vmatpush.bf16.msrb.mxu0 %v10381_v29 }
 0xd9d   : > { %v7999_v21 = vmul.f32 0.5, %v7998_v50  ;;  %v8003_v44 = vadd.f32 1.0, %v11664_v11 }
 0xd9e   : > { %v8711_v1 = vpop.permute.xlu1 %8710 }
 0xd9f   : > { %v8005_v55 = vmul.f32 %v7999_v21, %v941_v48  ;;  %v8004_v27 = vmul.f32 0.5, %v8003_v44  ;;  %v8979_v48 = vperm.slane %v8702_v26, %v14660_v2  ;;  %v8985_v21 = vperm.slane %v8711_v1, %v14676_v7 }
 0xda1   : > { %v8007_v38 = vadd.f32 %v8006_v18, %v8005_v55  ;;  %v8726_v15 = vpop.permute.xlu2 %8725  ;;  %v8980_v42 = vsel %vm4047_vm1, %v8979_v48, %v18297_v56 }
 0xda2   : > { %v8723_v53 = vpop.permute.xlu0 %8722  ;;  %v8982_v10 = vsel %vm4051_vm2, %v8981_v61, %v8980_v42 }
 0xda3   : > { %11665 = vtanh.f32 %v8007_v38  ;;  %8011 = vst [vmem:[#allocation3 + $0x8] sm:$0xff] %v8007_v38 }
 0xda6   : > { %v8720_v60 = vpop.permute.xlu1 %8719 }
 0xda9   : > { %v11666_v13 = vpop.eup %11665  ;;  %v18340_v8 = vpop.permute.xlu2 %8734 }
 0xdaa   : > { %v8009_v9 = vmul.f32 %v11666_v13, %v8004_v27  ;;  %v18338_v14 = vpop.permute.xlu0 %8731  ;;  %v8989_v27 = vperm.slane %v8717_v24, %v14708_v62  ;;  %v9001_v42 = vperm.slane %v18340_v8, %v19899_v17 }
 0xdac   : > { %8010 = vst [vmem:[#allocation2] sm:$0xff] %v8009_v9  ;;  %v8012_v0 = vpack.c.bf16 %v8009_v9, %v8009_v9 }
 0xdae   : > { %8213 = vmatmul.bf16.vlgmr.msra.gmra.mxu1 %v8012_v0  ;;  %8226 = vmatmul.bf16.vlgmr.msra.gmra.mxu2 %v8012_v0  ;;  %v8729_v22 = vpop.permute.xlu1 %8728 }
 0xdaf   : > { %8239 = vmatmul.bf16.vlgmr.msra.gmra.mxu3 %v8012_v0  ;;  %8252 = vmatmul.bf16.vlgmr.msrb.gmra.mxu0 %v8012_v0 }
 0xdb1   : > { %v8744_v6 = vpop.permute.xlu2 %8743 }
 0xdb2   : > { %v18344_v31 = vpop.permute.xlu0 %8740  ;;  %v9007_v47 = vperm.slane %v8744_v6, %v14652_v37  ;;  %v8983_v37 = vperm.slane %v8708_v41, %v14673_v35  ;;  %v8993_v41 = vperm.slane %v8723_v53, %v14734_v12  ;;  %v8995_v6 = vperm.slane %v8726_v15, %v14716_v3 }
 0xdb4   : > { %v8984_v56 = vsel %vm4055_vm3, %v8983_v37, %v8982_v10 }
 0xdb6   : > { %v18342_v33 = vpop.permute.xlu1 %8737 }
 0xdb9   : > { %v8753_v25 = vpop.permute.xlu2 %8752 }
 0xdba   : > { %v8750_v40 = vpop.permute.xlu0 %8749  ;;  %v9012_v36 = vperm.slane %v8753_v25, %v14679_v28 }
 0xdbb   : > { %v9010_v5 = vperm.slane %v8750_v40, %v14660_v2  ;;  %v8986_v2 = vsel %vm4059_vm4, %v8985_v21, %v8984_v56 }
 0xdbc   : > { %v8988_v38 = vsel %vm4063_vm5, %v8987_v4, %v8986_v2 }
 0xdbe   : > { %v8747_v54 = vpop.permute.xlu1 %8746 }
 0xdbf   : > { %v9008_v46 = vperm.slane %v8747_v54, %v14657_v58 }
 0xdc1   : > { %v8762_v30 = vpop.permute.xlu2 %8761  ;;  %v9009_v18 = vsel %vm4043_vm0, %v9008_v46, %v9007_v47  ;;  %vm20376_vm0 = vmmov %vm20358_vm10  ;;  %v9003_v46 = vperm.slane %v18342_v33, %v19895_v59 }
 0xdc2   : > { %v8759_v50 = vpop.permute.xlu0 %8758  ;;  %v9011_v32 = vsel %vm4047_vm1, %v9010_v5, %v9009_v18  ;;  %v9018_v13 = vperm.slane %v8762_v30, %v14729_v63  ;;  %v8990_v0 = vsel %vm20376_vm0, %v8989_v27, %v8988_v38  ;;  %vm20377_vm1 = vmmov %vm20376_vm0  ;;  %v20386_v5 = vld [vmem:[#allocation216_spill] sm:$0xff] }
 0xdc3   : > { %v9013_v55 = vsel %vm4051_vm2, %v9012_v36, %v9011_v32  ;;  %v9016_v29 = vperm.slane %v8759_v50, %v14676_v7  ;;  %vm20380_vm2 = vmmov %vm20360_vm9 }
 0xdc6   : > { %v8756_v16 = vpop.permute.xlu1 %8755 }
 0xdc7   : > { %v9014_v58 = vperm.slane %v8756_v16, %v14673_v35  ;;  %v8991_v35 = vperm.slane %v8720_v60, %v14685_v51 }
 0xdc9   : > { %v9015_v57 = vsel %vm4055_vm3, %v9014_v58, %v9013_v55  ;;  %v8771_v11 = vpop.permute.xlu2 %8770  ;;  %v8992_v7 = vsel %vm4071_vm7, %v8991_v35, %v8990_v0  ;;  %vm20381_vm3 = vmmov %vm20361_vm6 }
 0xdca   : > { %v8768_v39 = vpop.permute.xlu0 %8767  ;;  %v9017_v28 = vsel %vm4059_vm4, %v9016_v29, %v9015_v57  ;;  %v8994_v60 = vsel %vm4075_vm8, %v8993_v41, %v8992_v7  ;;  %v9024_v54 = vperm.slane %v8771_v11, %v14734_v12  ;;  %vm20382_vm4 = vmmov %vm20380_vm2  ;;  %v20390_v11 = vld [vmem:[#allocation246_spill] sm:$0xff] }
 0xdcb   : > { %v9019_v26 = vsel %vm4063_vm5, %v9018_v13, %v9017_v28  ;;  %v9022_v1 = vperm.slane %v8768_v39, %v14685_v51  ;;  %v1313_v51 = vld [vmem:[%s20379_s0] sm:$0xf]  ;;  %v8996_v53 = vsel %vm20380_vm2, %v8995_v6, %v8994_v60  ;;  %vm20383_vm5 = vmmov %vm20362_vm15 }
 0xdcc   : > { %v1315_v15 = vperm.slane %v1313_v51, 0  ;;  %v1316_v32 = vperm.slane %v1313_v51, 1  ;;  %v1317_v36 = vperm.slane %v1313_v51, 2  ;;  %v1318_v57 = vperm.slane %v1313_v51, 3 }
 0xdce   : > { %v8765_v43 = vpop.permute.xlu1 %8764  ;;  %v1519_v38 = vadd.f32 %v20390_v11, %v1317_v36  ;;  %v1532_v27 = vadd.f32 %v17762_v19, %v1318_v57 }
 0xdcf   : > { %v9020_v44 = vperm.slane %v8765_v43, %v14708_v62  ;;  %v8997_v62 = vperm.slane %v8729_v22, %v14691_v45  ;;  %v1493_v43 = vadd.f32 %v20386_v5, %v1315_v15 }
 0xdd1   : > { %v9021_v34 = vsel %vm20377_vm1, %v9020_v44, %v9019_v26  ;;  %v8780_v40 = vpop.permute.xlu2 %8779  ;;  %v8998_v22 = vsel %vm20381_vm3, %v8997_v62, %v8996_v53 }
 0xdd2   : > { %v8777_v20 = vpop.permute.xlu0 %8776  ;;  %v9023_v63 = vsel %vm4071_vm7, %v9022_v1, %v9021_v34  ;;  %vm20384_vm7 = vmmov %vm20381_vm3 }
 0xdd3   : > { %v9025_v25 = vsel %vm4075_vm8, %v9024_v54, %v9023_v63  ;;  %v9028_v12 = vperm.slane %v8777_v20, %v14691_v45  ;;  %vm20385_vm8 = vmmov %vm20383_vm5 }
 0xdd6   : > { %v8774_v9 = vpop.permute.xlu1 %8773 }
 0xdd7   : > { %v9026_v24 = vperm.slane %v8774_v9, %v14716_v3  ;;  %v8999_v3 = vperm.slane %v18338_v14, %v14740_v52  ;;  %v9030_v14 = vperm.slane %v8780_v40, %v14740_v52  ;;  %v9005_v52 = vperm.slane %v18344_v31, %v19904_v49  ;;  %v20388_v31 = vld [vmem:[#allocation226_spill] sm:$0xff] }
 0xdd9   : > { %v9027_v16 = vsel %vm20382_vm4, %v9026_v24, %v9025_v25  ;;  %v9000_v50 = vsel %vm20383_vm5, %v8999_v3, %v8998_v22  ;;  %v8789_v8 = vpop.permute.xlu2 %8788 }
 0xdda   : > { %v9029_v47 = vsel %vm20384_vm7, %v9028_v12, %v9027_v16  ;;  %v8786_v45 = vpop.permute.xlu0 %8785  ;;  %v9002_v18 = vsel %vm4091_vm12, %v9001_v42, %v9000_v50  ;;  %v9036_v55 = vperm.slane %v8789_v8, %v19904_v49 }
 0xddb   : > { %v9031_v61 = vsel %vm20385_vm8, %v9030_v14, %v9029_v47  ;;  %v9004_v33 = vsel %vm4095_vm13, %v9003_v46, %v9002_v18 }
 0xddc   : > { %v9006_v56 = vsel %vm4099_vm14, %v9005_v52, %v9004_v33 }
 0xdde   : > { %v8783_v48 = vpop.permute.xlu1 %8782 }
 0xddf   : > { %v9032_v30 = vperm.slane %v8783_v48, %v19899_v17  ;;  %v9034_v17 = vperm.slane %v8786_v45, %v19895_v59  ;;  %v1506_v59 = vadd.f32 %v20388_v31, %v1316_v32 }
 0xde1   : > { %v9033_v10 = vsel %vm4091_vm12, %v9032_v30, %v9031_v61  ;;  %vm20389_vm12 = vcmask 1046534  }
 0xde2   : > { %v9035_v39 = vsel %vm4095_vm13, %v9034_v17, %v9033_v10  ;;  %v9043_v29 = vsel %vm20389_vm12, %v9006_v56, %v18308_v23  ;;  %vm20391_vm13 = vcmask 1047559  }
 0xde3   : > { %v9037_v4 = vsel %vm4099_vm14, %v9036_v55, %v9035_v39 }
 0xde4   : > { %v9044_v28 = vsel %vm20391_vm13, %v9037_v4, %v9043_v29 }
 0xde5   : > { %9046 = vst [vmem:[%s12722_s2] sm:$0xff] %v9044_v28 }
 0xe2b   : > { %v8214_v21 = vpop.f32.mrf.mxu1 }
 0xe2c   : > { %v8215_v58 = vadd.f32 %v8214_v21, %v1493_v43  ;;  %v8253_v37 = vpop.f32.mrf.mxu0 }
 0xe2e   : > { %v8257_v2 = vmul.f32 0.5, %v8215_v58 }
 0xe30   : > { %11667 = vtanh.f32 %v8257_v2 }
 0xe31   : > { %v8227_v35 = vpop.f32.mrf.mxu2 }
 0xe32   : > { %v8228_v49 = vadd.f32 %v8227_v35, %v1506_v59  ;;  %v8240_v44 = vpop.f32.mrf.mxu3 }
 0xe33   : > { %v8241_v13 = vadd.f32 %v8240_v44, %v1519_v38  ;;  %v8216_v9 = vpop.f32.mrf.mxu1 }
 0xe34   : > { %12125 = shalt.err (!%p12122_p5)
}
 0xe35   : > { %11102 = dma.vmem_to_hbm [thread:$0]  (%p12608_p13), %s9084_s24, 128, %s9086_s3, %s9053_s4   ;;  %v8261_v19 = vmul.f32 0.5, %v8228_v49  ;;  %v8255_v23 = vpop.f32.mrf.mxu0  ;;  %v8254_v0 = vadd.f32 %v8253_v37, %v1532_v27  ;;  %11669 = vtanh.f32 %v8241_v13  ;;  %v943_v6 = vld [vmem:[#allocation3] sm:$0xff] }
 0xe36   : > { %v11668_v26 = vpop.eup %11667  ;;  %s20392_s14 = sld [smem:[#allocation270_spill]]  ;;  %s9067_s6 = sshll.u32 %s12720_s13, 4  ;;  %s9068_s6 = int_to_ptr.vmem [resolvable:$true] %s9067_s6 }
 0xe37   : > { %11671 = vtanh.f32 %v8261_v19  ;;  %v8259_v7 = vadd.f32 1.0, %v11668_v26  ;;  %v8266_v41 = vmul.f32 0.5, %v8254_v0  ;;  %s9048_s0 = scalar_lea.sflag [#allocation6], %s12666_s17 }
 0xe39   : > { %v8260_v34 = vmul.f32 0.5, %v8259_v7  ;;  %v8229_v1 = vpop.f32.mrf.mxu2  ;;  %11673 = vtanh.f32 %v8266_v41 }
 0xe3a   : > { %v8242_v20 = vpop.f32.mrf.mxu3 }
 0xe3b   : > { %v11670_v60 = vpop.eup %11669 }
 0xe3c   : > { %v8271_v63 = vmul.f32 %v11670_v60, %v8260_v34  ;;  %s9065_s9 = scalar_lea.hbm %s20392_s14, %s10497_s15  ;;  %s12146_s15 = scalar_lea.hbm %s20392_s14, 112 }
 0xe3d   : > { %v11672_v62 = vpop.eup %11671  ;;  %s9069_s19 = sshll.u32 %s9065_s9, 4  ;;  %s9070_s19 = int_to_ptr.hbm [resolvable:$true] %s9069_s19 }
 0xe3e   : > { %v8263_v24 = vadd.f32 1.0, %v11672_v62  ;;  %s12140_s27 = sshra.s32 %s9070_s19, 4  ;;  %s12141_s27 = int_to_ptr.hbm [resolvable:$true] %s12140_s27 }
 0xe3f   : > { %v11674_v51 = vpop.eup %11673  ;;  %s12142_s21 = scalar_lea.hbm %s12141_s27, 8  ;;  %p12147_p10 = scmp.lt.s32.totalorder %s12141_s27, %s20392_s14 }
 0xe40   : > { %v8264_v54 = vmul.f32 0.5, %v8263_v24  ;;  %v8268_v25 = vadd.f32 1.0, %v11674_v51  ;;  %p12143_p11 = scmp.ne.s32.totalorder %s12141_s27, %s12142_s21  ;;  %p12148_p1 = scmp.lt.s32.totalorder %s12146_s15, %s12142_s21 }
 0xe42   : > { %v8270_v40 = vmul.f32 %v8264_v54, %v943_v6  ;;  %v8269_v22 = vmul.f32 0.5, %v8268_v25  ;;  %p12144_p7 = pnand %p12143_p11, %p12608_p13  ;;  %p12149_p9 = por %p12148_p1, %p12147_p10 }
 0xe44   : > { %v8272_v53 = vadd.f32 %v8271_v63, %v8270_v40  ;;  %p12145_p8 = pneg %p12144_p7 }
 0xe46   : > { %11675 = vtanh.f32 %v8272_v53  ;;  %8276 = vst [vmem:[#allocation3] sm:$0xff] %v8272_v53  ;;  %p12150_p3 = pnand %p12149_p9, %p12145_p8 }
 0xe4c   : > { %v11676_v16 = vpop.eup %11675 }
 0xe4d   : > { %v8274_v48 = vmul.f32 %v11676_v16, %v8269_v22 }
 0xe4f   : > { %8275 = vst [vmem:[#allocation2 + $0x8] sm:$0xff] %v8274_v48 }
 0xe50   : > { %8277 = vst [vmem:[%s12720_s13] sm:$0xff] %v8274_v48 }
 0xe51   : > { %12153 = shalt.err (!%p12150_p3)
}
 0xe52   : > { %11101 = dma.vmem_to_hbm [thread:$0]  (%p12608_p13), %s9068_s6, 128, %s9070_s19, %s9048_s0  }
 0xe53 PF: > { %s20393_s17 = sld [smem:[#allocation42_spill]]  ;;  %p11173_p12 = scmp.ge.s32.totalorder %s12284_s1, 2 }
 0xe55   : > { %p11150_p0 = pnand %p11173_p12, %p12612_p6 }
 0xe57   : > { %p11151_p2 = pneg %p11150_p0 }
 0xe59   : > { %s9097_s4 = sand.u32 1, %s20393_s17  }
 0xe5a   : > { %s9098_s18 = scalar_lea.sflag [#allocation6], %s9097_s4 }
 0xe5b   : > { %12235 = dma.done.wait (%p11151_p2), %s9098_s18, 128  }
 0xe5c   : > { %12237 = vsyncadd (%p11151_p2), %s9098_s18, 4294967168  ;;  %s9108_s23 = scalar_lea.sflag [#allocation29], %s9097_s4 }
 0xe5d   : > { %12239 = dma.done.wait (%p11151_p2), %s9108_s23, 128  }
 0xe5e   : > { %12241 = vsyncadd (%p11151_p2), %s9108_s23, 4294967168  ;;  %s50_s1 = sadd.s32 1, %s12284_s1   ;;  %s20395_s24 = sld [smem:[#allocation41_spill]] }
 0xe5f   : > { %p47_p4 = scmp.ge.s32.totalorder %s50_s1, 16   ;;  %s20396_s16 = sld [smem:[#allocation53_spill]] }
 0xe60   : > { %s20397_s0 = sld [smem:[#allocation45_spill]]  ;;  %s20401_s25 = smov %s12252_s26 }
 0xe61   : > { %s20398_s30 = sld [smem:[#allocation46_spill]]  ;;  %s20403_s27 = smov %s12260_s28 }
 0xe62   : > { %s20399_s18 = sld [smem:[#allocation50_spill]]  ;;  %s20404_s28 = smov %s12264_s29 }
 0xe63   : > { %s20400_s19 = sld [smem:[#allocation51_spill]]  ;;  %s20405_s29 = smov %s12625_s8 }
 0xe64   :  { %49 = sbr.rel (!%p47_p4) target bundleno = 40 (0x28), region = 247 }
 0xe65   : > { %s20402_s26 = smov %s20396_s16 }
 0xe69   :  { %9114 = vsyncpa [#allocation5], 1 }
 0xe6a   :  { %9116 = vsyncpa [#allocation5 + $0x1], 1 }
 0xe6b   :  { %9117 = vsyncpa [#allocation8], 1 }
 0xe6c   :  { %9119 = vsyncpa [#allocation8 + $0x1], 1 }
 0xe6d   :  { %9120 = vsyncpa [#allocation11], 1 }
 0xe6e   :  { %9122 = vsyncpa [#allocation11 + $0x1], 1 }
 0xe6f   :  { %9123 = vsyncpa [#allocation14], 1 }
 0xe70   :  { %9125 = vsyncpa [#allocation14 + $0x1], 1 }
 0xe71   :  { %9126 = vsyncpa [#allocation17], 1 }
 0xe72   :  { %9127 = vsyncpa [#allocation20], 1 }
 0xe73   :  { %9128 = vsyncpa [#allocation23], 1 }
 0xe74   :  { %9129 = vsyncpa [#allocation26], 1 }
 0xe75   :  { %9130 = vsyncpa [#allocation6], 1 }
 0xe76   :  { %9132 = vsyncpa [#allocation6 + $0x1], 1 }
 0xe77   :  { %9133 = vsyncpa [#allocation29], 1 }
 0xe78   :  { %9135 = vsyncpa [#allocation29 + $0x1], 1 }

</bundles_post_ra>
